<compile_context>
chip_gen: v7x
topology: tpu7x:2x2x1
jax: 0.10.0
libtpu: 0.0.40
codegen_flags: <defaults>
</compile_context>

<pallas_src>
import math

import jax
import jax.numpy as jnp
from jax.experimental import pallas as pl
from jax.experimental.pallas import tpu as pltpu  # noqa: F401  (TPU backend)


# ------------------------------------------------------------------
# Pallas kernels (single invocation, whole operands resident in VMEM)
# ------------------------------------------------------------------

def _make_front_kernel(B, H, W, C, Cmid):
    """SE MLP + channel scale + conv1 3x3 (+ReLU, padded out) + BatchNorm of x."""

    def kernel(xp_ref, sw1_ref, sb1_ref, sw2_ref, sb2_ref, w1_ref,
               y1p_ref, xn_ref):
        f32 = jnp.float32
        xp = xp_ref[...]                                   # (B, H+2, W+2, C) f32
        x = xp[:, 1:H + 1, 1:W + 1, :]                     # (B, H, W, C)

        # ---- channel attention (AdaptiveAvgPool2d(1) -> conv1x1 -> ReLU ->
        #      conv1x1 -> sigmoid), fused in this launch ----
        pooled = jnp.mean(x, axis=(1, 2))                  # (B, C)
        h = jnp.dot(pooled, sw1_ref[...], preferred_element_type=f32) + sb1_ref[...]
        h = jnp.maximum(h, 0.0)
        logits = jnp.dot(h, sw2_ref[...], preferred_element_type=f32) + sb2_ref[...]
        s = pl.reciprocal(1.0 + jnp.exp(-logits), approx=True)   # sigmoid on EUP
        sp = xp * s[:, None, None, :]                      # scaled (padded) input, f32

        # ---- conv1 3x3: in-kernel im2col as 9 shifted matmuls, f32 accumulate ----
        acc = jnp.zeros((B * H * W, Cmid), f32)
        for k in range(9):
            kh, kw = k // 3, k % 3
            patch = sp[:, kh:kh + H, kw:kw + W, :].reshape(B * H * W, C)
            acc = acc + jnp.dot(patch.astype(jnp.bfloat16), w1_ref[k],
                                preferred_element_type=f32)
        y1 = jnp.maximum(acc, 0.0).reshape(B, H, W, Cmid)  # fused ReLU

        # Emit conv1 output already zero-padded so the tail conv needs no XLA pad.
        y1p_ref[...] = jnp.zeros_like(y1p_ref)
        y1p_ref[:, 1:H + 1, 1:W + 1, :] = y1

        # ---- BatchNorm2d (training-mode batch stats, affine = identity) ----
        mean = jnp.mean(x, axis=(0, 1, 2), keepdims=True)
        var = jnp.mean(jnp.square(x - mean), axis=(0, 1, 2), keepdims=True)
        xn_ref[...] = (x - mean) * jax.lax.rsqrt(var + 1e-5)

    return kernel


def _spectral_kernel(yri_ref, w1_ref, w2_ref, o_ref):
    # Block-complex mixing: [Yr|Yi] @ [[W1r,W1i],[-W1i,W1r]] -> ReLU ->
    #                        @ [[W2r,W2i],[-W2i,W2r]].
    # 2 MXU pushes instead of 8; K and N are 2C = 128 (lane-dense operands/output).
    f32 = jnp.float32
    h = jnp.dot(yri_ref[...].astype(jnp.bfloat16), w1_ref[...],
                preferred_element_type=f32)
    h = jnp.maximum(h, 0.0)                                # ReLU(real) | ReLU(imag)
    o_ref[...] = jnp.dot(h.astype(jnp.bfloat16), w2_ref[...],
                         preferred_element_type=f32)


def _make_tail_kernel(B, H, W, Cmid, C):
    """conv2 3x3 (in-kernel im2col) + channel-max + tanh combine + residual."""

    def kernel(y1p_ref, w2_ref, y2_ref, x_ref, o_ref):
        f32 = jnp.float32
        xv = x_ref[...]                                    # load before store (o aliases x)
        y2 = y2_ref[...]
        y1p = y1p_ref[...]                                 # (B, H+2, W+2, Cmid) padded

        acc = jnp.zeros((B * H * W, C), f32)
        for k in range(9):
            kh, kw = k // 3, k % 3
            patch = y1p[:, kh:kh + H, kw:kw + W, :].reshape(B * H * W, Cmid)
            acc = acc + jnp.dot(patch.astype(jnp.bfloat16), w2_ref[k],
                                preferred_element_type=f32)

        ymax = jnp.maximum(jnp.max(acc, axis=-1, keepdims=True), 1.0)
        t = jnp.tanh(y2 * pl.reciprocal(ymax, approx=True))   # EUP recip + tanh
        o_ref[...] = acc + ymax * t + xv

    return kernel


# ------------------------------------------------------------------
# Pallas wrappers
# ------------------------------------------------------------------

def pallas_front(xp, prep, B, H, W, C, Cmid):
    kern = _make_front_kernel(B, H, W, C, Cmid)
    return pl.pallas_call(
        kern,
        out_shape=(jax.ShapeDtypeStruct((B, H + 2, W + 2, Cmid), jnp.float32),
                   jax.ShapeDtypeStruct((B, H, W, C), jnp.float32)),
    )(xp, prep["se_w1"], prep["se_b1"], prep["se_w2"], prep["se_b2"],
      prep["w1_taps"])


def pallas_spectral(yri, w1_blk, w2_blk):
    M = yri.shape[0]
    Nout = w2_blk.shape[-1]
    return pl.pallas_call(
        _spectral_kernel,
        out_shape=jax.ShapeDtypeStruct((M, Nout), jnp.float32),
    )(yri, w1_blk, w2_blk)


def pallas_tail(y1p, w2_taps, y2_rows, x_rows, B, H, W, Cmid, C):
    kern = _make_tail_kernel(B, H, W, Cmid, C)
    return pl.pallas_call(
        kern,
        out_shape=jax.ShapeDtypeStruct((B * H * W, C), jnp.float32),
        input_output_aliases={3: 0},          # output reuses the residual (x) buffer
    )(y1p, w2_taps, y2_rows, x_rows)


# ------------------------------------------------------------------
# Parameters (deterministic init, mirroring the PyTorch module's parameters)
# ------------------------------------------------------------------

def init_params(key, C, ratio_spatial, ratio_freq):
    ks = jax.random.split(key, 8)

    def u(k, shape, fan_in):
        b = 1.0 / math.sqrt(fan_in)
        return jax.random.uniform(k, shape, jnp.float32, -b, b)

    Cr = C // 3
    Cm = C * ratio_spatial
    Cf = C * ratio_freq
    return {
        "ca1_w": u(ks[0], (Cr, C, 1, 1), C),
        "ca1_b": u(ks[1], (Cr,), C),
        "ca2_w": u(ks[2], (C, Cr, 1, 1), Cr),
        "ca2_b": u(ks[3], (C,), Cr),
        "conv1_w": u(ks[4], (Cm, C, 3, 3), C * 9),
        "conv2_w": u(ks[5], (C, Cm, 3, 3), Cm * 9),
        "w1": u(ks[6], (2, C, Cf), C),
        "w2": u(ks[7], (2, Cf, C), Cf),
    }


def prepare_params(p):
    """Pack / pre-cast weights once, outside the jitted forward."""
    Cr, C = p["ca1_w"].shape[0], p["ca1_w"].shape[1]
    Cmid = p["conv1_w"].shape[0]
    bf16 = jnp.bfloat16

    # conv taps: (Cout, Cin, 3, 3) -> (9, Cin, Cout) bf16 (one GEMM weight per tap)
    w1_taps = jnp.transpose(p["conv1_w"].reshape(Cmid, C, 9), (2, 1, 0)).astype(bf16)
    w2_taps = jnp.transpose(p["conv2_w"].reshape(C, Cmid, 9), (2, 1, 0)).astype(bf16)

    # block-complex spectral weights: (2K, 2N) = [[Wr, Wi], [-Wi, Wr]]
    def blockify(w):
        wr, wi = w[0], w[1]
        return jnp.concatenate(
            [jnp.concatenate([wr, wi], axis=1),
             jnp.concatenate([-wi, wr], axis=1)], axis=0).astype(bf16)

    return {
        # SE weights stay f32 (tiny; avoids pointless bf16 elementwise on v5e)
        "se_w1": p["ca1_w"].reshape(Cr, C).T,
        "se_b1": p["ca1_b"].reshape(1, Cr),
        "se_w2": p["ca2_w"].reshape(C, Cr).T,
        "se_b2": p["ca2_b"].reshape(1, C),
        "w1_taps": w1_taps,
        "w2_taps": w2_taps,
        "w1_blk": blockify(p["w1"]),
        "w2_blk": blockify(p["w2"]),
    }


# ------------------------------------------------------------------
# Basic_block forward (NCHW in / NCHW out, like the PyTorch module)
# ------------------------------------------------------------------

def basic_block_forward(x_nchw, prep):
    B, C, H, W = x_nchw.shape
    Cmid = prep["w1_taps"].shape[-1]
    Cspec = prep["w2_blk"].shape[-1] // 2

    # single NCHW -> NHWC transpose; everything downstream stays rows/NHWC
    x_nhwc = jnp.transpose(x_nchw, (0, 2, 3, 1))
    xp = jnp.pad(x_nhwc, ((0, 0), (1, 1), (1, 1), (0, 0)))

    # kernel 1: SE + scale + conv1(+ReLU, padded output) + BatchNorm(x)
    y1p, xn = pallas_front(xp, prep, B, H, W, C, Cmid)

    # spectral branch: FFTs have no Pallas TPU primitive -> jnp.fft on NHWC axes;
    # the channel mixing is one fused lane-dense block-complex kernel.
    # TODO(synk): rfft2/irfft2 stay in XLA.
    Y = jnp.fft.rfft2(xn, axes=(1, 2))                       # (B, H, Wf, C) complex64
    Wf = Y.shape[2]
    yri = jnp.concatenate([jnp.real(Y), jnp.imag(Y)], axis=-1)
    yri = yri.reshape(B * H * Wf, 2 * C)
    mixed = pallas_spectral(yri, prep["w1_blk"], prep["w2_blk"])  # (M, 2*Cspec)
    Y2 = (mixed[:, :Cspec] + 1j * mixed[:, Cspec:]).reshape(B, H, Wf, Cspec)
    y2 = jnp.fft.irfft2(Y2, s=(H, W), axes=(1, 2))           # (B, H, W, C)

    # kernel 3: conv2 + channel-max + tanh combine + residual (aliased output)
    out_rows = pallas_tail(y1p, prep["w2_taps"],
                           y2.reshape(B * H * W, C),
                           x_nhwc.reshape(B * H * W, C),
                           B, H, W, Cmid, C)
    return jnp.transpose(out_rows.reshape(B, H, W, C), (0, 3, 1, 2))


# ------------------------------------------------------------------
# Pure-JAX f32 reference (mirrors the PyTorch forward) for validation
# ------------------------------------------------------------------

def reference_forward(x, p):
    B, C, H, W = x.shape
    Cr = p["ca1_w"].shape[0]

    pooled = jnp.mean(x, axis=(2, 3))
    h = jnp.maximum(pooled @ p["ca1_w"].reshape(Cr, C).T + p["ca1_b"], 0.0)
    s = jax.nn.sigmoid(h @ p["ca2_w"].reshape(C, Cr).T + p["ca2_b"])
    y = x * s[:, :, None, None]

    dn = ("NCHW", "OIHW", "NCHW")
    y = jax.lax.conv_general_dilated(y, p["conv1_w"], (1, 1), "SAME",
                                     dimension_numbers=dn)
    y = jnp.maximum(y, 0.0)
    y1 = jax.lax.conv_general_dilated(y, p["conv2_w"], (1, 1), "SAME",
                                      dimension_numbers=dn)
    y1_max = jnp.maximum(jnp.max(y1, axis=1, keepdims=True), 1.0)

    mean = jnp.mean(x, axis=(0, 2, 3), keepdims=True)
    var = jnp.var(x, axis=(0, 2, 3), keepdims=True)
    xn = (x - mean) / jnp.sqrt(var + 1e-5)
    Yc = jnp.transpose(jnp.fft.rfft2(xn, norm="backward"), (0, 2, 3, 1))
    W1c = p["w1"][0] + 1j * p["w1"][1]
    W2c = p["w2"][0] + 1j * p["w2"][1]
    Y1c = Yc @ W1c
    Y1c = jnp.maximum(Y1c.real, 0.0) + 1j * jnp.maximum(Y1c.imag, 0.0)
    Y2c = jnp.transpose(Y1c @ W2c, (0, 3, 1, 2))
    y2 = jnp.fft.irfft2(Y2c, s=(H, W), norm="backward")
    y2 = y1_max * jnp.tanh(y2 / y1_max)
    return y1 + y2 + x


# ------------------------------------------------------------------
# Main
# ------------------------------------------------------------------

if __name__ == "__main__":
    B, C, H, W = 2, 64, 16, 16
    ratio_spatial, ratio_freq = 1, 1

    key = jax.random.PRNGKey(0)
    kx, kp = jax.random.split(key)
    x = jax.random.normal(kx, (B, C, H, W), jnp.float32)

    params = init_params(kp, C, ratio_spatial, ratio_freq)
    prep = prepare_params(params)                 # weights packed / bf16-cast once

    fwd = jax.jit(basic_block_forward)
    out = jax.block_until_ready(fwd(x, prep))

    assert out.shape == x.shape, (out.shape, x.shape)
    assert bool(jnp.all(jnp.isfinite(out)))

    # numerical check against the f32 reference (bf16 MXU operands -> loose tol)
    ref = jax.block_until_ready(jax.jit(reference_forward)(x, params))
    err = float(jnp.max(jnp.abs(out - ref)) / (jnp.max(jnp.abs(ref)) + 1e-6))
    assert err < 5e-2, f"relative-to-max error too large: {err}"

    print("KERNEL_OK")
</pallas_src>

<mosaic_0001>
module attributes {stable_mosaic.version = 11 : i64} {
  func.func @kernel(%arg0: memref<2x18x18x64xf32, #tpu.memory_space<vmem>>, %arg1: memref<64x21xf32, #tpu.memory_space<vmem>>, %arg2: memref<1x21xf32, #tpu.memory_space<vmem>>, %arg3: memref<21x64xf32, #tpu.memory_space<vmem>>, %arg4: memref<1x64xf32, #tpu.memory_space<vmem>>, %arg5: memref<9x64x64xbf16, #tpu.memory_space<vmem>>, %arg6: memref<2x18x18x64xf32, #tpu.memory_space<vmem>>, %arg7: memref<2x16x16x64xf32, #tpu.memory_space<vmem>>) attributes {dimension_semantics = [], scalar_prefetch = 0 : i64, scratch_operands = 0 : i64, tpu.core_type = #tpu.core_type<tc>} {
    %c0 = arith.constant 0 : index
    %c0_0 = arith.constant 0 : index
    %c0_1 = arith.constant 0 : index
    %c0_2 = arith.constant 0 : index
    %0 = vector.load %arg0[%c0, %c0_0, %c0_1, %c0_2] : memref<2x18x18x64xf32, #tpu.memory_space<vmem>>, vector<2x18x18x64xf32>
    %1 = vector.extract_strided_slice %0 {offsets = [0, 1, 1, 0], sizes = [2, 16, 16, 64], strides = [1, 1, 1, 1]} : vector<2x18x18x64xf32> to vector<2x16x16x64xf32>
    %cst = arith.constant dense<0.000000e+00> : vector<2x64xf32>
    %2 = vector.multi_reduction <add>, %1, %cst [1, 2] : vector<2x16x16x64xf32> to vector<2x64xf32>
    %cst_3 = arith.constant 2.560000e+02 : f32
    %3 = vector.broadcast %cst_3 : f32 to vector<2x64xf32>
    %4 = arith.divf %2, %3 : vector<2x64xf32>
    %c0_4 = arith.constant 0 : index
    %c0_5 = arith.constant 0 : index
    %5 = vector.load %arg1[%c0_4, %c0_5] : memref<64x21xf32, #tpu.memory_space<vmem>>, vector<64x21xf32>
    %cst_6 = arith.constant dense<0.000000e+00> : vector<2x21xf32>
    %6 = tpu.matmul %4, %5, %cst_6 {dimension_numbers = #tpu.dot_dimension_numbers<[1], [0], [0], [1], [0, 0, 1, 1], [], []>} : vector<2x64xf32>, vector<64x21xf32>, vector<2x21xf32> -> vector<2x21xf32>
    %c0_7 = arith.constant 0 : index
    %c0_8 = arith.constant 0 : index
    %7 = vector.load %arg2[%c0_7, %c0_8] : memref<1x21xf32, #tpu.memory_space<vmem>>, vector<1x21xf32>
    %8 = vector.broadcast %7 : vector<1x21xf32> to vector<2x21xf32>
    %9 = arith.addf %6, %8 : vector<2x21xf32>
    %cst_9 = arith.constant 0.000000e+00 : f32
    %10 = vector.broadcast %cst_9 : f32 to vector<2x21xf32>
    %11 = arith.maximumf %9, %10 : vector<2x21xf32>
    %c0_10 = arith.constant 0 : index
    %c0_11 = arith.constant 0 : index
    %12 = vector.load %arg3[%c0_10, %c0_11] : memref<21x64xf32, #tpu.memory_space<vmem>>, vector<21x64xf32>
    %cst_12 = arith.constant dense<0.000000e+00> : vector<2x64xf32>
    %13 = tpu.matmul %11, %12, %cst_12 {dimension_numbers = #tpu.dot_dimension_numbers<[1], [0], [0], [1], [0, 0, 1, 1], [], []>} : vector<2x21xf32>, vector<21x64xf32>, vector<2x64xf32> -> vector<2x64xf32>
    %c0_13 = arith.constant 0 : index
    %c0_14 = arith.constant 0 : index
    %14 = vector.load %arg4[%c0_13, %c0_14] : memref<1x64xf32, #tpu.memory_space<vmem>>, vector<1x64xf32>
    %15 = vector.broadcast %14 : vector<1x64xf32> to vector<2x64xf32>
    %16 = arith.addf %13, %15 : vector<2x64xf32>
    %cst_15 = arith.constant 0.000000e+00 : f32
    %17 = vector.broadcast %cst_15 : f32 to vector<2x64xf32>
    %18 = arith.subf %17, %16 : vector<2x64xf32>
    %19 = math.exp %18 : vector<2x64xf32>
    %cst_16 = arith.constant 1.000000e+00 : f32
    %20 = vector.broadcast %cst_16 : f32 to vector<2x64xf32>
    %21 = arith.addf %20, %19 : vector<2x64xf32>
    %22 = tpu.reciprocal %21 {approx = true} : vector<2x64xf32> -> vector<2x64xf32>
    %23 = vector.shape_cast %22 : vector<2x64xf32> to vector<2x1x1x64xf32>
    %24 = vector.broadcast %23 : vector<2x1x1x64xf32> to vector<2x18x18x64xf32>
    %25 = arith.mulf %0, %24 : vector<2x18x18x64xf32>
    %cst_17 = arith.constant 0.000000e+00 : f32
    %26 = vector.broadcast %cst_17 : f32 to vector<512x64xf32>
    %27 = vector.extract_strided_slice %25 {offsets = [0, 0, 0, 0], sizes = [2, 16, 16, 64], strides = [1, 1, 1, 1]} : vector<2x18x18x64xf32> to vector<2x16x16x64xf32>
    %28 = vector.shape_cast %27 : vector<2x16x16x64xf32> to vector<512x64xf32>
    %29 = arith.truncf %28 : vector<512x64xf32> to vector<512x64xbf16>
    %c0_18 = arith.constant 0 : index
    %c0_19 = arith.constant 0 : index
    %c0_20 = arith.constant 0 : index
    %30 = vector.load %arg5[%c0_18, %c0_19, %c0_20] : memref<9x64x64xbf16, #tpu.memory_space<vmem>>, vector<1x64x64xbf16>
    %31 = vector.shape_cast %30 : vector<1x64x64xbf16> to vector<64x64xbf16>
    %cst_21 = arith.constant dense<0.000000e+00> : vector<512x64xf32>
    %32 = tpu.matmul %29, %31, %cst_21 {dimension_numbers = #tpu.dot_dimension_numbers<[1], [0], [0], [1], [0, 0, 1, 1], [], []>} : vector<512x64xbf16>, vector<64x64xbf16>, vector<512x64xf32> -> vector<512x64xf32>
    %33 = arith.addf %26, %32 : vector<512x64xf32>
    %34 = vector.extract_strided_slice %25 {offsets = [0, 0, 1, 0], sizes = [2, 16, 16, 64], strides = [1, 1, 1, 1]} : vector<2x18x18x64xf32> to vector<2x16x16x64xf32>
    %35 = vector.shape_cast %34 : vector<2x16x16x64xf32> to vector<512x64xf32>
    %36 = arith.truncf %35 : vector<512x64xf32> to vector<512x64xbf16>
    %c1 = arith.constant 1 : index
    %c0_22 = arith.constant 0 : index
    %c0_23 = arith.constant 0 : index
    %37 = vector.load %arg5[%c1, %c0_22, %c0_23] : memref<9x64x64xbf16, #tpu.memory_space<vmem>>, vector<1x64x64xbf16>
    %38 = vector.shape_cast %37 : vector<1x64x64xbf16> to vector<64x64xbf16>
    %cst_24 = arith.constant dense<0.000000e+00> : vector<512x64xf32>
    %39 = tpu.matmul %36, %38, %cst_24 {dimension_numbers = #tpu.dot_dimension_numbers<[1], [0], [0], [1], [0, 0, 1, 1], [], []>} : vector<512x64xbf16>, vector<64x64xbf16>, vector<512x64xf32> -> vector<512x64xf32>
    %40 = arith.addf %33, %39 : vector<512x64xf32>
    %41 = vector.extract_strided_slice %25 {offsets = [0, 0, 2, 0], sizes = [2, 16, 16, 64], strides = [1, 1, 1, 1]} : vector<2x18x18x64xf32> to vector<2x16x16x64xf32>
    %42 = vector.shape_cast %41 : vector<2x16x16x64xf32> to vector<512x64xf32>
    %43 = arith.truncf %42 : vector<512x64xf32> to vector<512x64xbf16>
    %c2 = arith.constant 2 : index
    %c0_25 = arith.constant 0 : index
    %c0_26 = arith.constant 0 : index
    %44 = vector.load %arg5[%c2, %c0_25, %c0_26] : memref<9x64x64xbf16, #tpu.memory_space<vmem>>, vector<1x64x64xbf16>
    %45 = vector.shape_cast %44 : vector<1x64x64xbf16> to vector<64x64xbf16>
    %cst_27 = arith.constant dense<0.000000e+00> : vector<512x64xf32>
    %46 = tpu.matmul %43, %45, %cst_27 {dimension_numbers = #tpu.dot_dimension_numbers<[1], [0], [0], [1], [0, 0, 1, 1], [], []>} : vector<512x64xbf16>, vector<64x64xbf16>, vector<512x64xf32> -> vector<512x64xf32>
    %47 = arith.addf %40, %46 : vector<512x64xf32>
    %48 = vector.extract_strided_slice %25 {offsets = [0, 1, 0, 0], sizes = [2, 16, 16, 64], strides = [1, 1, 1, 1]} : vector<2x18x18x64xf32> to vector<2x16x16x64xf32>
    %49 = vector.shape_cast %48 : vector<2x16x16x64xf32> to vector<512x64xf32>
    %50 = arith.truncf %49 : vector<512x64xf32> to vector<512x64xbf16>
    %c3 = arith.constant 3 : index
    %c0_28 = arith.constant 0 : index
    %c0_29 = arith.constant 0 : index
    %51 = vector.load %arg5[%c3, %c0_28, %c0_29] : memref<9x64x64xbf16, #tpu.memory_space<vmem>>, vector<1x64x64xbf16>
    %52 = vector.shape_cast %51 : vector<1x64x64xbf16> to vector<64x64xbf16>
    %cst_30 = arith.constant dense<0.000000e+00> : vector<512x64xf32>
    %53 = tpu.matmul %50, %52, %cst_30 {dimension_numbers = #tpu.dot_dimension_numbers<[1], [0], [0], [1], [0, 0, 1, 1], [], []>} : vector<512x64xbf16>, vector<64x64xbf16>, vector<512x64xf32> -> vector<512x64xf32>
    %54 = arith.addf %47, %53 : vector<512x64xf32>
    %55 = vector.extract_strided_slice %25 {offsets = [0, 1, 1, 0], sizes = [2, 16, 16, 64], strides = [1, 1, 1, 1]} : vector<2x18x18x64xf32> to vector<2x16x16x64xf32>
    %56 = vector.shape_cast %55 : vector<2x16x16x64xf32> to vector<512x64xf32>
    %57 = arith.truncf %56 : vector<512x64xf32> to vector<512x64xbf16>
    %c4 = arith.constant 4 : index
    %c0_31 = arith.constant 0 : index
    %c0_32 = arith.constant 0 : index
    %58 = vector.load %arg5[%c4, %c0_31, %c0_32] : memref<9x64x64xbf16, #tpu.memory_space<vmem>>, vector<1x64x64xbf16>
    %59 = vector.shape_cast %58 : vector<1x64x64xbf16> to vector<64x64xbf16>
    %cst_33 = arith.constant dense<0.000000e+00> : vector<512x64xf32>
    %60 = tpu.matmul %57, %59, %cst_33 {dimension_numbers = #tpu.dot_dimension_numbers<[1], [0], [0], [1], [0, 0, 1, 1], [], []>} : vector<512x64xbf16>, vector<64x64xbf16>, vector<512x64xf32> -> vector<512x64xf32>
    %61 = arith.addf %54, %60 : vector<512x64xf32>
    %62 = vector.extract_strided_slice %25 {offsets = [0, 1, 2, 0], sizes = [2, 16, 16, 64], strides = [1, 1, 1, 1]} : vector<2x18x18x64xf32> to vector<2x16x16x64xf32>
    %63 = vector.shape_cast %62 : vector<2x16x16x64xf32> to vector<512x64xf32>
    %64 = arith.truncf %63 : vector<512x64xf32> to vector<512x64xbf16>
    %c5 = arith.constant 5 : index
    %c0_34 = arith.constant 0 : index
    %c0_35 = arith.constant 0 : index
    %65 = vector.load %arg5[%c5, %c0_34, %c0_35] : memref<9x64x64xbf16, #tpu.memory_space<vmem>>, vector<1x64x64xbf16>
    %66 = vector.shape_cast %65 : vector<1x64x64xbf16> to vector<64x64xbf16>
    %cst_36 = arith.constant dense<0.000000e+00> : vector<512x64xf32>
    %67 = tpu.matmul %64, %66, %cst_36 {dimension_numbers = #tpu.dot_dimension_numbers<[1], [0], [0], [1], [0, 0, 1, 1], [], []>} : vector<512x64xbf16>, vector<64x64xbf16>, vector<512x64xf32> -> vector<512x64xf32>
    %68 = arith.addf %61, %67 : vector<512x64xf32>
    %69 = vector.extract_strided_slice %25 {offsets = [0, 2, 0, 0], sizes = [2, 16, 16, 64], strides = [1, 1, 1, 1]} : vector<2x18x18x64xf32> to vector<2x16x16x64xf32>
    %70 = vector.shape_cast %69 : vector<2x16x16x64xf32> to vector<512x64xf32>
    %71 = arith.truncf %70 : vector<512x64xf32> to vector<512x64xbf16>
    %c6 = arith.constant 6 : index
    %c0_37 = arith.constant 0 : index
    %c0_38 = arith.constant 0 : index
    %72 = vector.load %arg5[%c6, %c0_37, %c0_38] : memref<9x64x64xbf16, #tpu.memory_space<vmem>>, vector<1x64x64xbf16>
    %73 = vector.shape_cast %72 : vector<1x64x64xbf16> to vector<64x64xbf16>
    %cst_39 = arith.constant dense<0.000000e+00> : vector<512x64xf32>
    %74 = tpu.matmul %71, %73, %cst_39 {dimension_numbers = #tpu.dot_dimension_numbers<[1], [0], [0], [1], [0, 0, 1, 1], [], []>} : vector<512x64xbf16>, vector<64x64xbf16>, vector<512x64xf32> -> vector<512x64xf32>
    %75 = arith.addf %68, %74 : vector<512x64xf32>
    %76 = vector.extract_strided_slice %25 {offsets = [0, 2, 1, 0], sizes = [2, 16, 16, 64], strides = [1, 1, 1, 1]} : vector<2x18x18x64xf32> to vector<2x16x16x64xf32>
    %77 = vector.shape_cast %76 : vector<2x16x16x64xf32> to vector<512x64xf32>
    %78 = arith.truncf %77 : vector<512x64xf32> to vector<512x64xbf16>
    %c7 = arith.constant 7 : index
    %c0_40 = arith.constant 0 : index
    %c0_41 = arith.constant 0 : index
    %79 = vector.load %arg5[%c7, %c0_40, %c0_41] : memref<9x64x64xbf16, #tpu.memory_space<vmem>>, vector<1x64x64xbf16>
    %80 = vector.shape_cast %79 : vector<1x64x64xbf16> to vector<64x64xbf16>
    %cst_42 = arith.constant dense<0.000000e+00> : vector<512x64xf32>
    %81 = tpu.matmul %78, %80, %cst_42 {dimension_numbers = #tpu.dot_dimension_numbers<[1], [0], [0], [1], [0, 0, 1, 1], [], []>} : vector<512x64xbf16>, vector<64x64xbf16>, vector<512x64xf32> -> vector<512x64xf32>
    %82 = arith.addf %75, %81 : vector<512x64xf32>
    %83 = vector.extract_strided_slice %25 {offsets = [0, 2, 2, 0], sizes = [2, 16, 16, 64], strides = [1, 1, 1, 1]} : vector<2x18x18x64xf32> to vector<2x16x16x64xf32>
    %84 = vector.shape_cast %83 : vector<2x16x16x64xf32> to vector<512x64xf32>
    %85 = arith.truncf %84 : vector<512x64xf32> to vector<512x64xbf16>
    %c8 = arith.constant 8 : index
    %c0_43 = arith.constant 0 : index
    %c0_44 = arith.constant 0 : index
    %86 = vector.load %arg5[%c8, %c0_43, %c0_44] : memref<9x64x64xbf16, #tpu.memory_space<vmem>>, vector<1x64x64xbf16>
    %87 = vector.shape_cast %86 : vector<1x64x64xbf16> to vector<64x64xbf16>
    %cst_45 = arith.constant dense<0.000000e+00> : vector<512x64xf32>
    %88 = tpu.matmul %85, %87, %cst_45 {dimension_numbers = #tpu.dot_dimension_numbers<[1], [0], [0], [1], [0, 0, 1, 1], [], []>} : vector<512x64xbf16>, vector<64x64xbf16>, vector<512x64xf32> -> vector<512x64xf32>
    %89 = arith.addf %82, %88 : vector<512x64xf32>
    %cst_46 = arith.constant 0.000000e+00 : f32
    %90 = vector.broadcast %cst_46 : f32 to vector<512x64xf32>
    %91 = arith.maximumf %89, %90 : vector<512x64xf32>
    %92 = vector.shape_cast %91 : vector<512x64xf32> to vector<2x16x16x64xf32>
    %cst_47 = arith.constant 0.000000e+00 : f32
    %93 = vector.broadcast %cst_47 : f32 to vector<2x18x18x64xf32>
    %c0_48 = arith.constant 0 : index
    %c0_49 = arith.constant 0 : index
    %c0_50 = arith.constant 0 : index
    %c0_51 = arith.constant 0 : index
    %94 = vector.load %arg6[%c0_48, %c0_49, %c0_50, %c0_51] : memref<2x18x18x64xf32, #tpu.memory_space<vmem>>, vector<2x18x18x64xf32>
    tpu.vector_store %arg6[%c0_48, %c0_49, %c0_50, %c0_51], %93 {strides = array<i32>} : memref<2x18x18x64xf32, #tpu.memory_space<vmem>>, vector<2x18x18x64xf32>,
    %c0_52 = arith.constant 0 : index
    %c1_53 = arith.constant 1 : index
    %c1_54 = arith.constant 1 : index
    %c0_55 = arith.constant 0 : index
    %95 = vector.load %arg6[%c0_52, %c1_53, %c1_54, %c0_55] : memref<2x18x18x64xf32, #tpu.memory_space<vmem>>, vector<2x16x16x64xf32>
    tpu.vector_store %arg6[%c0_52, %c1_53, %c1_54, %c0_55], %92 {strides = array<i32>} : memref<2x18x18x64xf32, #tpu.memory_space<vmem>>, vector<2x16x16x64xf32>,
    %cst_56 = arith.constant dense<0.000000e+00> : vector<64xf32>
    %96 = vector.multi_reduction <add>, %1, %cst_56 [0, 1, 2] : vector<2x16x16x64xf32> to vector<64xf32>
    %97 = vector.shape_cast %96 : vector<64xf32> to vector<1x1x1x64xf32>
    %cst_57 = arith.constant 5.120000e+02 : f32
    %98 = vector.broadcast %cst_57 : f32 to vector<1x1x1x64xf32>
    %99 = arith.divf %97, %98 : vector<1x1x1x64xf32>
    %100 = vector.broadcast %99 : vector<1x1x1x64xf32> to vector<2x16x16x64xf32>
    %101 = arith.subf %1, %100 : vector<2x16x16x64xf32>
    %102 = arith.mulf %101, %101 : vector<2x16x16x64xf32>
    %cst_58 = arith.constant dense<0.000000e+00> : vector<64xf32>
    %103 = vector.multi_reduction <add>, %102, %cst_58 [0, 1, 2] : vector<2x16x16x64xf32> to vector<64xf32>
    %104 = vector.shape_cast %103 : vector<64xf32> to vector<1x1x1x64xf32>
    %cst_59 = arith.constant 5.120000e+02 : f32
    %105 = vector.broadcast %cst_59 : f32 to vector<1x1x1x64xf32>
    %106 = arith.divf %104, %105 : vector<1x1x1x64xf32>
    %107 = vector.broadcast %99 : vector<1x1x1x64xf32> to vector<2x16x16x64xf32>
    %108 = arith.subf %1, %107 : vector<2x16x16x64xf32>
    %cst_60 = arith.constant 9.99999974E-6 : f32
    %109 = vector.broadcast %cst_60 : f32 to vector<1x1x1x64xf32>
    %110 = arith.addf %106, %109 : vector<1x1x1x64xf32>
    %111 = math.rsqrt %110 : vector<1x1x1x64xf32>
    %112 = vector.broadcast %111 : vector<1x1x1x64xf32> to vector<2x16x16x64xf32>
    %113 = arith.mulf %108, %112 : vector<2x16x16x64xf32>
    %c0_61 = arith.constant 0 : index
    %c0_62 = arith.constant 0 : index
    %c0_63 = arith.constant 0 : index
    %c0_64 = arith.constant 0 : index
    %114 = vector.load %arg7[%c0_61, %c0_62, %c0_63, %c0_64] : memref<2x16x16x64xf32, #tpu.memory_space<vmem>>, vector<2x16x16x64xf32>
    tpu.vector_store %arg7[%c0_61, %c0_62, %c0_63, %c0_64], %113 {strides = array<i32>} : memref<2x16x16x64xf32, #tpu.memory_space<vmem>>, vector<2x16x16x64xf32>,
    return
  }
}

module attributes {stable_mosaic.version = 11 : i64} {
  func.func @_spectral_kernel(%arg0: memref<288x128xf32, #tpu.memory_space<vmem>>, %arg1: memref<128x128xbf16, #tpu.memory_space<vmem>>, %arg2: memref<128x128xbf16, #tpu.memory_space<vmem>>, %arg3: memref<288x128xf32, #tpu.memory_space<vmem>>) attributes {dimension_semantics = [], scalar_prefetch = 0 : i64, scratch_operands = 0 : i64, tpu.core_type = #tpu.core_type<tc>} {
    %c0 = arith.constant 0 : index
    %c0_0 = arith.constant 0 : index
    %0 = vector.load %arg0[%c0, %c0_0] : memref<288x128xf32, #tpu.memory_space<vmem>>, vector<288x128xf32>
    %1 = arith.truncf %0 : vector<288x128xf32> to vector<288x128xbf16>
    %c0_1 = arith.constant 0 : index
    %c0_2 = arith.constant 0 : index
    %2 = vector.load %arg1[%c0_1, %c0_2] : memref<128x128xbf16, #tpu.memory_space<vmem>>, vector<128x128xbf16>
    %cst = arith.constant dense<0.000000e+00> : vector<288x128xf32>
    %3 = tpu.matmul %1, %2, %cst {dimension_numbers = #tpu.dot_dimension_numbers<[1], [0], [0], [1], [0, 0, 1, 1], [], []>} : vector<288x128xbf16>, vector<128x128xbf16>, vector<288x128xf32> -> vector<288x128xf32>
    %cst_3 = arith.constant 0.000000e+00 : f32
    %4 = vector.broadcast %cst_3 : f32 to vector<288x128xf32>
    %5 = arith.maximumf %3, %4 : vector<288x128xf32>
    %6 = arith.truncf %5 : vector<288x128xf32> to vector<288x128xbf16>
    %c0_4 = arith.constant 0 : index
    %c0_5 = arith.constant 0 : index
    %7 = vector.load %arg2[%c0_4, %c0_5] : memref<128x128xbf16, #tpu.memory_space<vmem>>, vector<128x128xbf16>
    %cst_6 = arith.constant dense<0.000000e+00> : vector<288x128xf32>
    %8 = tpu.matmul %6, %7, %cst_6 {dimension_numbers = #tpu.dot_dimension_numbers<[1], [0], [0], [1], [0, 0, 1, 1], [], []>} : vector<288x128xbf16>, vector<128x128xbf16>, vector<288x128xf32> -> vector<288x128xf32>
    %c0_7 = arith.constant 0 : index
    %c0_8 = arith.constant 0 : index
    %9 = vector.load %arg3[%c0_7, %c0_8] : memref<288x128xf32, #tpu.memory_space<vmem>>, vector<288x128xf32>
    tpu.vector_store %arg3[%c0_7, %c0_8], %8 {strides = array<i32>} : memref<288x128xf32, #tpu.memory_space<vmem>>, vector<288x128xf32>,
    return
  }
}

module attributes {stable_mosaic.version = 11 : i64} {
  func.func @kernel(%arg0: memref<2x18x18x64xf32, #tpu.memory_space<vmem>>, %arg1: memref<9x64x64xbf16, #tpu.memory_space<vmem>>, %arg2: memref<512x64xf32, #tpu.memory_space<vmem>>, %arg3: memref<512x64xf32, #tpu.memory_space<vmem>>, %arg4: memref<512x64xf32, #tpu.memory_space<vmem>>) attributes {dimension_semantics = [], scalar_prefetch = 0 : i64, scratch_operands = 0 : i64, tpu.core_type = #tpu.core_type<tc>} {
    %c0 = arith.constant 0 : index
    %c0_0 = arith.constant 0 : index
    %0 = vector.load %arg3[%c0, %c0_0] : memref<512x64xf32, #tpu.memory_space<vmem>>, vector<512x64xf32>
    %c0_1 = arith.constant 0 : index
    %c0_2 = arith.constant 0 : index
    %1 = vector.load %arg2[%c0_1, %c0_2] : memref<512x64xf32, #tpu.memory_space<vmem>>, vector<512x64xf32>
    %c0_3 = arith.constant 0 : index
    %c0_4 = arith.constant 0 : index
    %c0_5 = arith.constant 0 : index
    %c0_6 = arith.constant 0 : index
    %2 = vector.load %arg0[%c0_3, %c0_4, %c0_5, %c0_6] : memref<2x18x18x64xf32, #tpu.memory_space<vmem>>, vector<2x18x18x64xf32>
    %cst = arith.constant 0.000000e+00 : f32
    %3 = vector.broadcast %cst : f32 to vector<512x64xf32>
    %4 = vector.extract_strided_slice %2 {offsets = [0, 0, 0, 0], sizes = [2, 16, 16, 64], strides = [1, 1, 1, 1]} : vector<2x18x18x64xf32> to vector<2x16x16x64xf32>
    %5 = vector.shape_cast %4 : vector<2x16x16x64xf32> to vector<512x64xf32>
    %6 = arith.truncf %5 : vector<512x64xf32> to vector<512x64xbf16>
    %c0_7 = arith.constant 0 : index
    %c0_8 = arith.constant 0 : index
    %c0_9 = arith.constant 0 : index
    %7 = vector.load %arg1[%c0_7, %c0_8, %c0_9] : memref<9x64x64xbf16, #tpu.memory_space<vmem>>, vector<1x64x64xbf16>
    %8 = vector.shape_cast %7 : vector<1x64x64xbf16> to vector<64x64xbf16>
    %cst_10 = arith.constant dense<0.000000e+00> : vector<512x64xf32>
    %9 = tpu.matmul %6, %8, %cst_10 {dimension_numbers = #tpu.dot_dimension_numbers<[1], [0], [0], [1], [0, 0, 1, 1], [], []>} : vector<512x64xbf16>, vector<64x64xbf16>, vector<512x64xf32> -> vector<512x64xf32>
    %10 = arith.addf %3, %9 : vector<512x64xf32>
    %11 = vector.extract_strided_slice %2 {offsets = [0, 0, 1, 0], sizes = [2, 16, 16, 64], strides = [1, 1, 1, 1]} : vector<2x18x18x64xf32> to vector<2x16x16x64xf32>
    %12 = vector.shape_cast %11 : vector<2x16x16x64xf32> to vector<512x64xf32>
    %13 = arith.truncf %12 : vector<512x64xf32> to vector<512x64xbf16>
    %c1 = arith.constant 1 : index
    %c0_11 = arith.constant 0 : index
    %c0_12 = arith.constant 0 : index
    %14 = vector.load %arg1[%c1, %c0_11, %c0_12] : memref<9x64x64xbf16, #tpu.memory_space<vmem>>, vector<1x64x64xbf16>
    %15 = vector.shape_cast %14 : vector<1x64x64xbf16> to vector<64x64xbf16>
    %cst_13 = arith.constant dense<0.000000e+00> : vector<512x64xf32>
    %16 = tpu.matmul %13, %15, %cst_13 {dimension_numbers = #tpu.dot_dimension_numbers<[1], [0], [0], [1], [0, 0, 1, 1], [], []>} : vector<512x64xbf16>, vector<64x64xbf16>, vector<512x64xf32> -> vector<512x64xf32>
    %17 = arith.addf %10, %16 : vector<512x64xf32>
    %18 = vector.extract_strided_slice %2 {offsets = [0, 0, 2, 0], sizes = [2, 16, 16, 64], strides = [1, 1, 1, 1]} : vector<2x18x18x64xf32> to vector<2x16x16x64xf32>
    %19 = vector.shape_cast %18 : vector<2x16x16x64xf32> to vector<512x64xf32>
    %20 = arith.truncf %19 : vector<512x64xf32> to vector<512x64xbf16>
    %c2 = arith.constant 2 : index
    %c0_14 = arith.constant 0 : index
    %c0_15 = arith.constant 0 : index
    %21 = vector.load %arg1[%c2, %c0_14, %c0_15] : memref<9x64x64xbf16, #tpu.memory_space<vmem>>, vector<1x64x64xbf16>
    %22 = vector.shape_cast %21 : vector<1x64x64xbf16> to vector<64x64xbf16>
    %cst_16 = arith.constant dense<0.000000e+00> : vector<512x64xf32>
    %23 = tpu.matmul %20, %22, %cst_16 {dimension_numbers = #tpu.dot_dimension_numbers<[1], [0], [0], [1], [0, 0, 1, 1], [], []>} : vector<512x64xbf16>, vector<64x64xbf16>, vector<512x64xf32> -> vector<512x64xf32>
    %24 = arith.addf %17, %23 : vector<512x64xf32>
    %25 = vector.extract_strided_slice %2 {offsets = [0, 1, 0, 0], sizes = [2, 16, 16, 64], strides = [1, 1, 1, 1]} : vector<2x18x18x64xf32> to vector<2x16x16x64xf32>
    %26 = vector.shape_cast %25 : vector<2x16x16x64xf32> to vector<512x64xf32>
    %27 = arith.truncf %26 : vector<512x64xf32> to vector<512x64xbf16>
    %c3 = arith.constant 3 : index
    %c0_17 = arith.constant 0 : index
    %c0_18 = arith.constant 0 : index
    %28 = vector.load %arg1[%c3, %c0_17, %c0_18] : memref<9x64x64xbf16, #tpu.memory_space<vmem>>, vector<1x64x64xbf16>
    %29 = vector.shape_cast %28 : vector<1x64x64xbf16> to vector<64x64xbf16>
    %cst_19 = arith.constant dense<0.000000e+00> : vector<512x64xf32>
    %30 = tpu.matmul %27, %29, %cst_19 {dimension_numbers = #tpu.dot_dimension_numbers<[1], [0], [0], [1], [0, 0, 1, 1], [], []>} : vector<512x64xbf16>, vector<64x64xbf16>, vector<512x64xf32> -> vector<512x64xf32>
    %31 = arith.addf %24, %30 : vector<512x64xf32>
    %32 = vector.extract_strided_slice %2 {offsets = [0, 1, 1, 0], sizes = [2, 16, 16, 64], strides = [1, 1, 1, 1]} : vector<2x18x18x64xf32> to vector<2x16x16x64xf32>
    %33 = vector.shape_cast %32 : vector<2x16x16x64xf32> to vector<512x64xf32>
    %34 = arith.truncf %33 : vector<512x64xf32> to vector<512x64xbf16>
    %c4 = arith.constant 4 : index
    %c0_20 = arith.constant 0 : index
    %c0_21 = arith.constant 0 : index
    %35 = vector.load %arg1[%c4, %c0_20, %c0_21] : memref<9x64x64xbf16, #tpu.memory_space<vmem>>, vector<1x64x64xbf16>
    %36 = vector.shape_cast %35 : vector<1x64x64xbf16> to vector<64x64xbf16>
    %cst_22 = arith.constant dense<0.000000e+00> : vector<512x64xf32>
    %37 = tpu.matmul %34, %36, %cst_22 {dimension_numbers = #tpu.dot_dimension_numbers<[1], [0], [0], [1], [0, 0, 1, 1], [], []>} : vector<512x64xbf16>, vector<64x64xbf16>, vector<512x64xf32> -> vector<512x64xf32>
    %38 = arith.addf %31, %37 : vector<512x64xf32>
    %39 = vector.extract_strided_slice %2 {offsets = [0, 1, 2, 0], sizes = [2, 16, 16, 64], strides = [1, 1, 1, 1]} : vector<2x18x18x64xf32> to vector<2x16x16x64xf32>
    %40 = vector.shape_cast %39 : vector<2x16x16x64xf32> to vector<512x64xf32>
    %41 = arith.truncf %40 : vector<512x64xf32> to vector<512x64xbf16>
    %c5 = arith.constant 5 : index
    %c0_23 = arith.constant 0 : index
    %c0_24 = arith.constant 0 : index
    %42 = vector.load %arg1[%c5, %c0_23, %c0_24] : memref<9x64x64xbf16, #tpu.memory_space<vmem>>, vector<1x64x64xbf16>
    %43 = vector.shape_cast %42 : vector<1x64x64xbf16> to vector<64x64xbf16>
    %cst_25 = arith.constant dense<0.000000e+00> : vector<512x64xf32>
    %44 = tpu.matmul %41, %43, %cst_25 {dimension_numbers = #tpu.dot_dimension_numbers<[1], [0], [0], [1], [0, 0, 1, 1], [], []>} : vector<512x64xbf16>, vector<64x64xbf16>, vector<512x64xf32> -> vector<512x64xf32>
    %45 = arith.addf %38, %44 : vector<512x64xf32>
    %46 = vector.extract_strided_slice %2 {offsets = [0, 2, 0, 0], sizes = [2, 16, 16, 64], strides = [1, 1, 1, 1]} : vector<2x18x18x64xf32> to vector<2x16x16x64xf32>
    %47 = vector.shape_cast %46 : vector<2x16x16x64xf32> to vector<512x64xf32>
    %48 = arith.truncf %47 : vector<512x64xf32> to vector<512x64xbf16>
    %c6 = arith.constant 6 : index
    %c0_26 = arith.constant 0 : index
    %c0_27 = arith.constant 0 : index
    %49 = vector.load %arg1[%c6, %c0_26, %c0_27] : memref<9x64x64xbf16, #tpu.memory_space<vmem>>, vector<1x64x64xbf16>
    %50 = vector.shape_cast %49 : vector<1x64x64xbf16> to vector<64x64xbf16>
    %cst_28 = arith.constant dense<0.000000e+00> : vector<512x64xf32>
    %51 = tpu.matmul %48, %50, %cst_28 {dimension_numbers = #tpu.dot_dimension_numbers<[1], [0], [0], [1], [0, 0, 1, 1], [], []>} : vector<512x64xbf16>, vector<64x64xbf16>, vector<512x64xf32> -> vector<512x64xf32>
    %52 = arith.addf %45, %51 : vector<512x64xf32>
    %53 = vector.extract_strided_slice %2 {offsets = [0, 2, 1, 0], sizes = [2, 16, 16, 64], strides = [1, 1, 1, 1]} : vector<2x18x18x64xf32> to vector<2x16x16x64xf32>
    %54 = vector.shape_cast %53 : vector<2x16x16x64xf32> to vector<512x64xf32>
    %55 = arith.truncf %54 : vector<512x64xf32> to vector<512x64xbf16>
    %c7 = arith.constant 7 : index
    %c0_29 = arith.constant 0 : index
    %c0_30 = arith.constant 0 : index
    %56 = vector.load %arg1[%c7, %c0_29, %c0_30] : memref<9x64x64xbf16, #tpu.memory_space<vmem>>, vector<1x64x64xbf16>
    %57 = vector.shape_cast %56 : vector<1x64x64xbf16> to vector<64x64xbf16>
    %cst_31 = arith.constant dense<0.000000e+00> : vector<512x64xf32>
    %58 = tpu.matmul %55, %57, %cst_31 {dimension_numbers = #tpu.dot_dimension_numbers<[1], [0], [0], [1], [0, 0, 1, 1], [], []>} : vector<512x64xbf16>, vector<64x64xbf16>, vector<512x64xf32> -> vector<512x64xf32>
    %59 = arith.addf %52, %58 : vector<512x64xf32>
    %60 = vector.extract_strided_slice %2 {offsets = [0, 2, 2, 0], sizes = [2, 16, 16, 64], strides = [1, 1, 1, 1]} : vector<2x18x18x64xf32> to vector<2x16x16x64xf32>
    %61 = vector.shape_cast %60 : vector<2x16x16x64xf32> to vector<512x64xf32>
    %62 = arith.truncf %61 : vector<512x64xf32> to vector<512x64xbf16>
    %c8 = arith.constant 8 : index
    %c0_32 = arith.constant 0 : index
    %c0_33 = arith.constant 0 : index
    %63 = vector.load %arg1[%c8, %c0_32, %c0_33] : memref<9x64x64xbf16, #tpu.memory_space<vmem>>, vector<1x64x64xbf16>
    %64 = vector.shape_cast %63 : vector<1x64x64xbf16> to vector<64x64xbf16>
    %cst_34 = arith.constant dense<0.000000e+00> : vector<512x64xf32>
    %65 = tpu.matmul %62, %64, %cst_34 {dimension_numbers = #tpu.dot_dimension_numbers<[1], [0], [0], [1], [0, 0, 1, 1], [], []>} : vector<512x64xbf16>, vector<64x64xbf16>, vector<512x64xf32> -> vector<512x64xf32>
    %66 = arith.addf %59, %65 : vector<512x64xf32>
    %cst_35 = arith.constant dense<0xFF800000> : vector<512xf32>
    %67 = vector.multi_reduction <maximumf>, %66, %cst_35 [1] : vector<512x64xf32> to vector<512xf32>
    %68 = vector.shape_cast %67 : vector<512xf32> to vector<512x1xf32>
    %cst_36 = arith.constant 1.000000e+00 : f32
    %69 = vector.broadcast %cst_36 : f32 to vector<512x1xf32>
    %70 = arith.maximumf %68, %69 : vector<512x1xf32>
    %71 = tpu.reciprocal %70 {approx = true} : vector<512x1xf32> -> vector<512x1xf32>
    %72 = vector.broadcast %71 : vector<512x1xf32> to vector<512x64xf32>
    %73 = arith.mulf %1, %72 : vector<512x64xf32>
    %74 = math.tanh %73 : vector<512x64xf32>
    %75 = vector.broadcast %70 : vector<512x1xf32> to vector<512x64xf32>
    %76 = arith.mulf %75, %74 : vector<512x64xf32>
    %77 = arith.addf %66, %76 : vector<512x64xf32>
    %78 = arith.addf %77, %0 : vector<512x64xf32>
    %c0_37 = arith.constant 0 : index
    %c0_38 = arith.constant 0 : index
    %79 = vector.load %arg4[%c0_37, %c0_38] : memref<512x64xf32, #tpu.memory_space<vmem>>, vector<512x64xf32>
    tpu.vector_store %arg4[%c0_37, %c0_38], %78 {strides = array<i32>} : memref<512x64xf32, #tpu.memory_space<vmem>>, vector<512x64xf32>,
    return
  }
}

</mosaic_0001>

<bundles_post_ra>
// kernel: basic_block_forward.3
= control target key start
LH: loop header
LB: loop body
LE: loop exit
PB: predicated region body
PF: predicated region fallthrough
CT: control target
= control target key end

     0   :  { %v8640_v0 = vmov 0.0|0.0   ;;  %vm8641_vm0 = vmmov 0   ;;  %v13846_v4 = vmov 0.0   ;;  %vm230_vm1 = vcmask 1046528   ;;  %s13838_s1 = inlined_call_operand.vmem [shape: f32[64,21], index: 1, kind: input, shape index: {}]   ;;  %s13839_s0 = inlined_call_operand.vmem [shape: f32[2,18,18,64], index: 0, kind: input, shape index: {}]   ;;  %s13840_s3 = inlined_call_operand.vmem [shape: f32[21,64], index: 3, kind: input, shape index: {}]   ;;  %s13841_s2 = inlined_call_operand.vmem [shape: f32[1,21], index: 2, kind: input, shape index: {}]   ;;  %s13842_s7 = inlined_call_operand.vmem [shape: f32[2,16,16,64], index: 7, kind: output, shape index: {1}]   ;;  %s13843_s5 = inlined_call_operand.vmem [shape: bf16[9,64,64], index: 5, kind: input, shape index: {}]   ;;  %s13844_s4 = inlined_call_operand.vmem [shape: f32[1,64], index: 4, kind: input, shape index: {}]   ;;  %s13845_s6 = inlined_call_operand.vmem [shape: f32[2,18,18,64], index: 6, kind: output, shape index: {0}]  }
   0x1   :  { %7911 = vmatprep.subr.bf16.mxu0 %v8640_v0  ;;  %v597_v1 = vld [vmem:[%s13838_s1] sm:$0xff]  ;;  %v598_v2 = vld [vmem:[%s13838_s1 + $0x8] sm:$0xff]  ;;  %v599_v3 = vld [vmem:[%s13838_s1 + $0x10] sm:$0xff]  ;;  %7251 = vmatprep.mubr.msk.f32.mxu0 %vm8641_vm0, %v13846_v4  ;;  %vm455_vm2 = vcmask 523264   ;;  %vm614_vm3 = vcmask 1041409   ;;  %vm703_vm4 = vcmask 1044480  }
   0x2   :  { %v7912_v5 = vpack.c.bf16 %v598_v2, %v597_v1  ;;  %v600_v6 = vld [vmem:[%s13838_s1 + $0x18] sm:$0xff]  ;;  %7923 = vmatprep.subr.bf16.mxu1 %v8640_v0  ;;  %7260 = vmatprep.mubr.msk.f32.mxu1 %vm8641_vm0, %v13846_v4  ;;  %v601_v8 = vld [vmem:[%s13838_s1 + $0x20] sm:$0xff]  ;;  %v602_v9 = vld [vmem:[%s13838_s1 + $0x28] sm:$0xff]  ;;  %vm699_vm5 = vcmask 171008   ;;  %vm6335_vm6 = vcmask 523265   ;;  %vm6338_vm7 = vcmask 516096  }
   0x3   :  { %v7915_v7 = vpack.c.bf16 %v600_v6, %v599_v3  ;;  %v7918_v10 = vpack.c.bf16 %v602_v9, %v601_v8  ;;  %v603_v11 = vld [vmem:[%s13838_s1 + $0x30] sm:$0xff]  ;;  %v604_v12 = vld [vmem:[%s13838_s1 + $0x38] sm:$0xff]  ;;  %v8718_v15 = vld [vmem:[%s13839_s0 + $0x20] sm:$0xff]  ;;  %vm2142_vm8 = vcmask 1045504   ;;  %vm5379_vm9 = vcmask 517120  }
   0x4   :  { %7913 = vmatpush3.bf16.msra.mxu0 %v7912_v5  ;;  %v7921_v13 = vpack.c.bf16 %v604_v12, %v603_v11  ;;  %v8713_v14 = vld [vmem:[%s13839_s0 + $0x18] sm:$0xff]  ;;  %v8723_v16 = vld [vmem:[%s13839_s0 + $0x28] sm:$0x3]  ;;  %v8728_v17 = vld [vmem:[%s13839_s0 + $0x30] sm:$0xff]  ;;  %v232_v27 = vrot.slane %v8718_v15, 1 }
   0x5   :  { %7914 = vmatprep.subr.bf16.mxu0 %v8640_v0  ;;  %v8733_v18 = vld [vmem:[%s13839_s0 + $0x38] sm:$0xff]  ;;  %v8738_v19 = vld [vmem:[%s13839_s0 + $0x40] sm:$0x3]  ;;  %v8743_v20 = vld [vmem:[%s13839_s0 + $0x48] sm:$0xff]  ;;  %v231_v23 = vrot.slane %v8713_v14, 1  ;;  %v234_v28 = vrot.slane %v8723_v16, 1 }
   0x6   :  { %v8748_v21 = vld [vmem:[%s13839_s0 + $0x50] sm:$0xff]  ;;  %v8753_v22 = vld [vmem:[%s13839_s0 + $0x58] sm:$0x3]  ;;  %v8759_v24 = vld [vmem:[%s13839_s0 + $0x60] sm:$0xff]  ;;  %v236_v32 = vrot.slane %v8728_v17, 1  ;;  %v237_v33 = vrot.slane %v8733_v18, 1 }
   0x7   :  { %v8764_v25 = vld [vmem:[%s13839_s0 + $0x68] sm:$0xff]  ;;  %v8769_v26 = vld [vmem:[%s13839_s0 + $0x70] sm:$0x3]  ;;  %v8776_v29 = vld [vmem:[%s13839_s0 + $0x78] sm:$0xff]  ;;  %v239_v37 = vrot.slane %v8738_v19, 1  ;;  %v241_v38 = vrot.slane %v8743_v20, 1  ;;  %v233_v50 = vsel %vm230_vm1, %v231_v23, %v232_v27  ;;  %v235_v55 = vsel %vm230_vm1, %v232_v27, %v234_v28 }
   0x8   :  { %7916 = vmatpush3.bf16.msra.mxu0 %v7915_v7  ;;  %14167 = vst [vmem:[#allocation2_spill] sm:$0xff] %v8776_v29  ;;  %v8781_v30 = vld [vmem:[%s13839_s0 + $0x80] sm:$0xff]  ;;  %v8786_v31 = vld [vmem:[%s13839_s0 + $0x88] sm:$0x3]  ;;  %v8793_v34 = vld [vmem:[%s13839_s0 + $0x90] sm:$0xff]  ;;  %v242_v41 = vrot.slane %v8748_v21, 1  ;;  %v238_v56 = vsel %vm230_vm1, %v236_v32, %v237_v33 }
   0x9   :  { %7917 = vmatprep.subr.bf16.mxu0 %v8640_v0  ;;  %14168 = vst [vmem:[#allocation3_spill] sm:$0xff] %v8781_v30  ;;  %14169 = vst [vmem:[#allocation4_spill] sm:$0xff] %v8786_v31  ;;  %v8798_v35 = vld [vmem:[%s13839_s0 + $0x98] sm:$0xff]  ;;  %v8803_v36 = vld [vmem:[%s13839_s0 + $0xa0] sm:$0x3]  ;;  %v244_v42 = vrot.slane %v8753_v22, 1  ;;  %v240_v61 = vsel %vm230_vm1, %v237_v33, %v239_v37 }
   0xa   :  { %14170 = vst [vmem:[#allocation5_spill] sm:$0xff] %v8793_v34  ;;  %14171 = vst [vmem:[#allocation6_spill] sm:$0xff] %v8798_v35  ;;  %v8810_v39 = vld [vmem:[%s13839_s0 + $0xa8] sm:$0xff]  ;;  %v8815_v40 = vld [vmem:[%s13839_s0 + $0xb0] sm:$0xff]  ;;  %v246_v43 = vrot.slane %v8759_v24, 1  ;;  %v247_v44 = vrot.slane %v8764_v25, 1  ;;  %v243_v62 = vsel %vm230_vm1, %v241_v38, %v242_v41 }
   0xb   :  { %14172 = vst [vmem:[#allocation7_spill] sm:$0xff] %v8803_v36  ;;  %14173 = vst [vmem:[#allocation8_spill] sm:$0xff] %v8810_v39  ;;  %v249_v45 = vrot.slane %v8769_v26, 1  ;;  %v251_v46 = vrot.slane %v8776_v29, 1  ;;  %v252_v47 = vrot.slane %v8781_v30, 1  ;;  %v254_v48 = vrot.slane %v8786_v31, 1 }
   0xc   :  { %7919 = vmatpush3.bf16.msra.mxu0 %v7918_v10  ;;  %14174 = vst [vmem:[#allocation9_spill] sm:$0xff] %v8815_v40  ;;  %v8828_v49 = vld [vmem:[%s13839_s0 + $0xb8] sm:$0x3]  ;;  %v256_v51 = vrot.slane %v8793_v34, 1  ;;  %v257_v52 = vrot.slane %v8798_v35, 1  ;;  %v259_v53 = vrot.slane %v8803_v36, 1  ;;  %v245_v63 = vsel %vm230_vm1, %v242_v41, %v244_v42 }
   0xd   :  { %7920 = vmatprep.subr.bf16.mxu0 %v8640_v0  ;;  %14175 = vst [vmem:[#allocation10_spill] sm:$0xff] %v8828_v49  ;;  %v8837_v54 = vld [vmem:[%s13839_s0 + $0xc0] sm:$0xff]  ;;  %v261_v57 = vrot.slane %v8810_v39, 1  ;;  %v262_v58 = vrot.slane %v8815_v40, 1  ;;  %v8846_v59 = vld [vmem:[%s13839_s0 + $0xc8] sm:$0xff]  ;;  %v248_v0 = vsel %vm230_vm1, %v246_v43, %v247_v44  ;;  %v8860_v1 = vld [vmem:[%s13839_s0 + $0xd8] sm:$0xff]  ;;  %v8869_v5 = vsel %vm230_vm1, %v247_v44, %v249_v45 }
   0xe   :  { %14176 = vst [vmem:[#allocation11_spill] sm:$0xff] %v8837_v54  ;;  %14177 = vst [vmem:[#allocation12_spill] sm:$0xff] %v8846_v59  ;;  %v8851_v60 = vld [vmem:[%s13839_s0 + $0xd0] sm:$0x3]  ;;  %v83_v2 = vld [vmem:[%s13839_s0 + $0x1c8] sm:$0xff]  ;;  %v8872_v6 = vsel %vm230_vm1, %v251_v46, %v252_v47  ;;  %v8875_v7 = vsel %vm230_vm1, %v252_v47, %v254_v48  ;;  %v264_v8 = vrot.slane %v8828_v49, 1  ;;  %v8887_v11 = vsel %vm230_vm1, %v256_v51, %v257_v52 }
   0xf   :  { %14178 = vst [vmem:[#allocation13_spill] sm:$0xff] %v8851_v60  ;;  %14179 = vst [vmem:[#allocation14_spill] sm:$0xff] %v8860_v1  ;;  %v84_v3 = vld [vmem:[%s13839_s0 + $0x1d0] sm:$0xff]  ;;  %v8881_v9 = vld [vmem:[%s13839_s0 + $0xe8] sm:$0x3]  ;;  %v8890_v12 = vsel %vm230_vm1, %v257_v52, %v259_v53  ;;  %v456_v23 = vsel %vm455_vm2, %v233_v50, 0.0  ;;  %v8906_v33 = vsel %vm230_vm1, %v261_v57, %v262_v58 }
  0x10   :  { %7922 = vmatpush3.bf16.msra.mxu0 %v7921_v13  ;;  %14180 = vst [vmem:[#allocation15_spill] sm:$0xff] %v8881_v9  ;;  %v85_v10 = vld [vmem:[%s13839_s0 + $0x1d8] sm:$0x3]  ;;  %v266_v13 = vrot.slane %v8837_v54, 1  ;;  %v8897_v27 = vld [vmem:[%s13839_s0 + $0xe0] sm:$0xff]  ;;  %v87_v32 = vld [vmem:[%s13839_s0 + $0x1e8] sm:$0xff]  ;;  %v8921_v48 = vsel %vm230_vm1, %v262_v58, %v264_v8 }
  0x11   :  { %14181 = vst [vmem:[#allocation16_spill] sm:$0xff] %v8897_v27  ;;  %v86_v28 = vld [vmem:[%s13839_s0 + $0x1e0] sm:$0xff]  ;;  %v267_v37 = vrot.slane %v8846_v59, 1  ;;  %v457_v38 = vsel %vm455_vm2, %v235_v55, 0.0  ;;  %v459_v41 = vsel %vm455_vm2, %v238_v56, 0.0  ;;  %v269_v43 = vrot.slane %v8851_v60, 1 }
  0x12   :  { %v88_v42 = vld [vmem:[%s13839_s0 + $0x1f0] sm:$0x3]  ;;  %v311_v44 = vrot.slane %v83_v2, 1  ;;  %v312_v45 = vrot.slane %v84_v3, 1  ;;  %v458_v46 = vadd.f32 %v457_v38, %v456_v23  ;;  %v271_v50 = vrot.slane %v8860_v1, 1  ;;  %v89_v53 = vld [vmem:[%s13839_s0 + $0x1f8] sm:$0xff] }
  0x13   :  { %v8918_v47 = vld [vmem:[%s13839_s0 + $0xf0] sm:$0xff]  ;;  %v314_v51 = vrot.slane %v85_v10, 1  ;;  %v461_v52 = vsel %vm455_vm2, %v240_v61, 0.0  ;;  %v90_v55 = vld [vmem:[%s13839_s0 + $0x200] sm:$0xff]  ;;  %v272_v56 = vrot.slane %v8897_v27, 1  ;;  %v316_v57 = vrot.slane %v86_v28, 1 }
  0x14   :  { %14182 = vst [vmem:[#allocation17_spill] sm:$0xff] %v8918_v47  ;;  %v317_v2 = vrot.slane %v87_v32, 1  ;;  %v460_v3 = vadd.f32 %v459_v41, %v458_v46  ;;  %v8935_v58 = vld [vmem:[%s13839_s0 + $0xf8] sm:$0xff]  ;;  %v8938_v61 = vsel %vm230_vm1, %v266_v13, %v267_v37  ;;  %v274_v8 = vrot.slane %v8881_v9, 1  ;;  %v91_v38 = vld [vmem:[%s13839_s0 + $0x208] sm:$0x3] }
  0x15   :  { %14183 = vst [vmem:[#allocation18_spill] sm:$0xff] %v8935_v58  ;;  %v319_v10 = vrot.slane %v88_v42, 1  ;;  %v463_v23 = vsel %vm455_vm2, %v243_v62, 0.0  ;;  %v92_v28 = vld [vmem:[%s13839_s0 + $0x210] sm:$0xff]  ;;  %v8949_v32 = vsel %vm230_vm1, %v267_v37, %v269_v43  ;;  %v276_v41 = vrot.slane %v8918_v47, 1  ;;  %v93_v62 = vld [vmem:[%s13839_s0 + $0x218] sm:$0xff] }
  0x16   :  { %v313_v13 = vsel %vm230_vm1, %v311_v44, %v312_v45  ;;  %v462_v46 = vadd.f32 %v461_v52, %v460_v3  ;;  %v315_v42 = vsel %vm230_vm1, %v312_v45, %v314_v51  ;;  %v321_v4 = vrot.slane %v89_v53, 1  ;;  %v8966_v44 = vld [vmem:[%s13839_s0 + $0x100] sm:$0x3] }
  0x17   :  { %v322_v9 = vrot.slane %v90_v55, 1  ;;  %v465_v27 = vsel %vm455_vm2, %v245_v63, 0.0  ;;  %v8959_v1 = vsel %vm230_vm1, %v271_v50, %v272_v56  ;;  %v318_v43 = vsel %vm230_vm1, %v316_v57, %v317_v2  ;;  %14184 = vst [vmem:[#allocation19_spill] sm:$0xff] %v8966_v44  ;;  %v94_v63 = vld [vmem:[%s13839_s0 + $0x220] sm:$0x3] }
  0x18   :  { %v464_v47 = vadd.f32 %v463_v23, %v462_v46  ;;  %v320_v52 = vsel %vm230_vm1, %v317_v2, %v319_v10  ;;  %v324_v45 = vrot.slane %v91_v38, 1  ;;  %v326_v51 = vrot.slane %v92_v28, 1  ;;  %v8982_v2 = vld [vmem:[%s13839_s0 + $0x108] sm:$0xff]  ;;  %v96_v38 = vld [vmem:[%s13839_s0 + $0x230] sm:$0xff] }
  0x19   :  { %v467_v53 = vsel %vm455_vm2, %v248_v0, 0.0  ;;  %v327_v50 = vrot.slane %v93_v62, 1  ;;  %v8974_v57 = vsel %vm455_vm2, %v313_v13, 0.0  ;;  %v8977_v3 = vsel %vm455_vm2, %v315_v42, 0.0  ;;  %14185 = vst [vmem:[#allocation20_spill] sm:$0xff] %v8982_v2  ;;  %v95_v0 = vld [vmem:[%s13839_s0 + $0x228] sm:$0xff] }
  0x1a   :  { %v466_v55 = vadd.f32 %v465_v27, %v464_v47  ;;  %v323_v10 = vsel %vm230_vm1, %v321_v4, %v322_v9  ;;  %v469_v27 = vsel %vm455_vm2, %v8869_v5, 0.0  ;;  %v527_v47 = vadd.f32 %v8977_v3, %v8974_v57  ;;  %v9008_v5 = vld [vmem:[%s13839_s0 + $0x110] sm:$0xff] }
  0x1b   :  { %v8993_v23 = vsel %vm455_vm2, %v318_v43, 0.0  ;;  %v8999_v28 = vsel %vm230_vm1, %v272_v56, %v274_v8  ;;  %v279_v13 = vrot.slane %v8966_v44, 1  ;;  %v9003_v4 = vsel %vm455_vm2, %v320_v52, 0.0  ;;  %14186 = vst [vmem:[#allocation21_spill] sm:$0xff] %v9008_v5  ;;  %v97_v8 = vld [vmem:[%s13839_s0 + $0x238] sm:$0x3] }
  0x1c   :  { %v468_v46 = vadd.f32 %v467_v53, %v466_v55  ;;  %v325_v62 = vsel %vm230_vm1, %v322_v9, %v324_v45  ;;  %v329_v42 = vrot.slane %v94_v63, 1  ;;  %v471_v43 = vsel %vm455_vm2, %v8872_v6, 0.0  ;;  %v9024_v9 = vld [vmem:[%s13839_s0 + $0x118] sm:$0x3]  ;;  %v98_v6 = vld [vmem:[%s13839_s0 + $0x240] sm:$0xff] }
  0x1d   :  { %v529_v56 = vadd.f32 %v8993_v23, %v527_v47  ;;  %v281_v52 = vrot.slane %v8982_v2, 1  ;;  %v331_v53 = vrot.slane %v95_v0, 1  ;;  %v9019_v37 = vsel %vm455_vm2, %v323_v10, 0.0  ;;  %14187 = vst [vmem:[#allocation22_spill] sm:$0xff] %v9024_v9  ;;  %v99_v10 = vld [vmem:[%s13839_s0 + $0x248] sm:$0xff] }
  0x1e   :  { %v470_v55 = vadd.f32 %v469_v27, %v468_v46  ;;  %v328_v45 = vsel %vm230_vm1, %v326_v51, %v327_v50  ;;  %v332_v63 = vrot.slane %v96_v38, 1  ;;  %v473_v47 = vsel %vm455_vm2, %v8875_v7, 0.0  ;;  %v9048_v7 = vld [vmem:[%s13839_s0 + $0x120] sm:$0xff] }
  0x1f   :  { %v531_v0 = vadd.f32 %v9003_v4, %v529_v56  ;;  %v14188_v27 = vrot.slane %v8935_v58, 1  ;;  %v282_v2 = vrot.slane %v9008_v5, 1  ;;  %v9043_v51 = vsel %vm455_vm2, %v325_v62, 0.0  ;;  %14189 = vst [vmem:[#allocation23_spill] sm:$0xff] %v9048_v7 }
  0x20   :  { %v472_v44 = vadd.f32 %v471_v43, %v470_v55  ;;  %v330_v38 = vsel %vm230_vm1, %v327_v50, %v329_v42  ;;  %v334_v56 = vrot.slane %v97_v8, 1  ;;  %v475_v60 = vsel %vm455_vm2, %v8887_v11, 0.0  ;;  %v100_v43 = vld [vmem:[%s13839_s0 + $0x250] sm:$0x3]  ;;  %v9064_v50 = vld [vmem:[%s13839_s0 + $0x128] sm:$0xff]  ;;  %v101_v11 = vld [vmem:[%s13839_s0 + $0x258] sm:$0xff] }
  0x21   :  { %v9039_v46 = vsel %vm230_vm1, %v276_v41, %v14188_v27  ;;  %v533_v41 = vadd.f32 %v9019_v37, %v531_v0  ;;  %v284_v62 = vrot.slane %v9024_v9, 1  ;;  %v336_v55 = vrot.slane %v98_v6, 1  ;;  %14190 = vst [vmem:[#allocation24_spill] sm:$0xff] %v9064_v50  ;;  %v102_v6 = vld [vmem:[%s13839_s0 + $0x260] sm:$0xff] }
  0x22   :  { %v474_v27 = vadd.f32 %v473_v47, %v472_v44  ;;  %v9059_v5 = vsel %vm455_vm2, %v328_v45, 0.0  ;;  %v333_v42 = vsel %vm230_vm1, %v331_v53, %v332_v63  ;;  %v337_v8 = vrot.slane %v99_v10, 1 }
  0x23   :  { %v477_v0 = vsel %vm455_vm2, %v8890_v12, 0.0  ;;  %v535_v44 = vadd.f32 %v9043_v51, %v533_v41  ;;  %v14191_v45 = vrot.slane %v8935_v58, 1  ;;  %v286_v9 = vrot.slane %v9048_v7, 1  ;;  %v103_v58 = vld [vmem:[%s13839_s0 + $0x268] sm:$0x3] }
  0x24   :  { %v476_v59 = vadd.f32 %v475_v60, %v474_v27  ;;  %v9083_v53 = vsel %vm455_vm2, %v330_v38, 0.0  ;;  %v335_v10 = vsel %vm230_vm1, %v332_v63, %v334_v56  ;;  %v339_v12 = vrot.slane %v100_v43, 1  ;;  %v9099_v63 = vld [vmem:[%s13839_s0 + $0x130] sm:$0x3]  ;;  %v105_v27 = vld [vmem:[%s13839_s0 + $0x278] sm:$0xff] }
  0x25   :  { %v9079_v47 = vsel %vm230_vm1, %v14191_v45, %v279_v13  ;;  %v479_v41 = vsel %vm455_vm2, %v8906_v33, 0.0  ;;  %v537_v54 = vadd.f32 %v9059_v5, %v535_v44  ;;  %v287_v13 = vrot.slane %v9064_v50, 1  ;;  %14192 = vst [vmem:[#allocation25_spill] sm:$0xff] %v9099_v63  ;;  %v104_v33 = vld [vmem:[%s13839_s0 + $0x270] sm:$0xff] }
  0x26   :  { %v341_v45 = vrot.slane %v101_v11, 1  ;;  %v478_v7 = vadd.f32 %v477_v0, %v476_v59  ;;  %v9094_v60 = vsel %vm455_vm2, %v333_v42, 0.0  ;;  %v338_v38 = vsel %vm230_vm1, %v336_v55, %v337_v8 }
  0x27   :  { %v342_v56 = vrot.slane %v102_v6, 1  ;;  %v481_v43 = vsel %vm455_vm2, %v8921_v48, 0.0  ;;  %v539_v59 = vadd.f32 %v9083_v53, %v537_v54  ;;  %v9112_v11 = vsel %vm230_vm1, %v281_v52, %v282_v2  ;;  %v9123_v48 = vld [vmem:[%s13839_s0 + $0x138] sm:$0xff] }
  0x28   :  { %v9115_v42 = vsel %vm230_vm1, %v282_v2, %v284_v62  ;;  %v480_v0 = vadd.f32 %v479_v41, %v478_v7  ;;  %v9118_v44 = vsel %vm455_vm2, %v335_v10, 0.0  ;;  %14193 = vst [vmem:[#allocation26_spill] sm:$0xff] %v9123_v48  ;;  %v340_v54 = vsel %vm230_vm1, %v337_v8, %v339_v12  ;;  %v106_v2 = vld [vmem:[%s13839_s0 + $0x280] sm:$0x3] }
  0x29   :  { %v344_v55 = vrot.slane %v103_v58, 1  ;;  %v483_v6 = vsel %vm455_vm2, %v8938_v61, 0.0  ;;  %v541_v52 = vadd.f32 %v9094_v60, %v539_v59  ;;  %v289_v7 = vrot.slane %v9099_v63, 1  ;;  %v9139_v58 = vld [vmem:[%s13839_s0 + $0x140] sm:$0xff]  ;;  %v107_v61 = vld [vmem:[%s13839_s0 + $0x288] sm:$0xff] }
  0x2a   :  { %v346_v62 = vrot.slane %v104_v33, 1  ;;  %v482_v10 = vadd.f32 %v481_v43, %v480_v0  ;;  %v9134_v41 = vsel %vm455_vm2, %v338_v38, 0.0  ;;  %14194 = vst [vmem:[#allocation27_spill] sm:$0xff] %v9139_v58  ;;  %v343_v8 = vsel %vm230_vm1, %v341_v45, %v342_v56  ;;  %v108_v38 = vld [vmem:[%s13839_s0 + $0x290] sm:$0xff]  ;;  %v9161_v45 = vld [vmem:[%s13839_s0 + $0x148] sm:$0x3] }
  0x2b   :  { %v347_v12 = vrot.slane %v105_v27, 1  ;;  %v485_v59 = vsel %vm455_vm2, %v8949_v32, 0.0  ;;  %v543_v33 = vadd.f32 %v9118_v44, %v541_v52  ;;  %v9152_v43 = vsel %vm230_vm1, %v286_v9, %v287_v13  ;;  %14195 = vst [vmem:[#allocation28_spill] sm:$0xff] %v9161_v45 }
  0x2c   :  { %v291_v0 = vrot.slane %v9123_v48, 1  ;;  %v484_v63 = vadd.f32 %v483_v6, %v482_v10  ;;  %v9156_v50 = vsel %vm455_vm2, %v340_v54, 0.0  ;;  %v345_v32 = vsel %vm230_vm1, %v342_v56, %v344_v55  ;;  %v109_v6 = vld [vmem:[%s13839_s0 + $0x298] sm:$0x3]  ;;  %v9177_v56 = vld [vmem:[%s13839_s0 + $0x150] sm:$0xff] }
  0x2d   :  { %v349_v27 = vrot.slane %v106_v2, 1  ;;  %v487_v52 = vsel %vm455_vm2, %v8959_v1, 0.0  ;;  %v545_v9 = vadd.f32 %v9134_v41, %v543_v33  ;;  %v292_v54 = vrot.slane %v9139_v58, 1  ;;  %14196 = vst [vmem:[#allocation29_spill] sm:$0xff] %v9177_v56  ;;  %v110_v1 = vld [vmem:[%s13839_s0 + $0x2a0] sm:$0xff] }
  0x2e   :  { %v351_v10 = vrot.slane %v107_v61, 1  ;;  %v486_v48 = vadd.f32 %v485_v59, %v484_v63  ;;  %v9172_v49 = vsel %vm455_vm2, %v343_v8, 0.0  ;;  %v348_v55 = vsel %vm230_vm1, %v346_v62, %v347_v12  ;;  %v111_v61 = vld [vmem:[%s13839_s0 + $0x2a8] sm:$0xff]  ;;  %v9197_v62 = vld [vmem:[%s13839_s0 + $0x158] sm:$0xff] }
  0x2f   :  { %v352_v2 = vrot.slane %v108_v38, 1  ;;  %v489_v33 = vsel %vm455_vm2, %v8999_v28, 0.0  ;;  %v547_v63 = vadd.f32 %v9156_v50, %v545_v9  ;;  %v290_v8 = vsel %vm230_vm1, %v287_v13, %v289_v7  ;;  %14197 = vst [vmem:[#allocation30_spill] sm:$0xff] %v9197_v62  ;;  %v112_v13 = vld [vmem:[%s13839_s0 + $0x2b0] sm:$0x3] }
  0x30   :  { %v294_v59 = vrot.slane %v9161_v45, 1  ;;  %v488_v58 = vadd.f32 %v487_v52, %v486_v48  ;;  %v9192_v40 = vsel %vm455_vm2, %v345_v32, 0.0  ;;  %v350_v28 = vsel %vm230_vm1, %v347_v12, %v349_v27  ;;  %v113_v12 = vld [vmem:[%s13839_s0 + $0x2b8] sm:$0xff] }
  0x31   :  { %v354_v38 = vrot.slane %v109_v6, 1  ;;  %v491_v9 = vsel %vm455_vm2, %v9039_v46, 0.0  ;;  %v549_v39 = vadd.f32 %v9172_v49, %v547_v63  ;;  %v296_v48 = vrot.slane %v9177_v56, 1 }
  0x32   :  { %v356_v7 = vrot.slane %v110_v1, 1  ;;  %v490_v32 = vadd.f32 %v489_v33, %v488_v58  ;;  %v9208_v52 = vsel %vm455_vm2, %v348_v55, 0.0  ;;  %v353_v27 = vsel %vm230_vm1, %v351_v10, %v352_v2  ;;  %v114_v1 = vld [vmem:[%s13839_s0 + $0x2c0] sm:$0xff] }
  0x33   :  { %v357_v46 = vrot.slane %v111_v61, 1  ;;  %v493_v6 = vsel %vm455_vm2, %v9079_v47, 0.0  ;;  %v551_v63 = vadd.f32 %v9192_v40, %v549_v39  ;;  %v293_v58 = vsel %vm230_vm1, %v291_v0, %v292_v54  ;;  %v9228_v10 = vld [vmem:[%s13839_s0 + $0x160] sm:$0x3]  ;;  %v9233_v39 = vld [vmem:[%s13839_s0 + $0x168] sm:$0xff] }
  0x34   :  { %v297_v55 = vrot.slane %v9197_v62, 1  ;;  %v492_v33 = vadd.f32 %v491_v9, %v490_v32  ;;  %v9223_v56 = vsel %vm455_vm2, %v350_v28, 0.0  ;;  %14198 = vst [vmem:[#allocation31_spill] sm:$0xff] %v9228_v10  ;;  %14199 = vst [vmem:[#allocation32_spill] sm:$0xff] %v9233_v39  ;;  %v355_v47 = vsel %vm230_vm1, %v352_v2, %v354_v38  ;;  %v115_v28 = vld [vmem:[%s13839_s0 + $0x2c8] sm:$0x3] }
  0x35   :  { %v359_v61 = vrot.slane %v112_v13, 1  ;;  %v495_v0 = vsel %vm455_vm2, %v9112_v11, 0.0  ;;  %v553_v9 = vadd.f32 %v9208_v52, %v551_v63  ;;  %v295_v32 = vsel %vm230_vm1, %v292_v54, %v294_v59  ;;  %v116_v2 = vld [vmem:[%s13839_s0 + $0x2d0] sm:$0xff]  ;;  %v117_v54 = vld [vmem:[%s13839_s0 + $0x2d8] sm:$0xff] }
  0x36   :  { %v361_v62 = vrot.slane %v113_v12, 1  ;;  %v494_v45 = vadd.f32 %v493_v6, %v492_v33  ;;  %v9244_v36 = vsel %vm455_vm2, %v353_v27, 0.0  ;;  %v358_v38 = vsel %vm230_vm1, %v356_v7, %v357_v46  ;;  %v9264_v7 = vld [vmem:[%s13839_s0 + $0x170] sm:$0xff] }
  0x37   :  { %v362_v11 = vrot.slane %v114_v1, 1  ;;  %v497_v13 = vsel %vm455_vm2, %v9115_v42, 0.0  ;;  %v555_v63 = vadd.f32 %v9223_v56, %v553_v9  ;;  %v299_v59 = vrot.slane %v9228_v10, 1  ;;  %14200 = vst [vmem:[#allocation33_spill] sm:$0xff] %v9264_v7  ;;  %v9269_v42 = vld [vmem:[%s13839_s0 + $0x178] sm:$0x3] }
  0x38   :  { %v301_v12 = vrot.slane %v9233_v39, 1  ;;  %v496_v27 = vadd.f32 %v495_v0, %v494_v45  ;;  %v9259_v6 = vsel %vm455_vm2, %v355_v47, 0.0  ;;  %14201 = vst [vmem:[#allocation34_spill] sm:$0xff] %v9269_v42  ;;  %v360_v1 = vsel %vm230_vm1, %v357_v46, %v359_v61  ;;  %v118_v47 = vld [vmem:[%s13839_s0 + $0x2e0] sm:$0x3]  ;;  %v119_v46 = vld [vmem:[%s13839_s0 + $0x2e8] sm:$0xff] }
  0x39   :  { %v364_v33 = vrot.slane %v115_v28, 1  ;;  %v499_v9 = vsel %vm455_vm2, %v9152_v43, 0.0  ;;  %v557_v45 = vadd.f32 %v9244_v36, %v555_v63  ;;  %v298_v0 = vsel %vm230_vm1, %v296_v48, %v297_v55  ;;  %v120_v48 = vld [vmem:[%s13839_s0 + $0x2f0] sm:$0xff] }
  0x3a   :  { %v366_v39 = vrot.slane %v116_v2, 1  ;;  %v498_v10 = vadd.f32 %v497_v13, %v496_v27  ;;  %v9280_v35 = vsel %vm455_vm2, %v358_v38, 0.0  ;;  %v363_v61 = vsel %vm230_vm1, %v361_v62, %v362_v11  ;;  %v9299_v62 = vld [vmem:[%s13839_s0 + $0x180] sm:$0xff] }
  0x3b   :  { %v367_v43 = vrot.slane %v117_v54, 1  ;;  %v501_v28 = vsel %vm455_vm2, %v290_v8, 0.0  ;;  %v559_v63 = vadd.f32 %v9259_v6, %v557_v45  ;;  %v302_v2 = vrot.slane %v9264_v7, 1  ;;  %14202 = vst [vmem:[#allocation35_spill] sm:$0xff] %v9299_v62  ;;  %v9304_v8 = vld [vmem:[%s13839_s0 + $0x188] sm:$0xff] }
  0x3c   :  { %v304_v38 = vrot.slane %v9269_v42, 1  ;;  %v500_v13 = vadd.f32 %v499_v9, %v498_v10  ;;  %v9294_v27 = vsel %vm455_vm2, %v360_v1, 0.0  ;;  %14203 = vst [vmem:[#allocation36_spill] sm:$0xff] %v9304_v8  ;;  %v365_v54 = vsel %vm230_vm1, %v362_v11, %v364_v33  ;;  %v121_v1 = vld [vmem:[%s13839_s0 + $0x2f8] sm:$0x3]  ;;  %v122_v11 = vld [vmem:[%s13839_s0 + $0x300] sm:$0xff] }
  0x3d   :  { %v369_v45 = vrot.slane %v118_v47, 1  ;;  %v503_v7 = vsel %vm455_vm2, %v293_v58, 0.0  ;;  %v561_v10 = vadd.f32 %v9280_v35, %v559_v63  ;;  %v300_v9 = vsel %vm230_vm1, %v297_v55, %v299_v59  ;;  %v123_v55 = vld [vmem:[%s13839_s0 + $0x308] sm:$0xff] }
  0x3e   :  { %v371_v42 = vrot.slane %v119_v46, 1  ;;  %v502_v34 = vadd.f32 %v501_v28, %v500_v13  ;;  %v9314_v31 = vsel %vm455_vm2, %v363_v61, 0.0  ;;  %v368_v33 = vsel %vm230_vm1, %v366_v39, %v367_v43  ;;  %v9333_v39 = vld [vmem:[%s13839_s0 + $0x190] sm:$0x3] }
  0x3f   :  { %v372_v58 = vrot.slane %v120_v48, 1  ;;  %v505_v47 = vsel %vm455_vm2, %v295_v32, 0.0  ;;  %v563_v63 = vadd.f32 %v9294_v27, %v561_v10  ;;  %v306_v59 = vrot.slane %v9299_v62, 1  ;;  %14204 = vst [vmem:[#allocation37_spill] sm:$0xff] %v9333_v39 }
  0x40   :  { %v307_v46 = vrot.slane %v9304_v8, 1  ;;  %v504_v61 = vadd.f32 %v503_v7, %v502_v34  ;;  %v9328_v28 = vsel %vm455_vm2, %v365_v54, 0.0  ;;  %v370_v32 = vsel %vm230_vm1, %v367_v43, %v369_v45  ;;  %v124_v8 = vld [vmem:[%s13839_s0 + $0x310] sm:$0x3]  ;;  %v125_v43 = vld [vmem:[%s13839_s0 + $0x318] sm:$0xff] }
  0x41   :  { %v374_v48 = vrot.slane %v121_v1, 1  ;;  %v507_v13 = vsel %vm455_vm2, %v298_v0, 0.0  ;;  %v565_v10 = vadd.f32 %v9314_v31, %v563_v63  ;;  %v303_v34 = vsel %vm230_vm1, %v301_v12, %v302_v2  ;;  %v126_v12 = vld [vmem:[%s13839_s0 + $0x320] sm:$0xff] }
  0x42   :  { %v376_v7 = vrot.slane %v122_v11, 1  ;;  %v506_v54 = vadd.f32 %v505_v47, %v504_v61  ;;  %v9343_v62 = vsel %vm455_vm2, %v368_v33, 0.0  ;;  %v373_v45 = vsel %vm230_vm1, %v371_v42, %v372_v58 }
  0x43   :  { %v377_v0 = vrot.slane %v123_v55, 1  ;;  %v509_v1 = vsel %vm455_vm2, %v300_v9, 0.0  ;;  %v567_v63 = vadd.f32 %v9328_v28, %v565_v10  ;;  %v305_v11 = vsel %vm230_vm1, %v302_v2, %v304_v38  ;;  %v127_v10 = vld [vmem:[%s13839_s0 + $0x328] sm:$0x3] }
  0x44   :  { %v309_v33 = vrot.slane %v9333_v39, 1  ;;  %v508_v47 = vadd.f32 %v507_v13, %v506_v54  ;;  %v9357_v61 = vsel %vm455_vm2, %v370_v32, 0.0  ;;  %v375_v30 = vsel %vm230_vm1, %v372_v58, %v374_v48  ;;  %v128_v58 = vld [vmem:[%s13839_s0 + $0x330] sm:$0xff] }
  0x45   :  { %v379_v42 = vrot.slane %v124_v8, 1  ;;  %v511_v55 = vsel %vm455_vm2, %v303_v34, 0.0  ;;  %v569_v9 = vadd.f32 %v9343_v62, %v567_v63  ;;  %v308_v29 = vsel %vm230_vm1, %v306_v59, %v307_v46  ;;  %v129_v59 = vld [vmem:[%s13839_s0 + $0x338] sm:$0xff] }
  0x46   :  { %v381_v2 = vrot.slane %v125_v43, 1  ;;  %v510_v38 = vadd.f32 %v509_v1, %v508_v47  ;;  %v9367_v13 = vsel %vm455_vm2, %v373_v45, 0.0  ;;  %v378_v8 = vsel %vm230_vm1, %v376_v7, %v377_v0 }
  0x47   :  { %v382_v32 = vrot.slane %v126_v12, 1  ;;  %v513_v48 = vsel %vm455_vm2, %v305_v11, 0.0  ;;  %v571_v34 = vadd.f32 %v9357_v61, %v569_v9  ;;  %v310_v54 = vsel %vm230_vm1, %v307_v46, %v309_v33  ;;  %v130_v11 = vld [vmem:[%s13839_s0 + $0x340] sm:$0x3] }
  0x48   :  { %v512_v43 = vadd.f32 %v511_v55, %v510_v38  ;;  %v9380_v45 = vsel %vm455_vm2, %v375_v30, 0.0  ;;  %v380_v1 = vsel %vm230_vm1, %v377_v0, %v379_v42  ;;  %v384_v63 = vrot.slane %v127_v10, 1 }
  0x49   :  { %v515_v7 = vsel %vm455_vm2, %v308_v29, 0.0  ;;  %v573_v12 = vadd.f32 %v9367_v13, %v571_v34  ;;  %v386_v47 = vrot.slane %v128_v58, 1  ;;  %v9389_v39 = vsel %vm455_vm2, %v378_v8, 0.0 }
  0x4a   :  { %v514_v9 = vadd.f32 %v513_v48, %v512_v43  ;;  %v383_v46 = vsel %vm230_vm1, %v381_v2, %v382_v32  ;;  %v387_v30 = vrot.slane %v129_v59, 1  ;;  %v517_v33 = vsel %vm455_vm2, %v310_v54, 0.0 }
  0x4b   :  { %v575_v0 = vadd.f32 %v9380_v45, %v573_v12  ;;  %v578_v29 = vsel %vm455_vm2, %v380_v1, 0.0  ;;  %v385_v55 = vsel %vm230_vm1, %v382_v32, %v384_v63  ;;  %v389_v10 = vrot.slane %v130_v11, 1 }
  0x4c   :  { %v516_v42 = vadd.f32 %v515_v7, %v514_v9  ;;  %v580_v48 = vsel %vm455_vm2, %v383_v46, 0.0  ;;  %v388_v8 = vsel %vm230_vm1, %v386_v47, %v387_v30  ;;  %v582_v59 = vsel %vm455_vm2, %v385_v55, 0.0 }
  0x4d   :  { %v577_v38 = vadd.f32 %v9389_v39, %v575_v0  ;;  %v390_v43 = vsel %vm230_vm1, %v387_v30, %v389_v10  ;;  %v584_v32 = vsel %vm455_vm2, %v388_v8, 0.0 }
  0x4e   :  { %v518_v58 = vadd.f32 %v517_v33, %v516_v42  ;;  %v586_v9 = vsel %vm455_vm2, %v390_v43, 0.0 }
  0x4f   :  { %v579_v34 = vadd.f32 %v578_v29, %v577_v38 }
  0x50   :  { %v519_v2 = vrot.slane %v518_v58, 4  ;;  %v5551_v54 = vadd.f32 %v8974_v57, %v518_v58 }
  0x51   :  { %v581_v7 = vadd.f32 %v580_v48, %v579_v34 }
  0x52   :  { %v520_v1 = vadd.f32 %v519_v2, %v518_v58  ;;  %v5552_v63 = vadd.f32 %v5551_v54, %v8977_v3 }
  0x53   :  { %v583_v12 = vadd.f32 %v582_v59, %v581_v7 }
  0x54   :  { %v521_v11 = vrot.slane %v520_v1, 2  ;;  %v5553_v47 = vadd.f32 %v5552_v63, %v8993_v23 }
  0x55   :  { %v585_v46 = vadd.f32 %v584_v32, %v583_v12 }
  0x56   :  { %v5554_v33 = vadd.f32 %v5553_v47, %v9003_v4  ;;  %v522_v0 = vadd.f32 %v521_v11, %v520_v1 }
  0x57   :  { %v587_v42 = vadd.f32 %v586_v9, %v585_v46 }
  0x58   :  { %v5555_v57 = vadd.f32 %v5554_v33, %v9019_v37  ;;  %v523_v10 = vrot.slane %v522_v0, 1 }
  0x59   :  { %v588_v30 = vrot.slane %v587_v42, 4 }
  0x5a   :  { %v5556_v55 = vadd.f32 %v5555_v57, %v9043_v51  ;;  %v524_v34 = vadd.f32 %v523_v10, %v522_v0 }
  0x5b   :  { %v589_v38 = vadd.f32 %v588_v30, %v587_v42 }
  0x5c   :  { %v5557_v3 = vadd.f32 %v5556_v55, %v9059_v5  ;;  %v595_v7 = vmul.f32 0.00390625, %v524_v34 }
  0x5d   :  { %v590_v58 = vrot.slane %v589_v38, 2 }
  0x5e   :  { %v5558_v8 = vadd.f32 %v5557_v3, %v9083_v53 }
  0x5f   :  { %v591_v2 = vadd.f32 %v590_v58, %v589_v38 }
  0x60   :  { %v5559_v23 = vadd.f32 %v5558_v8, %v9094_v60 }
  0x61   :  { %v592_v54 = vrot.slane %v591_v2, 1 }
  0x62   :  { %v5560_v4 = vadd.f32 %v5559_v23, %v9118_v44 }
  0x63   :  { %v593_v43 = vadd.f32 %v592_v54, %v591_v2 }
  0x64   :  { %v5561_v37 = vadd.f32 %v5560_v4, %v9134_v41  ;;  %v14206_v4 = vld [vmem:[#allocation3_spill] sm:$0xff] }
  0x65   :  { %v596_v51 = vmul.f32 0.00390625, %v593_v43 }
  0x66   :  { %v5562_v1 = vadd.f32 %v5561_v37, %v9156_v50 }
  0x67   :  { %v615_v63 = vsel %vm614_vm3, %v596_v51, %v595_v7 }
  0x68   :  { %7252 = vmatmul.mubr.msk.f32.vlgmr.msra.gmra.mrb[0].mxu0 %vm455_vm2, %v615_v63  ;;  %v5563_v5 = vadd.f32 %v5562_v1, %v9172_v49 }
  0x6a   :  { %v5564_v53 = vadd.f32 %v5563_v5, %v9192_v40  ;;  %v14207_v5 = vld [vmem:[#allocation4_spill] sm:$0xff] }
  0x6c   :  { %v5565_v60 = vadd.f32 %v5564_v53, %v9208_v52 }
  0x6e   :  { %v5566_v12 = vadd.f32 %v5565_v60, %v9223_v56  ;;  %v14208_v60 = vld [vmem:[#allocation5_spill] sm:$0xff] }
  0x70   :  { %v5567_v44 = vadd.f32 %v5566_v12, %v9244_v36 }
  0x72   :  { %v5568_v11 = vadd.f32 %v5567_v44, %v9259_v6  ;;  %v14209_v44 = vld [vmem:[#allocation6_spill] sm:$0xff] }
  0x74   :  { %v5569_v41 = vadd.f32 %v5568_v11, %v9280_v35 }
  0x76   :  { %v5570_v47 = vadd.f32 %v5569_v41, %v9294_v27 }
  0x78   :  { %v5571_v50 = vadd.f32 %v5570_v47, %v9314_v31 }
  0x7a   :  { %v5572_v46 = vadd.f32 %v5571_v50, %v9328_v28 }
  0x7c   :  { %v5573_v49 = vadd.f32 %v5572_v46, %v9343_v62 }
  0x7e   :  { %v5574_v40 = vadd.f32 %v5573_v49, %v9357_v61 }
  0x80   :  { %v5575_v52 = vadd.f32 %v5574_v40, %v9367_v13 }
  0x82   :  { %v5576_v56 = vadd.f32 %v5575_v52, %v9380_v45 }
  0x84   :  { %v5577_v36 = vadd.f32 %v5576_v56, %v9389_v39 }
  0x86   :  { %v5578_v33 = vadd.f32 %v5577_v36, %v578_v29 }
  0x88   :  { %v5579_v6 = vadd.f32 %v5578_v33, %v580_v48 }
  0x8a   :  { %v5580_v0 = vadd.f32 %v5579_v6, %v582_v59 }
  0x8c   :  { %v5581_v35 = vadd.f32 %v5580_v0, %v584_v32 }
  0x8e   :  { %v5582_v42 = vadd.f32 %v5581_v35, %v586_v9 }
  0x90   :  { %v5583_v27 = vrot.slane %v5582_v42, 4 }
  0x92   :  { %v5584_v57 = vadd.f32 %v5583_v27, %v5582_v42  ;;  %v14210_v42 = vld [vmem:[#allocation7_spill] sm:$0xff] }
  0x94   :  { %v5585_v31 = vrot.slane %v5584_v57, 2 }
  0x96   :  { %v5586_v30 = vadd.f32 %v5585_v31, %v5584_v57  ;;  %v14211_v57 = vld [vmem:[#allocation8_spill] sm:$0xff] }
  0x98   :  { %v5587_v28 = vrot.slane %v5586_v30, 1 }
  0x9a   :  { %v5588_v55 = vadd.f32 %v5587_v28, %v5586_v30 }
  0x9c   :  { %v9431_v62 = vmul.f32 0.001953125, %v5588_v55 }
  0x9e   :  { %v9435_v61 = vsub.f32 %v8713_v14, %v9431_v62  ;;  %v9439_v39 = vsub.f32 %v8718_v15, %v9431_v62  ;;  %v9443_v13 = vsub.f32 %v8723_v16, %v9431_v62  ;;  %v9447_v45 = vsub.f32 %v8728_v17, %v9431_v62 }
  0x9f   :  { %v9451_v29 = vsub.f32 %v8733_v18, %v9431_v62  ;;  %v9455_v14 = vsub.f32 %v8738_v19, %v9431_v62  ;;  %v9459_v15 = vsub.f32 %v8743_v20, %v9431_v62  ;;  %v9463_v16 = vsub.f32 %v8748_v21, %v9431_v62 }
  0xa0   :  { %v5687_v17 = vmul.f32 %v9435_v61, %v9435_v61  ;;  %v5688_v48 = vmul.f32 %v9439_v39, %v9439_v39  ;;  %v5689_v18 = vmul.f32 %v9443_v13, %v9443_v13  ;;  %v5690_v19 = vmul.f32 %v9447_v45, %v9447_v45 }
  0xa1   :  { %v5691_v20 = vmul.f32 %v9451_v29, %v9451_v29  ;;  %v9477_v59 = vsub.f32 %v8753_v22, %v9431_v62  ;;  %v5692_v21 = vmul.f32 %v9455_v14, %v9455_v14  ;;  %v9483_v32 = vsub.f32 %v8759_v24, %v9431_v62  ;;  %v14205_v24 = vld [vmem:[#allocation2_spill] sm:$0xff] }
  0xa2   :  { %v9487_v9 = vsub.f32 %v8764_v25, %v9431_v62  ;;  %v5693_v10 = vmul.f32 %v9459_v15, %v9459_v15  ;;  %v5694_v38 = vmul.f32 %v9463_v16, %v9463_v16  ;;  %v5879_v3 = vrot.slane %v5687_v17, 1 }
  0xa3   :  { %v5880_v22 = vrot.slane %v5688_v48, 1  ;;  %v5882_v58 = vrot.slane %v5689_v18, 1  ;;  %v5884_v8 = vrot.slane %v5690_v19, 1  ;;  %v5885_v34 = vrot.slane %v5691_v20, 1  ;;  %v14212_v18 = vld [vmem:[#allocation9_spill] sm:$0xff] }
  0xa4   :  { %v9495_v2 = vsub.f32 %v8769_v26, %v9431_v62  ;;  %v9499_v23 = vsub.f32 %v14205_v24, %v9431_v62  ;;  %v5695_v25 = vmul.f32 %v9477_v59, %v9477_v59  ;;  %v5887_v54 = vrot.slane %v5692_v21, 1  ;;  %v14214_v24 = vld [vmem:[#allocation11_spill] sm:$0xff] }
  0xa5   :  { %v9505_v43 = vsub.f32 %v14206_v4, %v9431_v62  ;;  %v5696_v7 = vmul.f32 %v9483_v32, %v9483_v32  ;;  %v5697_v37 = vmul.f32 %v9487_v9, %v9487_v9  ;;  %v5881_v26 = vsel %vm230_vm1, %v5879_v3, %v5880_v22 }
  0xa6   :  { %v5883_v51 = vsel %vm230_vm1, %v5880_v22, %v5882_v58  ;;  %v5889_v1 = vrot.slane %v5693_v10, 1  ;;  %v5890_v63 = vrot.slane %v5694_v38, 1  ;;  %v9515_v53 = vsub.f32 %v14207_v5, %v9431_v62 }
  0xa7   :  { %v9519_v12 = vsub.f32 %v14208_v60, %v9431_v62  ;;  %v9523_v11 = vsub.f32 %v14209_v44, %v9431_v62  ;;  %v5886_v41 = vsel %vm230_vm1, %v5884_v8, %v5885_v34  ;;  %v5698_v47 = vmul.f32 %v9495_v2, %v9495_v2  ;;  %v14213_v8 = vld [vmem:[#allocation10_spill] sm:$0xff] }
  0xa8   :  { %v5699_v50 = vmul.f32 %v9499_v23, %v9499_v23  ;;  %v5888_v46 = vsel %vm230_vm1, %v5885_v34, %v5887_v54  ;;  %v5892_v49 = vrot.slane %v5695_v25, 1  ;;  %v5700_v40 = vmul.f32 %v9505_v43, %v9505_v43 }
  0xa9   :  { %v5894_v52 = vrot.slane %v5696_v7, 1  ;;  %v6103_v56 = vsel %vm455_vm2, %v5881_v26, 0.0  ;;  %v6104_v36 = vsel %vm455_vm2, %v5883_v51, 0.0  ;;  %v5891_v33 = vsel %vm230_vm1, %v5889_v1, %v5890_v63  ;;  %v14215_v51 = vld [vmem:[#allocation12_spill] sm:$0xff] }
  0xaa   :  { %v5895_v6 = vrot.slane %v5697_v37, 1  ;;  %v6105_v0 = vadd.f32 %v6104_v36, %v6103_v56  ;;  %v6106_v35 = vsel %vm455_vm2, %v5886_v41, 0.0  ;;  %v9539_v27 = vsub.f32 %v14210_v42, %v9431_v62 }
  0xab   :  { %v9543_v31 = vsub.f32 %v14211_v57, %v9431_v62  ;;  %v6108_v30 = vsel %vm455_vm2, %v5888_v46, 0.0  ;;  %v5701_v28 = vmul.f32 %v9515_v53, %v9515_v53  ;;  %v5893_v55 = vsel %vm230_vm1, %v5890_v63, %v5892_v49  ;;  %v14216_v46 = vld [vmem:[#allocation13_spill] sm:$0xff] }
  0xac   :  { %v5897_v17 = vrot.slane %v5698_v47, 1  ;;  %v6107_v48 = vadd.f32 %v6106_v35, %v6105_v0  ;;  %v9551_v19 = vsub.f32 %v14212_v18, %v9431_v62  ;;  %v5702_v20 = vmul.f32 %v9519_v12, %v9519_v12  ;;  %v14218_v35 = vld [vmem:[#allocation16_spill] sm:$0xff] }
  0xad   :  { %v5703_v21 = vmul.f32 %v9523_v11, %v9523_v11  ;;  %v6110_v10 = vsel %vm455_vm2, %v5891_v33, 0.0  ;;  %v5896_v38 = vsel %vm230_vm1, %v5894_v52, %v5895_v6  ;;  %v5899_v3 = vrot.slane %v5699_v50, 1 }
  0xae   :  { %v5900_v22 = vrot.slane %v5700_v40, 1  ;;  %v6109_v58 = vadd.f32 %v6108_v30, %v6107_v48  ;;  %v9561_v34 = vsub.f32 %v14213_v8, %v9431_v62  ;;  %v9565_v25 = vsub.f32 %v14214_v24, %v9431_v62  ;;  %v14217_v40 = vld [vmem:[#allocation14_spill] sm:$0xff] }
  0xaf   :  { %v6112_v54 = vsel %vm455_vm2, %v5893_v55, 0.0  ;;  %v5704_v4 = vmul.f32 %v9539_v27, %v9539_v27  ;;  %v5898_v7 = vsel %vm230_vm1, %v5895_v6, %v5897_v17  ;;  %v5902_v37 = vrot.slane %v5701_v28, 1 }
  0xb0   :  { %v6111_v26 = vadd.f32 %v6110_v10, %v6109_v58  ;;  %v9573_v1 = vsub.f32 %v14215_v51, %v9431_v62  ;;  %v5705_v63 = vmul.f32 %v9543_v31, %v9543_v31  ;;  %v5706_v5 = vmul.f32 %v9551_v19, %v9551_v19  ;;  %v14220_v10 = vld [vmem:[#allocation17_spill] sm:$0xff]  ;;  %v689_v51 = vld [vmem:[%s13840_s3] sm:$0xff] }
  0xb1   :  { %v6114_v60 = vsel %vm455_vm2, %v5896_v38, 0.0  ;;  %v5901_v44 = vsel %vm230_vm1, %v5899_v3, %v5900_v22  ;;  %v5904_v41 = vrot.slane %v5702_v20, 1  ;;  %v5905_v47 = vrot.slane %v5703_v21, 1  ;;  %v14219_v20 = vld [vmem:[#allocation15_spill] sm:$0xff] }
  0xb2   :  { %v6113_v50 = vadd.f32 %v6112_v54, %v6111_v26  ;;  %v9583_v49 = vsub.f32 %v14216_v46, %v9431_v62  ;;  %v9587_v52 = vsub.f32 %v14217_v40, %v9431_v62  ;;  %v6116_v56 = vsel %vm455_vm2, %v5898_v7, 0.0  ;;  %v14221_v54 = vld [vmem:[#allocation18_spill] sm:$0xff]  ;;  %v14223_v46 = vld [vmem:[#allocation20_spill] sm:$0xff] }
  0xb3   :  { %v5707_v36 = vmul.f32 %v9561_v34, %v9561_v34  ;;  %v5903_v33 = vsel %vm230_vm1, %v5900_v22, %v5902_v37  ;;  %v5907_v6 = vrot.slane %v5704_v4, 1  ;;  %v9595_v42 = vsub.f32 %v14218_v35, %v9431_v62 }
  0xb4   :  { %v6115_v0 = vadd.f32 %v6114_v60, %v6113_v50  ;;  %v5708_v57 = vmul.f32 %v9565_v25, %v9565_v25  ;;  %v5709_v30 = vmul.f32 %v9573_v1, %v9573_v1  ;;  %v6118_v28 = vsel %vm455_vm2, %v5901_v44, 0.0 }
  0xb5   :  { %v5906_v55 = vsel %vm230_vm1, %v5904_v41, %v5905_v47  ;;  %v5909_v17 = vrot.slane %v5705_v63, 1  ;;  %v5910_v48 = vrot.slane %v5706_v5, 1  ;;  %v9605_v21 = vsub.f32 %v14219_v20, %v9431_v62  ;;  %v690_v63 = vld [vmem:[%s13840_s3 + $0x8] sm:$0xff] }
  0xb6   :  { %v6117_v18 = vadd.f32 %v6116_v56, %v6115_v0  ;;  %v9609_v38 = vsub.f32 %v14220_v10, %v9431_v62  ;;  %v6120_v3 = vsel %vm455_vm2, %v5903_v33, 0.0  ;;  %v5710_v22 = vmul.f32 %v9583_v49, %v9583_v49 }
  0xb7   :  { %v5908_v58 = vsel %vm230_vm1, %v5905_v47, %v5907_v6  ;;  %v5912_v8 = vrot.slane %v5707_v36, 1  ;;  %v9617_v4 = vsub.f32 %v14221_v54, %v9431_v62  ;;  %v5711_v7 = vmul.f32 %v9587_v52, %v9587_v52  ;;  %v14222_v47 = vld [vmem:[#allocation19_spill] sm:$0xff] }
  0xb8   :  { %v6119_v24 = vadd.f32 %v6118_v28, %v6117_v18  ;;  %v5712_v37 = vmul.f32 %v9595_v42, %v9595_v42  ;;  %v6122_v26 = vsel %vm455_vm2, %v5906_v55, 0.0  ;;  %v5911_v5 = vsel %vm230_vm1, %v5909_v17, %v5910_v48 }
  0xb9   :  { %v5914_v60 = vrot.slane %v5708_v57, 1  ;;  %v5915_v44 = vrot.slane %v5709_v30, 1  ;;  %v9633_v50 = vsub.f32 %v14222_v47, %v9431_v62  ;;  %v9637_v40 = vsub.f32 %v14223_v46, %v9431_v62  ;;  %v14224_v57 = vld [vmem:[#allocation21_spill] sm:$0xff] }
  0xba   :  { %v6121_v41 = vadd.f32 %v6120_v3, %v6119_v24  ;;  %v5713_v56 = vmul.f32 %v9605_v21, %v9605_v21  ;;  %v6124_v36 = vsel %vm455_vm2, %v5908_v58, 0.0  ;;  %v5913_v33 = vsel %vm230_vm1, %v5910_v48, %v5912_v8  ;;  %v14226_v3 = vld [vmem:[#allocation22_spill] sm:$0xff]  ;;  %v14228_v58 = vld [vmem:[#allocation23_spill] sm:$0xff] }
  0xbb   :  { %v5917_v6 = vrot.slane %v5710_v22, 1  ;;  %v7924_v35 = vpack.c.bf16 %v690_v63, %v689_v51  ;;  %v9645_v30 = vsub.f32 %v14224_v57, %v9431_v62  ;;  %v5714_v28 = vmul.f32 %v9609_v38, %v9609_v38 }
  0xbc   :  { %v6123_v0 = vadd.f32 %v6122_v26, %v6121_v41  ;;  %v5715_v55 = vmul.f32 %v9617_v4, %v9617_v4  ;;  %v6126_v17 = vsel %vm455_vm2, %v5911_v5, 0.0  ;;  %v5916_v18 = vsel %vm230_vm1, %v5914_v60, %v5915_v44  ;;  %v691_v26 = vld [vmem:[%s13840_s3 + $0x10] sm:$0x1f] }
  0xbd   :  { %14225 = vst [vmem:[#allocation2_spill] sm:$0xff] %v9645_v30  ;;  %v5919_v20 = vrot.slane %v5711_v7, 1  ;;  %v5920_v10 = vrot.slane %v5712_v37, 1  ;;  %7925 = vmatpush3.bf16.msra.mxu1 %v7924_v35  ;;  %v9655_v22 = vsub.f32 %v14226_v3, %v9431_v62  ;;  %v9659_v8 = vsub.f32 %v14228_v58, %v9431_v62  ;;  %v14231_v5 = vld [vmem:[#allocation24_spill] sm:$0xff] }
  0xbe   :  { %v6125_v48 = vadd.f32 %v6124_v36, %v6123_v0  ;;  %v6128_v24 = vsel %vm455_vm2, %v5913_v33, 0.0  ;;  %v14230_v54 = vmov 0.0   ;;  %v5716_v7 = vmul.f32 %v9633_v50, %v9633_v50 }
  0xbf   :  { %14227 = vst [vmem:[#allocation3_spill] sm:$0xff] %v9655_v22  ;;  %14229 = vst [vmem:[#allocation4_spill] sm:$0xff] %v9659_v8  ;;  %7258 = vmatprep.subr.mxu1 %v14230_v54  ;;  %v5918_v37 = vsel %vm230_vm1, %v5915_v44, %v5917_v6  ;;  %v5922_v51 = vrot.slane %v5713_v56, 1  ;;  %v9671_v60 = vsub.f32 %v14231_v5, %v9431_v62  ;;  %v6130_v46 = vsel %vm455_vm2, %v5916_v18, 0.0  ;;  %v14233_v44 = vld [vmem:[#allocation25_spill] sm:$0xff]  ;;  %v14235_v6 = vld [vmem:[#allocation26_spill] sm:$0xff] }
  0xc0   :  { %v6127_v63 = vadd.f32 %v6126_v17, %v6125_v48  ;;  %v5717_v41 = vmul.f32 %v9637_v40, %v9637_v40  ;;  %v5718_v47 = vmul.f32 %v9645_v30, %v9645_v30  ;;  %v5921_v36 = vsel %vm230_vm1, %v5919_v20, %v5920_v10 }
  0xc1   :  { %14232 = vst [vmem:[#allocation5_spill] sm:$0xff] %v9671_v60  ;;  %v5924_v33 = vrot.slane %v5714_v28, 1  ;;  %v5925_v0 = vrot.slane %v5715_v55, 1  ;;  %7259 = vmatpush3.msk.msra.mxu1 %vm703_vm4, %v691_v26  ;;  %v9681_v56 = vsub.f32 %v14233_v44, %v9431_v62  ;;  %v9685_v57 = vsub.f32 %v14235_v6, %v9431_v62  ;;  %v14237_v55 = vld [vmem:[#allocation27_spill] sm:$0xff] }
  0xc2   :  { %v6129_v35 = vadd.f32 %v6128_v24, %v6127_v63  ;;  %v6132_v17 = vsel %vm455_vm2, %v5918_v37, 0.0  ;;  %v5719_v48 = vmul.f32 %v9655_v22, %v9655_v22  ;;  %v5923_v18 = vsel %vm230_vm1, %v5920_v10, %v5922_v51  ;;  %v14239_v10 = vld [vmem:[#allocation28_spill] sm:$0xff]  ;;  %v14241_v51 = vld [vmem:[#allocation29_spill] sm:$0xff] }
  0xc3   :  { %14234 = vst [vmem:[#allocation6_spill] sm:$0xff] %v9681_v56  ;;  %14236 = vst [vmem:[#allocation7_spill] sm:$0xff] %v9685_v57  ;;  %v5927_v20 = vrot.slane %v5716_v7, 1  ;;  %v9693_v3 = vsub.f32 %v14237_v55, %v9431_v62  ;;  %v5720_v58 = vmul.f32 %v9659_v8, %v9659_v8  ;;  %v5721_v24 = vmul.f32 %v9671_v60, %v9671_v60 }
  0xc4   :  { %v6131_v28 = vadd.f32 %v6130_v46, %v6129_v35  ;;  %v6134_v26 = vsel %vm455_vm2, %v5921_v36, 0.0  ;;  %v5926_v37 = vsel %vm230_vm1, %v5924_v33, %v5925_v0  ;;  %v5929_v63 = vrot.slane %v5717_v41, 1  ;;  %v14243_v41 = vld [vmem:[#allocation30_spill] sm:$0xff] }
  0xc5   :  { %14238 = vst [vmem:[#allocation8_spill] sm:$0xff] %v9693_v3  ;;  %v5930_v5 = vrot.slane %v5718_v47, 1  ;;  %v9703_v7 = vsub.f32 %v14239_v10, %v9431_v62  ;;  %v9707_v46 = vsub.f32 %v14241_v51, %v9431_v62  ;;  %v6136_v35 = vsel %vm455_vm2, %v5923_v18, 0.0 }
  0xc6   :  { %v6133_v44 = vadd.f32 %v6132_v17, %v6131_v28  ;;  %v5722_v6 = vmul.f32 %v9681_v56, %v9681_v56  ;;  %v5928_v36 = vsel %vm230_vm1, %v5925_v0, %v5927_v20  ;;  %v5932_v55 = vrot.slane %v5719_v48, 1  ;;  %v14245_v0 = vld [vmem:[#allocation31_spill] sm:$0xff]  ;;  %v14247_v20 = vld [vmem:[#allocation32_spill] sm:$0xff] }
  0xc7   :  { %14240 = vst [vmem:[#allocation9_spill] sm:$0xff] %v9703_v7  ;;  %14242 = vst [vmem:[#allocation10_spill] sm:$0xff] %v9707_v46  ;;  %v9715_v47 = vsub.f32 %v14243_v41, %v9431_v62  ;;  %v5723_v17 = vmul.f32 %v9685_v57, %v9685_v57  ;;  %v5724_v28 = vmul.f32 %v9693_v3, %v9693_v3  ;;  %v6138_v10 = vsel %vm455_vm2, %v5926_v37, 0.0 }
  0xc8   :  { %v6135_v33 = vadd.f32 %v6134_v26, %v6133_v44  ;;  %v5931_v18 = vsel %vm230_vm1, %v5929_v63, %v5930_v5  ;;  %v5934_v51 = vrot.slane %v5720_v58, 1  ;;  %v5935_v54 = vrot.slane %v5721_v24, 1  ;;  %v14249_v58 = vld [vmem:[#allocation33_spill] sm:$0xff] }
  0xc9   :  { %14244 = vst [vmem:[#allocation11_spill] sm:$0xff] %v9715_v47  ;;  %v9725_v48 = vsub.f32 %v14245_v0, %v9431_v62  ;;  %v9729_v26 = vsub.f32 %v14247_v20, %v9431_v62  ;;  %v6140_v44 = vsel %vm455_vm2, %v5928_v36, 0.0  ;;  %v5725_v41 = vmul.f32 %v9703_v7, %v9703_v7 }
  0xca   :  { %v6137_v56 = vadd.f32 %v6136_v35, %v6135_v33  ;;  %v5933_v37 = vsel %vm230_vm1, %v5930_v5, %v5932_v55  ;;  %v5937_v3 = vrot.slane %v5722_v6, 1  ;;  %v9737_v24 = vsub.f32 %v14249_v58, %v9431_v62  ;;  %v14251_v5 = vld [vmem:[#allocation34_spill] sm:$0xff]  ;;  %v14253_v6 = vld [vmem:[#allocation35_spill] sm:$0xff] }
  0xcb   :  { %14246 = vst [vmem:[#allocation12_spill] sm:$0xff] %v9725_v48  ;;  %14248 = vst [vmem:[#allocation13_spill] sm:$0xff] %v9729_v26  ;;  %v5726_v35 = vmul.f32 %v9707_v46, %v9707_v46  ;;  %v5727_v33 = vmul.f32 %v9715_v47, %v9715_v47  ;;  %v6142_v0 = vsel %vm455_vm2, %v5931_v18, 0.0  ;;  %v5936_v36 = vsel %vm230_vm1, %v5934_v51, %v5935_v54 }
  0xcc   :  { %v6139_v63 = vadd.f32 %v6138_v10, %v6137_v56  ;;  %14250 = vst [vmem:[#allocation14_spill] sm:$0xff] %v9737_v24  ;;  %v5939_v20 = vrot.slane %v5723_v17, 1  ;;  %v5940_v7 = vrot.slane %v5724_v28, 1  ;;  %v9747_v56 = vsub.f32 %v14251_v5, %v9431_v62  ;;  %v14255_v17 = vld [vmem:[#allocation36_spill] sm:$0xff] }
  0xcd   :  { %v9751_v55 = vsub.f32 %v14253_v6, %v9431_v62  ;;  %v6144_v10 = vsel %vm455_vm2, %v5933_v37, 0.0  ;;  %v5728_v58 = vmul.f32 %v9725_v48, %v9725_v48  ;;  %v5938_v18 = vsel %vm230_vm1, %v5935_v54, %v5937_v3  ;;  %v14257_v54 = vld [vmem:[#allocation37_spill] sm:$0xff]  ;;  %v8492_v3 = vld [vmem:[%s13839_s0 + $0x1c8] sm:$0xff] }
  0xce   :  { %v6141_v57 = vadd.f32 %v6140_v44, %v6139_v63  ;;  %14252 = vst [vmem:[#allocation16_spill] sm:$0xff] %v9747_v56  ;;  %v5942_v47 = vrot.slane %v5725_v41, 1  ;;  %v9759_v28 = vsub.f32 %v14255_v17, %v9431_v62  ;;  %v5729_v44 = vmul.f32 %v9729_v26, %v9729_v26 }
  0xcf   :  { %14254 = vst [vmem:[#allocation15_spill] sm:$0xff] %v9751_v55  ;;  %v5730_v63 = vmul.f32 %v9737_v24, %v9737_v24  ;;  %v6146_v5 = vsel %vm455_vm2, %v5936_v36, 0.0  ;;  %v5941_v37 = vsel %vm230_vm1, %v5939_v20, %v5940_v7  ;;  %v5944_v6 = vrot.slane %v5726_v35, 1 }
  0xd0   :  { %v6143_v51 = vadd.f32 %v6142_v0, %v6141_v57  ;;  %14256 = vst [vmem:[#allocation17_spill] sm:$0xff] %v9759_v28  ;;  %v5945_v48 = vrot.slane %v5727_v33, 1  ;;  %v9769_v57 = vsub.f32 %v14257_v54, %v9431_v62  ;;  %v9775_v41 = vsub.f32 %v8492_v3, %v9431_v62 }
  0xd1   :  { %v6148_v0 = vsel %vm455_vm2, %v5938_v18, 0.0  ;;  %v5731_v36 = vmul.f32 %v9747_v56, %v9747_v56  ;;  %v5943_v35 = vsel %vm230_vm1, %v5940_v7, %v5942_v47  ;;  %v5947_v33 = vrot.slane %v5728_v58, 1  ;;  %v8494_v58 = vld [vmem:[%s13839_s0 + $0x1d8] sm:$0x3] }
  0xd2   :  { %v6145_v46 = vadd.f32 %v6144_v10, %v6143_v51  ;;  %14258 = vst [vmem:[#allocation18_spill] sm:$0xff] %v9769_v57  ;;  %14259 = vst [vmem:[#allocation19_spill] sm:$0xff] %v9775_v41  ;;  %v8493_v10 = vld [vmem:[%s13839_s0 + $0x1d0] sm:$0xff]  ;;  %v5732_v17 = vmul.f32 %v9751_v55, %v9751_v55  ;;  %v5733_v18 = vmul.f32 %v9759_v28, %v9759_v28  ;;  %v6150_v54 = vsel %vm455_vm2, %v5941_v37, 0.0 }
  0xd3   :  { %v9785_v51 = vsub.f32 %v8493_v10, %v9431_v62  ;;  %v5946_v3 = vsel %vm230_vm1, %v5944_v6, %v5945_v48  ;;  %v5949_v7 = vrot.slane %v5729_v44, 1  ;;  %v5950_v47 = vrot.slane %v5730_v63, 1  ;;  %v8495_v10 = vld [vmem:[%s13839_s0 + $0x1e0] sm:$0xff] }
  0xd4   :  { %v6147_v20 = vadd.f32 %v6146_v5, %v6145_v46  ;;  %v9797_v5 = vsub.f32 %v8494_v58, %v9431_v62  ;;  %v9803_v28 = vsub.f32 %v8495_v10, %v9431_v62  ;;  %v6152_v37 = vsel %vm455_vm2, %v5943_v35, 0.0 }
  0xd5   :  { %14260 = vst [vmem:[#allocation20_spill] sm:$0xff] %v9785_v51  ;;  %v5734_v44 = vmul.f32 %v9769_v57, %v9769_v57  ;;  %v5948_v63 = vsel %vm230_vm1, %v5945_v48, %v5947_v33  ;;  %v5952_v6 = vrot.slane %v5731_v36, 1  ;;  %v5735_v10 = vmul.f32 %v9775_v41, %v9775_v41 }
  0xd6   :  { %v6149_v46 = vadd.f32 %v6148_v0, %v6147_v20  ;;  %14261 = vst [vmem:[#allocation21_spill] sm:$0xff] %v9797_v5  ;;  %14262 = vst [vmem:[#allocation22_spill] sm:$0xff] %v9803_v28  ;;  %v8496_v20 = vld [vmem:[%s13839_s0 + $0x1e8] sm:$0xff]  ;;  %v5736_v35 = vmul.f32 %v9785_v51, %v9785_v51  ;;  %v6154_v55 = vsel %vm455_vm2, %v5946_v3, 0.0  ;;  %v5951_v57 = vsel %vm230_vm1, %v5949_v7, %v5950_v47 }
  0xd7   :  { %v9813_v58 = vsub.f32 %v8496_v20, %v9431_v62  ;;  %v5954_v48 = vrot.slane %v5732_v17, 1  ;;  %v5955_v36 = vrot.slane %v5733_v18, 1  ;;  %v8498_v20 = vld [vmem:[%s13839_s0 + $0x1f8] sm:$0xff]  ;;  %v6156_v3 = vsel %vm455_vm2, %v5948_v63, 0.0 }
  0xd8   :  { %v6151_v0 = vadd.f32 %v6150_v54, %v6149_v46  ;;  %v8497_v54 = vld [vmem:[%s13839_s0 + $0x1f0] sm:$0x3]  ;;  %v9831_v51 = vsub.f32 %v8498_v20, %v9431_v62  ;;  %v5737_v17 = vmul.f32 %v9797_v5, %v9797_v5  ;;  %v5953_v18 = vsel %vm230_vm1, %v5950_v47, %v5952_v6  ;;  %v8500_v6 = vld [vmem:[%s13839_s0 + $0x208] sm:$0x3] }
  0xd9   :  { %14263 = vst [vmem:[#allocation23_spill] sm:$0xff] %v9813_v58  ;;  %v9825_v46 = vsub.f32 %v8497_v54, %v9431_v62  ;;  %v5957_v7 = vrot.slane %v5734_v44, 1  ;;  %v5738_v20 = vmul.f32 %v9803_v28, %v9803_v28  ;;  %v5739_v63 = vmul.f32 %v9813_v58, %v9813_v58 }
  0xda   :  { %v6153_v33 = vadd.f32 %v6152_v37, %v6151_v0  ;;  %14265 = vst [vmem:[#allocation25_spill] sm:$0xff] %v9831_v51  ;;  %v8499_v0 = vld [vmem:[%s13839_s0 + $0x200] sm:$0xff]  ;;  %v6158_v41 = vsel %vm455_vm2, %v5951_v57, 0.0  ;;  %v5956_v5 = vsel %vm230_vm1, %v5954_v48, %v5955_v36  ;;  %v5959_v47 = vrot.slane %v5735_v10, 1 }
  0xdb   :  { %14264 = vst [vmem:[#allocation24_spill] sm:$0xff] %v9825_v46  ;;  %v9841_v54 = vsub.f32 %v8499_v0, %v9431_v62  ;;  %v5960_v44 = vrot.slane %v5736_v35, 1  ;;  %v8501_v0 = vld [vmem:[%s13839_s0 + $0x210] sm:$0xff]  ;;  %v6160_v57 = vsel %vm455_vm2, %v5953_v18, 0.0  ;;  %v5740_v10 = vmul.f32 %v9825_v46, %v9825_v46 }
  0xdc   :  { %v6155_v37 = vadd.f32 %v6154_v55, %v6153_v33  ;;  %v9853_v33 = vsub.f32 %v8500_v6, %v9431_v62  ;;  %v9859_v58 = vsub.f32 %v8501_v0, %v9431_v62  ;;  %v5958_v35 = vsel %vm230_vm1, %v5955_v36, %v5957_v7  ;;  %v8503_v7 = vld [vmem:[%s13839_s0 + $0x220] sm:$0x3] }
  0xdd   :  { %14266 = vst [vmem:[#allocation26_spill] sm:$0xff] %v9841_v54  ;;  %v5962_v48 = vrot.slane %v5737_v17, 1  ;;  %v5741_v0 = vmul.f32 %v9831_v51, %v9831_v51  ;;  %v5742_v18 = vmul.f32 %v9841_v54, %v9841_v54  ;;  %v6162_v28 = vsel %vm455_vm2, %v5956_v5, 0.0 }
  0xde   :  { %v6157_v55 = vadd.f32 %v6156_v3, %v6155_v37  ;;  %14267 = vst [vmem:[#allocation27_spill] sm:$0xff] %v9853_v33  ;;  %14268 = vst [vmem:[#allocation28_spill] sm:$0xff] %v9859_v58  ;;  %v8502_v37 = vld [vmem:[%s13839_s0 + $0x218] sm:$0xff]  ;;  %v5961_v46 = vsel %vm230_vm1, %v5959_v47, %v5960_v44  ;;  %v5964_v36 = vrot.slane %v5738_v20, 1  ;;  %v5965_v17 = vrot.slane %v5739_v63, 1 }
  0xdf   :  { %v9869_v6 = vsub.f32 %v8502_v37, %v9431_v62  ;;  %v8504_v37 = vld [vmem:[%s13839_s0 + $0x228] sm:$0xff]  ;;  %v6164_v5 = vsel %vm455_vm2, %v5958_v35, 0.0  ;;  %v5743_v20 = vmul.f32 %v9853_v33, %v9853_v33  ;;  %v5963_v63 = vsel %vm230_vm1, %v5960_v44, %v5962_v48  ;;  %v8506_v48 = vld [vmem:[%s13839_s0 + $0x238] sm:$0x3] }
  0xe0   :  { %v6159_v3 = vadd.f32 %v6158_v41, %v6157_v55  ;;  %v9881_v55 = vsub.f32 %v8503_v7, %v9431_v62  ;;  %v9887_v54 = vsub.f32 %v8504_v37, %v9431_v62  ;;  %v5967_v47 = vrot.slane %v5740_v10, 1 }
  0xe1   :  { %14269 = vst [vmem:[#allocation29_spill] sm:$0xff] %v9869_v6  ;;  %v5744_v37 = vmul.f32 %v9859_v58, %v9859_v58  ;;  %v5745_v35 = vmul.f32 %v9869_v6, %v9869_v6  ;;  %v6166_v51 = vsel %vm455_vm2, %v5961_v46, 0.0  ;;  %v5966_v33 = vsel %vm230_vm1, %v5964_v36, %v5965_v17  ;;  %v8508_v46 = vld [vmem:[%s13839_s0 + $0x248] sm:$0xff] }
  0xe2   :  { %v6161_v41 = vadd.f32 %v6160_v57, %v6159_v3  ;;  %14270 = vst [vmem:[#allocation30_spill] sm:$0xff] %v9881_v55  ;;  %14271 = vst [vmem:[#allocation31_spill] sm:$0xff] %v9887_v54  ;;  %v8505_v3 = vld [vmem:[%s13839_s0 + $0x230] sm:$0xff]  ;;  %v5969_v44 = vrot.slane %v5741_v0, 1  ;;  %v5970_v10 = vrot.slane %v5742_v18, 1  ;;  %v9921_v0 = vsub.f32 %v8508_v46, %v9431_v62 }
  0xe3   :  { %v9897_v7 = vsub.f32 %v8505_v3, %v9431_v62  ;;  %v8507_v3 = vld [vmem:[%s13839_s0 + $0x240] sm:$0xff]  ;;  %v6168_v18 = vsel %vm455_vm2, %v5963_v63, 0.0  ;;  %v5746_v36 = vmul.f32 %v9881_v55, %v9881_v55  ;;  %v5747_v46 = vmul.f32 %v9887_v54, %v9887_v54 }
  0xe4   :  { %v6163_v57 = vadd.f32 %v6162_v28, %v6161_v41  ;;  %v9909_v41 = vsub.f32 %v8506_v48, %v9431_v62  ;;  %v9915_v6 = vsub.f32 %v8507_v3, %v9431_v62  ;;  %14275 = vst [vmem:[#allocation35_spill] sm:$0xff] %v9921_v0  ;;  %v8509_v3 = vld [vmem:[%s13839_s0 + $0x250] sm:$0x3]  ;;  %v6170_v56 = vsel %vm455_vm2, %v5966_v33, 0.0  ;;  %v8512_v33 = vld [vmem:[%s13839_s0 + $0x268] sm:$0x3] }
  0xe5   :  { %14272 = vst [vmem:[#allocation32_spill] sm:$0xff] %v9897_v7  ;;  %v9931_v58 = vsub.f32 %v8509_v3, %v9431_v62  ;;  %v5748_v63 = vmul.f32 %v9897_v7, %v9897_v7  ;;  %v5971_v55 = vsel %vm230_vm1, %v5969_v44, %v5970_v10  ;;  %v8511_v3 = vld [vmem:[%s13839_s0 + $0x260] sm:$0xff] }
  0xe6   :  { %v6165_v28 = vadd.f32 %v6164_v5, %v6163_v57  ;;  %14273 = vst [vmem:[#allocation33_spill] sm:$0xff] %v9909_v41  ;;  %14274 = vst [vmem:[#allocation34_spill] sm:$0xff] %v9915_v6  ;;  %v5968_v5 = vsel %vm230_vm1, %v5965_v17, %v5967_v47  ;;  %v5972_v57 = vrot.slane %v5743_v20, 1  ;;  %v5974_v17 = vrot.slane %v5744_v37, 1  ;;  %v8510_v47 = vld [vmem:[%s13839_s0 + $0x258] sm:$0xff] }
  0xe7   :  { %14276 = vst [vmem:[#allocation36_spill] sm:$0xff] %v9931_v58  ;;  %v5975_v20 = vrot.slane %v5745_v35, 1  ;;  %v9949_v7 = vsub.f32 %v8511_v3, %v9431_v62  ;;  %v9955_v37 = vsub.f32 %v8512_v33, %v9431_v62  ;;  %v6172_v35 = vsel %vm455_vm2, %v5968_v5, 0.0  ;;  %v8513_v3 = vld [vmem:[%s13839_s0 + $0x270] sm:$0xff] }
  0xe8   :  { %v6167_v48 = vadd.f32 %v6166_v51, %v6165_v28  ;;  %v9943_v28 = vsub.f32 %v8510_v47, %v9431_v62  ;;  %v5749_v44 = vmul.f32 %v9909_v41, %v9909_v41  ;;  %v9965_v54 = vsub.f32 %v8513_v3, %v9431_v62  ;;  %v8514_v3 = vld [vmem:[%s13839_s0 + $0x278] sm:$0xff] }
  0xe9   :  { %v5750_v33 = vmul.f32 %v9915_v6, %v9915_v6  ;;  %v5751_v5 = vmul.f32 %v9921_v0, %v9921_v0  ;;  %v6174_v24 = vsel %vm455_vm2, %v5971_v55, 0.0  ;;  %v9980_v6 = vsub.f32 %v8514_v3, %v9431_v62 }
  0xea   :  { %v6169_v51 = vadd.f32 %v6168_v18, %v6167_v48  ;;  %14277 = vst [vmem:[#allocation37_spill] sm:$0xff] %v9943_v28  ;;  %v5973_v18 = vsel %vm230_vm1, %v5970_v10, %v5972_v57  ;;  %v5977_v48 = vrot.slane %v5746_v36, 1  ;;  %v6441_v10 = vld [vmem:[%s13841_s2] ss:$0 sm:$0xff]  ;;  %v5979_v36 = vrot.slane %v5747_v46, 1 }
  0xeb   :  { %v5980_v57 = vrot.slane %v5748_v63, 1  ;;  %v5752_v0 = vmul.f32 %v9931_v58, %v9931_v58  ;;  %v5753_v55 = vmul.f32 %v9943_v28, %v9943_v28  ;;  %v6176_v41 = vsel %vm455_vm2, %v5973_v18, 0.0 }
  0xec   :  { %v6171_v47 = vadd.f32 %v6170_v56, %v6169_v51  ;;  %v5976_v56 = vsel %vm230_vm1, %v5974_v17, %v5975_v20  ;;  %v5978_v46 = vsel %vm230_vm1, %v5975_v20, %v5977_v48  ;;  %v5982_v63 = vrot.slane %v5749_v44, 1  ;;  %v8515_v20 = vld [vmem:[%s13839_s0 + $0x280] sm:$0x3] }
  0xed   :  { %v5754_v60 = vmul.f32 %v9949_v7, %v9949_v7  ;;  %v5984_v3 = vrot.slane %v5750_v33, 1  ;;  %v6178_v8 = vsel %vm455_vm2, %v5976_v56, 0.0  ;;  %v5981_v58 = vsel %vm230_vm1, %v5979_v36, %v5980_v57 }
  0xee   :  { %v6173_v51 = vadd.f32 %v6172_v35, %v6171_v47  ;;  %v5985_v22 = vrot.slane %v5751_v5, 1  ;;  %v6180_v18 = vsel %vm455_vm2, %v5978_v46, 0.0  ;;  %v5983_v48 = vsel %vm230_vm1, %v5980_v57, %v5982_v63 }
  0xef   :  { %v5987_v33 = vrot.slane %v5752_v0, 1  ;;  %v5756_v36 = vmul.f32 %v9965_v54, %v9965_v54  ;;  %v6182_v46 = vsel %vm455_vm2, %v5981_v58, 0.0  ;;  %v5989_v0 = vrot.slane %v5753_v55, 1 }
  0xf0   :  { %v6175_v17 = vadd.f32 %v6174_v24, %v6173_v51  ;;  %v9996_v24 = vsub.f32 %v8515_v20, %v9431_v62  ;;  %v5757_v51 = vmul.f32 %v9980_v6, %v9980_v6  ;;  %v5986_v57 = vsel %vm230_vm1, %v5984_v3, %v5985_v22  ;;  %v8520_v20 = vld [vmem:[%s13839_s0 + $0x2a8] sm:$0xff] }
  0xf1   :  { %v6184_v58 = vsel %vm455_vm2, %v5983_v48, 0.0  ;;  %v5988_v55 = vsel %vm230_vm1, %v5985_v22, %v5987_v33  ;;  %v5994_v22 = vrot.slane %v5756_v36, 1 }
  0xf2   :  { %v6177_v28 = vadd.f32 %v6176_v41, %v6175_v17  ;;  %v5755_v41 = vmul.f32 %v9955_v37, %v9955_v37  ;;  %v8519_v17 = vld [vmem:[%s13839_s0 + $0x2a0] sm:$0xff] }
  0xf4   :  { %v6179_v5 = vadd.f32 %v6178_v8, %v6177_v28  ;;  %v5990_v8 = vrot.slane %v5754_v60, 1  ;;  %v8518_v28 = vld [vmem:[%s13839_s0 + $0x298] sm:$0x3]  ;;  %v5758_v60 = vmul.f32 %v9996_v24, %v9996_v24 }
  0xf5   :  { %v10024_v63 = vsub.f32 %v8518_v28, %v9431_v62  ;;  %v8522_v28 = vld [vmem:[%s13839_s0 + $0x2b8] sm:$0xff] }
  0xf7   :  { %14279 = vst [vmem:[#allocation39_spill] sm:$0xff] %v10024_v63  ;;  %v5761_v36 = vmul.f32 %v10024_v63, %v10024_v63 }
 0x13b   :  { %v684_v26 = vpop.f32.mrb[0].mxu0 }
 0x13c   :  { %v685_v35 = vadd.f32 %v6441_v10, %v684_v26  ;;  %v7253_v47 = vpop.f32.mrb[1].mxu0  ;;  %v8516_v26 = vld [vmem:[%s13839_s0 + $0x288] sm:$0xff]  ;;  %v8517_v10 = vld [vmem:[%s13839_s0 + $0x290] sm:$0xff] }
 0x13d   :  { %v10002_v44 = vsub.f32 %v8516_v26, %v9431_v62  ;;  %v10012_v56 = vsub.f32 %v8517_v10, %v9431_v62  ;;  %v5992_v47 = vrot.slane %v5755_v41, 1  ;;  %v10040_v26 = vsub.f32 %v8520_v20, %v9431_v62 }
 0x13e   :  { %v688_v30 = vmax.f32 %v685_v35, 0.0  ;;  %v10030_v35 = vsub.f32 %v8519_v17, %v9431_v62  ;;  %v5991_v10 = vsel %vm230_vm1, %v5989_v0, %v5990_v8  ;;  %v5995_v41 = vrot.slane %v5757_v51, 1 }
 0x13f   :  { %14278 = vst [vmem:[#allocation38_spill] sm:$0xff] %v10012_v56  ;;  %14281 = vst [vmem:[#allocation41_spill] sm:$0xff] %v10040_v26  ;;  %v5760_v48 = vmul.f32 %v10012_v56, %v10012_v56  ;;  %v10058_v17 = vsub.f32 %v8522_v28, %v9431_v62  ;;  %v5993_v51 = vsel %vm230_vm1, %v5990_v8, %v5992_v47  ;;  %v5997_v0 = vrot.slane %v5758_v60, 1 }
 0x140   :  { %7261 = vmatmul.mubr.msk.f32.vlgmr.msra.gmra.mrb[0].mxu1 %vm699_vm5, %v688_v30  ;;  %v6181_v30 = vadd.f32 %v6180_v18, %v6179_v5  ;;  %14280 = vst [vmem:[#allocation40_spill] sm:$0xff] %v10030_v35  ;;  %v5759_v18 = vmul.f32 %v10002_v44, %v10002_v44  ;;  %v6186_v5 = vsel %vm455_vm2, %v5986_v57, 0.0  ;;  %v6188_v57 = vsel %vm455_vm2, %v5988_v55, 0.0 }
 0x141   :  { %14283 = vst [vmem:[#allocation43_spill] sm:$0xff] %v10058_v17  ;;  %v5763_v55 = vmul.f32 %v10040_v26, %v10040_v26  ;;  %v6190_v28 = vsel %vm455_vm2, %v5991_v10, 0.0  ;;  %v5996_v63 = vsel %vm230_vm1, %v5994_v22, %v5995_v41  ;;  %v6000_v60 = vrot.slane %v5760_v48, 1 }
 0x142   :  { %v6183_v3 = vadd.f32 %v6182_v46, %v6181_v30  ;;  %v8521_v46 = vld [vmem:[%s13839_s0 + $0x2b0] sm:$0x3]  ;;  %v5999_v8 = vrot.slane %v5759_v18, 1  ;;  %v6192_v10 = vsel %vm455_vm2, %v5993_v51, 0.0  ;;  %v5998_v48 = vsel %vm230_vm1, %v5995_v41, %v5997_v0 }
 0x143   :  { %v10052_v30 = vsub.f32 %v8521_v46, %v9431_v62  ;;  %v5762_v46 = vmul.f32 %v10030_v35, %v10030_v35  ;;  %v6002_v22 = vrot.slane %v5761_v36, 1  ;;  %v6194_v35 = vsel %vm455_vm2, %v5996_v63, 0.0 }
 0x144   :  { %v6185_v33 = vadd.f32 %v6184_v58, %v6183_v3  ;;  %v8523_v3 = vld [vmem:[%s13839_s0 + $0x2c0] sm:$0xff]  ;;  %v6005_v36 = vrot.slane %v5763_v55, 1  ;;  %v6196_v63 = vsel %vm455_vm2, %v5998_v48, 0.0 }
 0x145   :  { %14282 = vst [vmem:[#allocation42_spill] sm:$0xff] %v10052_v30  ;;  %v10068_v20 = vsub.f32 %v8523_v3, %v9431_v62  ;;  %v8525_v3 = vld [vmem:[%s13839_s0 + $0x2d0] sm:$0xff]  ;;  %v5764_v18 = vmul.f32 %v10052_v30, %v10052_v30  ;;  %v6001_v30 = vsel %vm230_vm1, %v5999_v8, %v6000_v60  ;;  %v6004_v41 = vrot.slane %v5762_v46, 1 }
 0x146   :  { %v6187_v58 = vadd.f32 %v6186_v5, %v6185_v33  ;;  %v8524_v5 = vld [vmem:[%s13839_s0 + $0x2c8] sm:$0x3]  ;;  %v10086_v26 = vsub.f32 %v8525_v3, %v9431_v62  ;;  %v5765_v3 = vmul.f32 %v10058_v17, %v10058_v17  ;;  %v6003_v55 = vsel %vm230_vm1, %v6000_v60, %v6002_v22  ;;  %v8530_v22 = vld [vmem:[%s13839_s0 + $0x2f8] sm:$0x3] }
 0x147   :  { %14284 = vst [vmem:[#allocation44_spill] sm:$0xff] %v10068_v20  ;;  %v10080_v33 = vsub.f32 %v8524_v5, %v9431_v62  ;;  %v5766_v51 = vmul.f32 %v10068_v20, %v10068_v20  ;;  %v6007_v8 = vrot.slane %v5764_v18, 1  ;;  %v6198_v17 = vsel %vm455_vm2, %v6001_v30, 0.0 }
 0x148   :  { %v6189_v47 = vadd.f32 %v6188_v57, %v6187_v58  ;;  %14286 = vst [vmem:[#allocation46_spill] sm:$0xff] %v10086_v26  ;;  %v8526_v58 = vld [vmem:[%s13839_s0 + $0x2d8] sm:$0xff]  ;;  %v6009_v60 = vrot.slane %v5765_v3, 1  ;;  %v6200_v30 = vsel %vm455_vm2, %v6003_v55, 0.0 }
 0x149   :  { %14285 = vst [vmem:[#allocation45_spill] sm:$0xff] %v10080_v33  ;;  %v10096_v5 = vsub.f32 %v8526_v58, %v9431_v62  ;;  %v8528_v58 = vld [vmem:[%s13839_s0 + $0x2e8] sm:$0xff]  ;;  %v5767_v46 = vmul.f32 %v10080_v33, %v10080_v33  ;;  %v6006_v33 = vsel %vm230_vm1, %v6004_v41, %v6005_v36  ;;  %v6010_v18 = vrot.slane %v5766_v51, 1 }
 0x14a   :  { %v6191_v57 = vadd.f32 %v6190_v28, %v6189_v47  ;;  %v8527_v28 = vld [vmem:[%s13839_s0 + $0x2e0] sm:$0x3]  ;;  %v10114_v20 = vsub.f32 %v8528_v58, %v9431_v62  ;;  %v5768_v58 = vmul.f32 %v10086_v26, %v10086_v26  ;;  %v6008_v51 = vsel %vm230_vm1, %v6005_v36, %v6007_v8  ;;  %v8533_v8 = vld [vmem:[%s13839_s0 + $0x310] sm:$0x3] }
 0x14b   :  { %14287 = vst [vmem:[#allocation47_spill] sm:$0xff] %v10096_v5  ;;  %v10108_v47 = vsub.f32 %v8527_v28, %v9431_v62  ;;  %v5769_v48 = vmul.f32 %v10096_v5, %v10096_v5  ;;  %v6012_v41 = vrot.slane %v5767_v46, 1  ;;  %v6202_v26 = vsel %vm455_vm2, %v6006_v33, 0.0 }
 0x14c   :  { %v6193_v0 = vadd.f32 %v6192_v10, %v6191_v57  ;;  %14289 = vst [vmem:[#allocation49_spill] sm:$0xff] %v10114_v20  ;;  %v8529_v57 = vld [vmem:[%s13839_s0 + $0x2f0] sm:$0xff]  ;;  %v6014_v36 = vrot.slane %v5768_v58, 1  ;;  %v6204_v33 = vsel %vm455_vm2, %v6008_v51, 0.0 }
 0x14d   :  { %14288 = vst [vmem:[#allocation48_spill] sm:$0xff] %v10108_v47  ;;  %v10124_v28 = vsub.f32 %v8529_v57, %v9431_v62  ;;  %v8531_v57 = vld [vmem:[%s13839_s0 + $0x300] sm:$0xff]  ;;  %v5770_v3 = vmul.f32 %v10108_v47, %v10108_v47  ;;  %v6011_v47 = vsel %vm230_vm1, %v6009_v60, %v6010_v18  ;;  %v6015_v46 = vrot.slane %v5769_v48, 1 }
 0x14e   :  { %v6195_v10 = vadd.f32 %v6194_v35, %v6193_v0  ;;  %v10136_v0 = vsub.f32 %v8530_v22, %v9431_v62  ;;  %v10142_v5 = vsub.f32 %v8531_v57, %v9431_v62  ;;  %v5771_v57 = vmul.f32 %v10114_v20, %v10114_v20 }
 0x14f   :  { %14290 = vst [vmem:[#allocation50_spill] sm:$0xff] %v10124_v28  ;;  %v5772_v55 = vmul.f32 %v10124_v28, %v10124_v28  ;;  %v6013_v48 = vsel %vm230_vm1, %v6010_v18, %v6012_v41  ;;  %v6017_v60 = vrot.slane %v5770_v3, 1  ;;  %v6206_v20 = vsel %vm455_vm2, %v6011_v47, 0.0  ;;  %v8536_v41 = vld [vmem:[%s13839_s0 + $0x328] sm:$0x3] }
 0x150   :  { %v6197_v35 = vadd.f32 %v6196_v63, %v6195_v10  ;;  %14291 = vst [vmem:[#allocation51_spill] sm:$0xff] %v10136_v0  ;;  %14292 = vst [vmem:[#allocation52_spill] sm:$0xff] %v10142_v5  ;;  %v8532_v10 = vld [vmem:[%s13839_s0 + $0x308] sm:$0xff]  ;;  %v5773_v58 = vmul.f32 %v10136_v0, %v10136_v0  ;;  %v6016_v0 = vsel %vm230_vm1, %v6014_v36, %v6015_v46  ;;  %v6019_v18 = vrot.slane %v5771_v57, 1 }
 0x151   :  { %v10152_v22 = vsub.f32 %v8532_v10, %v9431_v62  ;;  %v8534_v10 = vld [vmem:[%s13839_s0 + $0x318] sm:$0xff]  ;;  %v6020_v3 = vrot.slane %v5772_v55, 1  ;;  %v6208_v47 = vsel %vm455_vm2, %v6013_v48, 0.0  ;;  %v6018_v55 = vsel %vm230_vm1, %v6015_v46, %v6017_v60  ;;  %v8539_v60 = vld [vmem:[%s13839_s0 + $0x340] sm:$0x3] }
 0x152   :  { %v6199_v63 = vadd.f32 %v6198_v17, %v6197_v35  ;;  %v10164_v35 = vsub.f32 %v8533_v8, %v9431_v62  ;;  %v10170_v28 = vsub.f32 %v8534_v10, %v9431_v62  ;;  %v5774_v10 = vmul.f32 %v10142_v5, %v10142_v5 }
 0x153   :  { %14293 = vst [vmem:[#allocation53_spill] sm:$0xff] %v10152_v22  ;;  %v5775_v51 = vmul.f32 %v10152_v22, %v10152_v22  ;;  %v6022_v36 = vrot.slane %v5773_v58, 1  ;;  %v6210_v5 = vsel %vm455_vm2, %v6016_v0, 0.0 }
 0x154   :  { %v6201_v17 = vadd.f32 %v6200_v30, %v6199_v63  ;;  %14294 = vst [vmem:[#allocation54_spill] sm:$0xff] %v10164_v35  ;;  %14295 = vst [vmem:[#allocation55_spill] sm:$0xff] %v10170_v28  ;;  %v8535_v63 = vld [vmem:[%s13839_s0 + $0x320] sm:$0xff]  ;;  %v5776_v57 = vmul.f32 %v10164_v35, %v10164_v35  ;;  %v6021_v35 = vsel %vm230_vm1, %v6019_v18, %v6020_v3  ;;  %v6024_v46 = vrot.slane %v5774_v10, 1 }
 0x155   :  { %v10180_v8 = vsub.f32 %v8535_v63, %v9431_v62  ;;  %v8537_v63 = vld [vmem:[%s13839_s0 + $0x330] sm:$0xff]  ;;  %v6025_v58 = vrot.slane %v5775_v51, 1  ;;  %v6214_v18 = vsel %vm455_vm2, %v6021_v35, 0.0 }
 0x156   :  { %v6203_v30 = vadd.f32 %v6202_v26, %v6201_v17  ;;  %v10192_v17 = vsub.f32 %v8536_v41, %v9431_v62  ;;  %v10198_v22 = vsub.f32 %v8537_v63, %v9431_v62  ;;  %v5777_v63 = vmul.f32 %v10170_v28, %v10170_v28 }
 0x157   :  { %14296 = vst [vmem:[#allocation56_spill] sm:$0xff] %v10180_v8  ;;  %v5778_v48 = vmul.f32 %v10180_v8, %v10180_v8  ;;  %v6023_v8 = vsel %vm230_vm1, %v6020_v3, %v6022_v36  ;;  %v6027_v0 = vrot.slane %v5776_v57, 1 }
 0x158   :  { %v6205_v26 = vadd.f32 %v6204_v33, %v6203_v30  ;;  %14297 = vst [vmem:[#allocation57_spill] sm:$0xff] %v10192_v17  ;;  %14298 = vst [vmem:[#allocation58_spill] sm:$0xff] %v10198_v22  ;;  %v8538_v30 = vld [vmem:[%s13839_s0 + $0x338] sm:$0xff]  ;;  %v5779_v28 = vmul.f32 %v10192_v17, %v10192_v17  ;;  %v5780_v10 = vmul.f32 %v10198_v22, %v10198_v22 }
 0x159   :  { %v10208_v41 = vsub.f32 %v8538_v30, %v9431_v62  ;;  %v6212_v30 = vsel %vm455_vm2, %v6018_v55, 0.0 }
 0x15a   :  { %v6207_v33 = vadd.f32 %v6206_v20, %v6205_v26  ;;  %v10220_v26 = vsub.f32 %v8539_v60, %v9431_v62  ;;  %v6026_v62 = vsel %vm230_vm1, %v6024_v46, %v6025_v58  ;;  %v6216_v60 = vsel %vm455_vm2, %v6023_v8, 0.0 }
 0x15b   :  { %14299 = vst [vmem:[#allocation59_spill] sm:$0xff] %v10208_v41  ;;  %v5781_v51 = vmul.f32 %v10208_v41, %v10208_v41  ;;  %v6032_v57 = vrot.slane %v5779_v28, 1  ;;  %v6034_v22 = vrot.slane %v5780_v10, 1 }
 0x15c   :  { %v6209_v20 = vadd.f32 %v6208_v47, %v6207_v33  ;;  %v6029_v47 = vrot.slane %v5777_v63, 1  ;;  %v6030_v33 = vrot.slane %v5778_v48, 1  ;;  %v5782_v3 = vmul.f32 %v10220_v26, %v10220_v26 }
 0x15d   :  { %v6035_v35 = vrot.slane %v5781_v51, 1 }
 0x15e   :  { %v6211_v56 = vadd.f32 %v6210_v5, %v6209_v20  ;;  %v6028_v5 = vsel %vm230_vm1, %v6025_v58, %v6027_v0  ;;  %v6218_v20 = vsel %vm455_vm2, %v6026_v62, 0.0  ;;  %v6031_v41 = vsel %vm230_vm1, %v6029_v47, %v6030_v33 }
 0x15f   :  { %v6220_v63 = vsel %vm455_vm2, %v6028_v5, 0.0  ;;  %v6037_v48 = vrot.slane %v5782_v3, 1  ;;  %v6222_v46 = vsel %vm455_vm2, %v6031_v41, 0.0 }
 0x160   :  { %v6213_v55 = vadd.f32 %v6212_v30, %v6211_v56  ;;  %v6033_v56 = vsel %vm230_vm1, %v6030_v33, %v6032_v57  ;;  %v6036_v30 = vsel %vm230_vm1, %v6034_v22, %v6035_v35 }
 0x161   :  { %v6224_v28 = vsel %vm455_vm2, %v6033_v56, 0.0  ;;  %v6038_v0 = vsel %vm230_vm1, %v6035_v35, %v6037_v48  ;;  %v6226_v10 = vsel %vm455_vm2, %v6036_v30, 0.0 }
 0x162   :  { %v6215_v36 = vadd.f32 %v6214_v18, %v6213_v55  ;;  %v6228_v62 = vsel %vm455_vm2, %v6038_v0, 0.0  ;;  %v14305_v0 = vld [vmem:[#allocation7_spill] sm:$0xff] }
 0x164   :  { %v6217_v17 = vadd.f32 %v6216_v60, %v6215_v36 }
 0x166   :  { %v6219_v8 = vadd.f32 %v6218_v20, %v6217_v17 }
 0x168   :  { %v6221_v58 = vadd.f32 %v6220_v63, %v6219_v8 }
 0x16a   :  { %v6223_v18 = vadd.f32 %v6222_v46, %v6221_v58  ;;  %v14304_v58 = vld [vmem:[#allocation6_spill] sm:$0xff] }
 0x16c   :  { %v6225_v51 = vadd.f32 %v6224_v28, %v6223_v18 }
 0x16e   :  { %v6227_v47 = vadd.f32 %v6226_v10, %v6225_v51  ;;  %v14306_v10 = vld [vmem:[#allocation8_spill] sm:$0xff] }
 0x170   :  { %v6229_v55 = vadd.f32 %v6228_v62, %v6227_v47  ;;  %v14307_v62 = vld [vmem:[#allocation9_spill] sm:$0xff] }
 0x172   :  { %v6230_v33 = vrot.slane %v6229_v55, 4 }
 0x174   :  { %v6231_v60 = vadd.f32 %v6230_v33, %v6229_v55  ;;  %v14308_v55 = vld [vmem:[#allocation10_spill] sm:$0xff] }
 0x176   :  { %v6232_v17 = vrot.slane %v6231_v60, 2 }
 0x178   :  { %v6233_v3 = vadd.f32 %v6232_v17, %v6231_v60  ;;  %v14309_v60 = vld [vmem:[#allocation11_spill] sm:$0xff] }
 0x17a   :  { %v6234_v41 = vrot.slane %v6233_v3, 1 }
 0x17c   :  { %v6235_v5 = vadd.f32 %v6234_v41, %v6233_v3  ;;  %v14310_v3 = vld [vmem:[#allocation12_spill] sm:$0xff] }
 0x17e   :  { %v6236_v22 = vmul.f32 0.001953125, %v6235_v5  ;;  %v14311_v5 = vld [vmem:[#allocation13_spill] sm:$0xff] }
 0x180   :  { %v6237_v57 = vadd.f32 1e-05, %v6236_v22 }
 0x182   :  { %8486 = vrsqrt.f32 %v6237_v57  ;;  %v14312_v57 = vld [vmem:[#allocation14_spill] sm:$0xff] }
 0x18c   :  { %v10246_v36 = vpop.eup %8486 }
 0x18d   :  { %v6239_v20 = vmul.f32 %v10246_v36, %v9435_v61  ;;  %v6240_v35 = vmul.f32 %v10246_v36, %v9439_v39  ;;  %v6241_v63 = vmul.f32 %v10246_v36, %v9443_v13  ;;  %v6242_v56 = vmul.f32 %v10246_v36, %v9447_v45 }
 0x18e   :  { %v6243_v48 = vmul.f32 %v10246_v36, %v9451_v29  ;;  %v6244_v8 = vmul.f32 %v10246_v36, %v9455_v14  ;;  %v6245_v46 = vmul.f32 %v10246_v36, %v9459_v15  ;;  %v6246_v61 = vmul.f32 %v10246_v36, %v9463_v16 }
 0x18f   :  { %v6247_v39 = vmul.f32 %v10246_v36, %v9477_v59  ;;  %v6248_v13 = vmul.f32 %v10246_v36, %v9483_v32  ;;  %v6249_v45 = vmul.f32 %v10246_v36, %v9487_v9  ;;  %v6250_v29 = vmul.f32 %v10246_v36, %v9495_v2  ;;  %6336 = vst.msk [vmem:[%s13842_s7 - $0x1] sm:$0xfe] %vm6335_vm6, %v6239_v20 }
 0x190   :  { %6337 = vst.msk [vmem:[%s13842_s7 + $0x7] sm:$0xff] %vm455_vm2, %v6240_v35  ;;  %v6251_v14 = vmul.f32 %v10246_v36, %v9499_v23  ;;  %v6252_v15 = vmul.f32 %v10246_v36, %v9505_v43  ;;  %v6253_v16 = vmul.f32 %v10246_v36, %v9515_v53  ;;  %v6254_v59 = vmul.f32 %v10246_v36, %v9519_v12  ;;  %v14313_v35 = vld [vmem:[#allocation16_spill] sm:$0xff] }
 0x191   :  { %6339 = vst.msk [vmem:[%s13842_s7 + $0xf] sm:$0x1] %vm6338_vm7, %v6241_v63  ;;  %6342 = vst.msk [vmem:[%s13842_s7 + $0x1f] sm:$0x1] %vm6338_vm7, %v6244_v8  ;;  %v6255_v32 = vmul.f32 %v10246_v36, %v9523_v11  ;;  %v6256_v9 = vmul.f32 %v10246_v36, %v9539_v27  ;;  %v6257_v2 = vmul.f32 %v10246_v36, %v9543_v31  ;;  %v14315_v8 = vld [vmem:[#allocation17_spill] sm:$0xff] }
 0x192   :  { %6340 = vst.msk [vmem:[%s13842_s7 + $0xf] sm:$0xfe] %vm6335_vm6, %v6242_v56  ;;  %6343 = vst.msk [vmem:[%s13842_s7 + $0x1f] sm:$0xfe] %vm6335_vm6, %v6245_v46  ;;  %v6258_v23 = vmul.f32 %v10246_v36, %v9551_v19  ;;  %v6259_v43 = vmul.f32 %v10246_v36, %v9561_v34  ;;  %v6260_v53 = vmul.f32 %v10246_v36, %v9565_v25  ;;  %v14314_v56 = vld [vmem:[#allocation15_spill] sm:$0xff] }
 0x193   :  { %6341 = vst.msk [vmem:[%s13842_s7 + $0x17] sm:$0xff] %vm455_vm2, %v6243_v48  ;;  %6344 = vst.msk [vmem:[%s13842_s7 + $0x27] sm:$0xff] %vm455_vm2, %v6246_v61  ;;  %v6261_v12 = vmul.f32 %v10246_v36, %v9573_v1  ;;  %v6262_v11 = vmul.f32 %v10246_v36, %v9583_v49  ;;  %v6263_v27 = vmul.f32 %v10246_v36, %v9587_v52  ;;  %v14300_v52 = vld [vmem:[#allocation2_spill] sm:$0xff] }
 0x194   :  { %6345 = vst.msk [vmem:[%s13842_s7 + $0x2f] sm:$0x1] %vm6338_vm7, %v6247_v39  ;;  %6348 = vst.msk [vmem:[%s13842_s7 + $0x3f] sm:$0x1] %vm6338_vm7, %v6250_v29  ;;  %v6264_v31 = vmul.f32 %v10246_v36, %v9595_v42  ;;  %v6265_v19 = vmul.f32 %v10246_v36, %v9605_v21  ;;  %v6266_v34 = vmul.f32 %v10246_v36, %v9609_v38  ;;  %v14301_v21 = vld [vmem:[#allocation3_spill] sm:$0xff]  ;;  %v14316_v61 = vld [vmem:[#allocation18_spill] sm:$0xff] }
 0x195   :  { %6346 = vst.msk [vmem:[%s13842_s7 + $0x2f] sm:$0xfe] %vm6335_vm6, %v6248_v13  ;;  %6349 = vst.msk [vmem:[%s13842_s7 + $0x3f] sm:$0xfe] %vm6335_vm6, %v6251_v14  ;;  %v6267_v25 = vmul.f32 %v10246_v36, %v9617_v4  ;;  %v6268_v1 = vmul.f32 %v10246_v36, %v9633_v50  ;;  %v6269_v49 = vmul.f32 %v10246_v36, %v9637_v40  ;;  %v14302_v4 = vld [vmem:[#allocation4_spill] sm:$0xff]  ;;  %v14303_v40 = vld [vmem:[#allocation5_spill] sm:$0xff] }
 0x196   :  { %6347 = vst.msk [vmem:[%s13842_s7 + $0x37] sm:$0xff] %vm455_vm2, %v6249_v45  ;;  %6350 = vst.msk [vmem:[%s13842_s7 + $0x47] sm:$0xff] %vm455_vm2, %v6252_v15  ;;  %v6270_v42 = vmul.f32 %v10246_v36, %v14300_v52  ;;  %v6271_v38 = vmul.f32 %v10246_v36, %v14301_v21  ;;  %v6272_v50 = vmul.f32 %v10246_v36, %v14302_v4  ;;  %v14317_v13 = vld [vmem:[#allocation19_spill] sm:$0xff]  ;;  %v14318_v29 = vld [vmem:[#allocation20_spill] sm:$0xff] }
 0x197   :  { %6351 = vst.msk [vmem:[%s13842_s7 + $0x4f] sm:$0x1] %vm6338_vm7, %v6253_v16  ;;  %6354 = vst.msk [vmem:[%s13842_s7 + $0x5f] sm:$0x1] %vm6338_vm7, %v6256_v9  ;;  %v6273_v30 = vmul.f32 %v10246_v36, %v14303_v40  ;;  %v6274_v28 = vmul.f32 %v10246_v36, %v14304_v58  ;;  %v6275_v18 = vmul.f32 %v10246_v36, %v14305_v0  ;;  %v14319_v15 = vld [vmem:[#allocation21_spill] sm:$0xff]  ;;  %v14321_v9 = vld [vmem:[#allocation23_spill] sm:$0xff] }
 0x198   :  { %6352 = vst.msk [vmem:[%s13842_s7 + $0x4f] sm:$0xfe] %vm6335_vm6, %v6254_v59  ;;  %6355 = vst.msk [vmem:[%s13842_s7 + $0x5f] sm:$0xfe] %vm6335_vm6, %v6257_v2  ;;  %v6276_v51 = vmul.f32 %v10246_v36, %v14306_v10  ;;  %v6277_v47 = vmul.f32 %v10246_v36, %v14307_v62  ;;  %v6278_v33 = vmul.f32 %v10246_v36, %v14308_v55  ;;  %v14320_v59 = vld [vmem:[#allocation22_spill] sm:$0xff]  ;;  %v14329_v21 = vld [vmem:[#allocation31_spill] sm:$0xff] }
 0x199   :  { %6353 = vst.msk [vmem:[%s13842_s7 + $0x57] sm:$0xff] %vm455_vm2, %v6255_v32  ;;  %6356 = vst.msk [vmem:[%s13842_s7 + $0x67] sm:$0xff] %vm455_vm2, %v6258_v23  ;;  %v6279_v17 = vmul.f32 %v10246_v36, %v14309_v60  ;;  %v6280_v41 = vmul.f32 %v10246_v36, %v14310_v3  ;;  %v6281_v22 = vmul.f32 %v10246_v36, %v14311_v5  ;;  %v14322_v23 = vld [vmem:[#allocation24_spill] sm:$0xff]  ;;  %v14328_v52 = vld [vmem:[#allocation30_spill] sm:$0xff] }
 0x19a   :  { %6357 = vst.msk [vmem:[%s13842_s7 + $0x6f] sm:$0x1] %vm6338_vm7, %v6259_v43  ;;  %6360 = vst.msk [vmem:[%s13842_s7 + $0x7f] sm:$0x1] %vm6338_vm7, %v6262_v11  ;;  %v6282_v20 = vmul.f32 %v10246_v36, %v14312_v57  ;;  %v6283_v63 = vmul.f32 %v10246_v36, %v14313_v35  ;;  %v6284_v48 = vmul.f32 %v10246_v36, %v14314_v56  ;;  %v14324_v11 = vld [vmem:[#allocation26_spill] sm:$0xff]  ;;  %v14330_v4 = vld [vmem:[#allocation32_spill] sm:$0xff] }
 0x19b   :  { %6358 = vst.msk [vmem:[%s13842_s7 + $0x6f] sm:$0xfe] %vm6335_vm6, %v6260_v53  ;;  %6361 = vst.msk [vmem:[%s13842_s7 + $0x7f] sm:$0xfe] %vm6335_vm6, %v6263_v27  ;;  %v6285_v46 = vmul.f32 %v10246_v36, %v14315_v8  ;;  %v6286_v39 = vmul.f32 %v10246_v36, %v14316_v61  ;;  %v6287_v45 = vmul.f32 %v10246_v36, %v14317_v13  ;;  %v14323_v53 = vld [vmem:[#allocation25_spill] sm:$0xff]  ;;  %v14332_v58 = vld [vmem:[#allocation34_spill] sm:$0xff] }
 0x19c   :  { %6359 = vst.msk [vmem:[%s13842_s7 + $0x77] sm:$0xff] %vm455_vm2, %v6261_v12  ;;  %6362 = vst.msk [vmem:[%s13842_s7 + $0x87] sm:$0xff] %vm455_vm2, %v6264_v31  ;;  %v6288_v14 = vmul.f32 %v10246_v36, %v14318_v29  ;;  %v6289_v16 = vmul.f32 %v10246_v36, %v14319_v15  ;;  %v6290_v32 = vmul.f32 %v10246_v36, %v14320_v59  ;;  %v14325_v31 = vld [vmem:[#allocation27_spill] sm:$0xff]  ;;  %v14331_v40 = vld [vmem:[#allocation33_spill] sm:$0xff] }
 0x19d   :  { %6363 = vst.msk [vmem:[%s13842_s7 + $0x8f] sm:$0x1] %vm6338_vm7, %v6265_v19  ;;  %6366 = vst.msk [vmem:[%s13842_s7 + $0x9f] sm:$0x1] %vm6338_vm7, %v6268_v1  ;;  %v6291_v2 = vmul.f32 %v10246_v36, %v14321_v9  ;;  %v6292_v43 = vmul.f32 %v10246_v36, %v14322_v23  ;;  %v6293_v12 = vmul.f32 %v10246_v36, %v14323_v53  ;;  %v14327_v1 = vld [vmem:[#allocation29_spill] sm:$0xff]  ;;  %v14333_v0 = vld [vmem:[#allocation35_spill] sm:$0xff] }
 0x19e   :  { %6364 = vst.msk [vmem:[%s13842_s7 + $0x8f] sm:$0xfe] %vm6335_vm6, %v6266_v34  ;;  %6367 = vst.msk [vmem:[%s13842_s7 + $0x9f] sm:$0xfe] %vm6335_vm6, %v6269_v49  ;;  %v6294_v27 = vmul.f32 %v10246_v36, %v14324_v11  ;;  %v6295_v19 = vmul.f32 %v10246_v36, %v14325_v31  ;;  %v14326_v34 = vld [vmem:[#allocation28_spill] sm:$0xff]  ;;  %v6297_v49 = vmul.f32 %v10246_v36, %v14327_v1  ;;  %v14335_v62 = vld [vmem:[#allocation37_spill] sm:$0xff] }
 0x19f   :  { %6365 = vst.msk [vmem:[%s13842_s7 + $0x97] sm:$0xff] %vm455_vm2, %v6267_v25  ;;  %6368 = vst.msk [vmem:[%s13842_s7 + $0xa7] sm:$0xff] %vm455_vm2, %v6270_v42  ;;  %v6296_v25 = vmul.f32 %v10246_v36, %v14326_v34  ;;  %v6298_v42 = vmul.f32 %v10246_v36, %v14328_v52  ;;  %v14334_v10 = vld [vmem:[#allocation36_spill] sm:$0xff]  ;;  %v6306_v55 = vmul.f32 %v10246_v36, %v9949_v7  ;;  %v14340_v57 = vld [vmem:[#allocation42_spill] sm:$0xff] }
 0x1a0   :  { %6369 = vst.msk [vmem:[%s13842_s7 + $0xaf] sm:$0x1] %vm6338_vm7, %v6271_v38  ;;  %6372 = vst.msk [vmem:[%s13842_s7 + $0xbf] sm:$0x1] %vm6338_vm7, %v6274_v28  ;;  %v6299_v38 = vmul.f32 %v10246_v36, %v14329_v21  ;;  %v6302_v28 = vmul.f32 %v10246_v36, %v14332_v58  ;;  %v6307_v7 = vmul.f32 %v10246_v36, %v9955_v37  ;;  %v14341_v35 = vld [vmem:[#allocation43_spill] sm:$0xff]  ;;  %v14342_v56 = vld [vmem:[#allocation44_spill] sm:$0xff] }
 0x1a1   :  { %6370 = vst.msk [vmem:[%s13842_s7 + $0xaf] sm:$0xfe] %vm6335_vm6, %v6272_v50  ;;  %6373 = vst.msk [vmem:[%s13842_s7 + $0xbf] sm:$0xfe] %vm6335_vm6, %v6275_v18  ;;  %v6300_v50 = vmul.f32 %v10246_v36, %v14330_v4  ;;  %v6303_v18 = vmul.f32 %v10246_v36, %v14333_v0  ;;  %v6309_v60 = vmul.f32 %v10246_v36, %v9980_v6  ;;  %v14336_v6 = vld [vmem:[#allocation38_spill] sm:$0xff]  ;;  %v14343_v8 = vld [vmem:[#allocation45_spill] sm:$0xff] }
 0x1a2   :  { %6371 = vst.msk [vmem:[%s13842_s7 + $0xb7] sm:$0xff] %vm455_vm2, %v6273_v30  ;;  %6374 = vst.msk [vmem:[%s13842_s7 + $0xc7] sm:$0xff] %vm455_vm2, %v6276_v51  ;;  %v6301_v30 = vmul.f32 %v10246_v36, %v14331_v40  ;;  %v6304_v51 = vmul.f32 %v10246_v36, %v14334_v10  ;;  %v6312_v37 = vmul.f32 %v10246_v36, %v14336_v6  ;;  %v14344_v61 = vld [vmem:[#allocation46_spill] sm:$0xff]  ;;  %v14345_v13 = vld [vmem:[#allocation47_spill] sm:$0xff] }
 0x1a3   :  { %6375 = vst.msk [vmem:[%s13842_s7 + $0xcf] sm:$0x1] %vm6338_vm7, %v6277_v47  ;;  %6378 = vst.msk [vmem:[%s13842_s7 + $0xdf] sm:$0x1] %vm6338_vm7, %v6280_v41  ;;  %v6305_v47 = vmul.f32 %v10246_v36, %v14335_v62  ;;  %v14338_v41 = vld [vmem:[#allocation40_spill] sm:$0xff]  ;;  %v14347_v15 = vld [vmem:[#allocation49_spill] sm:$0xff]  ;;  %v6334_v4 = vmul.f32 %v10246_v36, %v10220_v26 }
 0x1a4   :  { %6376 = vst.msk [vmem:[%s13842_s7 + $0xcf] sm:$0xfe] %vm6335_vm6, %v6278_v33  ;;  %6379 = vst.msk [vmem:[%s13842_s7 + $0xdf] sm:$0xfe] %vm6335_vm6, %v6281_v22  ;;  %v6308_v33 = vmul.f32 %v10246_v36, %v9965_v54  ;;  %v6311_v54 = vmul.f32 %v10246_v36, %v10002_v44  ;;  %v6314_v5 = vmul.f32 %v10246_v36, %v14338_v41  ;;  %v14339_v44 = vld [vmem:[#allocation41_spill] sm:$0xff]  ;;  %v14346_v29 = vld [vmem:[#allocation48_spill] sm:$0xff] }
 0x1a5   :  { %6377 = vst.msk [vmem:[%s13842_s7 + $0xd7] sm:$0xff] %vm455_vm2, %v6279_v17  ;;  %6380 = vst.msk [vmem:[%s13842_s7 + $0xe7] sm:$0xff] %vm455_vm2, %v6282_v20  ;;  %v6310_v17 = vmul.f32 %v10246_v36, %v9996_v24  ;;  %v14337_v24 = vld [vmem:[#allocation39_spill] sm:$0xff]  ;;  %v6315_v22 = vmul.f32 %v10246_v36, %v14339_v44  ;;  %v6316_v20 = vmul.f32 %v10246_v36, %v14340_v57  ;;  %v14348_v59 = vld [vmem:[#allocation50_spill] sm:$0xff] }
 0x1a6   :  { %6381 = vst.msk [vmem:[%s13842_s7 + $0xef] sm:$0x1] %vm6338_vm7, %v6283_v63  ;;  %6384 = vst.msk [vmem:[%s13842_s7 + $0xff] sm:$0x1] %vm6338_vm7, %v6286_v39  ;;  %v6313_v3 = vmul.f32 %v10246_v36, %v14337_v24  ;;  %v6317_v63 = vmul.f32 %v10246_v36, %v14341_v35  ;;  %v6320_v39 = vmul.f32 %v10246_v36, %v14344_v61  ;;  %v14349_v9 = vld [vmem:[#allocation51_spill] sm:$0xff]  ;;  %v14350_v23 = vld [vmem:[#allocation52_spill] sm:$0xff] }
 0x1a7   :  { %6382 = vst.msk [vmem:[%s13842_s7 + $0xef] sm:$0xfe] %vm6335_vm6, %v6284_v48  ;;  %6385 = vst.msk [vmem:[%s13842_s7 + $0xff] sm:$0xfe] %vm6335_vm6, %v6287_v45  ;;  %v6318_v48 = vmul.f32 %v10246_v36, %v14342_v56  ;;  %v6321_v45 = vmul.f32 %v10246_v36, %v14345_v13  ;;  %v14351_v53 = vld [vmem:[#allocation53_spill] sm:$0xff]  ;;  %v14352_v11 = vld [vmem:[#allocation54_spill] sm:$0xff] }
 0x1a8   :  { %6383 = vst.msk [vmem:[%s13842_s7 + $0xf7] sm:$0xff] %vm455_vm2, %v6285_v46  ;;  %6386 = vst.msk [vmem:[%s13842_s7 + $0x107] sm:$0xff] %vm455_vm2, %v6288_v14  ;;  %v6319_v46 = vmul.f32 %v10246_v36, %v14343_v8  ;;  %v6322_v14 = vmul.f32 %v10246_v36, %v14346_v29  ;;  %v14353_v31 = vld [vmem:[#allocation55_spill] sm:$0xff]  ;;  %v14354_v34 = vld [vmem:[#allocation56_spill] sm:$0xff] }
 0x1a9   :  { %6387 = vst.msk [vmem:[%s13842_s7 + $0x10f] sm:$0x1] %vm6338_vm7, %v6289_v16  ;;  %6390 = vst.msk [vmem:[%s13842_s7 + $0x11f] sm:$0x1] %vm6338_vm7, %v6292_v43  ;;  %v6323_v16 = vmul.f32 %v10246_v36, %v14347_v15  ;;  %v6326_v43 = vmul.f32 %v10246_v36, %v14350_v23  ;;  %v14355_v1 = vld [vmem:[#allocation57_spill] sm:$0xff]  ;;  %v14356_v52 = vld [vmem:[#allocation58_spill] sm:$0xff] }
 0x1aa   :  { %6388 = vst.msk [vmem:[%s13842_s7 + $0x10f] sm:$0xfe] %vm6335_vm6, %v6290_v32  ;;  %6391 = vst.msk [vmem:[%s13842_s7 + $0x11f] sm:$0xfe] %vm6335_vm6, %v6293_v12  ;;  %v6324_v32 = vmul.f32 %v10246_v36, %v14348_v59  ;;  %v6327_v12 = vmul.f32 %v10246_v36, %v14351_v53  ;;  %v14357_v21 = vld [vmem:[#allocation59_spill] sm:$0xff]  ;;  %v8450_v26 = vld [vmem:[%s13843_s5 + $0x80] sm:$0xff]  }
 0x1ab   :  { %6389 = vst.msk [vmem:[%s13842_s7 + $0x117] sm:$0xff] %vm455_vm2, %v6291_v2  ;;  %6392 = vst.msk [vmem:[%s13842_s7 + $0x127] sm:$0xff] %vm455_vm2, %v6294_v27  ;;  %v6325_v2 = vmul.f32 %v10246_v36, %v14349_v9  ;;  %v6328_v27 = vmul.f32 %v10246_v36, %v14352_v11  ;;  %7926 = vmatprep.subr.bf16.mxu1 %v8450_v26  ;;  %v8453_v40 = vld [vmem:[%s13843_s5 + $0x28] sm:$0xff]   ;;  %v8455_v58 = vld [vmem:[%s13843_s5 + $0x30] sm:$0xff]  }
 0x1ac   :  { %6393 = vst.msk [vmem:[%s13842_s7 + $0x12f] sm:$0x1] %vm6338_vm7, %v6295_v19  ;;  %6396 = vst.msk [vmem:[%s13842_s7 + $0x13f] sm:$0x1] %vm6338_vm7, %v6298_v42  ;;  %v6329_v19 = vmul.f32 %v10246_v36, %v14353_v31  ;;  %v6332_v42 = vmul.f32 %v10246_v36, %v14356_v52  ;;  %7930 = vmatpush3.bf16.msra.mxu1 %v8450_v26  ;;  %v8457_v0 = vld [vmem:[%s13843_s5 + $0x38] sm:$0xff]   ;;  %v10857_v10 = vld [vmem:[%s13843_s5] sm:$0xff]  }
 0x1ad   :  { %6394 = vst.msk [vmem:[%s13842_s7 + $0x12f] sm:$0xfe] %vm6335_vm6, %v6296_v25  ;;  %6397 = vst.msk [vmem:[%s13842_s7 + $0x13f] sm:$0xfe] %vm6335_vm6, %v6299_v38  ;;  %v6330_v25 = vmul.f32 %v10246_v36, %v14354_v34  ;;  %v6333_v38 = vmul.f32 %v10246_v36, %v14357_v21  ;;  %v26_v35 = vld [vmem:[%s13839_s0] sm:$0xff] }
 0x1ae   :  { %6395 = vst.msk [vmem:[%s13842_s7 + $0x137] sm:$0xff] %vm455_vm2, %v6297_v49  ;;  %6398 = vst.msk [vmem:[%s13842_s7 + $0x147] sm:$0xff] %vm455_vm2, %v6300_v50  ;;  %v6331_v49 = vmul.f32 %v10246_v36, %v14355_v1  ;;  %v8451_v36 = vld [vmem:[%s13843_s5 + $0x20] sm:$0xff]   ;;  %v8452_v50 = vld [vmem:[%s13843_s5 + $0x88] sm:$0xff]  }
 0x1af   :  { %6399 = vst.msk [vmem:[%s13842_s7 + $0x14f] sm:$0x1] %vm6338_vm7, %v6301_v30  ;;  %6402 = vst.msk [vmem:[%s13842_s7 + $0x15f] sm:$0x1] %vm6338_vm7, %v6304_v51  ;;  %7263 = vmatprep.subr.bf16.mxu0 %v8451_v36  ;;  %7927 = vmatprep.subr.bf16.mxu1 %v8452_v50  ;;  %v8454_v30 = vld [vmem:[%s13843_s5 + $0x90] sm:$0xff]   ;;  %v8544_v53 = vld [vmem:[%s13839_s0 + $0x20] sm:$0xff] }
 0x1b0   :  { %6400 = vst.msk [vmem:[%s13842_s7 + $0x14f] sm:$0xfe] %vm6335_vm6, %v6302_v28  ;;  %6403 = vst.msk [vmem:[%s13842_s7 + $0x15f] sm:$0xfe] %vm6335_vm6, %v6305_v47  ;;  %7264 = vmatpush3.bf16.msra.mxu0 %v8451_v36  ;;  %7931 = vmatpush3.bf16.msra.mxu1 %v8452_v50  ;;  %v8456_v28 = vld [vmem:[%s13843_s5 + $0x98] sm:$0xff]   ;;  %v8546_v50 = vld [vmem:[%s13839_s0 + $0x180] sm:$0xff] }
 0x1b1   :  { %6401 = vst.msk [vmem:[%s13842_s7 + $0x157] sm:$0xff] %vm455_vm2, %v6303_v18  ;;  %6404 = vst.msk [vmem:[%s13842_s7 + $0x167] sm:$0xff] %vm455_vm2, %v6306_v55  ;;  %7265 = vmatprep.subr.bf16.mxu0 %v8453_v40  ;;  %7928 = vmatprep.subr.bf16.mxu1 %v8454_v30  ;;  %v10851_v18 = vld [vmem:[%s13843_s5 + $0xa0] sm:$0xff]   ;;  %v28_v56 = vld [vmem:[%s13839_s0 + $0x10] sm:$0x3] }
 0x1b2   :  { %6405 = vst.msk [vmem:[%s13842_s7 + $0x16f] sm:$0x1] %vm6338_vm7, %v6307_v7  ;;  %6408 = vst.msk [vmem:[%s13842_s7 + $0x17f] sm:$0x1] %vm6338_vm7, %v6310_v17  ;;  %v6443_v51 = vld [vmem:[%s13844_s4] ss:$0 sm:$0xff] }
 0x1b3   :  { %6406 = vst.msk [vmem:[%s13842_s7 + $0x16f] sm:$0xfe] %vm6335_vm6, %v6308_v33  ;;  %6409 = vst.msk [vmem:[%s13842_s7 + $0x17f] sm:$0xfe] %vm6335_vm6, %v6311_v54  ;;  %v8643_v54 = vmov 1966171168  }
 0x1b4   :  { %6407 = vst.msk [vmem:[%s13842_s7 + $0x177] sm:$0xff] %vm455_vm2, %v6309_v60  ;;  %6410 = vst.msk [vmem:[%s13842_s7 + $0x187] sm:$0xff] %vm455_vm2, %v6312_v37  ;;  %7266 = vmatpush3.bf16.msra.mxu0 %v8453_v40  ;;  %7932 = vmatpush3.bf16.msra.mxu1 %v8454_v30  ;;  %v784_v6 = vunpack.c.l.s4 %v8643_v54  ;;  %v786_v37 = vlaneseq  ;;  %v8547_v30 = vld [vmem:[%s13839_s0 + $0x188] sm:$0xff]  ;;  %v8551_v54 = vld [vmem:[%s13839_s0 + $0x40] sm:$0x3] }
 0x1b5   :  { %6411 = vst.msk [vmem:[%s13842_s7 + $0x18f] sm:$0x1] %vm6338_vm7, %v6313_v3  ;;  %6414 = vst.msk [vmem:[%s13842_s7 + $0x19f] sm:$0x1] %vm6338_vm7, %v6316_v20  ;;  %7267 = vmatprep.subr.bf16.mxu0 %v8455_v58  ;;  %7929 = vmatprep.subr.bf16.mxu1 %v8456_v28 }
 0x1b6   :  { %6412 = vst.msk [vmem:[%s13842_s7 + $0x18f] sm:$0xfe] %vm6335_vm6, %v6314_v5  ;;  %6415 = vst.msk [vmem:[%s13842_s7 + $0x19f] sm:$0xfe] %vm6335_vm6, %v6317_v63  ;;  %v785_v24 = vunpack.c.0.s8 %v784_v6  ;;  %v787_v3 = vshrl.u32 %v786_v37, 7  ;;  %v27_v63 = vld [vmem:[%s13839_s0 + $0x8] sm:$0xff] }
 0x1b7   :  { %6413 = vst.msk [vmem:[%s13842_s7 + $0x197] sm:$0xff] %vm455_vm2, %v6315_v22  ;;  %6416 = vst.msk [vmem:[%s13842_s7 + $0x1a7] sm:$0xff] %vm455_vm2, %v6318_v48  ;;  %v8462_v37 = vld [vmem:[%s13843_s5 + $0x8] sm:$0xff]  }
 0x1b8   :  { %6417 = vst.msk [vmem:[%s13842_s7 + $0x1af] sm:$0x1] %vm6338_vm7, %v6319_v46  ;;  %6420 = vst.msk [vmem:[%s13842_s7 + $0x1bf] sm:$0x1] %vm6338_vm7, %v6322_v14  ;;  %7268 = vmatpush3.bf16.msra.mxu0 %v8455_v58  ;;  %7933 = vmatpush3.bf16.msra.mxu1 %v8456_v28  ;;  %v788_v41 = vsub.s32 %v785_v24, %v787_v3  ;;  %v807_v22 = vsub.s32 0, %v787_v3  ;;  %v8541_v14 = vld [vmem:[%s13839_s0 + $0x170] sm:$0xff] }
 0x1b9   :  { %6418 = vst.msk [vmem:[%s13842_s7 + $0x1af] sm:$0xfe] %vm6335_vm6, %v6320_v39  ;;  %6421 = vst.msk [vmem:[%s13842_s7 + $0x1bf] sm:$0xfe] %vm6335_vm6, %v6323_v16  ;;  %7269 = vmatprep.subr.bf16.mxu0 %v8457_v0  ;;  %7623 = vmatprep.subr.bf16.mxu1 %v10851_v18  ;;  %v8542_v16 = vld [vmem:[%s13839_s0 + $0x178] sm:$0x3] }
 0x1ba   :  { %6419 = vst.msk [vmem:[%s13842_s7 + $0x1b7] sm:$0xff] %vm455_vm2, %v6321_v45  ;;  %6422 = vst.msk [vmem:[%s13842_s7 + $0x1c7] sm:$0xff] %vm455_vm2, %v6324_v32  ;;  %v8540_v45 = vld [vmem:[%s13839_s0 + $0x168] sm:$0xff]  ;;  %v8543_v32 = vld [vmem:[%s13839_s0 + $0x18] sm:$0xff] }
 0x1bb   :  { %6423 = vst.msk [vmem:[%s13842_s7 + $0x1cf] sm:$0x1] %vm6338_vm7, %v6325_v2  ;;  %6426 = vst.msk [vmem:[%s13842_s7 + $0x1df] sm:$0x1] %vm6338_vm7, %v6328_v27 }
 0x1bc   :  { %6424 = vst.msk [vmem:[%s13842_s7 + $0x1cf] sm:$0xfe] %vm6335_vm6, %v6326_v43  ;;  %6427 = vst.msk [vmem:[%s13842_s7 + $0x1df] sm:$0xfe] %vm6335_vm6, %v6329_v19  ;;  %7270 = vmatpush3.bf16.msra.mxu0 %v8457_v0  ;;  %v8545_v19 = vld [vmem:[%s13839_s0 + $0x28] sm:$0x3] }
 0x1bd   :  { %6425 = vst.msk [vmem:[%s13842_s7 + $0x1d7] sm:$0xff] %vm455_vm2, %v6327_v12  ;;  %6428 = vst.msk [vmem:[%s13842_s7 + $0x1e7] sm:$0xff] %vm455_vm2, %v6330_v25  ;;  %7335 = vmatprep.subr.bf16.mxu0 %v10857_v10  ;;  %v8548_v0 = vld [vmem:[%s13839_s0 + $0x190] sm:$0x3] }
 0x1be   :  { %6429 = vst.msk [vmem:[%s13842_s7 + $0x1ef] sm:$0x1] %vm6338_vm7, %v6331_v49  ;;  %6432 = vst.msk [vmem:[%s13842_s7 + $0x1ff] sm:$0x1] %vm6338_vm7, %v6334_v4 }
 0x1bf   :  { %6430 = vst.msk [vmem:[%s13842_s7 + $0x1ef] sm:$0xfe] %vm6335_vm6, %v6332_v42 }
 0x1c0   :  { %6431 = vst.msk [vmem:[%s13842_s7 + $0x1f7] sm:$0xff] %vm455_vm2, %v6333_v38 }
 0x213   :  { %v773_v62 = vpop.f32.mrb[0].mxu1 }
 0x214   :  { %v774_v47 = vadd.f32 %v6443_v51, %v773_v62  ;;  %v7262_v55 = vpop.f32.mrb[1].mxu1  ;;  %v8549_v62 = vld [vmem:[%s13839_s0 + $0x30] sm:$0xff] }
 0x215   :  { %v8550_v55 = vld [vmem:[%s13839_s0 + $0x38] sm:$0xff] }
 0x216   :  { %v777_v7 = vsub.f32 0.0, %v774_v47 }
 0x218   :  { %v778_v33 = vmul.f32 1.442695, %v777_v7 }
 0x21a   :  { %8488 = vpow2.f32 %v778_v33 }
 0x224   :  { %v8489_v60 = vpop.eup %8488 }
 0x225   :  { %v780_v17 = vadd.f32 1.0, %v8489_v60 }
 0x227   :  { %8490 = vrcp.f32 %v780_v17 }
 0x231   :  { %v8491_v5 = vpop.eup %8490 }
 0x232   :  { %v789_v44 = vrot.slane %v8491_v5, %v788_v41 }
 0x234   :  { %v790_v57 = vcombine.high %v789_v44, %v789_v44  ;;  %v797_v20 = vrot.slane %v789_v44, %v788_v41 }
 0x236   :  { %v804_v48 = vrot.slane %v790_v57, %v788_v41  ;;  %v10872_v8 = vrot.slane %v797_v20, %v807_v22  ;;  %v8552_v20 = vld [vmem:[%s13839_s0 + $0x1c8] sm:$0xff] }
 0x238   :  { %14358 = vst [vmem:[#allocation2_spill] sm:$0xff] %v10872_v8  ;;  %v10874_v46 = vrot.slane %v804_v48, %v807_v22  ;;  %v10877_v61 = vmul.f32 %v10872_v8, %v26_v35  ;;  %v10880_v39 = vmul.f32 %v10872_v8, %v27_v63  ;;  %v10883_v13 = vmul.f32 %v10872_v8, %v28_v56  ;;  %v8553_v63 = vld [vmem:[%s13839_s0 + $0x1d0] sm:$0xff] }
 0x239   :  { %v10889_v29 = vmul.f32 %v8540_v45, %v10872_v8  ;;  %v10895_v15 = vmul.f32 %v8541_v14, %v10872_v8  ;;  %v10901_v59 = vmul.f32 %v8542_v16, %v10872_v8  ;;  %v10907_v9 = vmul.f32 %v8543_v32, %v10872_v8  ;;  %v8554_v14 = vld [vmem:[%s13839_s0 + $0x1d8] sm:$0x3]  ;;  %v8555_v32 = vld [vmem:[%s13839_s0 + $0x48] sm:$0xff] }
 0x23a   :  { %14359 = vst [vmem:[#allocation3_spill] sm:$0xff] %v10877_v61  ;;  %14360 = vst [vmem:[#allocation4_spill] sm:$0xff] %v10880_v39  ;;  %v1059_v2 = vrot.slane %v10877_v61, 1  ;;  %v1060_v23 = vrot.slane %v10880_v39, 1  ;;  %v1062_v43 = vrot.slane %v10883_v13, 1  ;;  %v10916_v12 = vmul.f32 %v8544_v53, %v10872_v8  ;;  %v8612_v39 = vld [vmem:[%s13839_s0 + $0x2b8] sm:$0xff] }
 0x23b   :  { %14361 = vst [vmem:[#allocation5_spill] sm:$0xff] %v10883_v13  ;;  %14362 = vst [vmem:[#allocation6_spill] sm:$0xff] %v10889_v29  ;;  %v1134_v11 = vrot.slane %v10889_v29, 1  ;;  %v1135_v27 = vrot.slane %v10895_v15, 1  ;;  %v1137_v31 = vrot.slane %v10901_v59, 1  ;;  %v10925_v34 = vmul.f32 %v8545_v19, %v10872_v8 }
 0x23c   :  { %14363 = vst [vmem:[#allocation7_spill] sm:$0xff] %v10895_v15  ;;  %14364 = vst [vmem:[#allocation8_spill] sm:$0xff] %v10901_v59  ;;  %v1061_v25 = vsel %vm230_vm1, %v1059_v2, %v1060_v23  ;;  %v1063_v1 = vsel %vm230_vm1, %v1060_v23, %v1062_v43  ;;  %v1064_v49 = vrot.slane %v10907_v9, 1  ;;  %v1065_v52 = vrot.slane %v10916_v12, 1  ;;  %v8613_v15 = vld [vmem:[%s13839_s0 + $0x2c0] sm:$0xff] }
 0x23d   :  { %v1283_v42 = vpack.c.bf16 %v1063_v1, %v1061_v25  ;;  %v1136_v21 = vsel %vm230_vm1, %v1134_v11, %v1135_v27  ;;  %v1138_v38 = vsel %vm230_vm1, %v1135_v27, %v1137_v31  ;;  %v1067_v4 = vrot.slane %v10925_v34, 1  ;;  %v8556_v11 = vld [vmem:[%s13839_s0 + $0x50] sm:$0xff]  ;;  %v8557_v25 = vld [vmem:[%s13839_s0 + $0x58] sm:$0x3] }
 0x23e   :  { %v10934_v26 = vpack.c.bf16 %v1138_v38, %v1136_v21  ;;  %v1066_v36 = vsel %vm230_vm1, %v1064_v49, %v1065_v52  ;;  %v10941_v40 = vmul.f32 %v8546_v50, %v10872_v8  ;;  %v10947_v58 = vmul.f32 %v8547_v30, %v10872_v8  ;;  %v8465_v31 = vld [vmem:[%s13843_s5 + $0x10] sm:$0xff]  }
 0x23f   :  { %7271 = vmatprep.mubr.msk.bf16.mxu0 %vm455_vm2, %v1283_v42  ;;  %v1068_v28 = vsel %vm230_vm1, %v1065_v52, %v1067_v4  ;;  %v10955_v51 = vmul.f32 %v8548_v0, %v10872_v8  ;;  %v10961_v47 = vmul.f32 %v8549_v62, %v10872_v8  ;;  %v10967_v7 = vmul.f32 %v8550_v55, %v10872_v8  ;;  %v8558_v52 = vld [vmem:[%s13839_s0 + $0x1e0] sm:$0xff]  ;;  %v8559_v4 = vld [vmem:[%s13839_s0 + $0x1e8] sm:$0xff]  ;;  %v8560_v50 = vld [vmem:[%s13839_s0 + $0x1f0] sm:$0x3] }
 0x240   :  { %14365 = vst [vmem:[#allocation9_spill] sm:$0xff] %v10934_v26  ;;  %14366 = vst [vmem:[#allocation10_spill] sm:$0xff] %v10941_v40  ;;  %7587 = vmatprep.mubr.msk.bf16.mxu1 %vm455_vm2, %v10934_v26  ;;  %v10971_v33 = vpack.c.bf16 %v1068_v28, %v1066_v36  ;;  %v3281_v60 = vrot.slane %v10941_v40, 1  ;;  %v3282_v17 = vrot.slane %v10947_v58, 1  ;;  %v10979_v6 = vmul.f32 %v8551_v54, %v10872_v8  ;;  %v8561_v62 = vld [vmem:[%s13839_s0 + $0x60] sm:$0xff] }
 0x241   :  { %14367 = vst [vmem:[#allocation11_spill] sm:$0xff] %v10947_v58  ;;  %14368 = vst [vmem:[#allocation12_spill] sm:$0xff] %v10955_v51  ;;  %v3284_v24 = vrot.slane %v10955_v51, 1  ;;  %v1069_v3 = vrot.slane %v10961_v47, 1  ;;  %v1070_v41 = vrot.slane %v10967_v7, 1  ;;  %v10997_v35 = vmul.f32 %v8552_v20, %v10874_v46  ;;  %v8467_v20 = vld [vmem:[%s13843_s5 + $0x18] sm:$0xff]  }
 0x242   :  { %14369 = vst [vmem:[#allocation13_spill] sm:$0xff] %v10971_v33  ;;  %7272 = vmatmul.mubr.msk.bf16.vlgmr.msra.gmra.mrb[4].mxu0 %vm455_vm2, %v10971_v33  ;;  %v3283_v5 = vsel %vm230_vm1, %v3281_v60, %v3282_v17  ;;  %v1072_v44 = vrot.slane %v10979_v6, 1  ;;  %v11003_v56 = vmul.f32 %v8553_v63, %v10874_v46  ;;  %v11013_v16 = vmul.f32 %v8554_v14, %v10874_v46 }
 0x243   :  { %v3285_v22 = vsel %vm230_vm1, %v3282_v17, %v3284_v24  ;;  %v1071_v57 = vsel %vm230_vm1, %v1069_v3, %v1070_v41  ;;  %14370 = vst [vmem:[#allocation14_spill] sm:$0xff] %v10997_v35  ;;  %7336 = vmatpush3.bf16.msra.mxu0 %v10857_v10  ;;  %v11019_v2 = vmul.f32 %v8555_v32, %v10872_v8  ;;  %v8460_v10 = vld [vmem:[%s13843_s5 + $0xa8] sm:$0xff]   ;;  %v1144_v43 = vrot.slane %v10997_v35, 1  ;;  %v8461_v3 = vld [vmem:[%s13843_s5 + $0xb0] sm:$0xff]   ;;  %v8564_v32 = vld [vmem:[%s13839_s0 + $0x1f8] sm:$0xff] }
 0x244   :  { %14371 = vst [vmem:[#allocation16_spill] sm:$0xff] %v11003_v56  ;;  %v11006_v48 = vpack.c.bf16 %v3285_v22, %v3283_v5  ;;  %v1073_v45 = vsel %vm230_vm1, %v1070_v41, %v1072_v44  ;;  %14373 = vst [vmem:[#allocation17_spill] sm:$0xff] %v11013_v16  ;;  %7337 = vmatprep.subr.bf16.mxu0 %v8462_v37  ;;  %v1145_v53 = vrot.slane %v11003_v56, 1  ;;  %v1147_v19 = vrot.slane %v11013_v16, 1  ;;  %v8562_v5 = vld [vmem:[%s13839_s0 + $0x68] sm:$0xff]  ;;  %v8601_v56 = vld [vmem:[%s13839_s0 + $0x290] sm:$0xff] }
 0x245   :  { %v11024_v23 = vpack.c.bf16 %v1073_v45, %v1071_v57  ;;  %v11032_v27 = vmul.f32 %v8556_v11, %v10872_v8  ;;  %v11044_v1 = vmul.f32 %v8557_v25, %v10872_v8  ;;  %v1074_v49 = vrot.slane %v11019_v2, 1  ;;  %v8563_v44 = vld [vmem:[%s13839_s0 + $0x70] sm:$0x3]  ;;  %v8565_v25 = vld [vmem:[%s13839_s0 + $0x200] sm:$0xff] }
 0x246   :  { %14372 = vst [vmem:[#allocation15_spill] sm:$0xff] %v11006_v48  ;;  %7588 = vmatmul.mubr.msk.bf16.vlgmr.msra.gmra.mrb[4].mxu1 %vm455_vm2, %v11006_v48  ;;  %v11051_v42 = vmul.f32 %v8558_v52, %v10874_v46  ;;  %v1146_v21 = vsel %vm230_vm1, %v1144_v43, %v1145_v53  ;;  %v11062_v36 = vmul.f32 %v8559_v4, %v10874_v46  ;;  %v8566_v52 = vld [vmem:[%s13839_s0 + $0x208] sm:$0x3]  ;;  %v8567_v4 = vld [vmem:[%s13839_s0 + $0x78] sm:$0xff] }
 0x247   :  { %14374 = vst [vmem:[#allocation18_spill] sm:$0xff] %v11024_v23  ;;  %7624 = vmatpush3.bf16.msra.mxu1 %v10851_v18  ;;  %7275 = vmatprep.mubr.msk.bf16.mxu0 %vm455_vm2, %v11024_v23  ;;  %v1075_v38 = vrot.slane %v11032_v27, 1  ;;  %v11068_v18 = vmul.f32 %v8560_v50, %v10874_v46  ;;  %v1148_v30 = vsel %vm230_vm1, %v1145_v53, %v1147_v19  ;;  %v1077_v28 = vrot.slane %v11044_v1, 1  ;;  %v8579_v48 = vld [vmem:[%s13839_s0 + $0xa8] sm:$0xff] }
 0x248   :  { %14375 = vst [vmem:[#allocation19_spill] sm:$0xff] %v11051_v42  ;;  %14376 = vst [vmem:[#allocation20_spill] sm:$0xff] %v11062_v36  ;;  %v1149_v0 = vrot.slane %v11051_v42, 1  ;;  %v11077_v55 = vmul.f32 %v8561_v62, %v10872_v8  ;;  %7625 = vmatprep.subr.bf16.mxu1 %v8460_v10  ;;  %7338 = vmatpush3.bf16.msra.mxu0 %v8462_v37  ;;  %v11079_v60 = vpack.c.bf16 %v1148_v30, %v1146_v21  ;;  %v8569_v62 = vld [vmem:[%s13839_s0 + $0x88] sm:$0x3] }
 0x249   :  { %14377 = vst [vmem:[#allocation21_spill] sm:$0xff] %v11068_v18  ;;  %v1076_v17 = vsel %vm230_vm1, %v1074_v49, %v1075_v38  ;;  %v1150_v54 = vrot.slane %v11062_v36, 1  ;;  %v1152_v24 = vrot.slane %v11068_v18, 1  ;;  %7339 = vmatprep.subr.bf16.mxu0 %v8465_v31  ;;  %v1078_v41 = vsel %vm230_vm1, %v1075_v38, %v1077_v28  ;;  %v8600_v36 = vld [vmem:[%s13839_s0 + $0x288] sm:$0xff] }
 0x24a   :  { %v11092_v37 = vmul.f32 %v8562_v5, %v10872_v8  ;;  %v11098_v22 = vmul.f32 %v8563_v44, %v10872_v8  ;;  %v1079_v57 = vrot.slane %v11077_v55, 1  ;;  %7591 = vmatprep.mubr.msk.bf16.mxu1 %vm455_vm2, %v11079_v60  ;;  %v11106_v63 = vpack.c.bf16 %v1078_v41, %v1076_v17 }
 0x24b   :  { %v1151_v45 = vsel %vm230_vm1, %v1149_v0, %v1150_v54  ;;  %v1153_v14 = vsel %vm230_vm1, %v1150_v54, %v1152_v24  ;;  %v11114_v43 = vmul.f32 %v8564_v32, %v10874_v46  ;;  %v11124_v49 = vmul.f32 %v8565_v25, %v10874_v46  ;;  %7626 = vmatpush3.bf16.msra.mxu1 %v8460_v10  ;;  %v8568_v10 = vld [vmem:[%s13839_s0 + $0x80] sm:$0xff]  ;;  %v8463_v54 = vld [vmem:[%s13843_s5 + $0xb8] sm:$0xff]  }
 0x24c   :  { %14378 = vst [vmem:[#allocation22_spill] sm:$0xff] %v11106_v63  ;;  %v11116_v53 = vpack.c.bf16 %v1153_v14, %v1151_v45  ;;  %v1080_v11 = vrot.slane %v11092_v37, 1  ;;  %v1082_v19 = vrot.slane %v11098_v22, 1  ;;  %7340 = vmatpush3.bf16.msra.mxu0 %v8465_v31  ;;  %v11132_v21 = vmul.f32 %v8566_v52, %v10874_v46  ;;  %7627 = vmatprep.subr.bf16.mxu1 %v8461_v3  ;;  %v8570_v14 = vld [vmem:[%s13839_s0 + $0x210] sm:$0xff] }
 0x24d   :  { %14379 = vst [vmem:[#allocation23_spill] sm:$0xff] %v11114_v43  ;;  %14381 = vst [vmem:[#allocation25_spill] sm:$0xff] %v11124_v49  ;;  %7276 = vmatmul.mubr.msk.bf16.gmra.mrb[8].mxu0 %vm455_vm2, %v11106_v63  ;;  %v1154_v38 = vrot.slane %v11114_v43, 1  ;;  %v11139_v50 = vmul.f32 %v8567_v4, %v10872_v8  ;;  %v11145_v31 = vmul.f32 %v8568_v10, %v10872_v8  ;;  %v1155_v0 = vrot.slane %v11124_v49, 1  ;;  %v8573_v10 = vld [vmem:[%s13839_s0 + $0x90] sm:$0xff] }
 0x24e   :  { %14380 = vst [vmem:[#allocation24_spill] sm:$0xff] %v11116_v53  ;;  %14382 = vst [vmem:[#allocation26_spill] sm:$0xff] %v11132_v21  ;;  %7592 = vmatmul.mubr.msk.bf16.gmra.mrb[8].mxu1 %vm455_vm2, %v11116_v53  ;;  %v1081_v30 = vsel %vm230_vm1, %v1079_v57, %v1080_v11  ;;  %v1083_v28 = vsel %vm230_vm1, %v1080_v11, %v1082_v19  ;;  %v11156_v17 = vmul.f32 %v8569_v62, %v10872_v8  ;;  %v8571_v11 = vld [vmem:[%s13839_s0 + $0x218] sm:$0xff] }
 0x24f   :  { %7341 = vmatprep.subr.bf16.mxu0 %v8467_v20  ;;  %v11161_v24 = vpack.c.bf16 %v1083_v28, %v1081_v30  ;;  %v1157_v41 = vrot.slane %v11132_v21, 1  ;;  %v1084_v5 = vrot.slane %v11139_v50, 1  ;;  %v1085_v44 = vrot.slane %v11145_v31, 1  ;;  %7628 = vmatpush3.bf16.msra.mxu1 %v8461_v3 }
 0x250   :  { %v1156_v57 = vsel %vm230_vm1, %v1154_v38, %v1155_v0  ;;  %v1087_v45 = vrot.slane %v11156_v17, 1  ;;  %v11172_v32 = vmul.f32 %v8570_v14, %v10874_v46  ;;  %v11178_v19 = vmul.f32 %v8571_v11, %v10874_v46  ;;  %7342 = vmatpush3.bf16.msra.mxu0 %v8467_v20  ;;  %v8572_v38 = vld [vmem:[%s13839_s0 + $0x220] sm:$0x3]  ;;  %7629 = vmatprep.subr.bf16.mxu1 %v8463_v54  ;;  %v8574_v14 = vld [vmem:[%s13839_s0 + $0x98] sm:$0xff] }
 0x251   :  { %14383 = vst [vmem:[#allocation27_spill] sm:$0xff] %v11161_v24  ;;  %7279 = vmatprep.mubr.msk.bf16.mxu0 %vm455_vm2, %v11161_v24  ;;  %v1158_v25 = vsel %vm230_vm1, %v1155_v0, %v1157_v41  ;;  %v1086_v52 = vsel %vm230_vm1, %v1084_v5, %v1085_v44  ;;  %v11188_v4 = vmul.f32 %v8572_v38, %v10874_v46  ;;  %v11199_v20 = vld [vmem:[%s13843_s5 + $0xc0] sm:$0xff]  }
 0x252   :  { %14384 = vst [vmem:[#allocation28_spill] sm:$0xff] %v11172_v32  ;;  %14385 = vst [vmem:[#allocation29_spill] sm:$0xff] %v11178_v19  ;;  %v11194_v3 = vmul.f32 %v8573_v10, %v10872_v8  ;;  %v11201_v30 = vpack.c.bf16 %v1158_v25, %v1156_v57  ;;  %v1088_v28 = vsel %vm230_vm1, %v1085_v44, %v1087_v45  ;;  %v1159_v0 = vrot.slane %v11172_v32, 1  ;;  %v8575_v44 = vld [vmem:[%s13839_s0 + $0xa0] sm:$0x3]  ;;  %v8577_v10 = vld [vmem:[%s13839_s0 + $0x230] sm:$0xff] }
 0x253   :  { %14386 = vst [vmem:[#allocation30_spill] sm:$0xff] %v11188_v4  ;;  %v1160_v62 = vrot.slane %v11178_v19, 1  ;;  %v11206_v41 = vpack.c.bf16 %v1088_v28, %v1086_v52  ;;  %v1162_v5 = vrot.slane %v11188_v4, 1  ;;  %v11213_v11 = vmul.f32 %v8574_v14, %v10872_v8  ;;  %v8576_v52 = vld [vmem:[%s13839_s0 + $0x228] sm:$0xff]  ;;  %7630 = vmatpush3.bf16.msra.mxu1 %v8463_v54  ;;  %v11252_v54 = vld [vmem:[%s13843_s5 + $0x40] sm:$0xff]  }
 0x254   :  { %14387 = vst [vmem:[#allocation31_spill] sm:$0xff] %v11201_v30  ;;  %v11219_v57 = vmul.f32 %v8575_v44, %v10872_v8  ;;  %7595 = vmatprep.mubr.msk.bf16.mxu1 %vm455_vm2, %v11201_v30  ;;  %v1089_v25 = vrot.slane %v11194_v3, 1  ;;  %v11229_v38 = vmul.f32 %v8576_v52, %v10874_v46  ;;  %v11235_v28 = vmul.f32 %v8577_v10, %v10874_v46  ;;  %v8578_v52 = vld [vmem:[%s13839_s0 + $0x238] sm:$0x3] }
 0x255   :  { %14388 = vst [vmem:[#allocation32_spill] sm:$0xff] %v11206_v41  ;;  %v1161_v45 = vsel %vm230_vm1, %v1159_v0, %v1160_v62  ;;  %7280 = vmatmul.mubr.msk.bf16.gmra.mrb[12].mxu0 %vm455_vm2, %v11206_v41  ;;  %v1163_v0 = vsel %vm230_vm1, %v1160_v62, %v1162_v5  ;;  %v1090_v14 = vrot.slane %v11213_v11, 1  ;;  %v11246_v33 = vmul.f32 %v8578_v52, %v10874_v46 }
 0x256   :  { %14389 = vst [vmem:[#allocation33_spill] sm:$0xff] %v11229_v38  ;;  %14390 = vst [vmem:[#allocation34_spill] sm:$0xff] %v11235_v28  ;;  %v1092_v44 = vrot.slane %v11219_v57, 1  ;;  %7695 = vmatprep.subr.bf16.mxu1 %v11199_v20  ;;  %v11254_v10 = vpack.c.bf16 %v1163_v0, %v1161_v45  ;;  %v1164_v62 = vrot.slane %v11229_v38, 1  ;;  %v1165_v5 = vrot.slane %v11235_v28, 1  ;;  %v8580_v45 = vld [vmem:[%s13839_s0 + $0xb0] sm:$0xff]  ;;  %7407 = vmatprep.subr.bf16.mxu0 %v11252_v54 }
 0x257   :  { %14391 = vst [vmem:[#allocation35_spill] sm:$0xff] %v11246_v33  ;;  %14392 = vst [vmem:[#allocation36_spill] sm:$0xff] %v11252_v54  ;;  %v11262_v52 = vmul.f32 %v8579_v48, %v10872_v8  ;;  %v1091_v41 = vsel %vm230_vm1, %v1089_v25, %v1090_v14  ;;  %v1167_v63 = vrot.slane %v11246_v33, 1  ;;  %v11271_v0 = vmul.f32 %v8580_v45, %v10872_v8  ;;  %v8584_v33 = vld [vmem:[%s13839_s0 + $0x250] sm:$0x3]  ;;  %v8585_v28 = vld [vmem:[%s13839_s0 + $0xc0] sm:$0xff] }
 0x258   :  { %14393 = vst [vmem:[#allocation37_spill] sm:$0xff] %v11254_v10  ;;  %v1093_v24 = vsel %vm230_vm1, %v1090_v14, %v1092_v44  ;;  %7596 = vmatmul.mubr.msk.bf16.gmra.mrb[12].mxu1 %vm455_vm2, %v11254_v10  ;;  %v1166_v25 = vsel %vm230_vm1, %v1164_v62, %v1165_v5  ;;  %v8581_v14 = vld [vmem:[%s13839_s0 + $0xb8] sm:$0x3]  ;;  %v8583_v62 = vld [vmem:[%s13839_s0 + $0x248] sm:$0xff]  ;;  %v11461_v35 = vmul.f32 %v8601_v56, %v10874_v46 }
 0x259   :  { %v11276_v48 = vpack.c.bf16 %v1093_v24, %v1091_v41  ;;  %v11283_v44 = vmul.f32 %v8581_v14, %v10872_v8  ;;  %v1094_v23 = vrot.slane %v11262_v52, 1  ;;  %v1168_v45 = vsel %vm230_vm1, %v1165_v5, %v1167_v63  ;;  %v8582_v24 = vld [vmem:[%s13839_s0 + $0x240] sm:$0xff]  ;;  %v8586_v38 = vld [vmem:[%s13839_s0 + $0xc8] sm:$0xff] }
 0x25a   :  { %v1095_v13 = vrot.slane %v11271_v0, 1  ;;  %v11292_v41 = vmul.f32 %v8582_v24, %v10874_v46  ;;  %v11298_v14 = vmul.f32 %v8583_v62, %v10874_v46  ;;  %v11302_v63 = vpack.c.bf16 %v1168_v45, %v1166_v25  ;;  %14415 = vst [vmem:[#allocation59_spill] sm:$0xff] %v11461_v35  ;;  %v8603_v56 = vld [vmem:[%s13839_s0 + $0x108] sm:$0xff] }
 0x25b   :  { %14394 = vst [vmem:[#allocation38_spill] sm:$0xff] %v11276_v48  ;;  %7283 = vmatprep.mubr.msk.bf16.mxu0 %vm455_vm2, %v11276_v48  ;;  %v1097_v5 = vrot.slane %v11283_v44, 1  ;;  %v11309_v24 = vmul.f32 %v8584_v33, %v10874_v46  ;;  %v11315_v62 = vmul.f32 %v8585_v28, %v10872_v8  ;;  %v11324_v33 = vmul.f32 %v8586_v38, %v10872_v8 }
 0x25c   :  { %14395 = vst [vmem:[#allocation39_spill] sm:$0xff] %v11292_v41  ;;  %14396 = vst [vmem:[#allocation40_spill] sm:$0xff] %v11298_v14  ;;  %v1096_v48 = vsel %vm230_vm1, %v1094_v23, %v1095_v13  ;;  %v1169_v25 = vrot.slane %v11292_v41, 1  ;;  %v1170_v45 = vrot.slane %v11298_v14, 1  ;;  %7599 = vmatprep.mubr.msk.bf16.mxu1 %vm455_vm2, %v11302_v63  ;;  %v8587_v23 = vld [vmem:[%s13839_s0 + $0xd0] sm:$0x3]  ;;  %v11569_v29 = vmul.f32 %v8613_v15, %v10874_v46 }
 0x25d   :  { %14397 = vst [vmem:[#allocation41_spill] sm:$0xff] %v11302_v63  ;;  %14398 = vst [vmem:[#allocation42_spill] sm:$0xff] %v11309_v24  ;;  %v1098_v4 = vsel %vm230_vm1, %v1095_v13, %v1097_v5  ;;  %v1172_v28 = vrot.slane %v11309_v24, 1  ;;  %v11334_v14 = vmul.f32 %v8587_v23, %v10872_v8  ;;  %v1099_v41 = vrot.slane %v11315_v62, 1  ;;  %v8588_v13 = vld [vmem:[%s13839_s0 + $0x258] sm:$0xff] }
 0x25e   :  { %v11337_v19 = vpack.c.bf16 %v1098_v4, %v1096_v48  ;;  %v1171_v38 = vsel %vm230_vm1, %v1169_v25, %v1170_v45  ;;  %v1100_v32 = vrot.slane %v11324_v33, 1  ;;  %v11345_v5 = vmul.f32 %v8588_v13, %v10874_v46  ;;  %v8589_v4 = vld [vmem:[%s13839_s0 + $0x260] sm:$0xff]  ;;  %v8590_v25 = vld [vmem:[%s13839_s0 + $0x268] sm:$0x3]  ;;  %14428 = vst [vmem:[#allocation72_spill] sm:$0xff] %v11569_v29  ;;  %v8615_v15 = vld [vmem:[%s13839_s0 + $0x138] sm:$0xff] }
 0x25f   :  { %v1173_v24 = vsel %vm230_vm1, %v1170_v45, %v1172_v28  ;;  %v1102_v23 = vrot.slane %v11334_v14, 1  ;;  %v11353_v48 = vmul.f32 %v8589_v4, %v10874_v46  ;;  %v11359_v21 = vmul.f32 %v8590_v25, %v10874_v46  ;;  %v8591_v4 = vld [vmem:[%s13839_s0 + $0xd8] sm:$0xff] }
 0x260   :  { %14399 = vst [vmem:[#allocation43_spill] sm:$0xff] %v11337_v19  ;;  %14400 = vst [vmem:[#allocation44_spill] sm:$0xff] %v11345_v5  ;;  %7284 = vmatmul.mubr.msk.bf16.gmra.mrb[16].mxu0 %vm455_vm2, %v11337_v19  ;;  %v11363_v45 = vpack.c.bf16 %v1173_v24, %v1171_v38  ;;  %v1101_v28 = vsel %vm230_vm1, %v1099_v41, %v1100_v32  ;;  %v1174_v13 = vrot.slane %v11345_v5, 1  ;;  %v8592_v24 = vld [vmem:[%s13839_s0 + $0xe0] sm:$0xff]  ;;  %v8594_v19 = vld [vmem:[%s13839_s0 + $0x270] sm:$0xff] }
 0x261   :  { %14401 = vst [vmem:[#allocation45_spill] sm:$0xff] %v11353_v48  ;;  %14402 = vst [vmem:[#allocation46_spill] sm:$0xff] %v11359_v21  ;;  %v11371_v49 = vmul.f32 %v8591_v4, %v10872_v8  ;;  %v1103_v43 = vsel %vm230_vm1, %v1100_v32, %v1102_v23  ;;  %v1175_v25 = vrot.slane %v11353_v48, 1  ;;  %v1177_v54 = vrot.slane %v11359_v21, 1  ;;  %v8593_v32 = vld [vmem:[%s13839_s0 + $0xe8] sm:$0x3] }
 0x262   :  { %14403 = vst [vmem:[#allocation47_spill] sm:$0xff] %v11363_v45  ;;  %v11380_v41 = vmul.f32 %v8592_v24, %v10872_v8  ;;  %7600 = vmatmul.mubr.msk.bf16.gmra.mrb[16].mxu1 %vm455_vm2, %v11363_v45  ;;  %v11384_v38 = vpack.c.bf16 %v1103_v43, %v1101_v28  ;;  %v11390_v23 = vmul.f32 %v8593_v32, %v10872_v8  ;;  %v8595_v32 = vld [vmem:[%s13839_s0 + $0x278] sm:$0xff] }
 0x263   :  { %v1104_v4 = vrot.slane %v11371_v49, 1  ;;  %v11397_v24 = vmul.f32 %v8594_v19, %v10874_v46  ;;  %v1176_v21 = vsel %vm230_vm1, %v1174_v13, %v1175_v25  ;;  %v1178_v43 = vsel %vm230_vm1, %v1175_v25, %v1177_v54  ;;  %v8596_v54 = vld [vmem:[%s13839_s0 + $0x280] sm:$0x3] }
 0x264   :  { %14404 = vst [vmem:[#allocation48_spill] sm:$0xff] %v11384_v38  ;;  %14405 = vst [vmem:[#allocation49_spill] sm:$0xff] %v11390_v23  ;;  %v1105_v28 = vrot.slane %v11380_v41, 1  ;;  %v11406_v48 = vmul.f32 %v8595_v32, %v10874_v46  ;;  %7287 = vmatprep.mubr.msk.bf16.mxu0 %vm455_vm2, %v11384_v38  ;;  %v11410_v5 = vpack.c.bf16 %v1178_v43, %v1176_v21  ;;  %v1107_v19 = vrot.slane %v11390_v23, 1  ;;  %v8597_v21 = vld [vmem:[%s13839_s0 + $0xf0] sm:$0xff]  ;;  %v8598_v38 = vld [vmem:[%s13839_s0 + $0xf8] sm:$0xff] }
 0x265   :  { %14406 = vst [vmem:[#allocation50_spill] sm:$0xff] %v11397_v24  ;;  %v11417_v13 = vmul.f32 %v8596_v54, %v10874_v46  ;;  %v1179_v25 = vrot.slane %v11397_v24, 1  ;;  %v11426_v43 = vmul.f32 %v8597_v21, %v10872_v8  ;;  %v11432_v54 = vmul.f32 %v8598_v38, %v10872_v8  ;;  %v8599_v24 = vld [vmem:[%s13839_s0 + $0x100] sm:$0x3] }
 0x266   :  { %14407 = vst [vmem:[#allocation51_spill] sm:$0xff] %v11406_v48  ;;  %14408 = vst [vmem:[#allocation52_spill] sm:$0xff] %v11410_v5  ;;  %v1106_v18 = vsel %vm230_vm1, %v1104_v4, %v1105_v28  ;;  %v1180_v32 = vrot.slane %v11406_v48, 1  ;;  %7603 = vmatprep.mubr.msk.bf16.mxu1 %vm455_vm2, %v11410_v5  ;;  %v1108_v4 = vsel %vm230_vm1, %v1105_v28, %v1107_v19 }
 0x267   :  { %14409 = vst [vmem:[#allocation53_spill] sm:$0xff] %v11417_v13  ;;  %14410 = vst [vmem:[#allocation54_spill] sm:$0xff] %v11426_v43  ;;  %v1182_v48 = vrot.slane %v11417_v13, 1  ;;  %v11442_v21 = vmul.f32 %v8599_v24, %v10872_v8  ;;  %v11448_v38 = vmul.f32 %v8600_v36, %v10874_v46  ;;  %v11450_v42 = vpack.c.bf16 %v1108_v4, %v1106_v18  ;;  %v8602_v36 = vld [vmem:[%s13839_s0 + $0x298] sm:$0x3] }
 0x268   :  { %14411 = vst [vmem:[#allocation55_spill] sm:$0xff] %v11432_v54  ;;  %v1181_v28 = vsel %vm230_vm1, %v1179_v25, %v1180_v32  ;;  %v1109_v19 = vrot.slane %v11426_v43, 1  ;;  %v1110_v13 = vrot.slane %v11432_v54, 1  ;;  %v11467_v18 = vmul.f32 %v8602_v36, %v10874_v46 }
 0x269   :  { %14412 = vst [vmem:[#allocation56_spill] sm:$0xff] %v11442_v21  ;;  %14413 = vst [vmem:[#allocation57_spill] sm:$0xff] %v11448_v38  ;;  %v1183_v16 = vsel %vm230_vm1, %v1180_v32, %v1182_v48  ;;  %v1112_v24 = vrot.slane %v11442_v21, 1  ;;  %7288 = vmatmul.mubr.msk.bf16.gmra.mrb[20].mxu0 %vm455_vm2, %v11450_v42  ;;  %v1184_v32 = vrot.slane %v11448_v38, 1  ;;  %v11479_v4 = vmul.f32 %v8603_v56, %v10872_v8  ;;  %v8624_v21 = vld [vmem:[%s13839_s0 + $0x2e8] sm:$0xff] }
 0x26a   :  { %14414 = vst [vmem:[#allocation58_spill] sm:$0xff] %v11450_v42  ;;  %14416 = vst [vmem:[#allocation60_spill] sm:$0xff] %v11467_v18  ;;  %v11471_v48 = vpack.c.bf16 %v1183_v16, %v1181_v28  ;;  %v1111_v25 = vsel %vm230_vm1, %v1109_v19, %v1110_v13  ;;  %v1185_v36 = vrot.slane %v11461_v35, 1  ;;  %v1187_v58 = vrot.slane %v11467_v18, 1  ;;  %v8604_v16 = vld [vmem:[%s13839_s0 + $0x110] sm:$0xff]  ;;  %v8606_v42 = vld [vmem:[%s13839_s0 + $0x2a0] sm:$0xff] }
 0x26b   :  { %14418 = vst [vmem:[#allocation62_spill] sm:$0xff] %v11479_v4  ;;  %v1113_v51 = vsel %vm230_vm1, %v1110_v13, %v1112_v24  ;;  %v11488_v28 = vmul.f32 %v8604_v16, %v10872_v8  ;;  %v8605_v13 = vld [vmem:[%s13839_s0 + $0x118] sm:$0x3]  ;;  %v1114_v56 = vrot.slane %v11479_v4, 1  ;;  %v11505_v16 = vmul.f32 %v8606_v42, %v10874_v46 }
 0x26c   :  { %14417 = vst [vmem:[#allocation61_spill] sm:$0xff] %v11471_v48  ;;  %7604 = vmatmul.mubr.msk.bf16.gmra.mrb[20].mxu1 %vm455_vm2, %v11471_v48  ;;  %v11492_v19 = vpack.c.bf16 %v1113_v51, %v1111_v25  ;;  %v11498_v24 = vmul.f32 %v8605_v13, %v10872_v8  ;;  %v1186_v18 = vsel %vm230_vm1, %v1184_v32, %v1185_v36  ;;  %v8607_v13 = vld [vmem:[%s13839_s0 + $0x2a8] sm:$0xff] }
 0x26d   :  { %14419 = vst [vmem:[#allocation63_spill] sm:$0xff] %v11488_v28  ;;  %14422 = vst [vmem:[#allocation66_spill] sm:$0xff] %v11505_v16  ;;  %v1188_v51 = vsel %vm230_vm1, %v1185_v36, %v1187_v58  ;;  %v1115_v25 = vrot.slane %v11488_v28, 1  ;;  %v11514_v35 = vmul.f32 %v8607_v13, %v10874_v46  ;;  %v8608_v58 = vld [vmem:[%s13839_s0 + $0x2b0] sm:$0x3]  ;;  %v1189_v36 = vrot.slane %v11505_v16, 1 }
 0x26e   :  { %14420 = vst [vmem:[#allocation64_spill] sm:$0xff] %v11492_v19  ;;  %14421 = vst [vmem:[#allocation65_spill] sm:$0xff] %v11498_v24  ;;  %7291 = vmatprep.mubr.msk.bf16.mxu0 %vm455_vm2, %v11492_v19  ;;  %v11518_v38 = vpack.c.bf16 %v1188_v51, %v1186_v18  ;;  %v1117_v42 = vrot.slane %v11498_v24, 1  ;;  %v11525_v32 = vmul.f32 %v8608_v58, %v10874_v46  ;;  %v8609_v18 = vld [vmem:[%s13839_s0 + $0x120] sm:$0xff]  ;;  %v8610_v19 = vld [vmem:[%s13839_s0 + $0x128] sm:$0xff] }
 0x26f   :  { %14423 = vst [vmem:[#allocation67_spill] sm:$0xff] %v11514_v35  ;;  %v1116_v40 = vsel %vm230_vm1, %v1114_v56, %v1115_v25  ;;  %v1190_v13 = vrot.slane %v11514_v35, 1  ;;  %v11534_v51 = vmul.f32 %v8609_v18, %v10872_v8  ;;  %v11540_v58 = vmul.f32 %v8610_v19, %v10872_v8  ;;  %v8611_v16 = vld [vmem:[%s13839_s0 + $0x130] sm:$0x3] }
 0x270   :  { %14424 = vst [vmem:[#allocation68_spill] sm:$0xff] %v11518_v38  ;;  %14425 = vst [vmem:[#allocation69_spill] sm:$0xff] %v11525_v32  ;;  %7607 = vmatprep.mubr.msk.bf16.mxu1 %vm455_vm2, %v11518_v38  ;;  %v1118_v56 = vsel %vm230_vm1, %v1115_v25, %v1117_v42  ;;  %v1192_v35 = vrot.slane %v11525_v32, 1  ;;  %v11550_v18 = vmul.f32 %v8611_v16, %v10872_v8 }
 0x271   :  { %v11556_v19 = vmul.f32 %v8612_v39, %v10874_v46  ;;  %v11558_v61 = vpack.c.bf16 %v1118_v56, %v1116_v40  ;;  %v1191_v25 = vsel %vm230_vm1, %v1189_v36, %v1190_v13  ;;  %v1119_v42 = vrot.slane %v11534_v51, 1  ;;  %v8614_v39 = vld [vmem:[%s13839_s0 + $0x2c8] sm:$0x3] }
 0x272   :  { %v1120_v32 = vrot.slane %v11540_v58, 1  ;;  %v1193_v59 = vsel %vm230_vm1, %v1190_v13, %v1192_v35  ;;  %v1122_v16 = vrot.slane %v11550_v18, 1  ;;  %v11575_v40 = vmul.f32 %v8614_v39, %v10874_v46 }
 0x273   :  { %14426 = vst [vmem:[#allocation70_spill] sm:$0xff] %v11556_v19  ;;  %14427 = vst [vmem:[#allocation71_spill] sm:$0xff] %v11558_v61  ;;  %7292 = vmatmul.mubr.msk.bf16.gmra.mrb[24].mxu0 %vm455_vm2, %v11558_v61  ;;  %v11579_v35 = vpack.c.bf16 %v1193_v59, %v1191_v25  ;;  %v1194_v13 = vrot.slane %v11556_v19, 1  ;;  %v11587_v56 = vmul.f32 %v8615_v15, %v10872_v8  ;;  %v1195_v39 = vrot.slane %v11569_v29, 1  ;;  %v8616_v59 = vld [vmem:[%s13839_s0 + $0x140] sm:$0xff]  ;;  %v8618_v61 = vld [vmem:[%s13839_s0 + $0x2d0] sm:$0xff] }
 0x274   :  { %14429 = vst [vmem:[#allocation73_spill] sm:$0xff] %v11575_v40  ;;  %v1121_v36 = vsel %vm230_vm1, %v1119_v42, %v1120_v32  ;;  %v1123_v24 = vsel %vm230_vm1, %v1120_v32, %v1122_v16  ;;  %v1197_v28 = vrot.slane %v11575_v40, 1  ;;  %v11596_v25 = vmul.f32 %v8616_v59, %v10872_v8  ;;  %v8617_v32 = vld [vmem:[%s13839_s0 + $0x148] sm:$0x3] }
 0x275   :  { %14430 = vst [vmem:[#allocation74_spill] sm:$0xff] %v11579_v35  ;;  %7608 = vmatmul.mubr.msk.bf16.gmra.mrb[24].mxu1 %vm455_vm2, %v11579_v35  ;;  %v11600_v42 = vpack.c.bf16 %v1123_v24, %v1121_v36  ;;  %v11606_v16 = vmul.f32 %v8617_v32, %v10872_v8  ;;  %v1124_v15 = vrot.slane %v11587_v56, 1  ;;  %v11613_v59 = vmul.f32 %v8618_v61, %v10874_v46  ;;  %v8619_v32 = vld [vmem:[%s13839_s0 + $0x2d8] sm:$0xff] }
 0x276   :  { %v1196_v40 = vsel %vm230_vm1, %v1194_v13, %v1195_v39  ;;  %v1198_v24 = vsel %vm230_vm1, %v1195_v39, %v1197_v28  ;;  %v1125_v36 = vrot.slane %v11596_v25, 1  ;;  %v11622_v29 = vmul.f32 %v8619_v32, %v10874_v46  ;;  %v8620_v28 = vld [vmem:[%s13839_s0 + $0x2e0] sm:$0x3]  ;;  %v81_v35 = vld [vmem:[%s13839_s0 + $0x1b8] sm:$0xff] }
 0x277   :  { %14431 = vst [vmem:[#allocation75_spill] sm:$0xff] %v11600_v42  ;;  %14432 = vst [vmem:[#allocation76_spill] sm:$0xff] %v11613_v59  ;;  %7295 = vmatprep.mubr.msk.bf16.mxu0 %vm455_vm2, %v11600_v42  ;;  %v11626_v19 = vpack.c.bf16 %v1198_v24, %v1196_v40  ;;  %v1127_v61 = vrot.slane %v11606_v16, 1  ;;  %v11633_v13 = vmul.f32 %v8620_v28, %v10874_v46  ;;  %v1199_v39 = vrot.slane %v11613_v59, 1  ;;  %v8621_v40 = vld [vmem:[%s13839_s0 + $0x150] sm:$0xff]  ;;  %v8622_v42 = vld [vmem:[%s13839_s0 + $0x158] sm:$0xff] }
 0x278   :  { %14433 = vst [vmem:[#allocation77_spill] sm:$0xff] %v11622_v29  ;;  %v1126_v4 = vsel %vm230_vm1, %v1124_v15, %v1125_v36  ;;  %v1200_v32 = vrot.slane %v11622_v29, 1  ;;  %v11642_v24 = vmul.f32 %v8621_v40, %v10872_v8  ;;  %v11648_v28 = vmul.f32 %v8622_v42, %v10872_v8  ;;  %v8623_v59 = vld [vmem:[%s13839_s0 + $0x160] sm:$0x3] }
 0x279   :  { %14434 = vst [vmem:[#allocation78_spill] sm:$0xff] %v11626_v19  ;;  %14435 = vst [vmem:[#allocation79_spill] sm:$0xff] %v11633_v13  ;;  %7611 = vmatprep.mubr.msk.bf16.mxu1 %vm455_vm2, %v11626_v19  ;;  %v1128_v15 = vsel %vm230_vm1, %v1125_v36, %v1127_v61  ;;  %v1202_v29 = vrot.slane %v11633_v13, 1  ;;  %v11658_v40 = vmul.f32 %v8623_v59, %v10872_v8  ;;  %v8625_v8 = vld [vmem:[%s13839_s0 + $0x2f0] sm:$0xff] }
 0x27a   :  { %v11664_v42 = vmul.f32 %v8624_v21, %v10874_v46  ;;  %v11666_v54 = vpack.c.bf16 %v1128_v15, %v1126_v4  ;;  %v1201_v36 = vsel %vm230_vm1, %v1199_v39, %v1200_v32  ;;  %v1129_v61 = vrot.slane %v11642_v24, 1  ;;  %v8626_v21 = vld [vmem:[%s13839_s0 + $0x2f8] sm:$0x3]  ;;  %v8627_v15 = vld [vmem:[%s13839_s0 + $0x300] sm:$0xff] }
 0x27b   :  { %v1130_v13 = vrot.slane %v11648_v28, 1  ;;  %v1203_v19 = vsel %vm230_vm1, %v1200_v32, %v1202_v29  ;;  %v1132_v59 = vrot.slane %v11658_v40, 1  ;;  %v11677_v43 = vmul.f32 %v8625_v8, %v10874_v46  ;;  %v80_v29 = vld [vmem:[%s13839_s0 + $0x1b0] sm:$0xff] }
 0x27c   :  { %14436 = vst [vmem:[#allocation80_spill] sm:$0xff] %v11664_v42  ;;  %14437 = vst [vmem:[#allocation81_spill] sm:$0xff] %v11666_v54  ;;  %v11683_v4 = vmul.f32 %v8626_v21, %v10874_v46  ;;  %7296 = vmatmul.mubr.msk.bf16.gmra.mrb[28].mxu0 %vm455_vm2, %v11666_v54  ;;  %v11690_v39 = vpack.c.bf16 %v1203_v19, %v1201_v36  ;;  %v1204_v8 = vrot.slane %v11664_v42, 1 }
 0x27d   :  { %14438 = vst [vmem:[#allocation82_spill] sm:$0xff] %v11677_v43  ;;  %v1131_v32 = vsel %vm230_vm1, %v1129_v61, %v1130_v13  ;;  %v11698_v21 = vmul.f32 %v8627_v15, %v10874_v46  ;;  %v1133_v38 = vsel %vm230_vm1, %v1130_v13, %v1132_v59  ;;  %v1205_v19 = vrot.slane %v11677_v43, 1  ;;  %v8628_v61 = vld [vmem:[%s13839_s0 + $0x308] sm:$0xff]  ;;  %v82_v15 = vld [vmem:[%s13839_s0 + $0x1c0] sm:$0x3] }
 0x27e   :  { %14439 = vst [vmem:[#allocation83_spill] sm:$0xff] %v11683_v4  ;;  %14440 = vst [vmem:[#allocation84_spill] sm:$0xff] %v11690_v39  ;;  %v1207_v36 = vrot.slane %v11683_v4, 1  ;;  %v11710_v54 = vmul.f32 %v8628_v61, %v10874_v46  ;;  %7612 = vmatmul.mubr.msk.bf16.gmra.mrb[28].mxu1 %vm455_vm2, %v11690_v39  ;;  %v11717_v42 = vpack.c.bf16 %v1133_v38, %v1131_v32  ;;  %v8629_v13 = vld [vmem:[%s13839_s0 + $0x310] sm:$0x3] }
 0x27f   :  { %14441 = vst [vmem:[#allocation85_spill] sm:$0xff] %v11698_v21  ;;  %v11723_v59 = vmul.f32 %v8629_v13, %v10874_v46  ;;  %v1209_v4 = vrot.slane %v11698_v21, 1  ;;  %v11727_v61 = vmul.f32 %v10874_v46, %v80_v29  ;;  %v1206_v43 = vsel %vm230_vm1, %v1204_v8, %v1205_v19 }
 0x280   :  { %14442 = vst [vmem:[#allocation86_spill] sm:$0xff] %v11717_v42  ;;  %v1208_v23 = vsel %vm230_vm1, %v1205_v19, %v1207_v36  ;;  %v1210_v39 = vrot.slane %v11710_v54, 1  ;;  %v11733_v38 = vmul.f32 %v10874_v46, %v81_v35  ;;  %7299 = vmatprep.mubr.msk.bf16.mxu0 %vm455_vm2, %v11717_v42  ;;  %v11741_v21 = vmul.f32 %v10874_v46, %v82_v15  ;;  %v8630_v35 = vld [vmem:[%s13839_s0 + $0x318] sm:$0xff]  ;;  %v8632_v42 = vld [vmem:[%s13839_s0 + $0x328] sm:$0x3] }
 0x281   :  { %14443 = vst [vmem:[#allocation87_spill] sm:$0xff] %v11723_v59  ;;  %14444 = vst [vmem:[#allocation88_spill] sm:$0xff] %v11727_v61  ;;  %v11737_v32 = vpack.c.bf16 %v1208_v23, %v1206_v43  ;;  %v1212_v13 = vrot.slane %v11723_v59, 1  ;;  %v1139_v29 = vrot.slane %v11727_v61, 1  ;;  %v11750_v36 = vmul.f32 %v8630_v35, %v10874_v46  ;;  %v8631_v23 = vld [vmem:[%s13839_s0 + $0x320] sm:$0xff] }
 0x282   :  { %14445 = vst [vmem:[#allocation89_spill] sm:$0xff] %v11733_v38  ;;  %14447 = vst [vmem:[#allocation91_spill] sm:$0xff] %v11741_v21  ;;  %v1211_v8 = vsel %vm230_vm1, %v1209_v4, %v1210_v39  ;;  %v1140_v19 = vrot.slane %v11733_v38, 1  ;;  %v11756_v43 = vmul.f32 %v8631_v23, %v10874_v46  ;;  %v1142_v15 = vrot.slane %v11741_v21, 1  ;;  %v8633_v38 = vld [vmem:[%s13839_s0 + $0x330] sm:$0xff] }
 0x283   :  { %14446 = vst [vmem:[#allocation90_spill] sm:$0xff] %v11737_v32  ;;  %14448 = vst [vmem:[#allocation92_spill] sm:$0xff] %v11750_v36  ;;  %7615 = vmatprep.mubr.msk.bf16.mxu1 %vm455_vm2, %v11737_v32  ;;  %v1213_v4 = vsel %vm230_vm1, %v1210_v39, %v1212_v13  ;;  %v11766_v35 = vmul.f32 %v8632_v42, %v10874_v46  ;;  %v11772_v23 = vmul.f32 %v8633_v38, %v10874_v46  ;;  %v8634_v38 = vld [vmem:[%s13839_s0 + $0x338] sm:$0xff] }
 0x284   :  { %14449 = vst [vmem:[#allocation93_spill] sm:$0xff] %v11756_v43  ;;  %v11774_v61 = vpack.c.bf16 %v1213_v4, %v1211_v8  ;;  %v1141_v39 = vsel %vm230_vm1, %v1139_v29, %v1140_v19  ;;  %v1214_v13 = vrot.slane %v11750_v36, 1  ;;  %v1215_v21 = vrot.slane %v11756_v43, 1  ;;  %7300 = vmatmul.mubr.msk.bf16.gmra.mrb[32].mxu0 %vm455_vm2, %v10934_v26  ;;  %v8635_v29 = vld [vmem:[%s13839_s0 + $0x340] sm:$0x3] }
 0x285   :  { %14450 = vst [vmem:[#allocation94_spill] sm:$0xff] %v11766_v35  ;;  %v1143_v42 = vsel %vm230_vm1, %v1140_v19, %v1142_v15  ;;  %v1217_v32 = vrot.slane %v11766_v35, 1  ;;  %v11787_v8 = vmul.f32 %v8634_v38, %v10874_v46  ;;  %v11793_v4 = vmul.f32 %v8635_v29, %v10874_v46 }
 0x286   :  { %14451 = vst [vmem:[#allocation95_spill] sm:$0xff] %v11774_v61  ;;  %v1299_v43 = vpack.c.bf16 %v1143_v42, %v1141_v39  ;;  %v1216_v26 = vsel %vm230_vm1, %v1214_v13, %v1215_v21  ;;  %v3286_v19 = vrot.slane %v11772_v23, 1  ;;  %v2148_v15 = vrot.slane %v10907_v9, 2  ;;  %7616 = vmatmul.mubr.msk.bf16.gmra.mrb[32].mxu1 %vm455_vm2, %v11774_v61 }
 0x287   :  { %v1218_v38 = vsel %vm230_vm1, %v1215_v21, %v1217_v32  ;;  %v3287_v35 = vrot.slane %v11787_v8, 1  ;;  %v3289_v36 = vrot.slane %v11793_v4, 1  ;;  %v2149_v59 = vrot.slane %v10916_v12, 2 }
 0x288   :  { %7303 = vmatprep.mubr.msk.bf16.mxu0 %vm455_vm2, %v1299_v43  ;;  %v11805_v39 = vpack.c.bf16 %v1218_v38, %v1216_v26  ;;  %v2151_v13 = vrot.slane %v10925_v34, 2  ;;  %v2153_v26 = vrot.slane %v10961_v47, 2  ;;  %v2154_v34 = vrot.slane %v10967_v7, 2 }
 0x289   :  { %v3288_v42 = vsel %vm230_vm1, %v3286_v19, %v3287_v35  ;;  %v3290_v21 = vsel %vm230_vm1, %v3287_v35, %v3289_v36  ;;  %v2150_v32 = vsel %vm2142_vm8, %v2148_v15, %v2149_v59  ;;  %v2156_v38 = vrot.slane %v10979_v6, 2 }
 0x28a   :  { %14452 = vst [vmem:[#allocation96_spill] sm:$0xff] %v11805_v39  ;;  %7619 = vmatprep.mubr.msk.bf16.mxu1 %vm455_vm2, %v11805_v39  ;;  %v2152_v29 = vsel %vm2142_vm8, %v2149_v59, %v2151_v13  ;;  %v11816_v43 = vpack.c.bf16 %v3290_v21, %v3288_v42  ;;  %v2158_v59 = vrot.slane %v11019_v2, 2  ;;  %v2161_v36 = vrot.slane %v11044_v1, 2 }
 0x28b   :  { %v11823_v19 = vpack.c.bf16 %v2152_v29, %v2150_v32  ;;  %v2155_v35 = vsel %vm2142_vm8, %v2153_v26, %v2154_v34  ;;  %v2157_v6 = vsel %vm2142_vm8, %v2154_v34, %v2156_v38  ;;  %v2163_v42 = vrot.slane %v11077_v55, 2  ;;  %v8466_v34 = vld [vmem:[%s13843_s5 + $0xc8] sm:$0xff]  }
 0x28c   :  { %7304 = vmatmul.mubr.msk.bf16.gmra.mrb[36].mxu0 %vm455_vm2, %v11079_v60  ;;  %14453 = vst [vmem:[#allocation97_spill] sm:$0xff] %v11816_v43  ;;  %v2159_v60 = vrot.slane %v11032_v27, 2  ;;  %v2164_v21 = vrot.slane %v11092_v37, 2  ;;  %v2166_v32 = vrot.slane %v11098_v22, 2  ;;  %v11841_v1 = vpack.c.bf16 %v2157_v6, %v2155_v35 }
 0x28d   :  { %7307 = vmatprep.mubr.msk.bf16.mxu0 %vm455_vm2, %v11116_v53  ;;  %14454 = vst [vmem:[#allocation98_spill] sm:$0xff] %v11823_v19  ;;  %v2168_v29 = vrot.slane %v11139_v50, 2  ;;  %v2169_v26 = vrot.slane %v11145_v31, 2  ;;  %v2203_v22 = vrot.slane %v11534_v51, 2  ;;  %v2206_v6 = vrot.slane %v11550_v18, 2 }
 0x28e   :  { %7620 = vmatmul.mubr.msk.bf16.gmra.mrb[36].mxu1 %vm455_vm2, %v11816_v43  ;;  %v2160_v15 = vsel %vm2142_vm8, %v2158_v59, %v2159_v60  ;;  %v2162_v13 = vsel %vm2142_vm8, %v2159_v60, %v2161_v36  ;;  %14455 = vst [vmem:[#allocation99_spill] sm:$0xff] %v11841_v1  ;;  %v2171_v59 = vrot.slane %v11156_v17, 2  ;;  %v2204_v60 = vrot.slane %v11540_v58, 2 }
 0x28f   :  { %7631 = vmatprep.mubr.msk.bf16.mxu1 %vm455_vm2, %v11823_v19  ;;  %v11850_v38 = vpack.c.bf16 %v2162_v13, %v2160_v15  ;;  %v2165_v36 = vsel %vm2142_vm8, %v2163_v42, %v2164_v21  ;;  %v2167_v35 = vsel %vm2142_vm8, %v2164_v21, %v2166_v32  ;;  %v2208_v15 = vrot.slane %v11587_v56, 2  ;;  %v14500_v19 = vld [vmem:[#allocation91_spill] sm:$0xff] }
 0x290   :  { %v2170_v13 = vsel %vm2142_vm8, %v2168_v29, %v2169_v26  ;;  %v2205_v17 = vsel %vm2142_vm8, %v2203_v22, %v2204_v60  ;;  %v2209_v43 = vrot.slane %v11596_v25, 2  ;;  %v2207_v42 = vsel %vm2142_vm8, %v2204_v60, %v2206_v6 }
 0x291   :  { %14456 = vst [vmem:[#allocation100_spill] sm:$0xff] %v11850_v38  ;;  %v2213_v21 = vrot.slane %v11642_v24, 2  ;;  %v2214_v18 = vrot.slane %v11648_v28, 2  ;;  %v2216_v32 = vrot.slane %v11658_v40, 2  ;;  %v2172_v29 = vsel %vm2142_vm8, %v2169_v26, %v2171_v59  ;;  %v8470_v26 = vld [vmem:[%s13843_s5 + $0xd8] sm:$0xff]  }
 0x292   :  { %v2210_v22 = vsel %vm2142_vm8, %v2208_v15, %v2209_v43  ;;  %v11886_v6 = vpack.c.bf16 %v2167_v35, %v2165_v36  ;;  %v2174_v59 = vrot.slane %v11213_v11, 2  ;;  %v2176_v15 = vrot.slane %v11219_v57, 2 }
 0x293   :  { %v2217_v60 = vsel %vm2142_vm8, %v2214_v18, %v2216_v32  ;;  %v2179_v36 = vrot.slane %v11271_v0, 2  ;;  %v2181_v35 = vrot.slane %v11283_v44, 2  ;;  %v2186_v32 = vrot.slane %v11334_v14, 2 }
 0x294   :  { %7308 = vmatmul.mubr.msk.bf16.gmra.mrb[40].mxu0 %vm455_vm2, %v11201_v30  ;;  %v11876_v30 = vpack.c.bf16 %v2207_v42, %v2205_v17  ;;  %14459 = vst [vmem:[#allocation103_spill] sm:$0xff] %v11886_v6  ;;  %v2177_v17 = vsel %vm2142_vm8, %v2174_v59, %v2176_v15  ;;  %v14464_v15 = vld [vmem:[#allocation68_spill] sm:$0xff] }
 0x295   :  { %7311 = vmatprep.mubr.msk.bf16.mxu0 %vm455_vm2, %v11254_v10  ;;  %v8468_v10 = vld [vmem:[%s13843_s5 + $0xd0] sm:$0xff]   ;;  %v2182_v42 = vsel %vm2142_vm8, %v2179_v36, %v2181_v35 }
 0x296   :  { %7632 = vmatmul.mubr.msk.bf16.vlgmr.msra.gmra.mrb[40].mxu1 %vm455_vm2, %v11841_v1  ;;  %14457 = vst [vmem:[#allocation101_spill] sm:$0xff] %v11876_v30  ;;  %v14499_v1 = vld [vmem:[#allocation2_spill] sm:$0xff] }
 0x297   :  { %7696 = vmatpush3.bf16.msra.mxu1 %v11199_v20  ;;  %7635 = vmatprep.mubr.msk.bf16.mxu1 %vm455_vm2, %v11850_v38  ;;  %v2211_v20 = vrot.slane %v11606_v16, 2  ;;  %v2215_v38 = vsel %vm2142_vm8, %v2213_v21, %v2214_v18  ;;  %v2183_v21 = vrot.slane %v11315_v62, 2  ;;  %v2184_v18 = vrot.slane %v11324_v33, 2 }
 0x298   :  { %7697 = vmatprep.subr.bf16.mxu1 %v8466_v34  ;;  %v11888_v40 = vpack.c.bf16 %v2217_v60, %v2215_v38  ;;  %v2178_v38 = vrot.slane %v11262_v52, 2 }
 0x299   :  { %v2212_v16 = vsel %vm2142_vm8, %v2209_v43, %v2211_v20  ;;  %v11895_v43 = vpack.c.bf16 %v2172_v29, %v2170_v13  ;;  %v11910_v13 = vld [vmem:[%s13843_s5 + $0xe0] sm:$0xff]   ;;  %v2188_v29 = vrot.slane %v11371_v49, 2 }
 0x29a   :  { %v11880_v53 = vpack.c.bf16 %v2212_v16, %v2210_v22  ;;  %v2180_v20 = vsel %vm2142_vm8, %v2178_v38, %v2179_v36  ;;  %v2189_v22 = vrot.slane %v11380_v41, 2  ;;  %v14463_v16 = vld [vmem:[#allocation49_spill] sm:$0xff]  ;;  %v14466_v36 = vld [vmem:[#allocation74_spill] sm:$0xff] }
 0x29b   :  { %7698 = vmatpush3.bf16.msra.mxu1 %v8466_v34  ;;  %14460 = vst [vmem:[#allocation104_spill] sm:$0xff] %v11895_v43  ;;  %v2173_v34 = vrot.slane %v11194_v3, 2  ;;  %v2191_v60 = vrot.slane %v14463_v16, 2 }
 0x29c   :  { %14458 = vst [vmem:[#allocation102_spill] sm:$0xff] %v11880_v53  ;;  %7312 = vmatmul.mubr.msk.bf16.gmra.mrb[44].mxu0 %vm455_vm2, %v11302_v63  ;;  %7699 = vmatprep.subr.bf16.mxu1 %v8468_v10  ;;  %v3695_v63 = vrot.slane %v11787_v8, 2 }
 0x29d   :  { %7315 = vmatprep.mubr.msk.bf16.mxu0 %vm455_vm2, %v11363_v45  ;;  %v2175_v57 = vsel %vm2142_vm8, %v2173_v34, %v2174_v59  ;;  %v2187_v34 = vsel %vm2142_vm8, %v2184_v18, %v2186_v32  ;;  %v2190_v59 = vsel %vm2142_vm8, %v2188_v29, %v2189_v22  ;;  %v2192_v14 = vsel %vm2142_vm8, %v2189_v22, %v2191_v60  ;;  %v14471_v32 = vld [vmem:[#allocation62_spill] sm:$0xff]  ;;  %v14472_v22 = vld [vmem:[#allocation63_spill] sm:$0xff]  ;;  %v14473_v60 = vld [vmem:[#allocation65_spill] sm:$0xff] }
 0x29e   :  { %7636 = vmatmul.mubr.msk.bf16.gmra.mrb[44].mxu1 %vm455_vm2, %v11886_v6  ;;  %v11918_v44 = vpack.c.bf16 %v2177_v17, %v2175_v57  ;;  %v11945_v35 = vpack.c.bf16 %v2192_v14, %v2190_v59  ;;  %v14468_v57 = vld [vmem:[#allocation54_spill] sm:$0xff]  ;;  %v2198_v29 = vrot.slane %v14471_v32, 2  ;;  %v2199_v16 = vrot.slane %v14472_v22, 2 }
 0x29f   :  { %7639 = vmatprep.mubr.msk.bf16.mxu1 %vm455_vm2, %v11895_v43  ;;  %7700 = vmatpush3.bf16.msra.mxu1 %v8468_v10  ;;  %v11923_v10 = vpack.c.bf16 %v2182_v42, %v2180_v20  ;;  %v2193_v17 = vrot.slane %v14468_v57, 2  ;;  %v14469_v20 = vld [vmem:[#allocation55_spill] sm:$0xff]  ;;  %v3694_v45 = vrot.slane %v11772_v23, 2  ;;  %v77_v43 = vld [vmem:[%s13839_s0 + $0x198] sm:$0xff] }
 0x2a0   :  { %7701 = vmatprep.subr.bf16.mxu1 %v8470_v26  ;;  %14461 = vst [vmem:[#allocation105_spill] sm:$0xff] %v11918_v44  ;;  %14467 = vst [vmem:[#allocation107_spill] sm:$0xff] %v11945_v35  ;;  %v2194_v42 = vrot.slane %v14469_v20, 2 }
 0x2a1   :  { %14462 = vst [vmem:[#allocation106_spill] sm:$0xff] %v11923_v10 }
 0x2a2   :  { %v2195_v59 = vsel %vm2142_vm8, %v2193_v17, %v2194_v42 }
 0x2a3   :  { %7702 = vmatpush3.bf16.msra.mxu1 %v8470_v26  ;;  %v2185_v26 = vsel %vm2142_vm8, %v2183_v21, %v2184_v18  ;;  %v14470_v21 = vld [vmem:[#allocation56_spill] sm:$0xff] }
 0x2a4   :  { %7316 = vmatmul.mubr.msk.bf16.gmra.mrb[48].mxu0 %vm455_vm2, %v11410_v5  ;;  %7767 = vmatprep.subr.bf16.mxu1 %v11910_v13  ;;  %v11941_v38 = vpack.c.bf16 %v2187_v34, %v2185_v26  ;;  %v2196_v18 = vrot.slane %v14470_v21, 2  ;;  %v2201_v26 = vrot.slane %v14473_v60, 2  ;;  %v11959_v34 = vpack.c.bf16 %v11540_v58, %v11534_v51  ;;  %v14476_v58 = vld [vmem:[#allocation84_spill] sm:$0xff] }
 0x2a5   :  { %7319 = vmatprep.mubr.msk.bf16.mxu0 %vm455_vm2, %v11471_v48  ;;  %v11965_v21 = vpack.c.bf16 %v11596_v25, %v11587_v56  ;;  %v11971_v60 = vpack.c.bf16 %v11648_v28, %v11642_v24  ;;  %v14474_v48 = vld [vmem:[#allocation78_spill] sm:$0xff]  ;;  %v14478_v56 = vld [vmem:[#allocation85_spill] sm:$0xff]  ;;  %v14480_v24 = vld [vmem:[#allocation88_spill] sm:$0xff] }
 0x2a6   :  { %7640 = vmatmul.mubr.msk.bf16.gmra.mrb[48].mxu1 %vm455_vm2, %v11918_v44  ;;  %14465 = vst [vmem:[#allocation49_spill] sm:$0xff] %v11941_v38  ;;  %v2197_v14 = vsel %vm2142_vm8, %v2194_v42, %v2196_v18  ;;  %v2293_v25 = vrot.slane %v14478_v56, 2  ;;  %v2294_v42 = vrot.slane %v11710_v54, 2  ;;  %v14479_v18 = vld [vmem:[#allocation87_spill] sm:$0xff]  ;;  %v14481_v28 = vld [vmem:[#allocation89_spill] sm:$0xff]  ;;  %v14490_v44 = vld [vmem:[#allocation90_spill] sm:$0xff] }
 0x2a7   :  { %7643 = vmatprep.mubr.msk.bf16.mxu1 %vm455_vm2, %v11923_v10  ;;  %v11975_v51 = vpack.c.bf16 %v2197_v14, %v2195_v59 }
 0x2a9   :  { %14475 = vst [vmem:[#allocation54_spill] sm:$0xff] %v11975_v51 }
 0x2ac   :  { %7320 = vmatmul.mubr.msk.bf16.gmra.mrb[52].mxu0 %vm455_vm2, %v14464_v15  ;;  %v2202_v15 = vsel %vm2142_vm8, %v2199_v16, %v2201_v26  ;;  %v2295_v26 = vsel %vm2142_vm8, %v2293_v25, %v2294_v42 }
 0x2ad   :  { %7323 = vmatprep.mubr.msk.bf16.mxu0 %vm455_vm2, %v14466_v36  ;;  %v2200_v36 = vsel %vm2142_vm8, %v2198_v29, %v2199_v16  ;;  %v2296_v29 = vrot.slane %v14479_v18, 2  ;;  %v14485_v18 = vld [vmem:[#allocation94_spill] sm:$0xff]  ;;  %v3697_v16 = vrot.slane %v11793_v4, 2 }
 0x2ae   :  { %7644 = vmatmul.mubr.msk.bf16.gmra.mrb[52].mxu1 %vm455_vm2, %v11941_v38  ;;  %v11979_v17 = vpack.c.bf16 %v2202_v15, %v2200_v36  ;;  %v14482_v36 = vld [vmem:[#allocation92_spill] sm:$0xff]  ;;  %v2301_v5 = vrot.slane %v14485_v18, 2  ;;  %v3696_v18 = vsel %vm2142_vm8, %v3694_v45, %v3695_v63  ;;  %v78_v45 = vld [vmem:[%s13839_s0 + $0x1a0] sm:$0xff] }
 0x2af   :  { %7647 = vmatprep.mubr.msk.bf16.mxu1 %vm455_vm2, %v11945_v35  ;;  %v2297_v15 = vsel %vm2142_vm8, %v2294_v42, %v2296_v29  ;;  %v2298_v59 = vrot.slane %v14482_v36, 2  ;;  %v14487_v35 = vld [vmem:[#allocation7_spill] sm:$0xff]  ;;  %v3698_v10 = vsel %vm2142_vm8, %v3695_v63, %v3697_v16  ;;  %v14494_v63 = vld [vmem:[#allocation10_spill] sm:$0xff] }
 0x2b0   :  { %14477 = vst [vmem:[#allocation55_spill] sm:$0xff] %v11979_v17  ;;  %v11993_v14 = vpack.c.bf16 %v2297_v15, %v2295_v26  ;;  %v2219_v25 = vrot.slane %v14487_v35, 2  ;;  %v14488_v26 = vld [vmem:[#allocation8_spill] sm:$0xff]  ;;  %v12011_v4 = vpack.c.bf16 %v3698_v10, %v3696_v18  ;;  %v3689_v10 = vrot.slane %v14494_v63, 2  ;;  %v14495_v16 = vld [vmem:[#allocation11_spill] sm:$0xff] }
 0x2b1   :  { %v2221_v15 = vrot.slane %v14488_v26, 2  ;;  %v131_v18 = vld [vmem:[%s13839_s0 + $0x348] sm:$0xff] }
 0x2b2   :  { %14483 = vst [vmem:[#allocation56_spill] sm:$0xff] %v11993_v14  ;;  %14491 = vst [vmem:[#allocation63_spill] sm:$0xff] %v12011_v4  ;;  %v12065_v63 = vmul.f32 %v10874_v46, %v131_v18 }
 0x2b4   :  { %7324 = vmatmul.mubr.msk.bf16.gmra.mrb[56].mxu0 %vm455_vm2, %v14474_v48  ;;  %14504 = vst [vmem:[#allocation88_spill] sm:$0xff] %v12065_v63 }
 0x2b5   :  { %7327 = vmatprep.mubr.msk.bf16.mxu0 %vm455_vm2, %v14476_v58  ;;  %v14484_v58 = vld [vmem:[#allocation93_spill] sm:$0xff] }
 0x2b6   :  { %7648 = vmatmul.mubr.msk.bf16.gmra.mrb[56].mxu1 %vm455_vm2, %v11975_v51  ;;  %v2299_v48 = vrot.slane %v14484_v58, 2  ;;  %v14486_v51 = vld [vmem:[#allocation6_spill] sm:$0xff]  ;;  %v12033_v26 = vpack.c.bf16 %v14484_v58, %v14482_v36  ;;  %v2223_v58 = vrot.slane %v14480_v24, 2  ;;  %v2224_v36 = vrot.slane %v14481_v28, 2 }
 0x2b7   :  { %7651 = vmatprep.mubr.msk.bf16.mxu1 %vm455_vm2, %v11979_v17  ;;  %v2218_v17 = vrot.slane %v14486_v51, 2 }
 0x2b8   :  { %v2300_v42 = vsel %vm2142_vm8, %v2298_v59, %v2299_v48  ;;  %v2302_v29 = vsel %vm2142_vm8, %v2299_v48, %v2301_v5  ;;  %v14492_v5 = vld [vmem:[#allocation3_spill] sm:$0xff]  ;;  %v14493_v48 = vld [vmem:[#allocation4_spill] sm:$0xff]  ;;  %14497 = vst [vmem:[#allocation85_spill] sm:$0xff] %v12033_v26 }
 0x2b9   :  { %v12005_v38 = vpack.c.bf16 %v2302_v29, %v2300_v42  ;;  %v923_v59 = vpack.c.bf16 %v14493_v48, %v14492_v5  ;;  %v3690_v42 = vrot.slane %v14495_v16, 2  ;;  %v12029_v29 = vpack.c.bf16 %v11710_v54, %v14478_v56 }
 0x2ba   :  { %v12044_v54 = vmul.f32 %v14499_v1, %v77_v43  ;;  %v12047_v56 = vmul.f32 %v14499_v1, %v78_v45  ;;  %v2226_v16 = vrot.slane %v14500_v19, 2  ;;  %v12062_v45 = vpack.c.bf16 %v11787_v8, %v11772_v23  ;;  %v133_v19 = vld [vmem:[%s13839_s0 + $0x358] sm:$0x3] }
 0x2bb   :  { %14489 = vst [vmem:[#allocation62_spill] sm:$0xff] %v12005_v38  ;;  %14496 = vst [vmem:[#allocation65_spill] sm:$0xff] %v12029_v29  ;;  %v3691_v29 = vsel %vm2142_vm8, %v3689_v10, %v3690_v42  ;;  %v12074_v48 = vsel %vm2142_vm8, %v2223_v58, %v2224_v36  ;;  %v4502_v10 = vrot.slane %v12065_v63, 1  ;;  %v14509_v58 = vld [vmem:[#allocation17_spill] sm:$0xff] }
 0x2bc   :  { %7328 = vmatmul.mubr.msk.bf16.gmra.mrb[60].mxu0 %vm455_vm2, %v14490_v44  ;;  %v2222_v44 = vsel %vm2142_vm8, %v2219_v25, %v2221_v15  ;;  %v14502_v15 = vld [vmem:[#allocation16_spill] sm:$0xff]  ;;  %14503 = vst [vmem:[#allocation87_spill] sm:$0xff] %v12062_v45  ;;  %14506 = vst [vmem:[#allocation92_spill] sm:$0xff] %v12074_v48  ;;  %v12077_v5 = vsel %vm2142_vm8, %v2224_v36, %v2226_v16  ;;  %v4497_v45 = vrot.slane %v12044_v54, 1  ;;  %v4905_v16 = vrot.slane %v12044_v54, 2 }
 0x2bd   :  { %7331 = vmatprep.mubr.msk.bf16.mxu0 %vm455_vm2, %v11774_v61  ;;  %v2220_v61 = vsel %vm2142_vm8, %v2218_v17, %v2219_v25  ;;  %v132_v17 = vld [vmem:[%s13839_s0 + $0x350] sm:$0xff]  ;;  %v14501_v25 = vld [vmem:[#allocation14_spill] sm:$0xff]  ;;  %14507 = vst [vmem:[#allocation93_spill] sm:$0xff] %v12077_v5  ;;  %v2231_v36 = vrot.slane %v14509_v58, 2 }
 0x2be   :  { %7652 = vmatmul.mubr.msk.bf16.gmra.mrb[60].mxu1 %vm455_vm2, %v11876_v30  ;;  %v14498_v30 = vld [vmem:[#allocation12_spill] sm:$0xff]  ;;  %v2228_v43 = vrot.slane %v14501_v25, 2  ;;  %v12070_v26 = vpack.c.bf16 %v2222_v44, %v2220_v61  ;;  %v12082_v8 = vmul.f32 %v10874_v46, %v132_v17  ;;  %v4498_v61 = vrot.slane %v12047_v56, 1 }
 0x2bf   :  { %7655 = vmatprep.mubr.msk.bf16.mxu1 %vm455_vm2, %v11880_v53  ;;  %v3692_v6 = vrot.slane %v14498_v30, 2  ;;  %v79_v30 = vld [vmem:[%s13839_s0 + $0x1a8] sm:$0x3]  ;;  %v2229_v53 = vrot.slane %v14502_v15, 2  ;;  %v922_v44 = vmul.f32 %v10874_v46, %v133_v19 }
 0x2c0   :  { %14505 = vst [vmem:[#allocation89_spill] sm:$0xff] %v12070_v26  ;;  %14508 = vst [vmem:[#allocation94_spill] sm:$0xff] %v12082_v8  ;;  %v868_v18 = vmul.f32 %v14499_v1, %v79_v30  ;;  %v4503_v1 = vrot.slane %v12082_v8, 1  ;;  %v4906_v30 = vrot.slane %v12047_v56, 2  ;;  %v12099_v23 = vsel %vm230_vm1, %v4497_v45, %v4498_v61 }
 0x2c1   :  { %14510 = vst [vmem:[#allocation6_spill] sm:$0xff] %v12099_v23  ;;  %v4505_v46 = vrot.slane %v922_v44, 1  ;;  %v4911_v5 = vrot.slane %v12082_v8, 2  ;;  %v12132_v45 = vpack.c.bf16 %v10916_v12, %v10907_v9 }
 0x2c2   :  { %v4500_v17 = vrot.slane %v868_v18, 1  ;;  %v4908_v19 = vrot.slane %v868_v18, 2  ;;  %v12108_v58 = vsel %vm230_vm1, %v4502_v10, %v4503_v1  ;;  %v12111_v48 = vsel %vm2142_vm8, %v4905_v16, %v4906_v30 }
 0x2c3   :  { %14512 = vst [vmem:[#allocation8_spill] sm:$0xff] %v12108_v58  ;;  %14513 = vst [vmem:[#allocation12_spill] sm:$0xff] %v12111_v48  ;;  %v12117_v18 = vsel %vm230_vm1, %v4503_v1, %v4505_v46  ;;  %v2230_v1 = vsel %vm2142_vm8, %v2228_v43, %v2229_v53  ;;  %v14525_v46 = vld [vmem:[#allocation23_spill] sm:$0xff] }
 0x2c4   :  { %7332 = vmatmul.mubr.msk.bf16.gmra.mrb[64].mxu0 %vm455_vm2, %v11805_v39  ;;  %v4910_v39 = vrot.slane %v12065_v63, 2  ;;  %14514 = vst [vmem:[#allocation2_spill] sm:$0xff] %v12117_v18  ;;  %v12120_v63 = vsel %vm2142_vm8, %v4906_v30, %v4908_v19  ;;  %14517 = vst [vmem:[#allocation16_spill] sm:$0xff] %v12132_v45  ;;  %v2232_v30 = vsel %vm2142_vm8, %v2229_v53, %v2231_v36  ;;  %v14521_v53 = vld [vmem:[#allocation19_spill] sm:$0xff]  ;;  %v14523_v36 = vld [vmem:[#allocation21_spill] sm:$0xff]  ;;  %v2238_v19 = vrot.slane %v14525_v46, 2 }
 0x2c5   :  { %7343 = vmatprep.mubr.msk.bf16.mxu0 %vm455_vm2, %v923_v59  ;;  %v12105_v59 = vsel %vm230_vm1, %v4498_v61, %v4500_v17  ;;  %14515 = vst [vmem:[#allocation91_spill] sm:$0xff] %v12120_v63  ;;  %v3693_v61 = vsel %vm2142_vm8, %v3690_v42, %v3692_v6  ;;  %v8471_v6 = vld [vmem:[%s13843_s5 + $0x48] sm:$0xff]   ;;  %v12154_v12 = vpack.c.bf16 %v2232_v30, %v2230_v1  ;;  %v8473_v1 = vld [vmem:[%s13843_s5 + $0x50] sm:$0xff]  }
 0x2c6   :  { %7656 = vmatmul.mubr.msk.bf16.gmra.mrb[64].mxu1 %vm455_vm2, %v11888_v40  ;;  %14511 = vst [vmem:[#allocation7_spill] sm:$0xff] %v12105_v59  ;;  %v12128_v17 = vsel %vm2142_vm8, %v4910_v39, %v4911_v5  ;;  %v12150_v9 = vpack.c.bf16 %v3693_v61, %v3691_v29  ;;  %v14526_v29 = vld [vmem:[#allocation25_spill] sm:$0xff]  ;;  %v14527_v39 = vld [vmem:[#allocation26_spill] sm:$0xff]  ;;  %v12243_v18 = vpack.c.bf16 %v11271_v0, %v11262_v52 }
 0x2c7   :  { %7659 = vmatprep.mubr.msk.bf16.mxu1 %vm455_vm2, %v12070_v26  ;;  %v4913_v26 = vrot.slane %v922_v44, 2  ;;  %14516 = vst [vmem:[#allocation14_spill] sm:$0xff] %v12128_v17  ;;  %v12144_v44 = vpack.c.bf16 %v10967_v7, %v10961_v47  ;;  %14520 = vst [vmem:[#allocation109_spill] sm:$0xff] %v12154_v12  ;;  %v2236_v47 = vrot.slane %v14523_v36, 2  ;;  %v14524_v7 = vld [vmem:[#allocation36_spill] sm:$0xff]  ;;  %v2239_v61 = vrot.slane %v14526_v29, 2 }
 0x2c8   :  { %14519 = vst [vmem:[#allocation108_spill] sm:$0xff] %v12150_v9  ;;  %v2241_v16 = vrot.slane %v14527_v39, 2  ;;  %v8475_v17 = vld [vmem:[%s13843_s5 + $0x58] sm:$0xff]   ;;  %v12249_v59 = vpack.c.bf16 %v11324_v33, %v11315_v62  ;;  %v14546_v52 = vld [vmem:[#allocation50_spill] sm:$0xff] }
 0x2c9   :  { %v12140_v42 = vsel %vm2142_vm8, %v4911_v5, %v4913_v26  ;;  %v2233_v5 = vrot.slane %v14521_v53, 2  ;;  %v14522_v26 = vld [vmem:[#allocation20_spill] sm:$0xff]  ;;  %v2240_v10 = vsel %vm2142_vm8, %v2238_v19, %v2239_v61  ;;  %v2263_v0 = vrot.slane %v14546_v52, 2  ;;  %v14549_v62 = vld [vmem:[#allocation57_spill] sm:$0xff] }
 0x2ca   :  { %14518 = vst [vmem:[#allocation17_spill] sm:$0xff] %v12140_v42  ;;  %v2234_v43 = vrot.slane %v14522_v26, 2  ;;  %v2242_v39 = vsel %vm2142_vm8, %v2239_v61, %v2241_v16  ;;  %v12183_v42 = vpack.c.bf16 %v11092_v37, %v11077_v55  ;;  %v14533_v55 = vld [vmem:[#allocation33_spill] sm:$0xff]  ;;  %v14534_v61 = vld [vmem:[#allocation34_spill] sm:$0xff]  ;;  %v2268_v33 = vrot.slane %v14549_v62, 2 }
 0x2cb   :  { %v2248_v37 = vrot.slane %v14533_v55, 2 }
 0x2cc   :  { %7344 = vmatmul.mubr.msk.bf16.vlgmr.msra.gmra.mrb[4].mxu0 %vm455_vm2, %v12132_v45  ;;  %v2235_v30 = vsel %vm2142_vm8, %v2233_v5, %v2234_v43  ;;  %v2237_v36 = vsel %vm2142_vm8, %v2234_v43, %v2236_v47  ;;  %v14531_v5 = vld [vmem:[#allocation29_spill] sm:$0xff]  ;;  %v14532_v47 = vld [vmem:[#allocation30_spill] sm:$0xff] }
 0x2cd   :  { %7347 = vmatprep.mubr.msk.bf16.mxu0 %vm455_vm2, %v12144_v44  ;;  %7408 = vmatpush3.bf16.msra.mxu0 %v14524_v7  ;;  %v12174_v7 = vpack.c.bf16 %v11032_v27, %v11019_v2  ;;  %v12191_v2 = vpack.c.bf16 %v2242_v39, %v2240_v10  ;;  %v14530_v27 = vld [vmem:[#allocation28_spill] sm:$0xff]  ;;  %v2244_v43 = vrot.slane %v14531_v5, 2  ;;  %v2246_v19 = vrot.slane %v14532_v47, 2  ;;  %v12206_v10 = vld [vmem:[%s13843_s5 + $0x60] sm:$0xff]  }
 0x2ce   :  { %7660 = vmatmul.mubr.msk.bf16.gmra.mrb[4].mxu1 %vm455_vm2, %v12150_v9  ;;  %7409 = vmatprep.subr.bf16.mxu0 %v8471_v6  ;;  %v2243_v16 = vrot.slane %v14530_v27, 2  ;;  %v12212_v47 = vpack.c.bf16 %v11145_v31, %v11139_v50  ;;  %v12219_v9 = vpack.c.bf16 %v11213_v11, %v11194_v3  ;;  %v14538_v31 = vld [vmem:[#allocation39_spill] sm:$0xff]  ;;  %v14541_v3 = vld [vmem:[#allocation44_spill] sm:$0xff] }
 0x2cf   :  { %7663 = vmatprep.mubr.msk.bf16.mxu1 %vm455_vm2, %v12154_v12  ;;  %14529 = vst [vmem:[#allocation20_spill] sm:$0xff] %v12191_v2  ;;  %v2247_v39 = vsel %vm2142_vm8, %v2244_v43, %v2246_v19  ;;  %v14540_v19 = vld [vmem:[#allocation42_spill] sm:$0xff]  ;;  %v2258_v11 = vrot.slane %v14541_v3, 2 }
 0x2d1   :  { %7410 = vmatpush3.bf16.msra.mxu0 %v8471_v6  ;;  %v12187_v6 = vpack.c.bf16 %v2237_v36, %v2235_v30  ;;  %v2249_v30 = vrot.slane %v14534_v61, 2  ;;  %v14535_v36 = vld [vmem:[#allocation35_spill] sm:$0xff] }
 0x2d2   :  { %7411 = vmatprep.subr.bf16.mxu0 %v8473_v1  ;;  %v2251_v48 = vrot.slane %v14535_v36, 2 }
 0x2d3   :  { %14528 = vst [vmem:[#allocation19_spill] sm:$0xff] %v12187_v6  ;;  %v2250_v36 = vsel %vm2142_vm8, %v2248_v37, %v2249_v30  ;;  %v2256_v37 = vrot.slane %v14540_v19, 2 }
 0x2d4   :  { %7348 = vmatmul.mubr.msk.bf16.gmra.mrb[8].mxu0 %vm455_vm2, %v12174_v7  ;;  %v2252_v63 = vsel %vm2142_vm8, %v2249_v30, %v2251_v48  ;;  %v14542_v30 = vld [vmem:[#allocation45_spill] sm:$0xff] }
 0x2d5   :  { %7351 = vmatprep.mubr.msk.bf16.mxu0 %vm455_vm2, %v12183_v42  ;;  %7412 = vmatpush3.bf16.msra.mxu0 %v8473_v1  ;;  %v2245_v1 = vsel %vm2142_vm8, %v2243_v16, %v2244_v43  ;;  %v12227_v50 = vpack.c.bf16 %v2252_v63, %v2250_v36  ;;  %v14539_v43 = vld [vmem:[#allocation40_spill] sm:$0xff]  ;;  %v2259_v58 = vrot.slane %v14542_v30, 2 }
 0x2d6   :  { %7664 = vmatmul.mubr.msk.bf16.gmra.mrb[8].mxu1 %vm455_vm2, %v12187_v6  ;;  %7413 = vmatprep.subr.bf16.mxu0 %v8475_v17  ;;  %v12223_v16 = vpack.c.bf16 %v2247_v39, %v2245_v1  ;;  %v2254_v48 = vrot.slane %v14539_v43, 2  ;;  %v14543_v1 = vld [vmem:[#allocation46_spill] sm:$0xff] }
 0x2d7   :  { %7667 = vmatprep.mubr.msk.bf16.mxu1 %vm455_vm2, %v12191_v2  ;;  %14537 = vst [vmem:[#allocation36_spill] sm:$0xff] %v12227_v50  ;;  %v2261_v39 = vrot.slane %v14543_v1, 2  ;;  %v2260_v19 = vsel %vm2142_vm8, %v2258_v11, %v2259_v58  ;;  %v14548_v11 = vld [vmem:[#allocation53_spill] sm:$0xff]  ;;  %v12303_v2 = vpack.c.bf16 %v14472_v22, %v14471_v32  ;;  %v14564_v32 = vld [vmem:[#allocation79_spill] sm:$0xff] }
 0x2d8   :  { %14536 = vst [vmem:[#allocation21_spill] sm:$0xff] %v12223_v16  ;;  %v2257_v36 = vsel %vm2142_vm8, %v2254_v48, %v2256_v37  ;;  %v2286_v22 = vrot.slane %v14564_v32, 2 }
 0x2d9   :  { %7414 = vmatpush3.bf16.msra.mxu0 %v8475_v17  ;;  %v2253_v17 = vrot.slane %v14538_v31, 2  ;;  %v2262_v23 = vsel %vm2142_vm8, %v2259_v58, %v2261_v39  ;;  %v2266_v58 = vrot.slane %v14548_v11, 2  ;;  %v14550_v39 = vld [vmem:[#allocation59_spill] sm:$0xff] }
 0x2da   :  { %7479 = vmatprep.subr.bf16.mxu0 %v12206_v10  ;;  %v2269_v45 = vrot.slane %v14550_v39, 2 }
 0x2db   :  { %v2255_v63 = vsel %vm2142_vm8, %v2253_v17, %v2254_v48  ;;  %v12257_v17 = vpack.c.bf16 %v2262_v23, %v2260_v19  ;;  %v14547_v48 = vld [vmem:[#allocation51_spill] sm:$0xff] }
 0x2dc   :  { %7352 = vmatmul.mubr.msk.bf16.gmra.mrb[12].mxu0 %vm455_vm2, %v12212_v47  ;;  %v12253_v1 = vpack.c.bf16 %v2257_v36, %v2255_v63  ;;  %v2264_v37 = vrot.slane %v14547_v48, 2  ;;  %v14551_v63 = vld [vmem:[#allocation60_spill] sm:$0xff]  ;;  %v2270_v11 = vsel %vm2142_vm8, %v2268_v33, %v2269_v45  ;;  %v14556_v33 = vld [vmem:[#allocation69_spill] sm:$0xff] }
 0x2dd   :  { %7355 = vmatprep.mubr.msk.bf16.mxu0 %vm455_vm2, %v12219_v9  ;;  %14545 = vst [vmem:[#allocation25_spill] sm:$0xff] %v12257_v17  ;;  %v2271_v36 = vrot.slane %v14551_v63, 2 }
 0x2de   :  { %7668 = vmatmul.mubr.msk.bf16.gmra.mrb[12].mxu1 %vm455_vm2, %v12223_v16  ;;  %14544 = vst [vmem:[#allocation23_spill] sm:$0xff] %v12253_v1  ;;  %v2265_v23 = vsel %vm2142_vm8, %v2263_v0, %v2264_v37  ;;  %v2267_v19 = vsel %vm2142_vm8, %v2264_v37, %v2266_v58  ;;  %v12279_v16 = vpack.c.bf16 %v14469_v20, %v14468_v57  ;;  %v14555_v37 = vld [vmem:[#allocation67_spill] sm:$0xff]  ;;  %v14557_v57 = vld [vmem:[#allocation70_spill] sm:$0xff] }
 0x2df   :  { %7671 = vmatprep.mubr.msk.bf16.mxu1 %vm455_vm2, %v12227_v50  ;;  %v12273_v50 = vpack.c.bf16 %v11380_v41, %v11371_v49  ;;  %v12283_v63 = vpack.c.bf16 %v2267_v19, %v2265_v23  ;;  %v14554_v49 = vld [vmem:[#allocation66_spill] sm:$0xff]  ;;  %v2274_v58 = vrot.slane %v14555_v37, 2  ;;  %v2278_v20 = vrot.slane %v14557_v57, 2  ;;  %v14559_v23 = vld [vmem:[#allocation73_spill] sm:$0xff] }
 0x2e0   :  { %v2273_v41 = vrot.slane %v14554_v49, 2  ;;  %v2281_v19 = vrot.slane %v14559_v23, 2 }
 0x2e1   :  { %14552 = vst [vmem:[#allocation26_spill] sm:$0xff] %v12283_v63 }
 0x2e4   :  { %7356 = vmatmul.mubr.msk.bf16.gmra.mrb[16].mxu0 %vm455_vm2, %v12243_v18 }
 0x2e5   :  { %7359 = vmatprep.mubr.msk.bf16.mxu0 %vm455_vm2, %v12249_v59 }
 0x2e6   :  { %7672 = vmatmul.mubr.msk.bf16.gmra.mrb[16].mxu1 %vm455_vm2, %v12253_v1  ;;  %v2272_v1 = vsel %vm2142_vm8, %v2269_v45, %v2271_v36  ;;  %v2276_v45 = vrot.slane %v14556_v33, 2  ;;  %v14558_v36 = vld [vmem:[#allocation72_spill] sm:$0xff] }
 0x2e7   :  { %7675 = vmatprep.mubr.msk.bf16.mxu1 %vm455_vm2, %v12257_v17  ;;  %v12287_v0 = vpack.c.bf16 %v2272_v1, %v2270_v11  ;;  %v2279_v17 = vrot.slane %v14558_v36, 2  ;;  %v2275_v1 = vsel %vm2142_vm8, %v2273_v41, %v2274_v58  ;;  %v14562_v41 = vld [vmem:[#allocation76_spill] sm:$0xff] }
 0x2e8   :  { %v2277_v11 = vsel %vm2142_vm8, %v2274_v58, %v2276_v45  ;;  %v2283_v58 = vrot.slane %v14562_v41, 2  ;;  %v14563_v45 = vld [vmem:[#allocation77_spill] sm:$0xff] }
 0x2e9   :  { %14553 = vst [vmem:[#allocation28_spill] sm:$0xff] %v12287_v0  ;;  %v2280_v33 = vsel %vm2142_vm8, %v2278_v20, %v2279_v17  ;;  %v12309_v6 = vpack.c.bf16 %v2277_v11, %v2275_v1  ;;  %v14567_v1 = vld [vmem:[#allocation83_spill] sm:$0xff] }
 0x2ea   :  { %v2291_v11 = vrot.slane %v14567_v1, 2 }
 0x2eb   :  { %14560 = vst [vmem:[#allocation29_spill] sm:$0xff] %v12309_v6 }
 0x2ec   :  { %7360 = vmatmul.mubr.msk.bf16.gmra.mrb[20].mxu0 %vm455_vm2, %v12273_v50 }
 0x2ed   :  { %7363 = vmatprep.mubr.msk.bf16.mxu0 %vm455_vm2, %v12279_v16 }
 0x2ee   :  { %7676 = vmatmul.mubr.msk.bf16.gmra.mrb[20].mxu1 %vm455_vm2, %v12283_v63  ;;  %v2282_v63 = vsel %vm2142_vm8, %v2279_v17, %v2281_v19  ;;  %v14565_v17 = vld [vmem:[#allocation80_spill] sm:$0xff]  ;;  %v14566_v19 = vld [vmem:[#allocation82_spill] sm:$0xff] }
 0x2ef   :  { %7679 = vmatprep.mubr.msk.bf16.mxu1 %vm455_vm2, %v12287_v0  ;;  %v12313_v23 = vpack.c.bf16 %v2282_v63, %v2280_v33  ;;  %v2284_v0 = vrot.slane %v14563_v45, 2  ;;  %v2288_v20 = vrot.slane %v14565_v17, 2  ;;  %v2289_v8 = vrot.slane %v14566_v19, 2 }
 0x2f1   :  { %14561 = vst [vmem:[#allocation30_spill] sm:$0xff] %v12313_v23  ;;  %v2285_v63 = vsel %vm2142_vm8, %v2283_v58, %v2284_v0  ;;  %v2287_v33 = vsel %vm2142_vm8, %v2284_v0, %v2286_v22  ;;  %v2290_v12 = vsel %vm2142_vm8, %v2288_v20, %v2289_v8  ;;  %v2292_v32 = vsel %vm2142_vm8, %v2289_v8, %v2291_v11  ;;  %v14577_v58 = vld [vmem:[#allocation11_spill] sm:$0xff]  ;;  %v8481_v11 = vld [vmem:[%s13843_s5 + $0x70] sm:$0xff]  }
 0x2f2   :  { %v12335_v1 = vpack.c.bf16 %v2292_v32, %v2290_v12  ;;  %v12343_v0 = vpack.c.bf16 %v14487_v35, %v14486_v51  ;;  %v14570_v8 = vpack.c.bf16 %v14481_v28, %v14480_v24  ;;  %v12357_v12 = vpack.c.bf16 %v14502_v15, %v14501_v25  ;;  %v8474_v28 = vld [vmem:[%s13843_s5 + $0xe8] sm:$0xff]   ;;  %v8476_v25 = vld [vmem:[%s13843_s5 + $0xf0] sm:$0xff]   ;;  %v14583_v32 = vld [vmem:[#allocation105_spill] sm:$0xff] }
 0x2f3   :  { %v12361_v35 = vpack.c.bf16 %v14522_v26, %v14521_v53  ;;  %v12373_v51 = vpack.c.bf16 %v14526_v29, %v14525_v46  ;;  %v12377_v24 = vpack.c.bf16 %v14531_v5, %v14530_v27  ;;  %v12396_v15 = vpack.c.bf16 %v14534_v61, %v14533_v55  ;;  %v12416_v26 = vld [vmem:[%s13843_s5 + $0x100] sm:$0xff]   ;;  %v8479_v22 = vld [vmem:[%s13843_s5 + $0x68] sm:$0xff]  }
 0x2f4   :  { %7364 = vmatmul.mubr.msk.bf16.gmra.mrb[24].mxu0 %vm455_vm2, %v12303_v2  ;;  %14569 = vst [vmem:[#allocation34_spill] sm:$0xff] %v12335_v1  ;;  %v12400_v53 = vpack.c.bf16 %v14539_v43, %v14538_v31  ;;  %v12420_v46 = vpack.c.bf16 %v14542_v30, %v14541_v3  ;;  %v12424_v29 = vpack.c.bf16 %v14547_v48, %v14546_v52  ;;  %v14571_v43 = vld [vmem:[#allocation3_spill] sm:$0xff]  ;;  %v14572_v30 = vld [vmem:[#allocation4_spill] sm:$0xff]  ;;  %v14573_v48 = vld [vmem:[#allocation5_spill] sm:$0xff] }
 0x2f5   :  { %7367 = vmatprep.mubr.msk.bf16.mxu0 %vm455_vm2, %v11959_v34  ;;  %v12437_v27 = vpack.c.bf16 %v14550_v39, %v14549_v62  ;;  %v12441_v5 = vpack.c.bf16 %v14555_v37, %v14554_v49  ;;  %v12453_v55 = vpack.c.bf16 %v14558_v36, %v14557_v57  ;;  %v12457_v61 = vpack.c.bf16 %v14563_v45, %v14562_v41  ;;  %v14574_v39 = vld [vmem:[#allocation65_spill] sm:$0xff]  ;;  %v14576_v41 = vld [vmem:[#allocation10_spill] sm:$0xff] }
 0x2f6   :  { %7680 = vmatmul.mubr.msk.bf16.gmra.mrb[24].mxu1 %vm455_vm2, %v12309_v6  ;;  %v12331_v6 = vpack.c.bf16 %v2287_v33, %v2285_v63  ;;  %v12469_v31 = vpack.c.bf16 %v14566_v19, %v14565_v17  ;;  %v2143_v3 = vrot.slane %v14571_v43, 2  ;;  %v2144_v52 = vrot.slane %v14572_v30, 2  ;;  %v14575_v36 = vld [vmem:[#allocation85_spill] sm:$0xff]  ;;  %v14578_v17 = vld [vmem:[#allocation98_spill] sm:$0xff]  ;;  %v14579_v19 = vld [vmem:[#allocation99_spill] sm:$0xff] }
 0x2f7   :  { %7683 = vmatprep.mubr.msk.bf16.mxu1 %vm455_vm2, %v12313_v23  ;;  %v2146_v62 = vrot.slane %v14573_v48, 2  ;;  %v12489_v45 = vpack.c.bf16 %v14577_v58, %v14576_v41  ;;  %v4097_v20 = vpack.c.bf16 %v12047_v56, %v12044_v54  ;;  %v8483_v54 = vld [vmem:[%s13843_s5 + $0x78] sm:$0xff]   ;;  %v14580_v56 = vld [vmem:[#allocation100_spill] sm:$0xff]  ;;  %v12525_v63 = vld [vmem:[%s13843_s5 + $0x80] sm:$0xff]  }
 0x2f8   :  { %14568 = vst [vmem:[#allocation33_spill] sm:$0xff] %v12331_v6  ;;  %v2145_v49 = vsel %vm2142_vm8, %v2143_v3, %v2144_v52  ;;  %v14582_v33 = vld [vmem:[#allocation104_spill] sm:$0xff]  ;;  %v14588_v43 = vld [vmem:[#allocation55_spill] sm:$0xff]  ;;  %v14589_v3 = vld [vmem:[#allocation101_spill] sm:$0xff] }
 0x2f9   :  { %v2147_v37 = vsel %vm2142_vm8, %v2144_v52, %v2146_v62  ;;  %v14590_v30 = vld [vmem:[#allocation102_spill] sm:$0xff]  ;;  %v14591_v52 = vld [vmem:[#allocation89_spill] sm:$0xff]  ;;  %v14593_v62 = vld [vmem:[#allocation92_spill] sm:$0xff] }
 0x2fa   :  { %v2367_v57 = vpack.c.bf16 %v2147_v37, %v2145_v49  ;;  %v14592_v48 = vld [vmem:[#allocation93_spill] sm:$0xff]  ;;  %v14595_v37 = vld [vmem:[#allocation87_spill] sm:$0xff]  ;;  %v14597_v41 = vld [vmem:[#allocation88_spill] sm:$0xff] }
 0x2fb   :  { %v14594_v49 = vpack.c.bf16 %v14592_v48, %v14593_v62  ;;  %v14598_v58 = vld [vmem:[#allocation94_spill] sm:$0xff]  ;;  %v14602_v48 = vld [vmem:[#allocation21_spill] sm:$0xff] }
 0x2fc   :  { %7368 = vmatmul.mubr.msk.bf16.gmra.mrb[28].mxu0 %vm455_vm2, %v11965_v21  ;;  %v14603_v62 = vld [vmem:[#allocation22_spill] sm:$0xff] }
 0x2fd   :  { %7371 = vmatprep.mubr.msk.bf16.mxu0 %vm455_vm2, %v11971_v60 }
 0x2fe   :  { %7684 = vmatmul.mubr.msk.bf16.gmra.mrb[28].mxu1 %vm455_vm2, %v12331_v6 }
 0x2ff   :  { %7687 = vmatprep.mubr.msk.bf16.mxu1 %vm455_vm2, %v12335_v1 }
 0x304   :  { %7372 = vmatmul.mubr.msk.bf16.gmra.mrb[32].mxu0 %vm455_vm2, %v12343_v0 }
 0x305   :  { %7375 = vmatprep.mubr.msk.bf16.mxu0 %vm455_vm2, %v14570_v8  ;;  %v14584_v8 = vld [vmem:[#allocation106_spill] sm:$0xff] }
 0x306   :  { %7688 = vmatmul.mubr.msk.bf16.gmra.mrb[32].mxu1 %vm455_vm2, %v11993_v14 }
 0x307   :  { %7691 = vmatprep.mubr.msk.bf16.mxu1 %vm455_vm2, %v12005_v38 }
 0x30c   :  { %7376 = vmatmul.mubr.msk.bf16.gmra.mrb[36].mxu0 %vm455_vm2, %v12357_v12 }
 0x30d   :  { %7379 = vmatprep.mubr.msk.bf16.mxu0 %vm455_vm2, %v12361_v35 }
 0x30e   :  { %7692 = vmatmul.mubr.msk.bf16.gmra.mrb[36].mxu1 %vm455_vm2, %v12011_v4  ;;  %v14608_v4 = vld [vmem:[#allocation38_spill] sm:$0xff] }
 0x30f   :  { %7703 = vmatprep.mubr.msk.bf16.mxu1 %vm455_vm2, %v12144_v44 }
 0x314   :  { %7380 = vmatmul.mubr.msk.bf16.gmra.mrb[40].mxu0 %vm455_vm2, %v12373_v51 }
 0x315   :  { %7383 = vmatprep.mubr.msk.bf16.mxu0 %vm455_vm2, %v12377_v24 }
 0x316   :  { %7704 = vmatmul.mubr.msk.bf16.vlgmr.msra.gmra.mrb[40].mxu1 %vm455_vm2, %v12174_v7 }
 0x317   :  { %7768 = vmatpush3.bf16.msra.mxu1 %v11910_v13  ;;  %7707 = vmatprep.mubr.msk.bf16.mxu1 %vm455_vm2, %v12183_v42  ;;  %v8478_v13 = vld [vmem:[%s13843_s5 + $0xf8] sm:$0xff]  }
 0x318   :  { %7769 = vmatprep.subr.bf16.mxu1 %v8474_v28 }
 0x31b   :  { %7770 = vmatpush3.bf16.msra.mxu1 %v8474_v28  ;;  %v14585_v28 = vld [vmem:[#allocation49_spill] sm:$0xff] }
 0x31c   :  { %7384 = vmatmul.mubr.msk.bf16.gmra.mrb[44].mxu0 %vm455_vm2, %v12396_v15  ;;  %7771 = vmatprep.subr.bf16.mxu1 %v8476_v25 }
 0x31d   :  { %7387 = vmatprep.mubr.msk.bf16.mxu0 %vm455_vm2, %v12400_v53 }
 0x31e   :  { %7708 = vmatmul.mubr.msk.bf16.gmra.mrb[44].mxu1 %vm455_vm2, %v12212_v47 }
 0x31f   :  { %7711 = vmatprep.mubr.msk.bf16.mxu1 %vm455_vm2, %v12219_v9  ;;  %7772 = vmatpush3.bf16.msra.mxu1 %v8476_v25  ;;  %v14586_v25 = vld [vmem:[#allocation107_spill] sm:$0xff] }
 0x320   :  { %7773 = vmatprep.subr.bf16.mxu1 %v8478_v13 }
 0x323   :  { %7774 = vmatpush3.bf16.msra.mxu1 %v8478_v13  ;;  %v14587_v13 = vld [vmem:[#allocation54_spill] sm:$0xff] }
 0x324   :  { %7388 = vmatmul.mubr.msk.bf16.gmra.mrb[48].mxu0 %vm455_vm2, %v12420_v46  ;;  %7839 = vmatprep.subr.bf16.mxu1 %v12416_v26 }
 0x325   :  { %7391 = vmatprep.mubr.msk.bf16.mxu0 %vm455_vm2, %v12424_v29 }
 0x326   :  { %7712 = vmatmul.mubr.msk.bf16.gmra.mrb[48].mxu1 %vm455_vm2, %v12243_v18 }
 0x327   :  { %7715 = vmatprep.mubr.msk.bf16.mxu1 %vm455_vm2, %v12249_v59 }
 0x32c   :  { %7392 = vmatmul.mubr.msk.bf16.gmra.mrb[52].mxu0 %vm455_vm2, %v12437_v27 }
 0x32d   :  { %7395 = vmatprep.mubr.msk.bf16.mxu0 %vm455_vm2, %v12441_v5 }
 0x32e   :  { %7716 = vmatmul.mubr.msk.bf16.gmra.mrb[52].mxu1 %vm455_vm2, %v12273_v50 }
 0x32f   :  { %7719 = vmatprep.mubr.msk.bf16.mxu1 %vm455_vm2, %v12279_v16 }
 0x334   :  { %7396 = vmatmul.mubr.msk.bf16.gmra.mrb[56].mxu0 %vm455_vm2, %v12453_v55 }
 0x335   :  { %7399 = vmatprep.mubr.msk.bf16.mxu0 %vm455_vm2, %v12457_v61 }
 0x336   :  { %7720 = vmatmul.mubr.msk.bf16.gmra.mrb[56].mxu1 %vm455_vm2, %v12303_v2 }
 0x337   :  { %7723 = vmatprep.mubr.msk.bf16.mxu1 %vm455_vm2, %v11959_v34 }
 0x33c   :  { %7400 = vmatmul.mubr.msk.bf16.gmra.mrb[60].mxu0 %vm455_vm2, %v12469_v31 }
 0x33d   :  { %7403 = vmatprep.mubr.msk.bf16.mxu0 %vm455_vm2, %v14574_v39 }
 0x33e   :  { %7724 = vmatmul.mubr.msk.bf16.gmra.mrb[60].mxu1 %vm455_vm2, %v11965_v21 }
 0x33f   :  { %7727 = vmatprep.mubr.msk.bf16.mxu1 %vm455_vm2, %v11971_v60 }
 0x344   :  { %7404 = vmatmul.mubr.msk.bf16.gmra.mrb[64].mxu0 %vm455_vm2, %v14575_v36 }
 0x345   :  { %7415 = vmatprep.mubr.msk.bf16.mxu0 %vm455_vm2, %v2367_v57  ;;  %v14596_v57 = vld [vmem:[#allocation109_spill] sm:$0xff] }
 0x346   :  { %7728 = vmatmul.mubr.msk.bf16.gmra.mrb[64].mxu1 %vm455_vm2, %v12343_v0 }
 0x347   :  { %7731 = vmatprep.mubr.msk.bf16.mxu1 %vm455_vm2, %v12489_v45 }
 0x34c   :  { %7416 = vmatmul.mubr.msk.bf16.vlgmr.msra.gmra.mrb[4].mxu0 %vm455_vm2, %v14578_v17  ;;  %v14599_v17 = vld [vmem:[#allocation19_spill] sm:$0xff] }
 0x34d   :  { %7419 = vmatprep.mubr.msk.bf16.mxu0 %vm455_vm2, %v14579_v19  ;;  %7480 = vmatpush3.bf16.msra.mxu0 %v12206_v10  ;;  %v14581_v10 = vld [vmem:[#allocation103_spill] sm:$0xff] }
 0x34e   :  { %7732 = vmatmul.mubr.msk.bf16.gmra.mrb[4].mxu1 %vm455_vm2, %v4097_v20  ;;  %7481 = vmatprep.subr.bf16.mxu0 %v8479_v22  ;;  %v14600_v20 = vld [vmem:[#allocation18_spill] sm:$0xff] }
 0x34f   :  { %7735 = vmatprep.mubr.msk.bf16.mxu1 %vm455_vm2, %v12361_v35 }
 0x351   :  { %7482 = vmatpush3.bf16.msra.mxu0 %v8479_v22  ;;  %v4098_v22 = vpack.c.bf16 %v14598_v58, %v14597_v41  ;;  %v14605_v41 = vld [vmem:[#allocation36_spill] sm:$0xff]  ;;  %v8485_v58 = vld [vmem:[%s13843_s5 + $0x118] sm:$0xff]  }
 0x352   :  { %7483 = vmatprep.subr.bf16.mxu0 %v8481_v11 }
 0x354   :  { %7420 = vmatmul.mubr.msk.bf16.gmra.mrb[8].mxu0 %vm455_vm2, %v14580_v56 }
 0x355   :  { %7423 = vmatprep.mubr.msk.bf16.mxu0 %vm455_vm2, %v14581_v10  ;;  %7484 = vmatpush3.bf16.msra.mxu0 %v8481_v11  ;;  %v14601_v11 = vld [vmem:[#allocation20_spill] sm:$0xff] }
 0x356   :  { %7736 = vmatmul.mubr.msk.bf16.gmra.mrb[8].mxu1 %vm455_vm2, %v12373_v51  ;;  %7485 = vmatprep.subr.bf16.mxu0 %v8483_v54 }
 0x357   :  { %7739 = vmatprep.mubr.msk.bf16.mxu1 %vm455_vm2, %v12377_v24 }
 0x359   :  { %7486 = vmatpush3.bf16.msra.mxu0 %v8483_v54  ;;  %v8482_v54 = vld [vmem:[%s13843_s5 + $0x108] sm:$0xff]  }
 0x35a   :  { %7551 = vmatprep.subr.bf16.mxu0 %v12525_v63 }
 0x35c   :  { %7424 = vmatmul.mubr.msk.bf16.gmra.mrb[12].mxu0 %vm455_vm2, %v14582_v33 }
 0x35d   :  { %7427 = vmatprep.mubr.msk.bf16.mxu0 %vm455_vm2, %v14583_v32 }
 0x35e   :  { %7740 = vmatmul.mubr.msk.bf16.gmra.mrb[12].mxu1 %vm455_vm2, %v12396_v15 }
 0x35f   :  { %7743 = vmatprep.mubr.msk.bf16.mxu1 %vm455_vm2, %v12400_v53 }
 0x364   :  { %7428 = vmatmul.mubr.msk.bf16.gmra.mrb[16].mxu0 %vm455_vm2, %v14584_v8 }
 0x365   :  { %7431 = vmatprep.mubr.msk.bf16.mxu0 %vm455_vm2, %v14585_v28 }
 0x366   :  { %7744 = vmatmul.mubr.msk.bf16.gmra.mrb[16].mxu1 %vm455_vm2, %v12420_v46 }
 0x367   :  { %7747 = vmatprep.mubr.msk.bf16.mxu1 %vm455_vm2, %v12424_v29 }
 0x36c   :  { %7432 = vmatmul.mubr.msk.bf16.gmra.mrb[20].mxu0 %vm455_vm2, %v14586_v25 }
 0x36d   :  { %7435 = vmatprep.mubr.msk.bf16.mxu0 %vm455_vm2, %v14587_v13 }
 0x36e   :  { %7748 = vmatmul.mubr.msk.bf16.gmra.mrb[20].mxu1 %vm455_vm2, %v12437_v27 }
 0x36f   :  { %7751 = vmatprep.mubr.msk.bf16.mxu1 %vm455_vm2, %v12441_v5 }
 0x374   :  { %7436 = vmatmul.mubr.msk.bf16.gmra.mrb[24].mxu0 %vm455_vm2, %v14588_v43 }
 0x375   :  { %7439 = vmatprep.mubr.msk.bf16.mxu0 %vm455_vm2, %v14589_v3 }
 0x376   :  { %7752 = vmatmul.mubr.msk.bf16.gmra.mrb[24].mxu1 %vm455_vm2, %v12453_v55 }
 0x377   :  { %7755 = vmatprep.mubr.msk.bf16.mxu1 %vm455_vm2, %v12457_v61 }
 0x37c   :  { %7440 = vmatmul.mubr.msk.bf16.gmra.mrb[28].mxu0 %vm455_vm2, %v14590_v30 }
 0x37d   :  { %7443 = vmatprep.mubr.msk.bf16.mxu0 %vm455_vm2, %v11888_v40 }
 0x37e   :  { %7756 = vmatmul.mubr.msk.bf16.gmra.mrb[28].mxu1 %vm455_vm2, %v12469_v31 }
 0x37f   :  { %7759 = vmatprep.mubr.msk.bf16.mxu1 %vm455_vm2, %v14574_v39 }
 0x384   :  { %7444 = vmatmul.mubr.msk.bf16.gmra.mrb[32].mxu0 %vm455_vm2, %v14591_v52 }
 0x385   :  { %7447 = vmatprep.mubr.msk.bf16.mxu0 %vm455_vm2, %v14594_v49  ;;  %v14604_v49 = vld [vmem:[#allocation27_spill] sm:$0xff] }
 0x386   :  { %7760 = vmatmul.mubr.msk.bf16.gmra.mrb[32].mxu1 %vm455_vm2, %v14575_v36 }
 0x387   :  { %7763 = vmatprep.mubr.msk.bf16.mxu1 %vm455_vm2, %v14595_v37 }
 0x38c   :  { %7448 = vmatmul.mubr.msk.bf16.gmra.mrb[36].mxu0 %vm455_vm2, %v14596_v57  ;;  %v8484_v57 = vld [vmem:[%s13843_s5 + $0x110] sm:$0xff]  }
 0x38d   :  { %7451 = vmatprep.mubr.msk.bf16.mxu0 %vm455_vm2, %v14599_v17 }
 0x38e   :  { %7764 = vmatmul.mubr.msk.bf16.gmra.mrb[36].mxu1 %vm455_vm2, %v4098_v22  ;;  %v14606_v22 = vld [vmem:[#allocation23_spill] sm:$0xff] }
 0x38f   :  { %7775 = vmatprep.mubr.msk.bf16.mxu1 %vm455_vm2, %v14600_v20 }
 0x394   :  { %7452 = vmatmul.mubr.msk.bf16.gmra.mrb[40].mxu0 %vm455_vm2, %v14601_v11  ;;  %v14612_v11 = vld [vmem:[#allocation48_spill] sm:$0xff] }
 0x395   :  { %7455 = vmatprep.mubr.msk.bf16.mxu0 %vm455_vm2, %v14602_v48  ;;  %v14611_v48 = vld [vmem:[#allocation43_spill] sm:$0xff] }
 0x396   :  { %7776 = vmatmul.mubr.msk.bf16.vlgmr.msra.gmra.mrb[40].mxu1 %vm455_vm2, %v14603_v62 }
 0x397   :  { %7840 = vmatpush3.bf16.msra.mxu1 %v12416_v26  ;;  %7779 = vmatprep.mubr.msk.bf16.mxu1 %vm455_vm2, %v14604_v49  ;;  %v14607_v26 = vld [vmem:[#allocation32_spill] sm:$0xff] }
 0x398   :  { %7841 = vmatprep.subr.bf16.mxu1 %v8482_v54 }
 0x39b   :  { %7842 = vmatpush3.bf16.msra.mxu1 %v8482_v54  ;;  %v14609_v54 = vld [vmem:[#allocation25_spill] sm:$0xff] }
 0x39c   :  { %7456 = vmatmul.mubr.msk.bf16.gmra.mrb[44].mxu0 %vm455_vm2, %v14605_v41  ;;  %7843 = vmatprep.subr.bf16.mxu1 %v8484_v57  ;;  %v14610_v41 = vld [vmem:[#allocation26_spill] sm:$0xff] }
 0x39d   :  { %7459 = vmatprep.mubr.msk.bf16.mxu0 %vm455_vm2, %v14606_v22  ;;  %v14613_v22 = vld [vmem:[#allocation28_spill] sm:$0xff] }
 0x39e   :  { %7780 = vmatmul.mubr.msk.bf16.gmra.mrb[44].mxu1 %vm455_vm2, %v14607_v26  ;;  %v14614_v26 = vld [vmem:[#allocation29_spill] sm:$0xff] }
 0x39f   :  { %7783 = vmatprep.mubr.msk.bf16.mxu1 %vm455_vm2, %v14608_v4  ;;  %7844 = vmatpush3.bf16.msra.mxu1 %v8484_v57  ;;  %v14615_v57 = vld [vmem:[#allocation58_spill] sm:$0xff] }
 0x3a0   :  { %7845 = vmatprep.subr.bf16.mxu1 %v8485_v58 }
 0x3a3   :  { %7846 = vmatpush3.bf16.msra.mxu1 %v8485_v58  ;;  %v14616_v58 = vld [vmem:[#allocation64_spill] sm:$0xff] }
 0x3a4   :  { %7460 = vmatmul.mubr.msk.bf16.gmra.mrb[48].mxu0 %vm455_vm2, %v14609_v54  ;;  %v14618_v54 = vld [vmem:[#allocation75_spill] sm:$0xff] }
 0x3a5   :  { %7463 = vmatprep.mubr.msk.bf16.mxu0 %vm455_vm2, %v14610_v41  ;;  %v14617_v41 = vld [vmem:[#allocation71_spill] sm:$0xff] }
 0x3a6   :  { %7784 = vmatmul.mubr.msk.bf16.gmra.mrb[48].mxu1 %vm455_vm2, %v14611_v48 }
 0x3a7   :  { %7787 = vmatprep.mubr.msk.bf16.mxu1 %vm455_vm2, %v14612_v11 }
 0x3ac   :  { %7464 = vmatmul.mubr.msk.bf16.gmra.mrb[52].mxu0 %vm455_vm2, %v14613_v22  ;;  %v14620_v22 = vld [vmem:[#allocation86_spill] sm:$0xff] }
 0x3ad   :  { %7467 = vmatprep.mubr.msk.bf16.mxu0 %vm455_vm2, %v14614_v26  ;;  %v14619_v26 = vld [vmem:[#allocation81_spill] sm:$0xff] }
 0x3ae   :  { %7788 = vmatmul.mubr.msk.bf16.gmra.mrb[52].mxu1 %vm455_vm2, %v14615_v57 }
 0x3af   :  { %7791 = vmatprep.mubr.msk.bf16.mxu1 %vm455_vm2, %v14616_v58 }
 0x3b4   :  { %7468 = vmatmul.mubr.msk.bf16.gmra.mrb[56].mxu0 %vm455_vm2, %v12313_v23  ;;  %v14622_v23 = vld [vmem:[#allocation9_spill] sm:$0xff] }
 0x3b5   :  { %7471 = vmatprep.mubr.msk.bf16.mxu0 %vm455_vm2, %v12331_v6  ;;  %v14621_v6 = vld [vmem:[#allocation16_spill] sm:$0xff] }
 0x3b6   :  { %7792 = vmatmul.mubr.msk.bf16.gmra.mrb[56].mxu1 %vm455_vm2, %v14617_v41 }
 0x3b7   :  { %7795 = vmatprep.mubr.msk.bf16.mxu1 %vm455_vm2, %v14618_v54  ;;  %v14623_v54 = vld [vmem:[#allocation15_spill] sm:$0xff] }
 0x3bc   :  { %7472 = vmatmul.mubr.msk.bf16.gmra.mrb[60].mxu0 %vm455_vm2, %v12335_v1  ;;  %v14625_v1 = vld [vmem:[#allocation6_spill] sm:$0xff] }
 0x3bd   :  { %7475 = vmatprep.mubr.msk.bf16.mxu0 %vm455_vm2, %v11993_v14  ;;  %v14624_v14 = vld [vmem:[#allocation7_spill] sm:$0xff] }
 0x3be   :  { %7796 = vmatmul.mubr.msk.bf16.gmra.mrb[60].mxu1 %vm455_vm2, %v14619_v26 }
 0x3bf   :  { %7799 = vmatprep.mubr.msk.bf16.mxu1 %vm455_vm2, %v14620_v22 }
 0x3c4   :  { %7476 = vmatmul.mubr.msk.bf16.gmra.mrb[64].mxu0 %vm455_vm2, %v12005_v38  ;;  %v14626_v38 = vpack.c.bf16 %v14624_v14, %v14625_v1  ;;  %v8639_v14 = vld [vmem:[%s13843_s5 + $0x98] sm:$0xff]   ;;  %v14632_v1 = vld [vmem:[#allocation52_spill] sm:$0xff] }
 0x3c5   :  { %7487 = vmatprep.mubr.msk.bf16.mxu0 %vm455_vm2, %v14621_v6  ;;  %v8637_v6 = vld [vmem:[%s13843_s5 + $0x88] sm:$0xff]  }
 0x3c6   :  { %7800 = vmatmul.mubr.msk.bf16.gmra.mrb[64].mxu1 %vm455_vm2, %v14622_v23  ;;  %v14627_v23 = vld [vmem:[#allocation24_spill] sm:$0xff] }
 0x3c7   :  { %7803 = vmatprep.mubr.msk.bf16.mxu1 %vm455_vm2, %v14623_v54 }
 0x3cc   :  { %7488 = vmatmul.mubr.msk.bf16.vlgmr.msra.gmra.mrb[4].mxu0 %vm455_vm2, %v12144_v44  ;;  %v8638_v44 = vld [vmem:[%s13843_s5 + $0x90] sm:$0xff]  }
 0x3cd   :  { %7491 = vmatprep.mubr.msk.bf16.mxu0 %vm455_vm2, %v12174_v7  ;;  %7552 = vmatpush3.bf16.msra.mxu0 %v12525_v63  ;;  %v14629_v7 = vld [vmem:[#allocation37_spill] sm:$0xff] }
 0x3ce   :  { %7804 = vmatmul.mubr.msk.bf16.gmra.mrb[4].mxu1 %vm455_vm2, %v14626_v38  ;;  %7553 = vmatprep.subr.bf16.mxu0 %v8637_v6  ;;  %v14628_v38 = vld [vmem:[#allocation31_spill] sm:$0xff]  ;;  %v14633_v63 = vld [vmem:[#allocation61_spill] sm:$0xff] }
 0x3cf   :  { %7807 = vmatprep.mubr.msk.bf16.mxu1 %vm455_vm2, %v14627_v23 }
 0x3d1   :  { %7554 = vmatpush3.bf16.msra.mxu0 %v8637_v6 }
 0x3d2   :  { %7555 = vmatprep.subr.bf16.mxu0 %v8638_v44 }
 0x3d4   :  { %7492 = vmatmul.mubr.msk.bf16.gmra.mrb[8].mxu0 %vm455_vm2, %v12183_v42  ;;  %v14630_v42 = vld [vmem:[#allocation41_spill] sm:$0xff] }
 0x3d5   :  { %7495 = vmatprep.mubr.msk.bf16.mxu0 %vm455_vm2, %v12212_v47  ;;  %7556 = vmatpush3.bf16.msra.mxu0 %v8638_v44  ;;  %v14631_v47 = vld [vmem:[#allocation47_spill] sm:$0xff] }
 0x3d6   :  { %7808 = vmatmul.mubr.msk.bf16.gmra.mrb[8].mxu1 %vm455_vm2, %v14628_v38  ;;  %7557 = vmatprep.subr.bf16.mxu0 %v8639_v14 }
 0x3d7   :  { %7811 = vmatprep.mubr.msk.bf16.mxu1 %vm455_vm2, %v14629_v7 }
 0x3d9   :  { %7558 = vmatpush3.bf16.msra.mxu0 %v8639_v14 }
 0x3dc   :  { %7496 = vmatmul.mubr.msk.bf16.gmra.mrb[12].mxu0 %vm455_vm2, %v12219_v9  ;;  %v14635_v9 = vld [vmem:[#allocation74_spill] sm:$0xff] }
 0x3dd   :  { %7499 = vmatprep.mubr.msk.bf16.mxu0 %vm455_vm2, %v12243_v18  ;;  %v14634_v18 = vld [vmem:[#allocation68_spill] sm:$0xff] }
 0x3de   :  { %7812 = vmatmul.mubr.msk.bf16.gmra.mrb[12].mxu1 %vm455_vm2, %v14630_v42 }
 0x3df   :  { %7815 = vmatprep.mubr.msk.bf16.mxu1 %vm455_vm2, %v14631_v47 }
 0x3e4   :  { %7500 = vmatmul.mubr.msk.bf16.gmra.mrb[16].mxu0 %vm455_vm2, %v12249_v59  ;;  %v14636_v59 = vld [vmem:[#allocation78_spill] sm:$0xff] }
 0x3e5   :  { %7503 = vmatprep.mubr.msk.bf16.mxu0 %vm455_vm2, %v12273_v50  ;;  %v14637_v50 = vld [vmem:[#allocation84_spill] sm:$0xff] }
 0x3e6   :  { %7816 = vmatmul.mubr.msk.bf16.gmra.mrb[16].mxu1 %vm455_vm2, %v14632_v1 }
 0x3e7   :  { %7819 = vmatprep.mubr.msk.bf16.mxu1 %vm455_vm2, %v14633_v63 }
 0x3ec   :  { %7504 = vmatmul.mubr.msk.bf16.gmra.mrb[20].mxu0 %vm455_vm2, %v12279_v16  ;;  %v14639_v16 = vld [vmem:[#allocation95_spill] sm:$0xff] }
 0x3ed   :  { %7507 = vmatprep.mubr.msk.bf16.mxu0 %vm455_vm2, %v12303_v2  ;;  %v14638_v2 = vld [vmem:[#allocation90_spill] sm:$0xff] }
 0x3ee   :  { %7820 = vmatmul.mubr.msk.bf16.gmra.mrb[20].mxu1 %vm455_vm2, %v14634_v18 }
 0x3ef   :  { %7823 = vmatprep.mubr.msk.bf16.mxu1 %vm455_vm2, %v14635_v9 }
 0x3f4   :  { %7508 = vmatmul.mubr.msk.bf16.gmra.mrb[24].mxu0 %vm455_vm2, %v11959_v34  ;;  %v14640_v34 = vld [vmem:[#allocation96_spill] sm:$0xff] }
 0x3f5   :  { %7511 = vmatprep.mubr.msk.bf16.mxu0 %vm455_vm2, %v11965_v21  ;;  %v14641_v21 = vld [vmem:[#allocation97_spill] sm:$0xff] }
 0x3f6   :  { %7824 = vmatmul.mubr.msk.bf16.gmra.mrb[24].mxu1 %vm455_vm2, %v14636_v59 }
 0x3f7   :  { %7827 = vmatprep.mubr.msk.bf16.mxu1 %vm455_vm2, %v14637_v50 }
 0x3fc   :  { %7512 = vmatmul.mubr.msk.bf16.gmra.mrb[28].mxu0 %vm455_vm2, %v11971_v60  ;;  %v14642_v60 = vld [vmem:[#allocation2_spill] sm:$0xff] }
 0x3fd   :  { %7515 = vmatprep.mubr.msk.bf16.mxu0 %vm455_vm2, %v12343_v0  ;;  %v14643_v0 = vld [vmem:[#allocation8_spill] sm:$0xff] }
 0x3fe   :  { %7828 = vmatmul.mubr.msk.bf16.gmra.mrb[28].mxu1 %vm455_vm2, %v14638_v2  ;;  %v14644_v54 = vpack.c.bf16 %v14642_v60, %v14643_v0 }
 0x3ff   :  { %7831 = vmatprep.mubr.msk.bf16.mxu1 %vm455_vm2, %v14639_v16 }
 0x404   :  { %7516 = vmatmul.mubr.msk.bf16.gmra.mrb[32].mxu0 %vm455_vm2, %v12489_v45  ;;  %v14662_v45 = vld [vmem:[#allocation34_spill] sm:$0xff] }
 0x405   :  { %7519 = vmatprep.mubr.msk.bf16.mxu0 %vm455_vm2, %v12357_v12  ;;  %v14645_v12 = vld [vmem:[#allocation13_spill] sm:$0xff] }
 0x406   :  { %7832 = vmatmul.mubr.msk.bf16.gmra.mrb[32].mxu1 %vm455_vm2, %v14640_v34 }
 0x407   :  { %7835 = vmatprep.mubr.msk.bf16.mxu1 %vm455_vm2, %v14641_v21 }
 0x40c   :  { %7520 = vmatmul.mubr.msk.bf16.gmra.mrb[36].mxu0 %vm455_vm2, %v12361_v35  ;;  %v14646_v35 = vld [vmem:[#allocation108_spill] sm:$0xff] }
 0x40d   :  { %7523 = vmatprep.mubr.msk.bf16.mxu0 %vm455_vm2, %v12373_v51  ;;  %v14647_v51 = vld [vmem:[#allocation91_spill] sm:$0xff] }
 0x40e   :  { %7836 = vmatmul.mubr.msk.bf16.gmra.mrb[36].mxu1 %vm455_vm2, %v14644_v54 }
 0x40f   :  { %7847 = vmatprep.mubr.msk.bf16.mxu1 %vm455_vm2, %v14579_v19  ;;  %v14663_v19 = vld [vmem:[#allocation56_spill] sm:$0xff] }
 0x414   :  { %7524 = vmatmul.mubr.msk.bf16.gmra.mrb[40].mxu0 %vm455_vm2, %v12377_v24 }
 0x415   :  { %7527 = vmatprep.mubr.msk.bf16.mxu0 %vm455_vm2, %v12396_v15  ;;  %v14650_v15 = vld [vmem:[#allocation32_spill] sm:$0xff] }
 0x416   :  { %7848 = vmatmul.mubr.msk.bf16.vlgmr.msra.gmra.mrb[40].mxu1 %vm455_vm2, %v14580_v56  ;;  %v14664_v56 = vld [vmem:[#allocation62_spill] sm:$0xff] }
 0x417   :  { %7851 = vmatprep.mubr.msk.bf16.mxu1 %vm455_vm2, %v14581_v10  ;;  %v14665_v10 = vld [vmem:[#allocation63_spill] sm:$0xff] }
 0x41c   :  { %7528 = vmatmul.mubr.msk.bf16.gmra.mrb[44].mxu0 %vm455_vm2, %v12400_v53  ;;  %v14651_v53 = vld [vmem:[#allocation20_spill] sm:$0xff] }
 0x41d   :  { %7531 = vmatprep.mubr.msk.bf16.mxu0 %vm455_vm2, %v12420_v46  ;;  %v14652_v46 = vld [vmem:[#allocation21_spill] sm:$0xff] }
 0x41e   :  { %7852 = vmatmul.mubr.msk.bf16.gmra.mrb[44].mxu1 %vm455_vm2, %v14582_v33  ;;  %v14666_v33 = vld [vmem:[#allocation17_spill] sm:$0xff] }
 0x41f   :  { %7855 = vmatprep.mubr.msk.bf16.mxu1 %vm455_vm2, %v14583_v32  ;;  %v14667_v32 = vld [vmem:[#allocation14_spill] sm:$0xff] }
 0x424   :  { %7532 = vmatmul.mubr.msk.bf16.gmra.mrb[48].mxu0 %vm455_vm2, %v12424_v29  ;;  %v14653_v29 = vld [vmem:[#allocation36_spill] sm:$0xff] }
 0x425   :  { %7535 = vmatprep.mubr.msk.bf16.mxu0 %vm455_vm2, %v12437_v27  ;;  %v14654_v27 = vld [vmem:[#allocation23_spill] sm:$0xff] }
 0x426   :  { %7856 = vmatmul.mubr.msk.bf16.gmra.mrb[48].mxu1 %vm455_vm2, %v14584_v8  ;;  %v14668_v8 = vpack.c.bf16 %v14666_v33, %v14667_v32 }
 0x427   :  { %7859 = vmatprep.mubr.msk.bf16.mxu1 %vm455_vm2, %v14585_v28  ;;  %v14669_v28 = vmov 0.0  }
 0x428   :  { %5384 = vst.msk [vmem:[%s13845_s6 + $0x30] sm:$0xff] %vm455_vm2, %v14669_v28  ;;  %5385 = vst.msk [vmem:[%s13845_s6 + $0x38] sm:$0xff] %vm455_vm2, %v14669_v28 }
 0x429   :  { %5377 = vst.msk [vmem:[%s13845_s6] sm:$0xff] %vm455_vm2, %v14669_v28  ;;  %5378 = vst.msk [vmem:[%s13845_s6 + $0x8] sm:$0xff] %vm455_vm2, %v14669_v28 }
 0x42a   :  { %5381 = vst.msk [vmem:[%s13845_s6 + $0x18] sm:$0xff] %vm455_vm2, %v14669_v28  ;;  %5382 = vst.msk [vmem:[%s13845_s6 + $0x20] sm:$0xff] %vm455_vm2, %v14669_v28 }
 0x42b   :  { %5387 = vst.msk [vmem:[%s13845_s6 + $0x48] sm:$0xff] %vm455_vm2, %v14669_v28  ;;  %5388 = vst.msk [vmem:[%s13845_s6 + $0x50] sm:$0xff] %vm455_vm2, %v14669_v28 }
 0x42c   :  { %7536 = vmatmul.mubr.msk.bf16.gmra.mrb[52].mxu0 %vm455_vm2, %v12441_v5  ;;  %v14655_v5 = vld [vmem:[#allocation25_spill] sm:$0xff]  ;;  %5390 = vst.msk [vmem:[%s13845_s6 + $0x60] sm:$0xff] %vm455_vm2, %v14669_v28  ;;  %5391 = vst.msk [vmem:[%s13845_s6 + $0x68] sm:$0xff] %vm455_vm2, %v14669_v28 }
 0x42d   :  { %7539 = vmatprep.mubr.msk.bf16.mxu0 %vm455_vm2, %v12453_v55  ;;  %v14656_v55 = vld [vmem:[#allocation26_spill] sm:$0xff]  ;;  %5393 = vst.msk [vmem:[%s13845_s6 + $0x78] sm:$0xff] %vm455_vm2, %v14669_v28  ;;  %5394 = vst.msk [vmem:[%s13845_s6 + $0x80] sm:$0xff] %vm455_vm2, %v14669_v28 }
 0x42e   :  { %7860 = vmatmul.mubr.msk.bf16.gmra.mrb[52].mxu1 %vm455_vm2, %v14586_v25  ;;  %5396 = vst.msk [vmem:[%s13845_s6 + $0x90] sm:$0xff] %vm455_vm2, %v14669_v28  ;;  %5397 = vst.msk [vmem:[%s13845_s6 + $0x98] sm:$0xff] %vm455_vm2, %v14669_v28 }
 0x42f   :  { %7863 = vmatprep.mubr.msk.bf16.mxu1 %vm455_vm2, %v14587_v13  ;;  %5399 = vst.msk [vmem:[%s13845_s6 + $0xa8] sm:$0xff] %vm455_vm2, %v14669_v28  ;;  %5400 = vst.msk [vmem:[%s13845_s6 + $0xb0] sm:$0xff] %vm455_vm2, %v14669_v28 }
 0x430   :  { %5402 = vst.msk [vmem:[%s13845_s6 + $0xc0] sm:$0xff] %vm455_vm2, %v14669_v28  ;;  %5403 = vst.msk [vmem:[%s13845_s6 + $0xc8] sm:$0xff] %vm455_vm2, %v14669_v28 }
 0x431   :  { %5405 = vst.msk [vmem:[%s13845_s6 + $0xd8] sm:$0xff] %vm455_vm2, %v14669_v28  ;;  %5406 = vst.msk [vmem:[%s13845_s6 + $0xe0] sm:$0xff] %vm455_vm2, %v14669_v28 }
 0x432   :  { %5408 = vst.msk [vmem:[%s13845_s6 + $0xf0] sm:$0xff] %vm455_vm2, %v14669_v28  ;;  %5409 = vst.msk [vmem:[%s13845_s6 + $0xf8] sm:$0xff] %vm455_vm2, %v14669_v28 }
 0x433   :  { %5411 = vst.msk [vmem:[%s13845_s6 + $0x108] sm:$0xff] %vm455_vm2, %v14669_v28  ;;  %5412 = vst.msk [vmem:[%s13845_s6 + $0x110] sm:$0xff] %vm455_vm2, %v14669_v28 }
 0x434   :  { %7540 = vmatmul.mubr.msk.bf16.gmra.mrb[56].mxu0 %vm455_vm2, %v12457_v61  ;;  %v14658_v61 = vld [vmem:[#allocation29_spill] sm:$0xff]  ;;  %5414 = vst.msk [vmem:[%s13845_s6 + $0x120] sm:$0xff] %vm455_vm2, %v14669_v28  ;;  %5415 = vst.msk [vmem:[%s13845_s6 + $0x128] sm:$0xff] %vm455_vm2, %v14669_v28 }
 0x435   :  { %7543 = vmatprep.mubr.msk.bf16.mxu0 %vm455_vm2, %v12469_v31  ;;  %v14659_v31 = vld [vmem:[#allocation75_spill] sm:$0xff]  ;;  %5417 = vst.msk [vmem:[%s13845_s6 + $0x138] sm:$0xff] %vm455_vm2, %v14669_v28  ;;  %5418 = vst.msk [vmem:[%s13845_s6 + $0x140] sm:$0xff] %vm455_vm2, %v14669_v28 }
 0x436   :  { %7864 = vmatmul.mubr.msk.bf16.gmra.mrb[56].mxu1 %vm455_vm2, %v14588_v43  ;;  %5420 = vst.msk [vmem:[%s13845_s6 + $0x150] sm:$0xff] %vm455_vm2, %v14669_v28  ;;  %5421 = vst.msk [vmem:[%s13845_s6 + $0x158] sm:$0xff] %vm455_vm2, %v14669_v28 }
 0x437   :  { %7867 = vmatprep.mubr.msk.bf16.mxu1 %vm455_vm2, %v14589_v3  ;;  %5423 = vst.msk [vmem:[%s13845_s6 + $0x168] sm:$0xff] %vm455_vm2, %v14669_v28  ;;  %5424 = vst.msk [vmem:[%s13845_s6 + $0x170] sm:$0xff] %vm455_vm2, %v14669_v28 }
 0x438   :  { %5426 = vst.msk [vmem:[%s13845_s6 + $0x180] sm:$0xff] %vm455_vm2, %v14669_v28  ;;  %5427 = vst.msk [vmem:[%s13845_s6 + $0x188] sm:$0xff] %vm455_vm2, %v14669_v28 }
 0x439   :  { %5429 = vst.msk [vmem:[%s13845_s6 + $0x198] sm:$0xff] %vm455_vm2, %v14669_v28  ;;  %5430 = vst.msk [vmem:[%s13845_s6 + $0x1a0] sm:$0xff] %vm455_vm2, %v14669_v28 }
 0x43a   :  { %5432 = vst.msk [vmem:[%s13845_s6 + $0x1b0] sm:$0xff] %vm455_vm2, %v14669_v28  ;;  %5433 = vst.msk [vmem:[%s13845_s6 + $0x1b8] sm:$0xff] %vm455_vm2, %v14669_v28 }
 0x43b   :  { %5435 = vst.msk [vmem:[%s13845_s6 + $0x1c8] sm:$0xff] %vm455_vm2, %v14669_v28  ;;  %5436 = vst.msk [vmem:[%s13845_s6 + $0x1d0] sm:$0xff] %vm455_vm2, %v14669_v28 }
 0x43c   :  { %7544 = vmatmul.mubr.msk.bf16.gmra.mrb[60].mxu0 %vm455_vm2, %v14574_v39  ;;  %v14660_v39 = vld [vmem:[#allocation30_spill] sm:$0xff]  ;;  %5438 = vst.msk [vmem:[%s13845_s6 + $0x1e0] sm:$0xff] %vm455_vm2, %v14669_v28  ;;  %5439 = vst.msk [vmem:[%s13845_s6 + $0x1e8] sm:$0xff] %vm455_vm2, %v14669_v28 }
 0x43d   :  { %7547 = vmatprep.mubr.msk.bf16.mxu0 %vm455_vm2, %v14575_v36  ;;  %v14661_v36 = vld [vmem:[#allocation33_spill] sm:$0xff]  ;;  %5441 = vst.msk [vmem:[%s13845_s6 + $0x1f8] sm:$0xff] %vm455_vm2, %v14669_v28  ;;  %5442 = vst.msk [vmem:[%s13845_s6 + $0x200] sm:$0xff] %vm455_vm2, %v14669_v28 }
 0x43e   :  { %7868 = vmatmul.mubr.msk.bf16.gmra.mrb[60].mxu1 %vm455_vm2, %v14590_v30  ;;  %5444 = vst.msk [vmem:[%s13845_s6 + $0x210] sm:$0xff] %vm455_vm2, %v14669_v28  ;;  %5445 = vst.msk [vmem:[%s13845_s6 + $0x218] sm:$0xff] %vm455_vm2, %v14669_v28 }
 0x43f   :  { %7871 = vmatprep.mubr.msk.bf16.mxu1 %vm455_vm2, %v11888_v40  ;;  %v14648_v40 = vld [vmem:[#allocation12_spill] sm:$0xff]  ;;  %5447 = vst.msk [vmem:[%s13845_s6 + $0x228] sm:$0xff] %vm455_vm2, %v14669_v28  ;;  %5448 = vst.msk [vmem:[%s13845_s6 + $0x230] sm:$0xff] %vm455_vm2, %v14669_v28 }
 0x440   :  { %v14649_v24 = vpack.c.bf16 %v14647_v51, %v14648_v40  ;;  %5450 = vst.msk [vmem:[%s13845_s6 + $0x240] sm:$0xff] %vm455_vm2, %v14669_v28  ;;  %5451 = vst.msk [vmem:[%s13845_s6 + $0x248] sm:$0xff] %vm455_vm2, %v14669_v28 }
 0x441   :  { %5453 = vst.msk [vmem:[%s13845_s6 + $0x258] sm:$0xff] %vm455_vm2, %v14669_v28  ;;  %5454 = vst.msk [vmem:[%s13845_s6 + $0x260] sm:$0xff] %vm455_vm2, %v14669_v28 }
 0x442   :  { %5456 = vst.msk [vmem:[%s13845_s6 + $0x270] sm:$0xff] %vm455_vm2, %v14669_v28  ;;  %5457 = vst.msk [vmem:[%s13845_s6 + $0x278] sm:$0xff] %vm455_vm2, %v14669_v28 }
 0x443   :  { %5459 = vst.msk [vmem:[%s13845_s6 + $0x288] sm:$0xff] %vm455_vm2, %v14669_v28  ;;  %5460 = vst.msk [vmem:[%s13845_s6 + $0x290] sm:$0xff] %vm455_vm2, %v14669_v28 }
 0x444   :  { %7548 = vmatmul.mubr.msk.bf16.gmra.mrb[64].mxu0 %vm455_vm2, %v14595_v37  ;;  %5462 = vst.msk [vmem:[%s13845_s6 + $0x2a0] sm:$0xff] %vm455_vm2, %v14669_v28  ;;  %5463 = vst.msk [vmem:[%s13845_s6 + $0x2a8] sm:$0xff] %vm455_vm2, %v14669_v28 }
 0x445   :  { %7559 = vmatprep.mubr.msk.bf16.mxu0 %vm455_vm2, %v14645_v12  ;;  %5465 = vst.msk [vmem:[%s13845_s6 + $0x2b8] sm:$0xff] %vm455_vm2, %v14669_v28  ;;  %5466 = vst.msk [vmem:[%s13845_s6 + $0x2c0] sm:$0xff] %vm455_vm2, %v14669_v28 }
 0x446   :  { %7872 = vmatmul.mubr.msk.bf16.gmra.mrb[64].mxu1 %vm455_vm2, %v14591_v52  ;;  %5468 = vst.msk [vmem:[%s13845_s6 + $0x2d0] sm:$0xff] %vm455_vm2, %v14669_v28  ;;  %5469 = vst.msk [vmem:[%s13845_s6 + $0x2d8] sm:$0xff] %vm455_vm2, %v14669_v28 }
 0x447   :  { %7875 = vmatprep.mubr.msk.bf16.mxu1 %vm455_vm2, %v14646_v35  ;;  %5471 = vst.msk [vmem:[%s13845_s6 + $0x2e8] sm:$0xff] %vm455_vm2, %v14669_v28  ;;  %5472 = vst.msk [vmem:[%s13845_s6 + $0x2f0] sm:$0xff] %vm455_vm2, %v14669_v28 }
 0x448   :  { %5474 = vst.msk [vmem:[%s13845_s6 + $0x300] sm:$0xff] %vm455_vm2, %v14669_v28  ;;  %5475 = vst.msk [vmem:[%s13845_s6 + $0x308] sm:$0xff] %vm455_vm2, %v14669_v28 }
 0x449   :  { %5477 = vst.msk [vmem:[%s13845_s6 + $0x318] sm:$0xff] %vm455_vm2, %v14669_v28  ;;  %5478 = vst.msk [vmem:[%s13845_s6 + $0x320] sm:$0xff] %vm455_vm2, %v14669_v28 }
 0x44a   :  { %5480 = vst.msk [vmem:[%s13845_s6 + $0x330] sm:$0xff] %vm455_vm2, %v14669_v28  ;;  %5481 = vst.msk [vmem:[%s13845_s6 + $0x338] sm:$0xff] %vm455_vm2, %v14669_v28 }
 0x44b   :  { %5483 = vst.msk [vmem:[%s13845_s6 + $0x348] sm:$0xff] %vm455_vm2, %v14669_v28  ;;  %5484 = vst.msk [vmem:[%s13845_s6 + $0x350] sm:$0xff] %vm455_vm2, %v14669_v28 }
 0x44c   :  { %7560 = vmatmul.mubr.msk.bf16.vlgmr.msra.gmra.mrb[4].mxu0 %vm455_vm2, %v14600_v20  ;;  %5386 = vst.msk [vmem:[%s13845_s6 + $0x40] sm:$0x3] %vm5379_vm9, %v14669_v28  ;;  %5380 = vst.msk [vmem:[%s13845_s6 + $0x10] sm:$0x3] %vm5379_vm9, %v14669_v28 }
 0x44d   :  { %7563 = vmatprep.mubr.msk.bf16.mxu0 %vm455_vm2, %v14603_v62  ;;  %5383 = vst.msk [vmem:[%s13845_s6 + $0x28] sm:$0x3] %vm5379_vm9, %v14669_v28  ;;  %5389 = vst.msk [vmem:[%s13845_s6 + $0x58] sm:$0x3] %vm5379_vm9, %v14669_v28 }
 0x44e   :  { %7876 = vmatmul.mubr.msk.bf16.gmra.mrb[4].mxu1 %vm455_vm2, %v14649_v24  ;;  %5392 = vst.msk [vmem:[%s13845_s6 + $0x70] sm:$0x3] %vm5379_vm9, %v14669_v28  ;;  %5395 = vst.msk [vmem:[%s13845_s6 + $0x88] sm:$0x3] %vm5379_vm9, %v14669_v28 }
 0x44f   :  { %7879 = vmatprep.mubr.msk.bf16.mxu1 %vm455_vm2, %v14599_v17  ;;  %5398 = vst.msk [vmem:[%s13845_s6 + $0xa0] sm:$0x3] %vm5379_vm9, %v14669_v28  ;;  %5401 = vst.msk [vmem:[%s13845_s6 + $0xb8] sm:$0x3] %vm5379_vm9, %v14669_v28 }
 0x450   :  { %5404 = vst.msk [vmem:[%s13845_s6 + $0xd0] sm:$0x3] %vm5379_vm9, %v14669_v28  ;;  %5407 = vst.msk [vmem:[%s13845_s6 + $0xe8] sm:$0x3] %vm5379_vm9, %v14669_v28 }
 0x451   :  { %5410 = vst.msk [vmem:[%s13845_s6 + $0x100] sm:$0x3] %vm5379_vm9, %v14669_v28  ;;  %5413 = vst.msk [vmem:[%s13845_s6 + $0x118] sm:$0x3] %vm5379_vm9, %v14669_v28 }
 0x452   :  { %5416 = vst.msk [vmem:[%s13845_s6 + $0x130] sm:$0x3] %vm5379_vm9, %v14669_v28  ;;  %5419 = vst.msk [vmem:[%s13845_s6 + $0x148] sm:$0x3] %vm5379_vm9, %v14669_v28 }
 0x453   :  { %5422 = vst.msk [vmem:[%s13845_s6 + $0x160] sm:$0x3] %vm5379_vm9, %v14669_v28  ;;  %5425 = vst.msk [vmem:[%s13845_s6 + $0x178] sm:$0x3] %vm5379_vm9, %v14669_v28 }
 0x454   :  { %7564 = vmatmul.mubr.msk.bf16.gmra.mrb[8].mxu0 %vm455_vm2, %v14604_v49  ;;  %5428 = vst.msk [vmem:[%s13845_s6 + $0x190] sm:$0x3] %vm5379_vm9, %v14669_v28  ;;  %5431 = vst.msk [vmem:[%s13845_s6 + $0x1a8] sm:$0x3] %vm5379_vm9, %v14669_v28 }
 0x455   :  { %7567 = vmatprep.mubr.msk.bf16.mxu0 %vm455_vm2, %v14650_v15  ;;  %5434 = vst.msk [vmem:[%s13845_s6 + $0x1c0] sm:$0x3] %vm5379_vm9, %v14669_v28  ;;  %5437 = vst.msk [vmem:[%s13845_s6 + $0x1d8] sm:$0x3] %vm5379_vm9, %v14669_v28 }
 0x456   :  { %7880 = vmatmul.mubr.msk.bf16.gmra.mrb[8].mxu1 %vm455_vm2, %v14651_v53  ;;  %5440 = vst.msk [vmem:[%s13845_s6 + $0x1f0] sm:$0x3] %vm5379_vm9, %v14669_v28  ;;  %5443 = vst.msk [vmem:[%s13845_s6 + $0x208] sm:$0x3] %vm5379_vm9, %v14669_v28 }
 0x457   :  { %7883 = vmatprep.mubr.msk.bf16.mxu1 %vm455_vm2, %v14652_v46  ;;  %5446 = vst.msk [vmem:[%s13845_s6 + $0x220] sm:$0x3] %vm5379_vm9, %v14669_v28  ;;  %5449 = vst.msk [vmem:[%s13845_s6 + $0x238] sm:$0x3] %vm5379_vm9, %v14669_v28 }
 0x458   :  { %5452 = vst.msk [vmem:[%s13845_s6 + $0x250] sm:$0x3] %vm5379_vm9, %v14669_v28  ;;  %5455 = vst.msk [vmem:[%s13845_s6 + $0x268] sm:$0x3] %vm5379_vm9, %v14669_v28 }
 0x459   :  { %5458 = vst.msk [vmem:[%s13845_s6 + $0x280] sm:$0x3] %vm5379_vm9, %v14669_v28  ;;  %5461 = vst.msk [vmem:[%s13845_s6 + $0x298] sm:$0x3] %vm5379_vm9, %v14669_v28 }
 0x45a   :  { %5464 = vst.msk [vmem:[%s13845_s6 + $0x2b0] sm:$0x3] %vm5379_vm9, %v14669_v28  ;;  %5467 = vst.msk [vmem:[%s13845_s6 + $0x2c8] sm:$0x3] %vm5379_vm9, %v14669_v28 }
 0x45b   :  { %5470 = vst.msk [vmem:[%s13845_s6 + $0x2e0] sm:$0x3] %vm5379_vm9, %v14669_v28  ;;  %5473 = vst.msk [vmem:[%s13845_s6 + $0x2f8] sm:$0x3] %vm5379_vm9, %v14669_v28 }
 0x45c   :  { %7568 = vmatmul.mubr.msk.bf16.gmra.mrb[12].mxu0 %vm455_vm2, %v14608_v4  ;;  %v14657_v4 = vld [vmem:[#allocation28_spill] sm:$0xff]  ;;  %5476 = vst.msk [vmem:[%s13845_s6 + $0x310] sm:$0x3] %vm5379_vm9, %v14669_v28  ;;  %5479 = vst.msk [vmem:[%s13845_s6 + $0x328] sm:$0x3] %vm5379_vm9, %v14669_v28 }
 0x45d   :  { %7571 = vmatprep.mubr.msk.bf16.mxu0 %vm455_vm2, %v14611_v48  ;;  %5482 = vst.msk [vmem:[%s13845_s6 + $0x340] sm:$0x3] %vm5379_vm9, %v14669_v28  ;;  %5485 = vst.msk [vmem:[%s13845_s6 + $0x358] sm:$0x3] %vm5379_vm9, %v14669_v28 }
 0x45e   :  { %7884 = vmatmul.mubr.msk.bf16.gmra.mrb[12].mxu1 %vm455_vm2, %v14653_v29 }
 0x45f   :  { %7887 = vmatprep.mubr.msk.bf16.mxu1 %vm455_vm2, %v14654_v27 }
 0x464   :  { %7572 = vmatmul.mubr.msk.bf16.gmra.mrb[16].mxu0 %vm455_vm2, %v14612_v11 }
 0x465   :  { %7575 = vmatprep.mubr.msk.bf16.mxu0 %vm455_vm2, %v14615_v57 }
 0x466   :  { %7888 = vmatmul.mubr.msk.bf16.gmra.mrb[16].mxu1 %vm455_vm2, %v14655_v5 }
 0x467   :  { %7891 = vmatprep.mubr.msk.bf16.mxu1 %vm455_vm2, %v14656_v55 }
 0x46c   :  { %7576 = vmatmul.mubr.msk.bf16.gmra.mrb[20].mxu0 %vm455_vm2, %v14616_v58 }
 0x46d   :  { %7579 = vmatprep.mubr.msk.bf16.mxu0 %vm455_vm2, %v14617_v41 }
 0x46e   :  { %7892 = vmatmul.mubr.msk.bf16.gmra.mrb[20].mxu1 %vm455_vm2, %v14657_v4 }
 0x46f   :  { %7895 = vmatprep.mubr.msk.bf16.mxu1 %vm455_vm2, %v14658_v61 }
 0x474   :  { %7580 = vmatmul.mubr.msk.bf16.gmra.mrb[24].mxu0 %vm455_vm2, %v14659_v31 }
 0x475   :  { %7583 = vmatprep.mubr.msk.bf16.mxu0 %vm455_vm2, %v14619_v26 }
 0x476   :  { %7896 = vmatmul.mubr.msk.bf16.gmra.mrb[24].mxu1 %vm455_vm2, %v14660_v39 }
 0x477   :  { %7899 = vmatprep.mubr.msk.bf16.mxu1 %vm455_vm2, %v14661_v36 }
 0x47c   :  { %7584 = vmatmul.mubr.msk.bf16.gmra.mrb[28].mxu0 %vm455_vm2, %v14620_v22 }
 0x47e   :  { %7900 = vmatmul.mubr.msk.bf16.gmra.mrb[28].mxu1 %vm455_vm2, %v14662_v45 }
 0x47f   :  { %7903 = vmatprep.mubr.msk.bf16.mxu1 %vm455_vm2, %v14663_v19 }
 0x486   :  { %7904 = vmatmul.mubr.msk.bf16.gmra.mrb[32].mxu1 %vm455_vm2, %v14664_v56 }
 0x487   :  { %7907 = vmatprep.mubr.msk.bf16.mxu1 %vm455_vm2, %v14665_v10 }
 0x48e   :  { %7908 = vmatmul.mubr.msk.bf16.gmra.mrb[36].mxu1 %vm455_vm2, %v14668_v8 }
 0x4d7   :  { %v13399_v25 = vpop.f32.mrb[32].mxu0 }
 0x4d8   :  { %v13401_v13 = vpop.f32.mrb[33].mxu0 }
 0x4d9   :  { %v13403_v43 = vpop.f32.mrb[34].mxu0 }
 0x4da   :  { %v13405_v3 = vpop.f32.mrb[35].mxu0 }
 0x4df   :  { %v13407_v30 = vpop.f32.mrb[36].mxu0 }
 0x4e0   :  { %v13409_v52 = vpop.f32.mrb[37].mxu0 }
 0x4e1   :  { %v13411_v37 = vpop.f32.mrb[38].mxu0 }
 0x4e2   :  { %v13413_v17 = vpop.f32.mrb[39].mxu0 }
 0x4e7   :  { %v13415_v20 = vpop.f32.mrb[40].mxu0 }
 0x4e8   :  { %v13417_v11 = vpop.f32.mrb[41].mxu0 }
 0x4e9   :  { %v7849_v48 = vpop.f32.mrb[40].mxu1  ;;  %v13419_v62 = vpop.f32.mrb[42].mxu0 }
 0x4ea   :  { %v4994_v49 = vpop.f32.mrb[41].mxu1  ;;  %v13421_v41 = vpop.f32.mrb[43].mxu0 }
 0x4eb   :  { %v7850_v22 = vpop.f32.mrb[42].mxu1 }
 0x4ec   :  { %v13423_v26 = vpop.f32.mrb[43].mxu1 }
 0x4ef   :  { %v13425_v57 = vpop.f32.mrb[44].mxu0 }
 0x4f0   :  { %v13427_v58 = vpop.f32.mrb[45].mxu0 }
 0x4f1   :  { %v13429_v6 = vpop.f32.mrb[44].mxu1  ;;  %v13431_v23 = vpop.f32.mrb[46].mxu0 }
 0x4f2   :  { %v13433_v44 = vpop.f32.mrb[45].mxu1  ;;  %v13435_v38 = vpop.f32.mrb[47].mxu0 }
 0x4f3   :  { %v13437_v14 = vpop.f32.mrb[46].mxu1 }
 0x4f4   :  { %v13439_v7 = vpop.f32.mrb[47].mxu1 }
 0x4f7   :  { %v13441_v42 = vpop.f32.mrb[48].mxu0 }
 0x4f8   :  { %v13443_v47 = vpop.f32.mrb[49].mxu0 }
 0x4f9   :  { %v13445_v1 = vpop.f32.mrb[48].mxu1  ;;  %v13447_v63 = vpop.f32.mrb[50].mxu0 }
 0x4fa   :  { %v13449_v18 = vpop.f32.mrb[49].mxu1  ;;  %v13451_v9 = vpop.f32.mrb[51].mxu0 }
 0x4fb   :  { %v13453_v59 = vpop.f32.mrb[50].mxu1 }
 0x4fc   :  { %v13455_v50 = vpop.f32.mrb[51].mxu1 }
 0x4ff   :  { %v13457_v2 = vpop.f32.mrb[52].mxu0 }
 0x500   :  { %v13459_v16 = vpop.f32.mrb[53].mxu0 }
 0x501   :  { %v13461_v34 = vpop.f32.mrb[52].mxu1  ;;  %v13463_v21 = vpop.f32.mrb[54].mxu0 }
 0x502   :  { %v13465_v60 = vpop.f32.mrb[53].mxu1  ;;  %v13467_v0 = vpop.f32.mrb[55].mxu0 }
 0x503   :  { %v13469_v54 = vpop.f32.mrb[54].mxu1 }
 0x504   :  { %v13471_v12 = vpop.f32.mrb[55].mxu1 }
 0x507   :  { %v13473_v35 = vpop.f32.mrb[56].mxu0 }
 0x508   :  { %14670 = vst [vmem:[#allocation35_spill] sm:$0xff] %v13473_v35  ;;  %v13475_v51 = vpop.f32.mrb[57].mxu0 }
 0x509   :  { %14671 = vst [vmem:[#allocation39_spill] sm:$0xff] %v13475_v51  ;;  %v13477_v40 = vpop.f32.mrb[56].mxu1  ;;  %v13479_v24 = vpop.f32.mrb[58].mxu0 }
 0x50a   :  { %14672 = vst [vmem:[#allocation40_spill] sm:$0xff] %v13479_v24  ;;  %v13481_v15 = vpop.f32.mrb[57].mxu1  ;;  %v13483_v53 = vpop.f32.mrb[59].mxu0 }
 0x50b   :  { %14673 = vst [vmem:[#allocation42_spill] sm:$0xff] %v13483_v53  ;;  %v13485_v46 = vpop.f32.mrb[58].mxu1 }
 0x50c   :  { %v13487_v29 = vpop.f32.mrb[59].mxu1 }
 0x50f   :  { %v13489_v27 = vpop.f32.mrb[60].mxu0 }
 0x510   :  { %14674 = vst [vmem:[#allocation44_spill] sm:$0xff] %v13489_v27  ;;  %v13491_v5 = vpop.f32.mrb[61].mxu0 }
 0x511   :  { %14675 = vst [vmem:[#allocation45_spill] sm:$0xff] %v13491_v5  ;;  %v13493_v55 = vpop.f32.mrb[60].mxu1  ;;  %v13495_v4 = vpop.f32.mrb[62].mxu0 }
 0x512   :  { %14676 = vst [vmem:[#allocation46_spill] sm:$0xff] %v13495_v4  ;;  %v13497_v61 = vpop.f32.mrb[61].mxu1  ;;  %v13499_v31 = vpop.f32.mrb[63].mxu0 }
 0x513   :  { %14677 = vst [vmem:[#allocation50_spill] sm:$0xff] %v13499_v31  ;;  %v13501_v39 = vpop.f32.mrb[62].mxu1 }
 0x514   :  { %v13503_v36 = vpop.f32.mrb[63].mxu1 }
 0x517   :  { %v13505_v45 = vpop.f32.mrb[64].mxu0 }
 0x518   :  { %14678 = vst [vmem:[#allocation51_spill] sm:$0xff] %v13505_v45  ;;  %v13507_v19 = vpop.f32.mrb[65].mxu0 }
 0x519   :  { %14679 = vst [vmem:[#allocation53_spill] sm:$0xff] %v13507_v19  ;;  %v13509_v56 = vpop.f32.mrb[64].mxu1  ;;  %v13511_v10 = vpop.f32.mrb[66].mxu0 }
 0x51a   :  { %14680 = vst [vmem:[#allocation57_spill] sm:$0xff] %v13509_v56  ;;  %14681 = vst [vmem:[#allocation59_spill] sm:$0xff] %v13511_v10  ;;  %v13513_v33 = vpop.f32.mrb[65].mxu1  ;;  %v13515_v32 = vpop.f32.mrb[67].mxu0 }
 0x51b   :  { %14682 = vst [vmem:[#allocation60_spill] sm:$0xff] %v13513_v33  ;;  %14683 = vst [vmem:[#allocation66_spill] sm:$0xff] %v13515_v32  ;;  %v13517_v8 = vpop.f32.mrb[66].mxu1 }
 0x51c   :  { %14684 = vst [vmem:[#allocation67_spill] sm:$0xff] %v13517_v8  ;;  %v13519_v28 = vpop.f32.mrb[67].mxu1 }
 0x51f   :  { %v7561_v31 = vpop.f32.mrb[4].mxu0 }
 0x520   :  { %v7934_v4 = vadd.f32 %v7849_v48, %v7561_v31  ;;  %v3370_v5 = vpop.f32.mrb[5].mxu0 }
 0x521   :  { %v7877_v27 = vpop.f32.mrb[4].mxu1  ;;  %v7935_v53 = vadd.f32 %v4994_v49, %v3370_v5  ;;  %v7562_v45 = vpop.f32.mrb[6].mxu0 }
 0x522   :  { %v5315_v24 = vmax.f32 %v7934_v4, 0.0  ;;  %v7962_v19 = vadd.f32 %v7877_v27, %v13399_v25  ;;  %v5106_v51 = vpop.f32.mrb[5].mxu1  ;;  %v7936_v35 = vadd.f32 %v7850_v22, %v7562_v45  ;;  %v3373_v10 = vpop.f32.mrb[7].mxu0 }
 0x523   :  { %v5313_v56 = vmax.f32 %v7935_v53, 0.0  ;;  %v7963_v33 = vadd.f32 %v5106_v51, %v13401_v13  ;;  %v7878_v32 = vpop.f32.mrb[6].mxu1  ;;  %v7937_v8 = vadd.f32 %v13423_v26, %v3373_v10 }
 0x524   :  { %6836 = vst.msk [vmem:[%s13845_s6 + $0x31] sm:$0xff] %vm455_vm2, %v5315_v24  ;;  %v5343_v48 = vmax.f32 %v7962_v19, 0.0  ;;  %v5316_v49 = vmax.f32 %v7936_v35, 0.0  ;;  %v7964_v5 = vadd.f32 %v7878_v32, %v13403_v43  ;;  %v5109_v4 = vpop.f32.mrb[7].mxu1 }
 0x525   :  { %6834 = vst.msk [vmem:[%s13845_s6 + $0x19] sm:$0xff] %vm455_vm2, %v5313_v56  ;;  %v5341_v25 = vmax.f32 %v7963_v33, 0.0  ;;  %v5314_v13 = vmax.f32 %v7937_v8, 0.0  ;;  %v7965_v22 = vadd.f32 %v5109_v4, %v13405_v3 }
 0x526   :  { %6864 = vst.msk [vmem:[%s13845_s6 + $0x181] sm:$0xff] %vm455_vm2, %v5343_v48  ;;  %6837 = vst.msk [vmem:[%s13845_s6 + $0x39] sm:$0xff] %vm455_vm2, %v5316_v49  ;;  %v5344_v43 = vmax.f32 %v7964_v5, 0.0 }
 0x527   :  { %6862 = vst.msk [vmem:[%s13845_s6 + $0x169] sm:$0xff] %vm455_vm2, %v5341_v25  ;;  %6835 = vst.msk [vmem:[%s13845_s6 + $0x21] sm:$0xff] %vm455_vm2, %v5314_v13  ;;  %v5342_v3 = vmax.f32 %v7965_v22, 0.0  ;;  %v7565_v26 = vpop.f32.mrb[8].mxu0 }
 0x528   :  { %6865 = vst.msk [vmem:[%s13845_s6 + $0x189] sm:$0xff] %vm455_vm2, %v5344_v43  ;;  %v7938_v35 = vadd.f32 %v13429_v6, %v7565_v26  ;;  %v3386_v51 = vpop.f32.mrb[9].mxu0 }
 0x529   :  { %6863 = vst.msk [vmem:[%s13845_s6 + $0x171] sm:$0xff] %vm455_vm2, %v5342_v3  ;;  %v7881_v24 = vpop.f32.mrb[8].mxu1  ;;  %v7939_v53 = vadd.f32 %v13433_v44, %v3386_v51  ;;  %v7566_v27 = vpop.f32.mrb[10].mxu0 }
 0x52a   :  { %v5319_v31 = vmax.f32 %v7938_v35, 0.0  ;;  %v7966_v45 = vadd.f32 %v7881_v24, %v13407_v30  ;;  %v5122_v19 = vpop.f32.mrb[9].mxu1  ;;  %v7940_v56 = vadd.f32 %v13437_v14, %v7566_v27  ;;  %v3389_v10 = vpop.f32.mrb[11].mxu0 }
 0x52b   :  { %v5317_v33 = vmax.f32 %v7939_v53, 0.0  ;;  %v7967_v6 = vadd.f32 %v5122_v19, %v13409_v52  ;;  %v7882_v32 = vpop.f32.mrb[10].mxu1  ;;  %v7941_v8 = vadd.f32 %v13439_v7, %v3389_v10 }
 0x52c   :  { %6840 = vst.msk [vmem:[%s13845_s6 + $0x61] sm:$0xff] %vm455_vm2, %v5319_v31  ;;  %v5347_v44 = vmax.f32 %v7966_v45, 0.0  ;;  %v5320_v48 = vmax.f32 %v7940_v56, 0.0  ;;  %v7968_v49 = vadd.f32 %v7882_v32, %v13411_v37  ;;  %v5125_v30 = vpop.f32.mrb[11].mxu1 }
 0x52d   :  { %6838 = vst.msk [vmem:[%s13845_s6 + $0x49] sm:$0xff] %vm455_vm2, %v5317_v33  ;;  %v5345_v14 = vmax.f32 %v7967_v6, 0.0  ;;  %v5318_v52 = vmax.f32 %v7941_v8, 0.0  ;;  %v7969_v5 = vadd.f32 %v5125_v30, %v13413_v17 }
 0x52e   :  { %6868 = vst.msk [vmem:[%s13845_s6 + $0x1e1] sm:$0xff] %vm455_vm2, %v5347_v44  ;;  %6841 = vst.msk [vmem:[%s13845_s6 + $0x69] sm:$0xff] %vm455_vm2, %v5320_v48  ;;  %v5348_v37 = vmax.f32 %v7968_v49, 0.0 }
 0x52f   :  { %6866 = vst.msk [vmem:[%s13845_s6 + $0x1c9] sm:$0xff] %vm455_vm2, %v5345_v14  ;;  %6839 = vst.msk [vmem:[%s13845_s6 + $0x51] sm:$0xff] %vm455_vm2, %v5318_v52  ;;  %v5346_v17 = vmax.f32 %v7969_v5, 0.0  ;;  %v7569_v7 = vpop.f32.mrb[12].mxu0 }
 0x530   :  { %6869 = vst.msk [vmem:[%s13845_s6 + $0x1e9] sm:$0xff] %vm455_vm2, %v5348_v37  ;;  %v7942_v4 = vadd.f32 %v13445_v1, %v7569_v7  ;;  %v3402_v25 = vpop.f32.mrb[13].mxu0 }
 0x531   :  { %6867 = vst.msk [vmem:[%s13845_s6 + $0x1d1] sm:$0xff] %vm455_vm2, %v5346_v17  ;;  %v7885_v13 = vpop.f32.mrb[12].mxu1  ;;  %v7943_v22 = vadd.f32 %v13449_v18, %v3402_v25  ;;  %v7570_v43 = vpop.f32.mrb[14].mxu0 }
 0x532   :  { %v5323_v3 = vmax.f32 %v7942_v4, 0.0  ;;  %v7970_v26 = vadd.f32 %v7885_v13, %v13415_v20  ;;  %v5138_v35 = vpop.f32.mrb[13].mxu1  ;;  %v7944_v51 = vadd.f32 %v13453_v59, %v7570_v43  ;;  %v3405_v24 = vpop.f32.mrb[15].mxu0 }
 0x533   :  { %v5321_v53 = vmax.f32 %v7943_v22, 0.0  ;;  %v7971_v1 = vadd.f32 %v5138_v35, %v13417_v11  ;;  %v7886_v27 = vpop.f32.mrb[14].mxu1  ;;  %v7945_v31 = vadd.f32 %v13455_v50, %v3405_v24 }
 0x534   :  { %6844 = vst.msk [vmem:[%s13845_s6 + $0x91] sm:$0xff] %vm455_vm2, %v5323_v3  ;;  %v5351_v18 = vmax.f32 %v7970_v26, 0.0  ;;  %v5324_v45 = vmax.f32 %v7944_v51, 0.0  ;;  %v7972_v19 = vadd.f32 %v7886_v27, %v13419_v62  ;;  %v5141_v20 = vpop.f32.mrb[15].mxu1 }
 0x535   :  { %6842 = vst.msk [vmem:[%s13845_s6 + $0x79] sm:$0xff] %vm455_vm2, %v5321_v53  ;;  %v5349_v59 = vmax.f32 %v7971_v1, 0.0  ;;  %v5322_v11 = vmax.f32 %v7945_v31, 0.0  ;;  %v7973_v56 = vadd.f32 %v5141_v20, %v13421_v41 }
 0x536   :  { %6872 = vst.msk [vmem:[%s13845_s6 + $0x211] sm:$0xff] %vm455_vm2, %v5351_v18  ;;  %6845 = vst.msk [vmem:[%s13845_s6 + $0x99] sm:$0xff] %vm455_vm2, %v5324_v45  ;;  %v5352_v62 = vmax.f32 %v7972_v19, 0.0 }
 0x537   :  { %6870 = vst.msk [vmem:[%s13845_s6 + $0x1f9] sm:$0xff] %vm455_vm2, %v5349_v59  ;;  %6843 = vst.msk [vmem:[%s13845_s6 + $0x81] sm:$0xff] %vm455_vm2, %v5322_v11  ;;  %v5350_v41 = vmax.f32 %v7973_v56, 0.0  ;;  %v7573_v50 = vpop.f32.mrb[16].mxu0 }
 0x538   :  { %6873 = vst.msk [vmem:[%s13845_s6 + $0x219] sm:$0xff] %vm455_vm2, %v5352_v62  ;;  %v7946_v10 = vadd.f32 %v13461_v34, %v7573_v50  ;;  %v3418_v33 = vpop.f32.mrb[17].mxu0 }
 0x539   :  { %6871 = vst.msk [vmem:[%s13845_s6 + $0x201] sm:$0xff] %vm455_vm2, %v5350_v41  ;;  %v7889_v6 = vpop.f32.mrb[16].mxu1  ;;  %v7947_v32 = vadd.f32 %v13465_v60, %v3418_v33  ;;  %v7574_v8 = vpop.f32.mrb[18].mxu0 }
 0x53a   :  { %v5327_v44 = vmax.f32 %v7946_v10, 0.0  ;;  %v7974_v48 = vadd.f32 %v7889_v6, %v13425_v57  ;;  %v5154_v49 = vpop.f32.mrb[17].mxu1  ;;  %v7948_v30 = vadd.f32 %v13469_v54, %v7574_v8  ;;  %v3421_v14 = vpop.f32.mrb[19].mxu0 }
 0x53b   :  { %v5325_v52 = vmax.f32 %v7947_v32, 0.0  ;;  %v7975_v34 = vadd.f32 %v5154_v49, %v13427_v58  ;;  %v7890_v5 = vpop.f32.mrb[18].mxu1  ;;  %v7949_v37 = vadd.f32 %v13471_v12, %v3421_v14  ;;  %v14685_v14 = vld [vmem:[#allocation57_spill] sm:$0xff] }
 0x53c   :  { %6848 = vst.msk [vmem:[%s13845_s6 + $0xc1] sm:$0xff] %vm455_vm2, %v5327_v44  ;;  %v5355_v60 = vmax.f32 %v7974_v48, 0.0  ;;  %v5328_v17 = vmax.f32 %v7948_v30, 0.0  ;;  %v7976_v7 = vadd.f32 %v7890_v5, %v13431_v23  ;;  %v5157_v57 = vpop.f32.mrb[19].mxu1 }
 0x53d   :  { %6846 = vst.msk [vmem:[%s13845_s6 + $0xa9] sm:$0xff] %vm455_vm2, %v5325_v52  ;;  %v5353_v54 = vmax.f32 %v7975_v34, 0.0  ;;  %v5326_v58 = vmax.f32 %v7949_v37, 0.0  ;;  %v7977_v4 = vadd.f32 %v5157_v57, %v13435_v38  ;;  %v14686_v37 = vld [vmem:[#allocation60_spill] sm:$0xff]  ;;  %v14687_v57 = vld [vmem:[#allocation35_spill] sm:$0xff] }
 0x53e   :  { %6876 = vst.msk [vmem:[%s13845_s6 + $0x241] sm:$0xff] %vm455_vm2, %v5355_v60  ;;  %6849 = vst.msk [vmem:[%s13845_s6 + $0xc9] sm:$0xff] %vm455_vm2, %v5328_v17  ;;  %v5356_v23 = vmax.f32 %v7976_v7, 0.0 }
 0x53f   :  { %6874 = vst.msk [vmem:[%s13845_s6 + $0x229] sm:$0xff] %vm455_vm2, %v5353_v54  ;;  %6847 = vst.msk [vmem:[%s13845_s6 + $0xb1] sm:$0xff] %vm455_vm2, %v5326_v58  ;;  %v5354_v38 = vmax.f32 %v7977_v4, 0.0  ;;  %v7577_v12 = vpop.f32.mrb[20].mxu0  ;;  %v14688_v4 = vld [vmem:[#allocation67_spill] sm:$0xff] }
 0x540   :  { %6877 = vst.msk [vmem:[%s13845_s6 + $0x249] sm:$0xff] %vm455_vm2, %v5356_v23  ;;  %v7950_v25 = vadd.f32 %v13477_v40, %v7577_v12  ;;  %v3434_v13 = vpop.f32.mrb[21].mxu0 }
 0x541   :  { %6875 = vst.msk [vmem:[%s13845_s6 + $0x231] sm:$0xff] %vm455_vm2, %v5354_v38  ;;  %v7893_v22 = vpop.f32.mrb[20].mxu1  ;;  %v7951_v43 = vadd.f32 %v13481_v15, %v3434_v13  ;;  %v7578_v3 = vpop.f32.mrb[22].mxu0 }
 0x542   :  { %v5331_v26 = vmax.f32 %v7950_v25, 0.0  ;;  %v7978_v35 = vadd.f32 %v7893_v22, %v13441_v42  ;;  %v5170_v51 = vpop.f32.mrb[21].mxu1  ;;  %v7952_v24 = vadd.f32 %v13485_v46, %v7578_v3  ;;  %v3437_v53 = vpop.f32.mrb[23].mxu0  ;;  %v14689_v25 = vld [vmem:[#allocation39_spill] sm:$0xff] }
 0x543   :  { %v5329_v1 = vmax.f32 %v7951_v43, 0.0  ;;  %v7979_v40 = vadd.f32 %v5170_v51, %v13443_v47  ;;  %v7894_v27 = vpop.f32.mrb[22].mxu1  ;;  %v7953_v31 = vadd.f32 %v13487_v29, %v3437_v53 }
 0x544   :  { %6852 = vst.msk [vmem:[%s13845_s6 + $0xf1] sm:$0xff] %vm455_vm2, %v5331_v26  ;;  %v5359_v15 = vmax.f32 %v7978_v35, 0.0  ;;  %v5332_v18 = vmax.f32 %v7952_v24, 0.0  ;;  %v7980_v45 = vadd.f32 %v7894_v27, %v13447_v63  ;;  %v5173_v42 = vpop.f32.mrb[23].mxu1  ;;  %v14690_v35 = vld [vmem:[#allocation40_spill] sm:$0xff] }
 0x545   :  { %6850 = vst.msk [vmem:[%s13845_s6 + $0xd9] sm:$0xff] %vm455_vm2, %v5329_v1  ;;  %v5357_v46 = vmax.f32 %v7979_v40, 0.0  ;;  %v5330_v47 = vmax.f32 %v7953_v31, 0.0  ;;  %v7981_v19 = vadd.f32 %v5173_v42, %v13451_v9  ;;  %v14691_v40 = vld [vmem:[#allocation42_spill] sm:$0xff] }
 0x546   :  { %6880 = vst.msk [vmem:[%s13845_s6 + $0x271] sm:$0xff] %vm455_vm2, %v5359_v15  ;;  %6853 = vst.msk [vmem:[%s13845_s6 + $0xf9] sm:$0xff] %vm455_vm2, %v5332_v18  ;;  %v5360_v63 = vmax.f32 %v7980_v45, 0.0  ;;  %v14692_v18 = vld [vmem:[#allocation44_spill] sm:$0xff] }
 0x547   :  { %6878 = vst.msk [vmem:[%s13845_s6 + $0x259] sm:$0xff] %vm455_vm2, %v5357_v46  ;;  %6851 = vst.msk [vmem:[%s13845_s6 + $0xe1] sm:$0xff] %vm455_vm2, %v5330_v47  ;;  %v5358_v9 = vmax.f32 %v7981_v19, 0.0  ;;  %v7581_v29 = vpop.f32.mrb[24].mxu0  ;;  %v14693_v46 = vld [vmem:[#allocation45_spill] sm:$0xff] }
 0x548   :  { %6881 = vst.msk [vmem:[%s13845_s6 + $0x279] sm:$0xff] %vm455_vm2, %v5360_v63  ;;  %v7954_v20 = vadd.f32 %v13493_v55, %v7581_v29  ;;  %v3450_v59 = vpop.f32.mrb[25].mxu0 }
 0x549   :  { %6879 = vst.msk [vmem:[%s13845_s6 + $0x261] sm:$0xff] %vm455_vm2, %v5358_v9  ;;  %v7897_v11 = vpop.f32.mrb[24].mxu1  ;;  %v7955_v56 = vadd.f32 %v13497_v61, %v3450_v59  ;;  %v7582_v62 = vpop.f32.mrb[26].mxu0  ;;  %v14694_v9 = vld [vmem:[#allocation46_spill] sm:$0xff] }
 0x54a   :  { %v5335_v41 = vmax.f32 %v7954_v20, 0.0  ;;  %v7982_v50 = vadd.f32 %v7897_v11, %v13457_v2  ;;  %v5186_v10 = vpop.f32.mrb[25].mxu1  ;;  %v7956_v33 = vadd.f32 %v13501_v39, %v7582_v62  ;;  %v3453_v6 = vpop.f32.mrb[27].mxu0  ;;  %v14695_v11 = vld [vmem:[#allocation50_spill] sm:$0xff] }
 0x54b   :  { %v5333_v32 = vmax.f32 %v7955_v56, 0.0  ;;  %v7983_v55 = vadd.f32 %v5186_v10, %v13459_v16  ;;  %v7898_v8 = vpop.f32.mrb[26].mxu1  ;;  %v7957_v44 = vadd.f32 %v13503_v36, %v3453_v6  ;;  %v14696_v10 = vld [vmem:[#allocation51_spill] sm:$0xff] }
 0x54c   :  { %6856 = vst.msk [vmem:[%s13845_s6 + $0x121] sm:$0xff] %vm455_vm2, %v5335_v41  ;;  %v5363_v61 = vmax.f32 %v7982_v50, 0.0  ;;  %v5336_v48 = vmax.f32 %v7956_v33, 0.0  ;;  %v7984_v49 = vadd.f32 %v7898_v8, %v13463_v21  ;;  %v5189_v2 = vpop.f32.mrb[27].mxu1 }
 0x54d   :  { %6854 = vst.msk [vmem:[%s13845_s6 + $0x109] sm:$0xff] %vm455_vm2, %v5333_v32  ;;  %v5361_v39 = vmax.f32 %v7983_v55, 0.0  ;;  %v5334_v16 = vmax.f32 %v7957_v44, 0.0  ;;  %v7985_v30 = vadd.f32 %v5189_v2, %v13467_v0  ;;  %v14697_v32 = vld [vmem:[#allocation53_spill] sm:$0xff] }
 0x54e   :  { %6884 = vst.msk [vmem:[%s13845_s6 + $0x2a1] sm:$0xff] %vm455_vm2, %v5363_v61  ;;  %6857 = vst.msk [vmem:[%s13845_s6 + $0x129] sm:$0xff] %vm455_vm2, %v5336_v48  ;;  %v5364_v21 = vmax.f32 %v7984_v49, 0.0  ;;  %v14698_v61 = vld [vmem:[#allocation59_spill] sm:$0xff] }
 0x54f   :  { %6882 = vst.msk [vmem:[%s13845_s6 + $0x289] sm:$0xff] %vm455_vm2, %v5361_v39  ;;  %6855 = vst.msk [vmem:[%s13845_s6 + $0x111] sm:$0xff] %vm455_vm2, %v5334_v16  ;;  %v5362_v0 = vmax.f32 %v7985_v30, 0.0  ;;  %v7585_v36 = vpop.f32.mrb[28].mxu0  ;;  %v14699_v39 = vld [vmem:[#allocation66_spill] sm:$0xff] }
 0x550   :  { %6885 = vst.msk [vmem:[%s13845_s6 + $0x2a9] sm:$0xff] %vm455_vm2, %v5364_v21  ;;  %v7958_v52 = vadd.f32 %v14685_v14, %v7585_v36  ;;  %v3466_v34 = vpop.f32.mrb[29].mxu0 }
 0x551   :  { %6883 = vst.msk [vmem:[%s13845_s6 + $0x291] sm:$0xff] %vm455_vm2, %v5362_v0  ;;  %v7901_v5 = vpop.f32.mrb[28].mxu1  ;;  %v7959_v60 = vadd.f32 %v14686_v37, %v3466_v34  ;;  %v7586_v17 = vpop.f32.mrb[30].mxu0 }
 0x552   :  { %v5339_v7 = vmax.f32 %v7958_v52, 0.0  ;;  %v7986_v54 = vadd.f32 %v7901_v5, %v14687_v57  ;;  %v5202_v58 = vpop.f32.mrb[29].mxu1  ;;  %v7960_v23 = vadd.f32 %v14688_v4, %v7586_v17  ;;  %v3469_v38 = vpop.f32.mrb[31].mxu0 }
 0x553   :  { %v5337_v12 = vmax.f32 %v7959_v60, 0.0  ;;  %v7987_v13 = vadd.f32 %v5202_v58, %v14689_v25  ;;  %v7902_v22 = vpop.f32.mrb[30].mxu1  ;;  %v7961_v43 = vadd.f32 %v13519_v28, %v3469_v38 }
 0x554   :  { %6860 = vst.msk [vmem:[%s13845_s6 + $0x151] sm:$0xff] %vm455_vm2, %v5339_v7  ;;  %v5367_v3 = vmax.f32 %v7986_v54, 0.0  ;;  %v5340_v26 = vmax.f32 %v7960_v23, 0.0  ;;  %v7988_v51 = vadd.f32 %v7902_v22, %v14690_v35  ;;  %v5205_v24 = vpop.f32.mrb[31].mxu1 }
 0x555   :  { %6858 = vst.msk [vmem:[%s13845_s6 + $0x139] sm:$0xff] %vm455_vm2, %v5337_v12  ;;  %v5365_v53 = vmax.f32 %v7987_v13, 0.0  ;;  %v5338_v1 = vmax.f32 %v7961_v43, 0.0  ;;  %v7989_v27 = vadd.f32 %v5205_v24, %v14691_v40 }
 0x556   :  { %6888 = vst.msk [vmem:[%s13845_s6 + $0x2d1] sm:$0xff] %vm455_vm2, %v5367_v3  ;;  %6861 = vst.msk [vmem:[%s13845_s6 + $0x159] sm:$0xff] %vm455_vm2, %v5340_v26  ;;  %v5368_v28 = vmax.f32 %v7988_v51, 0.0 }
 0x557   :  { %6886 = vst.msk [vmem:[%s13845_s6 + $0x2b9] sm:$0xff] %vm455_vm2, %v5365_v53  ;;  %6859 = vst.msk [vmem:[%s13845_s6 + $0x141] sm:$0xff] %vm455_vm2, %v5338_v1  ;;  %v5366_v31 = vmax.f32 %v7989_v27, 0.0 }
 0x558   :  { %6889 = vst.msk [vmem:[%s13845_s6 + $0x2d9] sm:$0xff] %vm455_vm2, %v5368_v28 }
 0x559   :  { %6887 = vst.msk [vmem:[%s13845_s6 + $0x2c1] sm:$0xff] %vm455_vm2, %v5366_v31  ;;  %v7905_v15 = vpop.f32.mrb[32].mxu1 }
 0x55a   :  { %v7990_v45 = vadd.f32 %v7905_v15, %v14692_v18  ;;  %v5218_v42 = vpop.f32.mrb[33].mxu1 }
 0x55b   :  { %v7991_v47 = vadd.f32 %v5218_v42, %v14693_v46  ;;  %v7906_v19 = vpop.f32.mrb[34].mxu1 }
 0x55c   :  { %v5371_v63 = vmax.f32 %v7990_v45, 0.0  ;;  %v7992_v29 = vadd.f32 %v7906_v19, %v14694_v9  ;;  %v5221_v20 = vpop.f32.mrb[35].mxu1 }
 0x55d   :  { %v5369_v59 = vmax.f32 %v7991_v47, 0.0  ;;  %v7993_v56 = vadd.f32 %v5221_v20, %v14695_v11 }
 0x55e   :  { %6892 = vst.msk [vmem:[%s13845_s6 + $0x301] sm:$0xff] %vm455_vm2, %v5371_v63  ;;  %v5372_v62 = vmax.f32 %v7992_v29, 0.0 }
 0x55f   :  { %6890 = vst.msk [vmem:[%s13845_s6 + $0x2e9] sm:$0xff] %vm455_vm2, %v5369_v59  ;;  %v5370_v41 = vmax.f32 %v7993_v56, 0.0 }
 0x560   :  { %6893 = vst.msk [vmem:[%s13845_s6 + $0x309] sm:$0xff] %vm455_vm2, %v5372_v62 }
 0x561   :  { %6891 = vst.msk [vmem:[%s13845_s6 + $0x2f1] sm:$0xff] %vm455_vm2, %v5370_v41  ;;  %v7909_v50 = vpop.f32.mrb[36].mxu1 }
 0x562   :  { %v7994_v33 = vadd.f32 %v7909_v50, %v14696_v10  ;;  %v5234_v6 = vpop.f32.mrb[37].mxu1 }
 0x563   :  { %v7995_v55 = vadd.f32 %v5234_v6, %v14697_v32  ;;  %v7910_v8 = vpop.f32.mrb[38].mxu1 }
 0x564   :  { %v5375_v44 = vmax.f32 %v7994_v33, 0.0  ;;  %v7996_v48 = vadd.f32 %v7910_v8, %v14698_v61  ;;  %v5237_v49 = vpop.f32.mrb[39].mxu1 }
 0x565   :  { %v5373_v2 = vmax.f32 %v7995_v55, 0.0  ;;  %v7997_v16 = vadd.f32 %v5237_v49, %v14699_v39 }
 0x566   :  { %6896 = vst.msk [vmem:[%s13845_s6 + $0x331] sm:$0xff] %vm455_vm2, %v5375_v44  ;;  %v5376_v30 = vmax.f32 %v7996_v48, 0.0 }
 0x567   :  { %6894 = vst.msk [vmem:[%s13845_s6 + $0x319] sm:$0xff] %vm455_vm2, %v5373_v2  ;;  %v5374_v21 = vmax.f32 %v7997_v16, 0.0 }
 0x568   :  { %6897 = vst.msk [vmem:[%s13845_s6 + $0x339] sm:$0xff] %vm455_vm2, %v5376_v30 }
 0x569   :  { %6895 = vst.msk [vmem:[%s13845_s6 + $0x321] sm:$0xff] %vm455_vm2, %v5374_v21 }

// kernel: basic_block_forward.4
= control target key start
LH: loop header
LB: loop body
LE: loop exit
PB: predicated region body
PF: predicated region fallthrough
CT: control target
= control target key end

     0   :  { %s1117_s1 = inlined_call_operand.vmem [shape: bf16[128,128], index: 1, kind: input, shape index: {}]   ;;  %s1118_s0 = inlined_call_operand.vmem [shape: f32[288,128], index: 0, kind: input, shape index: {}]   ;;  %s1119_s2 = inlined_call_operand.vmem [shape: bf16[128,128], index: 2, kind: input, shape index: {}]   ;;  %s1120_s3 = inlined_call_operand.vmem [shape: f32[288,128], index: 3, kind: output, shape index: {}]  }
   0x1   :  { %v817_v0 = vld [vmem:[%s1117_s1] sm:$0xff]   ;;  %v818_v1 = vld [vmem:[%s1117_s1 + $0x8] sm:$0xff]   ;;  %v819_v2 = vld [vmem:[%s1117_s1 + $0x10] sm:$0xff]  }
   0x2   :  { %713 = vmatprep.subr.bf16.mxu0 %v817_v0  ;;  %v820_v3 = vld [vmem:[%s1117_s1 + $0x18] sm:$0xff]   ;;  %v15_v4 = vld [vmem:[%s1118_s0] sm:$0xff]  ;;  %v16_v5 = vld [vmem:[%s1118_s0 + $0x8] sm:$0xff] }
   0x3   :  { %714 = vmatpush3.bf16.msra.mxu0 %v817_v0  ;;  %v51_v6 = vpack.c.bf16 %v16_v5, %v15_v4  ;;  %v821_v7 = vld [vmem:[%s1117_s1 + $0x20] sm:$0xff]   ;;  %v822_v8 = vld [vmem:[%s1117_s1 + $0x28] sm:$0xff]   ;;  %v823_v9 = vld [vmem:[%s1117_s1 + $0x30] sm:$0xff]  }
   0x4   :  { %715 = vmatprep.subr.bf16.mxu0 %v818_v1  ;;  %v825_v10 = vld [vmem:[%s1119_s2] sm:$0xff]   ;;  %v826_v11 = vld [vmem:[%s1119_s2 + $0x8] sm:$0xff]   ;;  %v824_v12 = vld [vmem:[%s1117_s1 + $0x38] sm:$0xff]  }
   0x5   :  { %729 = vmatprep.mubr.bf16.mxu0 %v51_v6  ;;  %765 = vmatprep.subr.bf16.mxu1 %v825_v10  ;;  %v827_v13 = vld [vmem:[%s1119_s2 + $0x10] sm:$0xff]   ;;  %v18_v15 = vld [vmem:[%s1118_s0 + $0x18] sm:$0xff]  ;;  %v19_v16 = vld [vmem:[%s1118_s0 + $0x20] sm:$0xff] }
   0x6   :  { %766 = vmatpush3.bf16.msra.mxu1 %v825_v10  ;;  %v17_v14 = vld [vmem:[%s1118_s0 + $0x10] sm:$0xff]  ;;  %v20_v17 = vld [vmem:[%s1118_s0 + $0x28] sm:$0xff]  ;;  %v828_v18 = vld [vmem:[%s1119_s2 + $0x18] sm:$0xff]  }
   0x7   :  { %716 = vmatpush3.bf16.msra.mxu0 %v818_v1  ;;  %767 = vmatprep.subr.bf16.mxu1 %v826_v11  ;;  %v52_v19 = vpack.c.bf16 %v18_v15, %v17_v14  ;;  %v53_v20 = vpack.c.bf16 %v20_v17, %v19_v16  ;;  %v829_v21 = vld [vmem:[%s1119_s2 + $0x20] sm:$0xff]   ;;  %v21_v22 = vld [vmem:[%s1118_s0 + $0x30] sm:$0xff]  ;;  %v22_v23 = vld [vmem:[%s1118_s0 + $0x38] sm:$0xff] }
   0x8   :  { %717 = vmatprep.subr.bf16.mxu0 %v819_v2  ;;  %v23_v24 = vld [vmem:[%s1118_s0 + $0x40] sm:$0xff]  ;;  %v24_v25 = vld [vmem:[%s1118_s0 + $0x48] sm:$0xff]  ;;  %v54_v27 = vpack.c.bf16 %v22_v23, %v21_v22  ;;  %v25_v29 = vld [vmem:[%s1118_s0 + $0x50] sm:$0xff] }
   0x9   :  { %v830_v26 = vld [vmem:[%s1119_s2 + $0x28] sm:$0xff]   ;;  %v55_v28 = vpack.c.bf16 %v24_v25, %v23_v24  ;;  %v26_v30 = vld [vmem:[%s1118_s0 + $0x58] sm:$0xff]  ;;  %v27_v31 = vld [vmem:[%s1118_s0 + $0x60] sm:$0xff] }
   0xa   :  { %768 = vmatpush3.bf16.msra.mxu1 %v826_v11  ;;  %v28_v32 = vld [vmem:[%s1118_s0 + $0x68] sm:$0xff]  ;;  %v56_v33 = vpack.c.bf16 %v26_v30, %v25_v29  ;;  %v29_v35 = vld [vmem:[%s1118_s0 + $0x70] sm:$0xff]  ;;  %v30_v36 = vld [vmem:[%s1118_s0 + $0x78] sm:$0xff] }
   0xb   :  { %718 = vmatpush3.bf16.msra.mxu0 %v819_v2  ;;  %769 = vmatprep.subr.bf16.mxu1 %v827_v13  ;;  %v57_v34 = vpack.c.bf16 %v28_v32, %v27_v31  ;;  %v31_v37 = vld [vmem:[%s1118_s0 + $0x80] sm:$0xff]  ;;  %v32_v38 = vld [vmem:[%s1118_s0 + $0x88] sm:$0xff]  ;;  %v58_v39 = vpack.c.bf16 %v30_v36, %v29_v35  ;;  %v33_v41 = vld [vmem:[%s1118_s0 + $0x90] sm:$0xff] }
   0xc   :  { %719 = vmatprep.subr.bf16.mxu0 %v820_v3  ;;  %v59_v40 = vpack.c.bf16 %v32_v38, %v31_v37  ;;  %v34_v42 = vld [vmem:[%s1118_s0 + $0x98] sm:$0xff]  ;;  %v35_v43 = vld [vmem:[%s1118_s0 + $0xa0] sm:$0xff]  ;;  %v36_v44 = vld [vmem:[%s1118_s0 + $0xa8] sm:$0xff] }
   0xd   :  { %v60_v45 = vpack.c.bf16 %v34_v42, %v33_v41  ;;  %v61_v46 = vpack.c.bf16 %v36_v44, %v35_v43  ;;  %v37_v47 = vld [vmem:[%s1118_s0 + $0xb0] sm:$0xff]  ;;  %v38_v48 = vld [vmem:[%s1118_s0 + $0xb8] sm:$0xff]  ;;  %v39_v49 = vld [vmem:[%s1118_s0 + $0xc0] sm:$0xff] }
   0xe   :  { %770 = vmatpush3.bf16.msra.mxu1 %v827_v13  ;;  %v40_v50 = vld [vmem:[%s1118_s0 + $0xc8] sm:$0xff]  ;;  %v62_v51 = vpack.c.bf16 %v38_v48, %v37_v47  ;;  %v41_v53 = vld [vmem:[%s1118_s0 + $0xd0] sm:$0xff]  ;;  %v42_v54 = vld [vmem:[%s1118_s0 + $0xd8] sm:$0xff] }
   0xf   :  { %720 = vmatpush3.bf16.msra.mxu0 %v820_v3  ;;  %771 = vmatprep.subr.bf16.mxu1 %v828_v18  ;;  %v63_v52 = vpack.c.bf16 %v40_v50, %v39_v49  ;;  %v43_v55 = vld [vmem:[%s1118_s0 + $0xe0] sm:$0xff]  ;;  %v44_v56 = vld [vmem:[%s1118_s0 + $0xe8] sm:$0xff]  ;;  %v64_v57 = vpack.c.bf16 %v42_v54, %v41_v53  ;;  %v45_v59 = vld [vmem:[%s1118_s0 + $0xf0] sm:$0xff] }
  0x10   :  { %721 = vmatprep.subr.bf16.mxu0 %v821_v7  ;;  %v65_v58 = vpack.c.bf16 %v44_v56, %v43_v55  ;;  %v46_v60 = vld [vmem:[%s1118_s0 + $0xf8] sm:$0xff]  ;;  %v47_v61 = vld [vmem:[%s1118_s0 + $0x100] sm:$0xff]  ;;  %v48_v62 = vld [vmem:[%s1118_s0 + $0x108] sm:$0xff] }
  0x11   :  { %v66_v63 = vpack.c.bf16 %v46_v60, %v45_v59  ;;  %v67_v0 = vpack.c.bf16 %v48_v62, %v47_v61  ;;  %v49_v1 = vld [vmem:[%s1118_s0 + $0x110] sm:$0xff]  ;;  %v50_v2 = vld [vmem:[%s1118_s0 + $0x118] sm:$0xff] }
  0x12   :  { %772 = vmatpush3.bf16.msra.mxu1 %v828_v18  ;;  %v68_v3 = vpack.c.bf16 %v50_v2, %v49_v1  ;;  %v831_v4 = vld [vmem:[%s1119_s2 + $0x30] sm:$0xff]   ;;  %v832_v5 = vld [vmem:[%s1119_s2 + $0x38] sm:$0xff]  }
  0x13   :  { %722 = vmatpush3.bf16.msra.mxu0 %v821_v7  ;;  %773 = vmatprep.subr.bf16.mxu1 %v829_v21 }
  0x14   :  { %723 = vmatprep.subr.bf16.mxu0 %v822_v8 }
  0x16   :  { %774 = vmatpush3.bf16.msra.mxu1 %v829_v21 }
  0x17   :  { %724 = vmatpush3.bf16.msra.mxu0 %v822_v8  ;;  %775 = vmatprep.subr.bf16.mxu1 %v830_v26 }
  0x18   :  { %725 = vmatprep.subr.bf16.mxu0 %v823_v9 }
  0x1a   :  { %776 = vmatpush3.bf16.msra.mxu1 %v830_v26 }
  0x1b   :  { %726 = vmatpush3.bf16.msra.mxu0 %v823_v9  ;;  %777 = vmatprep.subr.bf16.mxu1 %v831_v4 }
  0x1c   :  { %727 = vmatprep.subr.bf16.mxu0 %v824_v12 }
  0x1e   :  { %778 = vmatpush3.bf16.msra.mxu1 %v831_v4 }
  0x1f   :  { %728 = vmatpush3.bf16.msra.mxu0 %v824_v12  ;;  %779 = vmatprep.subr.bf16.mxu1 %v832_v5 }
  0x22   :  { %730 = vmatmul.mubr.bf16.vlgmr.msra.gmra.mrb[0].mxu0 %v52_v19  ;;  %780 = vmatpush3.bf16.msra.mxu1 %v832_v5 }
  0x23   :  { %733 = vmatprep.mubr.bf16.mxu0 %v53_v20 }
  0x2a   :  { %734 = vmatmul.mubr.bf16.gmra.mrb[4].mxu0 %v54_v27 }
  0x2b   :  { %737 = vmatprep.mubr.bf16.mxu0 %v55_v28 }
  0x32   :  { %738 = vmatmul.mubr.bf16.gmra.mrb[8].mxu0 %v56_v33 }
  0x33   :  { %741 = vmatprep.mubr.bf16.mxu0 %v57_v34 }
  0x3a   :  { %742 = vmatmul.mubr.bf16.gmra.mrb[12].mxu0 %v58_v39 }
  0x3b   :  { %745 = vmatprep.mubr.bf16.mxu0 %v59_v40 }
  0x42   :  { %746 = vmatmul.mubr.bf16.gmra.mrb[16].mxu0 %v60_v45 }
  0x43   :  { %749 = vmatprep.mubr.bf16.mxu0 %v61_v46 }
  0x4a   :  { %750 = vmatmul.mubr.bf16.gmra.mrb[20].mxu0 %v62_v51 }
  0x4b   :  { %753 = vmatprep.mubr.bf16.mxu0 %v63_v52 }
  0x52   :  { %754 = vmatmul.mubr.bf16.gmra.mrb[24].mxu0 %v64_v57 }
  0x53   :  { %757 = vmatprep.mubr.bf16.mxu0 %v65_v58 }
  0x5a   :  { %758 = vmatmul.mubr.bf16.gmra.mrb[28].mxu0 %v66_v63 }
  0x5b   :  { %761 = vmatprep.mubr.bf16.mxu0 %v67_v0 }
  0x62   :  { %762 = vmatmul.mubr.bf16.gmra.mrb[32].mxu0 %v68_v3 }
  0xf5   :  { %v731_v6 = vpop.f32.mrb[0].mxu0 }
  0xf6   :  { %v167_v7 = vpop.f32.mrb[1].mxu0  ;;  %v312_v9 = vmax.f32 %v731_v6, 0.0 }
  0xf7   :  { %v732_v8 = vpop.f32.mrb[2].mxu0  ;;  %v310_v12 = vmax.f32 %v167_v7, 0.0 }
  0xf8   :  { %v313_v10 = vmax.f32 %v732_v8, 0.0  ;;  %v170_v11 = vpop.f32.mrb[3].mxu0 }
  0xf9   :  { %v311_v13 = vmax.f32 %v170_v11, 0.0 }
  0xfa   :  { %v347_v14 = vpack.c.bf16 %v313_v10, %v312_v9 }
  0xfb   :  { %v346_v15 = vpack.c.bf16 %v311_v13, %v310_v12 }
  0xfd   :  { %v735_v16 = vpop.f32.mrb[4].mxu0  ;;  %781 = vmatprep.mubr.bf16.mxu1 %v346_v15 }
  0xfe   :  { %v183_v17 = vpop.f32.mrb[5].mxu0  ;;  %782 = vmatmul.mubr.bf16.vlgmr.msra.gmra.mrb[0].mxu1 %v347_v14  ;;  %v316_v19 = vmax.f32 %v735_v16, 0.0 }
  0xff   :  { %v736_v18 = vpop.f32.mrb[6].mxu0  ;;  %v314_v22 = vmax.f32 %v183_v17, 0.0 }
 0x100   :  { %v317_v20 = vmax.f32 %v736_v18, 0.0  ;;  %v186_v21 = vpop.f32.mrb[7].mxu0 }
 0x101   :  { %v315_v23 = vmax.f32 %v186_v21, 0.0 }
 0x102   :  { %v349_v24 = vpack.c.bf16 %v317_v20, %v316_v19 }
 0x103   :  { %v348_v25 = vpack.c.bf16 %v315_v23, %v314_v22 }
 0x105   :  { %v739_v26 = vpop.f32.mrb[8].mxu0  ;;  %785 = vmatprep.mubr.bf16.mxu1 %v348_v25 }
 0x106   :  { %v199_v27 = vpop.f32.mrb[9].mxu0  ;;  %786 = vmatmul.mubr.bf16.gmra.mrb[4].mxu1 %v349_v24  ;;  %v320_v29 = vmax.f32 %v739_v26, 0.0 }
 0x107   :  { %v740_v28 = vpop.f32.mrb[10].mxu0  ;;  %v318_v32 = vmax.f32 %v199_v27, 0.0 }
 0x108   :  { %v321_v30 = vmax.f32 %v740_v28, 0.0  ;;  %v202_v31 = vpop.f32.mrb[11].mxu0 }
 0x109   :  { %v319_v33 = vmax.f32 %v202_v31, 0.0 }
 0x10a   :  { %v351_v34 = vpack.c.bf16 %v321_v30, %v320_v29 }
 0x10b   :  { %v350_v35 = vpack.c.bf16 %v319_v33, %v318_v32 }
 0x10d   :  { %v743_v36 = vpop.f32.mrb[12].mxu0  ;;  %789 = vmatprep.mubr.bf16.mxu1 %v350_v35 }
 0x10e   :  { %v215_v37 = vpop.f32.mrb[13].mxu0  ;;  %790 = vmatmul.mubr.bf16.gmra.mrb[8].mxu1 %v351_v34  ;;  %v324_v39 = vmax.f32 %v743_v36, 0.0 }
 0x10f   :  { %v744_v38 = vpop.f32.mrb[14].mxu0  ;;  %v322_v42 = vmax.f32 %v215_v37, 0.0 }
 0x110   :  { %v325_v40 = vmax.f32 %v744_v38, 0.0  ;;  %v218_v41 = vpop.f32.mrb[15].mxu0 }
 0x111   :  { %v323_v43 = vmax.f32 %v218_v41, 0.0 }
 0x112   :  { %v353_v44 = vpack.c.bf16 %v325_v40, %v324_v39 }
 0x113   :  { %v352_v45 = vpack.c.bf16 %v323_v43, %v322_v42 }
 0x115   :  { %v747_v46 = vpop.f32.mrb[16].mxu0  ;;  %793 = vmatprep.mubr.bf16.mxu1 %v352_v45 }
 0x116   :  { %v231_v47 = vpop.f32.mrb[17].mxu0  ;;  %794 = vmatmul.mubr.bf16.gmra.mrb[12].mxu1 %v353_v44  ;;  %v328_v49 = vmax.f32 %v747_v46, 0.0 }
 0x117   :  { %v748_v48 = vpop.f32.mrb[18].mxu0  ;;  %v326_v52 = vmax.f32 %v231_v47, 0.0 }
 0x118   :  { %v329_v50 = vmax.f32 %v748_v48, 0.0  ;;  %v234_v51 = vpop.f32.mrb[19].mxu0 }
 0x119   :  { %v327_v53 = vmax.f32 %v234_v51, 0.0 }
 0x11a   :  { %v355_v54 = vpack.c.bf16 %v329_v50, %v328_v49 }
 0x11b   :  { %v354_v55 = vpack.c.bf16 %v327_v53, %v326_v52 }
 0x11d   :  { %v751_v56 = vpop.f32.mrb[20].mxu0  ;;  %797 = vmatprep.mubr.bf16.mxu1 %v354_v55 }
 0x11e   :  { %v247_v57 = vpop.f32.mrb[21].mxu0  ;;  %798 = vmatmul.mubr.bf16.gmra.mrb[16].mxu1 %v355_v54  ;;  %v332_v59 = vmax.f32 %v751_v56, 0.0 }
 0x11f   :  { %v752_v58 = vpop.f32.mrb[22].mxu0  ;;  %v330_v62 = vmax.f32 %v247_v57, 0.0 }
 0x120   :  { %v333_v60 = vmax.f32 %v752_v58, 0.0  ;;  %v250_v61 = vpop.f32.mrb[23].mxu0 }
 0x121   :  { %v331_v63 = vmax.f32 %v250_v61, 0.0 }
 0x122   :  { %v357_v0 = vpack.c.bf16 %v333_v60, %v332_v59 }
 0x123   :  { %v356_v1 = vpack.c.bf16 %v331_v63, %v330_v62 }
 0x125   :  { %v755_v2 = vpop.f32.mrb[24].mxu0  ;;  %801 = vmatprep.mubr.bf16.mxu1 %v356_v1 }
 0x126   :  { %v263_v3 = vpop.f32.mrb[25].mxu0  ;;  %802 = vmatmul.mubr.bf16.gmra.mrb[20].mxu1 %v357_v0  ;;  %v336_v5 = vmax.f32 %v755_v2, 0.0 }
 0x127   :  { %v756_v4 = vpop.f32.mrb[26].mxu0  ;;  %v334_v8 = vmax.f32 %v263_v3, 0.0 }
 0x128   :  { %v337_v6 = vmax.f32 %v756_v4, 0.0  ;;  %v266_v7 = vpop.f32.mrb[27].mxu0 }
 0x129   :  { %v335_v9 = vmax.f32 %v266_v7, 0.0 }
 0x12a   :  { %v359_v10 = vpack.c.bf16 %v337_v6, %v336_v5 }
 0x12b   :  { %v358_v11 = vpack.c.bf16 %v335_v9, %v334_v8 }
 0x12d   :  { %v759_v12 = vpop.f32.mrb[28].mxu0  ;;  %805 = vmatprep.mubr.bf16.mxu1 %v358_v11 }
 0x12e   :  { %v279_v13 = vpop.f32.mrb[29].mxu0  ;;  %806 = vmatmul.mubr.bf16.gmra.mrb[24].mxu1 %v359_v10  ;;  %v340_v15 = vmax.f32 %v759_v12, 0.0 }
 0x12f   :  { %v760_v14 = vpop.f32.mrb[30].mxu0  ;;  %v338_v18 = vmax.f32 %v279_v13, 0.0 }
 0x130   :  { %v341_v16 = vmax.f32 %v760_v14, 0.0  ;;  %v282_v17 = vpop.f32.mrb[31].mxu0 }
 0x131   :  { %v339_v19 = vmax.f32 %v282_v17, 0.0 }
 0x132   :  { %v361_v20 = vpack.c.bf16 %v341_v16, %v340_v15 }
 0x133   :  { %v360_v21 = vpack.c.bf16 %v339_v19, %v338_v18 }
 0x135   :  { %v763_v22 = vpop.f32.mrb[32].mxu0  ;;  %809 = vmatprep.mubr.bf16.mxu1 %v360_v21 }
 0x136   :  { %v295_v23 = vpop.f32.mrb[33].mxu0  ;;  %810 = vmatmul.mubr.bf16.gmra.mrb[28].mxu1 %v361_v20  ;;  %v344_v25 = vmax.f32 %v763_v22, 0.0 }
 0x137   :  { %v764_v24 = vpop.f32.mrb[34].mxu0  ;;  %v342_v28 = vmax.f32 %v295_v23, 0.0 }
 0x138   :  { %v345_v26 = vmax.f32 %v764_v24, 0.0  ;;  %v298_v27 = vpop.f32.mrb[35].mxu0 }
 0x139   :  { %v343_v29 = vmax.f32 %v298_v27, 0.0 }
 0x13a   :  { %v363_v30 = vpack.c.bf16 %v345_v26, %v344_v25 }
 0x13b   :  { %v362_v31 = vpack.c.bf16 %v343_v29, %v342_v28 }
 0x13d   :  { %813 = vmatprep.mubr.bf16.mxu1 %v362_v31 }
 0x13e   :  { %814 = vmatmul.mubr.bf16.gmra.mrb[32].mxu1 %v363_v30 }
 0x1d1   :  { %v783_v32 = vpop.f32.mrb[0].mxu1 }
 0x1d2   :  { %607 = vst [vmem:[%s1120_s3 + $0x10] sm:$0xff] %v783_v32  ;;  %v462_v33 = vpop.f32.mrb[1].mxu1 }
 0x1d3   :  { %605 = vst [vmem:[%s1120_s3] sm:$0xff] %v462_v33  ;;  %v784_v34 = vpop.f32.mrb[2].mxu1 }
 0x1d4   :  { %608 = vst [vmem:[%s1120_s3 + $0x18] sm:$0xff] %v784_v34  ;;  %v465_v35 = vpop.f32.mrb[3].mxu1 }
 0x1d5   :  { %606 = vst [vmem:[%s1120_s3 + $0x8] sm:$0xff] %v465_v35 }
 0x1d9   :  { %v787_v36 = vpop.f32.mrb[4].mxu1 }
 0x1da   :  { %611 = vst [vmem:[%s1120_s3 + $0x30] sm:$0xff] %v787_v36  ;;  %v478_v37 = vpop.f32.mrb[5].mxu1 }
 0x1db   :  { %609 = vst [vmem:[%s1120_s3 + $0x20] sm:$0xff] %v478_v37  ;;  %v788_v38 = vpop.f32.mrb[6].mxu1 }
 0x1dc   :  { %612 = vst [vmem:[%s1120_s3 + $0x38] sm:$0xff] %v788_v38  ;;  %v481_v39 = vpop.f32.mrb[7].mxu1 }
 0x1dd   :  { %610 = vst [vmem:[%s1120_s3 + $0x28] sm:$0xff] %v481_v39 }
 0x1e1   :  { %v791_v40 = vpop.f32.mrb[8].mxu1 }
 0x1e2   :  { %615 = vst [vmem:[%s1120_s3 + $0x50] sm:$0xff] %v791_v40  ;;  %v494_v41 = vpop.f32.mrb[9].mxu1 }
 0x1e3   :  { %613 = vst [vmem:[%s1120_s3 + $0x40] sm:$0xff] %v494_v41  ;;  %v792_v42 = vpop.f32.mrb[10].mxu1 }
 0x1e4   :  { %616 = vst [vmem:[%s1120_s3 + $0x58] sm:$0xff] %v792_v42  ;;  %v497_v43 = vpop.f32.mrb[11].mxu1 }
 0x1e5   :  { %614 = vst [vmem:[%s1120_s3 + $0x48] sm:$0xff] %v497_v43 }
 0x1e9   :  { %v795_v44 = vpop.f32.mrb[12].mxu1 }
 0x1ea   :  { %619 = vst [vmem:[%s1120_s3 + $0x70] sm:$0xff] %v795_v44  ;;  %v510_v45 = vpop.f32.mrb[13].mxu1 }
 0x1eb   :  { %617 = vst [vmem:[%s1120_s3 + $0x60] sm:$0xff] %v510_v45  ;;  %v796_v46 = vpop.f32.mrb[14].mxu1 }
 0x1ec   :  { %620 = vst [vmem:[%s1120_s3 + $0x78] sm:$0xff] %v796_v46  ;;  %v513_v47 = vpop.f32.mrb[15].mxu1 }
 0x1ed   :  { %618 = vst [vmem:[%s1120_s3 + $0x68] sm:$0xff] %v513_v47 }
 0x1f1   :  { %v799_v48 = vpop.f32.mrb[16].mxu1 }
 0x1f2   :  { %623 = vst [vmem:[%s1120_s3 + $0x90] sm:$0xff] %v799_v48  ;;  %v526_v49 = vpop.f32.mrb[17].mxu1 }
 0x1f3   :  { %621 = vst [vmem:[%s1120_s3 + $0x80] sm:$0xff] %v526_v49  ;;  %v800_v50 = vpop.f32.mrb[18].mxu1 }
 0x1f4   :  { %624 = vst [vmem:[%s1120_s3 + $0x98] sm:$0xff] %v800_v50  ;;  %v529_v51 = vpop.f32.mrb[19].mxu1 }
 0x1f5   :  { %622 = vst [vmem:[%s1120_s3 + $0x88] sm:$0xff] %v529_v51 }
 0x1f9   :  { %v803_v52 = vpop.f32.mrb[20].mxu1 }
 0x1fa   :  { %627 = vst [vmem:[%s1120_s3 + $0xb0] sm:$0xff] %v803_v52  ;;  %v542_v53 = vpop.f32.mrb[21].mxu1 }
 0x1fb   :  { %625 = vst [vmem:[%s1120_s3 + $0xa0] sm:$0xff] %v542_v53  ;;  %v804_v54 = vpop.f32.mrb[22].mxu1 }
 0x1fc   :  { %628 = vst [vmem:[%s1120_s3 + $0xb8] sm:$0xff] %v804_v54  ;;  %v545_v55 = vpop.f32.mrb[23].mxu1 }
 0x1fd   :  { %626 = vst [vmem:[%s1120_s3 + $0xa8] sm:$0xff] %v545_v55 }
 0x201   :  { %v807_v56 = vpop.f32.mrb[24].mxu1 }
 0x202   :  { %631 = vst [vmem:[%s1120_s3 + $0xd0] sm:$0xff] %v807_v56  ;;  %v558_v57 = vpop.f32.mrb[25].mxu1 }
 0x203   :  { %629 = vst [vmem:[%s1120_s3 + $0xc0] sm:$0xff] %v558_v57  ;;  %v808_v58 = vpop.f32.mrb[26].mxu1 }
 0x204   :  { %632 = vst [vmem:[%s1120_s3 + $0xd8] sm:$0xff] %v808_v58  ;;  %v561_v59 = vpop.f32.mrb[27].mxu1 }
 0x205   :  { %630 = vst [vmem:[%s1120_s3 + $0xc8] sm:$0xff] %v561_v59 }
 0x209   :  { %v811_v60 = vpop.f32.mrb[28].mxu1 }
 0x20a   :  { %635 = vst [vmem:[%s1120_s3 + $0xf0] sm:$0xff] %v811_v60  ;;  %v574_v61 = vpop.f32.mrb[29].mxu1 }
 0x20b   :  { %633 = vst [vmem:[%s1120_s3 + $0xe0] sm:$0xff] %v574_v61  ;;  %v812_v62 = vpop.f32.mrb[30].mxu1 }
 0x20c   :  { %636 = vst [vmem:[%s1120_s3 + $0xf8] sm:$0xff] %v812_v62  ;;  %v577_v63 = vpop.f32.mrb[31].mxu1 }
 0x20d   :  { %634 = vst [vmem:[%s1120_s3 + $0xe8] sm:$0xff] %v577_v63 }
 0x211   :  { %v815_v0 = vpop.f32.mrb[32].mxu1 }
 0x212   :  { %639 = vst [vmem:[%s1120_s3 + $0x110] sm:$0xff] %v815_v0  ;;  %v590_v1 = vpop.f32.mrb[33].mxu1 }
 0x213   :  { %637 = vst [vmem:[%s1120_s3 + $0x100] sm:$0xff] %v590_v1  ;;  %v816_v2 = vpop.f32.mrb[34].mxu1 }
 0x214   :  { %640 = vst [vmem:[%s1120_s3 + $0x118] sm:$0xff] %v816_v2  ;;  %v593_v3 = vpop.f32.mrb[35].mxu1 }
 0x215   :  { %638 = vst [vmem:[%s1120_s3 + $0x108] sm:$0xff] %v593_v3 }

// kernel: reverse.1
= control target key start
LH: loop header
LB: loop body
LE: loop exit
PB: predicated region body
PF: predicated region fallthrough
CT: control target
= control target key end

     0   :  { %s344_s0 = inlined_call_operand.vmem [shape: f32[2,64,16,7], index: 0, kind: input, shape index: {}]   ;;  %s345_s1 = inlined_call_operand.vmem [shape: f32[2,64,16,7], index: 1, kind: output, shape index: {}]  }
   0x1   :  { %v112_v0 = vld [vmem:[%s344_s0 + $0x60] sm:$0xff]  ;;  %v113_v1 = vld [vmem:[%s344_s0 + $0xd0] sm:$0xff]  ;;  %v138_v14 = vld [vmem:[%s344_s0 + $0x68] sm:$0xff] }
   0x2   :  { %v115_v2 = vld [vmem:[%s344_s0 + $0x50] sm:$0xff]  ;;  %4 = vst [vmem:[%s345_s1] sm:$0xff] %v112_v0  ;;  %114 = vst [vmem:[%s345_s1 + $0x70] sm:$0xff] %v113_v1  ;;  %v117_v3 = vld [vmem:[%s344_s0 + $0xc0] sm:$0xff] }
   0x3   :  { %116 = vst [vmem:[%s345_s1 + $0x10] sm:$0xff] %v115_v2  ;;  %v119_v4 = vld [vmem:[%s344_s0 + $0x40] sm:$0xff]  ;;  %v121_v5 = vld [vmem:[%s344_s0 + $0xb0] sm:$0xff]  ;;  %118 = vst [vmem:[%s345_s1 + $0x80] sm:$0xff] %v117_v3 }
   0x4   :  { %120 = vst [vmem:[%s345_s1 + $0x20] sm:$0xff] %v119_v4  ;;  %122 = vst [vmem:[%s345_s1 + $0x90] sm:$0xff] %v121_v5  ;;  %v123_v6 = vld [vmem:[%s344_s0 + $0x30] sm:$0xff]  ;;  %v125_v7 = vld [vmem:[%s344_s0 + $0xa0] sm:$0xff] }
   0x5   :  { %v127_v8 = vld [vmem:[%s344_s0 + $0x20] sm:$0xff]  ;;  %124 = vst [vmem:[%s345_s1 + $0x30] sm:$0xff] %v123_v6  ;;  %126 = vst [vmem:[%s345_s1 + $0xa0] sm:$0xff] %v125_v7  ;;  %v129_v9 = vld [vmem:[%s344_s0 + $0x90] sm:$0xff] }
   0x6   :  { %128 = vst [vmem:[%s345_s1 + $0x40] sm:$0xff] %v127_v8  ;;  %v131_v10 = vld [vmem:[%s344_s0 + $0x10] sm:$0xff]  ;;  %v133_v11 = vld [vmem:[%s344_s0 + $0x80] sm:$0xff]  ;;  %130 = vst [vmem:[%s345_s1 + $0xb0] sm:$0xff] %v129_v9 }
   0x7   :  { %132 = vst [vmem:[%s345_s1 + $0x50] sm:$0xff] %v131_v10  ;;  %134 = vst [vmem:[%s345_s1 + $0xc0] sm:$0xff] %v133_v11  ;;  %v49_v12 = vld [vmem:[%s344_s0] sm:$0xff]  ;;  %v136_v13 = vld [vmem:[%s344_s0 + $0x70] sm:$0xff] }
   0x8   :  { %135 = vst [vmem:[%s345_s1 + $0x60] sm:$0xff] %v49_v12  ;;  %137 = vst [vmem:[%s345_s1 + $0xd0] sm:$0xff] %v136_v13  ;;  %v140_v15 = vld [vmem:[%s344_s0 + $0xd8] sm:$0xff]  ;;  %v144_v17 = vld [vmem:[%s344_s0 + $0xc8] sm:$0xff] }
   0x9   :  { %139 = vst [vmem:[%s345_s1 + $0x8] sm:$0xff] %v138_v14  ;;  %v142_v16 = vld [vmem:[%s344_s0 + $0x58] sm:$0xff]  ;;  %141 = vst [vmem:[%s345_s1 + $0x78] sm:$0xff] %v140_v15  ;;  %v146_v18 = vld [vmem:[%s344_s0 + $0x48] sm:$0xff] }
   0xa   :  { %143 = vst [vmem:[%s345_s1 + $0x18] sm:$0xff] %v142_v16  ;;  %145 = vst [vmem:[%s345_s1 + $0x88] sm:$0xff] %v144_v17  ;;  %v148_v19 = vld [vmem:[%s344_s0 + $0xb8] sm:$0xff]  ;;  %v152_v21 = vld [vmem:[%s344_s0 + $0xa8] sm:$0xff] }
   0xb   :  { %v150_v20 = vld [vmem:[%s344_s0 + $0x38] sm:$0xff]  ;;  %147 = vst [vmem:[%s345_s1 + $0x28] sm:$0xff] %v146_v18  ;;  %149 = vst [vmem:[%s345_s1 + $0x98] sm:$0xff] %v148_v19  ;;  %v154_v22 = vld [vmem:[%s344_s0 + $0x28] sm:$0xff] }
   0xc   :  { %151 = vst [vmem:[%s345_s1 + $0x38] sm:$0xff] %v150_v20  ;;  %v156_v23 = vld [vmem:[%s344_s0 + $0x98] sm:$0xff]  ;;  %153 = vst [vmem:[%s345_s1 + $0xa8] sm:$0xff] %v152_v21  ;;  %v160_v25 = vld [vmem:[%s344_s0 + $0x88] sm:$0xff] }
   0xd   :  { %155 = vst [vmem:[%s345_s1 + $0x48] sm:$0xff] %v154_v22  ;;  %157 = vst [vmem:[%s345_s1 + $0xb8] sm:$0xff] %v156_v23  ;;  %v158_v24 = vld [vmem:[%s344_s0 + $0x18] sm:$0xff]  ;;  %v162_v26 = vld [vmem:[%s344_s0 + $0x8] sm:$0xff] }
   0xe   :  { %159 = vst [vmem:[%s345_s1 + $0x58] sm:$0xff] %v158_v24  ;;  %161 = vst [vmem:[%s345_s1 + $0xc8] sm:$0xff] %v160_v25  ;;  %v164_v27 = vld [vmem:[%s344_s0 + $0x78] sm:$0xff] }
   0xf   :  { %163 = vst [vmem:[%s345_s1 + $0x68] sm:$0xff] %v162_v26  ;;  %165 = vst [vmem:[%s345_s1 + $0xd8] sm:$0xff] %v164_v27 }

// kernel: basic_block_forward.5
= control target key start
LH: loop header
LB: loop body
LE: loop exit
PB: predicated region body
PF: predicated region fallthrough
CT: control target
= control target key end

     0   :  { %vm390_vm0 = vcmask 1046528   ;;  %vm680_vm1 = vcmask 523264   ;;  %vm1475_vm2 = vcmask 1045504   ;;  %s11021_s1 = inlined_call_operand.vmem [shape: bf16[9,64,64], index: 1, kind: input, shape index: {}]   ;;  %s11022_s0 = inlined_call_operand.vmem [shape: f32[2,18,18,64], index: 0, kind: input, shape index: {}]   ;;  %s11023_s2 = inlined_call_operand.vmem [shape: f32[512,64], index: 2, kind: input, shape index: {}]   ;;  %s11024_s3 = inlined_call_operand.vmem [shape: f32[512,64], index: 3, kind: input, shape index: {}, may-alias: {3,4}]   ;;  %s11025_s4 = inlined_call_operand.vmem [shape: f32[512,64], index: 4, kind: output, shape index: {}, may-alias: {3,4}]  }
   0x1   :  { %v7234_v0 = vld [vmem:[%s11021_s1 + $0x20] sm:$0xff]   ;;  %v7236_v2 = vld [vmem:[%s11021_s1 + $0x28] sm:$0xff]   ;;  %v7238_v4 = vld [vmem:[%s11021_s1 + $0x30] sm:$0xff]  }
   0x2   :  { %v7235_v1 = vld [vmem:[%s11021_s1 + $0x80] sm:$0xff]   ;;  %6066 = vmatprep.subr.bf16.mxu1 %v7234_v0  ;;  %v7237_v3 = vld [vmem:[%s11021_s1 + $0x88] sm:$0xff]   ;;  %v7239_v5 = vld [vmem:[%s11021_s1 + $0x90] sm:$0xff]  }
   0x3   :  { %6354 = vmatprep.subr.bf16.mxu0 %v7235_v1  ;;  %6067 = vmatpush3.bf16.msra.mxu1 %v7234_v0  ;;  %v7240_v6 = vld [vmem:[%s11021_s1 + $0x38] sm:$0xff]   ;;  %v146_v7 = vld [vmem:[%s11022_s0] sm:$0xff]  ;;  %v147_v8 = vld [vmem:[%s11022_s0 + $0x8] sm:$0xff] }
   0x4   :  { %6355 = vmatpush3.bf16.msra.mxu0 %v7235_v1  ;;  %6068 = vmatprep.subr.bf16.mxu1 %v7236_v2  ;;  %v148_v9 = vld [vmem:[%s11022_s0 + $0x10] sm:$0x3]  ;;  %v7241_v10 = vld [vmem:[%s11021_s1 + $0x98] sm:$0xff]   ;;  %v391_v11 = vrot.slane %v146_v7, 1  ;;  %v392_v12 = vrot.slane %v147_v8, 1  ;;  %v7632_v15 = vld [vmem:[%s11022_s0 + $0x20] sm:$0xff] }
   0x5   :  { %6356 = vmatprep.subr.bf16.mxu0 %v7237_v3  ;;  %v394_v13 = vrot.slane %v148_v9, 1  ;;  %v7627_v14 = vld [vmem:[%s11022_s0 + $0x18] sm:$0xff]  ;;  %v7637_v16 = vld [vmem:[%s11022_s0 + $0x28] sm:$0x3]  ;;  %v397_v21 = vrot.slane %v7632_v15, 1  ;;  %v7242_v23 = vld [vmem:[%s11021_s1] sm:$0xff]  }
   0x6   :  { %v7641_v17 = vpack.c.bf16 %v7632_v15, %v7627_v14  ;;  %v396_v18 = vrot.slane %v7627_v14, 1  ;;  %v393_v19 = vsel %vm390_vm0, %v391_v11, %v392_v12  ;;  %v399_v22 = vrot.slane %v7637_v16, 1  ;;  %v7654_v25 = vld [vmem:[%s11022_s0 + $0x30] sm:$0xff]  ;;  %v7659_v26 = vld [vmem:[%s11022_s0 + $0x38] sm:$0xff]  ;;  %v7243_v27 = vld [vmem:[%s11021_s1 + $0xa0] sm:$0xff]  }
   0x7   :  { %6069 = vmatpush3.bf16.msra.mxu1 %v7236_v2  ;;  %v395_v20 = vsel %vm390_vm0, %v392_v12, %v394_v13  ;;  %v7669_v30 = vld [vmem:[%s11022_s0 + $0x40] sm:$0x3]  ;;  %v401_v31 = vrot.slane %v7654_v25, 1  ;;  %v402_v32 = vrot.slane %v7659_v26, 1  ;;  %v7678_v35 = vld [vmem:[%s11022_s0 + $0x48] sm:$0xff]  ;;  %v7684_v37 = vld [vmem:[%s11022_s0 + $0x50] sm:$0xff] }
   0x8   :  { %6357 = vmatpush3.bf16.msra.mxu0 %v7237_v3  ;;  %6070 = vmatprep.subr.bf16.mxu1 %v7238_v4  ;;  %11183 = vst [vmem:[#allocation2_spill] sm:$0xff] %v7641_v17  ;;  %v615_v24 = vpack.c.bf16 %v395_v20, %v393_v19  ;;  %v398_v28 = vsel %vm390_vm0, %v396_v18, %v397_v21  ;;  %v404_v34 = vrot.slane %v7669_v30, 1  ;;  %v7689_v38 = vld [vmem:[%s11022_s0 + $0x58] sm:$0x3]  ;;  %v406_v39 = vrot.slane %v7678_v35, 1  ;;  %v7695_v40 = vld [vmem:[%s11022_s0 + $0x60] sm:$0xff] }
   0x9   :  { %6358 = vmatprep.subr.bf16.mxu0 %v7239_v5  ;;  %v400_v29 = vsel %vm390_vm0, %v397_v21, %v399_v22  ;;  %v403_v36 = vsel %vm390_vm0, %v401_v31, %v402_v32  ;;  %v407_v42 = vrot.slane %v7684_v37, 1  ;;  %v409_v43 = vrot.slane %v7689_v38, 1  ;;  %v7704_v44 = vld [vmem:[%s11022_s0 + $0x68] sm:$0xff]  ;;  %v7709_v45 = vld [vmem:[%s11022_s0 + $0x70] sm:$0x3]  ;;  %v7719_v50 = vld [vmem:[%s11022_s0 + $0x78] sm:$0xff] }
   0xa   :  { %6074 = vmatprep.mubr.msk.bf16.mxu1 %vm680_vm1, %v615_v24  ;;  %v616_v33 = vpack.c.bf16 %v400_v29, %v398_v28  ;;  %v405_v41 = vsel %vm390_vm0, %v402_v32, %v404_v34  ;;  %v411_v46 = vrot.slane %v7695_v40, 1  ;;  %v412_v48 = vrot.slane %v7704_v44, 1  ;;  %v7724_v51 = vld [vmem:[%s11022_s0 + $0x80] sm:$0xff]  ;;  %v7729_v52 = vld [vmem:[%s11022_s0 + $0x88] sm:$0x3]  ;;  %v7751_v62 = vld [vmem:[%s11022_s0 + $0x90] sm:$0xff] }
   0xb   :  { %6071 = vmatpush3.bf16.msra.mxu1 %v7238_v4  ;;  %v7712_v47 = vpack.c.bf16 %v405_v41, %v403_v36  ;;  %v414_v49 = vrot.slane %v7709_v45, 1  ;;  %v408_v53 = vsel %vm390_vm0, %v406_v39, %v407_v42  ;;  %v410_v54 = vsel %vm390_vm0, %v407_v42, %v409_v43  ;;  %v7244_v59 = vld [vmem:[%s11021_s1 + $0xa8] sm:$0xff]   ;;  %v7760_v1 = vld [vmem:[%s11022_s0 + $0x98] sm:$0xff]  ;;  %v7765_v2 = vld [vmem:[%s11022_s0 + $0xa0] sm:$0x3] }
   0xc   :  { %6359 = vmatpush3.bf16.msra.mxu0 %v7239_v5  ;;  %6072 = vmatprep.subr.bf16.mxu1 %v7240_v6  ;;  %v416_v55 = vrot.slane %v7719_v50, 1  ;;  %v417_v56 = vrot.slane %v7724_v51, 1  ;;  %v7738_v57 = vpack.c.bf16 %v410_v54, %v408_v53  ;;  %v419_v58 = vrot.slane %v7729_v52, 1  ;;  %v7770_v3 = vld [vmem:[%s11022_s0 + $0xa8] sm:$0xff]  ;;  %v7775_v4 = vld [vmem:[%s11022_s0 + $0xb0] sm:$0xff]  ;;  %v7811_v22 = vld [vmem:[%s11022_s0 + $0xc0] sm:$0xff] }
   0xd   :  { %6360 = vmatprep.subr.bf16.mxu0 %v7241_v10  ;;  %6362 = vmatprep.mubr.msk.bf16.mxu0 %vm680_vm1, %v616_v33  ;;  %11184 = vst [vmem:[#allocation3_spill] sm:$0xff] %v7712_v47  ;;  %v413_v60 = vsel %vm390_vm0, %v411_v46, %v412_v48  ;;  %v415_v61 = vsel %vm390_vm0, %v412_v48, %v414_v49  ;;  %v7780_v5 = vld [vmem:[%s11022_s0 + $0xb8] sm:$0x3]  ;;  %v421_v9 = vrot.slane %v7751_v62, 1  ;;  %v424_v11 = vrot.slane %v7765_v2, 1  ;;  %v7246_v19 = vld [vmem:[%s11021_s1 + $0xb0] sm:$0xff]  }
   0xe   :  { %11185 = vst [vmem:[#allocation4_spill] sm:$0xff] %v7738_v57  ;;  %v418_v63 = vsel %vm390_vm0, %v416_v55, %v417_v56  ;;  %v420_v0 = vsel %vm390_vm0, %v417_v56, %v419_v58  ;;  %v7785_v7 = vpack.c.bf16 %v415_v61, %v413_v60  ;;  %v426_v12 = vrot.slane %v7770_v3, 1  ;;  %v7823_v28 = vld [vmem:[%s11022_s0 + $0xd0] sm:$0x3]  ;;  %v7828_v29 = vld [vmem:[%s11022_s0 + $0xd8] sm:$0xff]  ;;  %v7833_v31 = vld [vmem:[%s11022_s0 + $0xe0] sm:$0xff] }
   0xf   :  { %6073 = vmatpush3.bf16.msra.mxu1 %v7240_v6  ;;  %v7245_v6 = vld [vmem:[%s11021_s1 + $0x8] sm:$0xff]   ;;  %v7787_v8 = vpack.c.bf16 %v420_v0, %v418_v63  ;;  %v427_v13 = vrot.slane %v7775_v4, 1  ;;  %v429_v18 = vrot.slane %v7780_v5, 1  ;;  %v431_v39 = vrot.slane %v7811_v22, 1  ;;  %v7862_v49 = vld [vmem:[%s11022_s0 + $0xf0] sm:$0xff]  ;;  %v7867_v53 = vld [vmem:[%s11022_s0 + $0xf8] sm:$0xff] }
  0x10   :  { %6361 = vmatpush3.bf16.msra.mxu0 %v7241_v10  ;;  %6138 = vmatprep.subr.bf16.mxu1 %v7242_v23  ;;  %11186 = vst [vmem:[#allocation5_spill] sm:$0xff] %v7785_v7  ;;  %v422_v10 = vrot.slane %v7760_v1, 1  ;;  %v7838_v32 = vld [vmem:[%s11022_s0 + $0xe8] sm:$0x3]  ;;  %v434_v42 = vrot.slane %v7823_v28, 1  ;;  %v436_v43 = vrot.slane %v7828_v29, 1 }
  0x11   :  { %6426 = vmatprep.subr.bf16.mxu0 %v7243_v27  ;;  %11187 = vst [vmem:[#allocation6_spill] sm:$0xff] %v7787_v8  ;;  %v430_v24 = vsel %vm390_vm0, %v427_v13, %v429_v18  ;;  %v437_v46 = vrot.slane %v7833_v31, 1  ;;  %v439_v48 = vrot.slane %v7838_v32, 1  ;;  %v7872_v54 = vld [vmem:[%s11022_s0 + $0x100] sm:$0x3]  ;;  %v7881_v58 = vld [vmem:[%s11022_s0 + $0x108] sm:$0xff] }
  0x12   :  { %6075 = vmatmul.mubr.msk.bf16.vlgmr.msra.gmra.mrb[0].mxu1 %vm680_vm1, %v616_v33  ;;  %v423_v20 = vsel %vm390_vm0, %v421_v9, %v422_v10  ;;  %v425_v21 = vsel %vm390_vm0, %v422_v10, %v424_v11  ;;  %v7247_v33 = vld [vmem:[%s11021_s1 + $0xb8] sm:$0xff]   ;;  %v7248_v61 = vld [vmem:[%s11021_s1 + $0x10] sm:$0xff]   ;;  %v441_v11 = vrot.slane %v7862_v49, 1  ;;  %v446_v18 = vrot.slane %v7881_v58, 1 }
  0x13   :  { %6363 = vmatmul.mubr.msk.bf16.vlgmr.msra.gmra.mrb[0].mxu0 %vm680_vm1, %v7712_v47  ;;  %6139 = vmatpush3.bf16.msra.mxu1 %v7242_v23  ;;  %v428_v23 = vsel %vm390_vm0, %v426_v12, %v427_v13  ;;  %v7843_v34 = vpack.c.bf16 %v425_v21, %v423_v20  ;;  %v440_v60 = vsel %vm390_vm0, %v437_v46, %v439_v48  ;;  %v7891_v63 = vld [vmem:[%s11022_s0 + $0x110] sm:$0xff]  ;;  %v7896_v0 = vld [vmem:[%s11022_s0 + $0x118] sm:$0x3]  ;;  %v442_v12 = vrot.slane %v7867_v53, 1  ;;  %v7954_v48 = vld [vmem:[%s11022_s0 + $0x148] sm:$0x3] }
  0x14   :  { %6427 = vmatpush3.bf16.msra.mxu0 %v7243_v27  ;;  %6078 = vmatprep.mubr.msk.bf16.mxu1 %vm680_vm1, %v7712_v47  ;;  %v7818_v27 = vld [vmem:[%s11022_s0 + $0xc8] sm:$0xff]  ;;  %v7845_v36 = vpack.c.bf16 %v430_v24, %v428_v23  ;;  %v444_v13 = vrot.slane %v7872_v54, 1  ;;  %v449_v20 = vrot.slane %v7896_v0, 1  ;;  %v7927_v24 = vld [vmem:[%s11022_s0 + $0x120] sm:$0xff] }
  0x15   :  { %6366 = vmatprep.mubr.msk.bf16.mxu0 %vm680_vm1, %v7738_v57  ;;  %6428 = vmatprep.subr.bf16.mxu0 %v7244_v59  ;;  %11188 = vst [vmem:[#allocation7_spill] sm:$0xff] %v7843_v34  ;;  %v432_v41 = vrot.slane %v7818_v27, 1  ;;  %v443_v21 = vsel %vm390_vm0, %v441_v11, %v442_v12 }
  0x16   :  { %6140 = vmatprep.subr.bf16.mxu1 %v7245_v6  ;;  %11189 = vst [vmem:[#allocation8_spill] sm:$0xff] %v7845_v36  ;;  %v445_v23 = vsel %vm390_vm0, %v442_v12, %v444_v13 }
  0x17   :  { %6141 = vmatpush3.bf16.msra.mxu1 %v7245_v6  ;;  %v433_v55 = vsel %vm390_vm0, %v431_v39, %v432_v41  ;;  %v435_v56 = vsel %vm390_vm0, %v432_v41, %v434_v42  ;;  %v7901_v6 = vld [vmem:[%s11021_s1 + $0xc0] sm:$0xff]   ;;  %v7934_v41 = vld [vmem:[%s11022_s0 + $0x128] sm:$0xff]  ;;  %v7939_v42 = vld [vmem:[%s11022_s0 + $0x130] sm:$0x3] }
  0x18   :  { %6429 = vmatpush3.bf16.msra.mxu0 %v7244_v59  ;;  %v438_v59 = vsel %vm390_vm0, %v436_v43, %v437_v46  ;;  %v7903_v9 = vpack.c.bf16 %v435_v56, %v433_v55  ;;  %6142 = vmatprep.subr.bf16.mxu1 %v7248_v61  ;;  %v7944_v43 = vld [vmem:[%s11022_s0 + $0x138] sm:$0xff]  ;;  %v7949_v46 = vld [vmem:[%s11022_s0 + $0x140] sm:$0xff]  ;;  %v7959_v56 = vpack.c.bf16 %v445_v23, %v443_v21  ;;  %v454_v11 = vrot.slane %v7939_v42, 1 }
  0x19   :  { %6430 = vmatprep.subr.bf16.mxu0 %v7246_v19  ;;  %v7905_v10 = vpack.c.bf16 %v440_v60, %v438_v59  ;;  %v7250_v55 = vld [vmem:[%s11021_s1 + $0x18] sm:$0xff]   ;;  %v451_v59 = vrot.slane %v7927_v24, 1  ;;  %v456_v12 = vrot.slane %v7944_v43, 1  ;;  %v457_v13 = vrot.slane %v7949_v46, 1 }
  0x1a   :  { %6079 = vmatmul.mubr.msk.bf16.gmra.mrb[4].mxu1 %vm680_vm1, %v7738_v57  ;;  %11190 = vst [vmem:[#allocation9_spill] sm:$0xff] %v7903_v9  ;;  %11192 = vst [vmem:[#allocation11_spill] sm:$0xff] %v7959_v56  ;;  %v7987_v23 = vld [vmem:[%s11022_s0 + $0x158] sm:$0xff] }
  0x1b   :  { %6367 = vmatmul.mubr.msk.bf16.gmra.mrb[4].mxu0 %vm680_vm1, %v7785_v7  ;;  %6082 = vmatprep.mubr.msk.bf16.mxu1 %vm680_vm1, %v7785_v7  ;;  %11191 = vst [vmem:[#allocation10_spill] sm:$0xff] %v7905_v10  ;;  %v8040_v7 = vld [vmem:[%s11022_s0 + $0x190] sm:$0x3] }
  0x1c   :  { %6370 = vmatprep.mubr.msk.bf16.mxu0 %vm680_vm1, %v7787_v8  ;;  %6431 = vmatpush3.bf16.msra.mxu0 %v7246_v19  ;;  %v447_v19 = vrot.slane %v7891_v63, 1  ;;  %11201 = vst [vmem:[#allocation20_spill] sm:$0xff] %v8040_v7 }
  0x1d   :  { %6432 = vmatprep.subr.bf16.mxu0 %v7247_v33  ;;  %6143 = vmatpush3.bf16.msra.mxu1 %v7248_v61  ;;  %v452_v61 = vrot.slane %v7934_v41, 1 }
  0x1e   :  { %v450_v39 = vsel %vm390_vm0, %v447_v19, %v449_v20  ;;  %6144 = vmatprep.subr.bf16.mxu1 %v7250_v55 }
  0x1f   :  { %v453_v20 = vsel %vm390_vm0, %v451_v59, %v452_v61  ;;  %v455_v21 = vsel %vm390_vm0, %v452_v61, %v454_v11  ;;  %v7999_v59 = vld [vmem:[%s11022_s0 + $0x168] sm:$0xff]  ;;  %v8004_v61 = vld [vmem:[%s11022_s0 + $0x170] sm:$0xff]  ;;  %v1481_v11 = vrot.slane %v7627_v14, 2  ;;  %v8025_v14 = vld [vmem:[%s11021_s1 + $0x40] sm:$0xff]  }
  0x20   :  { %6433 = vmatpush3.bf16.msra.mxu0 %v7247_v33  ;;  %v448_v33 = vsel %vm390_vm0, %v446_v18, %v447_v19  ;;  %v459_v18 = vrot.slane %v7954_v48, 1  ;;  %v7978_v19 = vld [vmem:[%s11022_s0 + $0x150] sm:$0xff]  ;;  %11194 = vst [vmem:[#allocation13_spill] sm:$0xff] %v8004_v61  ;;  %11198 = vst [vmem:[#allocation17_spill] sm:$0xff] %v8025_v14 }
  0x21   :  { %6498 = vmatprep.subr.bf16.mxu0 %v7901_v6  ;;  %v7962_v60 = vpack.c.bf16 %v450_v39, %v448_v33  ;;  %6145 = vmatpush3.bf16.msra.mxu1 %v7250_v55  ;;  %v7992_v33 = vld [vmem:[%s11022_s0 + $0x160] sm:$0x3]  ;;  %v458_v39 = vsel %vm390_vm0, %v456_v12, %v457_v13  ;;  %v8011_v12 = vld [vmem:[%s11022_s0 + $0x178] sm:$0x3] }
  0x22   :  { %6083 = vmatmul.mubr.msk.bf16.gmra.mrb[8].mxu1 %vm680_vm1, %v7787_v8  ;;  %v460_v55 = vsel %vm390_vm0, %v457_v13, %v459_v18  ;;  %11195 = vst [vmem:[#allocation14_spill] sm:$0xff] %v8011_v12  ;;  %v8013_v13 = vpack.c.bf16 %v455_v21, %v453_v20  ;;  %v462_v18 = vrot.slane %v7987_v23, 1  ;;  %v467_v20 = vrot.slane %v8004_v61, 1  ;;  %v8035_v8 = vld [vmem:[%s11022_s0 + $0x188] sm:$0xff]  ;;  %6210 = vmatprep.subr.bf16.mxu1 %v8025_v14  ;;  %v202_v14 = vld [vmem:[%s11022_s0 + $0x1c0] sm:$0x3] }
  0x23   :  { %6371 = vmatmul.mubr.msk.bf16.gmra.mrb[8].mxu0 %vm680_vm1, %v7843_v34  ;;  %6086 = vmatprep.mubr.msk.bf16.mxu1 %vm680_vm1, %v7843_v34  ;;  %11193 = vst [vmem:[#allocation12_spill] sm:$0xff] %v7962_v60  ;;  %v466_v34 = vrot.slane %v7999_v59, 1  ;;  %v469_v21 = vrot.slane %v8011_v12, 1  ;;  %11200 = vst [vmem:[#allocation19_spill] sm:$0xff] %v8035_v8  ;;  %v2617_v12 = vrot.slane %v8040_v7, 1  ;;  %v8075_v61 = vld [vmem:[%s11022_s0 + $0x1c8] sm:$0xff] }
  0x24   :  { %6374 = vmatprep.mubr.msk.bf16.mxu0 %vm680_vm1, %v7845_v36  ;;  %11196 = vst [vmem:[#allocation15_spill] sm:$0xff] %v8013_v13  ;;  %11204 = vst [vmem:[#allocation23_spill] sm:$0xff] %v8075_v61  ;;  %v8091_v7 = vld [vmem:[%s11022_s0 + $0x1d8] sm:$0x3] }
  0x25   :  { %v470_v17 = vsel %vm390_vm0, %v467_v20, %v469_v21  ;;  %11208 = vst [vmem:[#allocation27_spill] sm:$0xff] %v8091_v7 }
  0x2a   :  { %6087 = vmatmul.mubr.msk.bf16.gmra.mrb[12].mxu1 %vm680_vm1, %v7845_v36  ;;  %v8027_v36 = vpack.c.bf16 %v460_v55, %v458_v39  ;;  %v1482_v39 = vrot.slane %v7632_v15, 2  ;;  %v8049_v55 = vld [vmem:[%s11022_s0 + $0x1b0] sm:$0xff]  ;;  %v8059_v15 = vld [vmem:[%s11022_s0 + $0x1b8] sm:$0xff] }
  0x2b   :  { %6375 = vmatmul.mubr.msk.bf16.gmra.mrb[12].mxu0 %vm680_vm1, %v7903_v9  ;;  %6090 = vmatprep.mubr.msk.bf16.mxu1 %vm680_vm1, %v7903_v9  ;;  %v8020_v9 = vld [vmem:[%s11022_s0 + $0x180] sm:$0xff]  ;;  %11202 = vst [vmem:[#allocation21_spill] sm:$0xff] %v8049_v55  ;;  %11203 = vst [vmem:[#allocation22_spill] sm:$0xff] %v8059_v15 }
  0x2c   :  { %6378 = vmatprep.mubr.msk.bf16.mxu0 %vm680_vm1, %v7905_v10  ;;  %11197 = vst [vmem:[#allocation16_spill] sm:$0xff] %v8020_v9  ;;  %11199 = vst [vmem:[#allocation18_spill] sm:$0xff] %v8027_v36  ;;  %v2614_v57 = vrot.slane %v8020_v9, 1  ;;  %v2615_v9 = vrot.slane %v8035_v8, 1  ;;  %v1484_v8 = vrot.slane %v7637_v16, 2 }
  0x32   :  { %6091 = vmatmul.mubr.msk.bf16.gmra.mrb[16].mxu1 %vm680_vm1, %v7905_v10  ;;  %v464_v10 = vrot.slane %v7992_v33, 1 }
  0x33   :  { %6379 = vmatmul.mubr.msk.bf16.gmra.mrb[16].mxu0 %vm680_vm1, %v7959_v56  ;;  %6094 = vmatprep.mubr.msk.bf16.mxu1 %vm680_vm1, %v7959_v56  ;;  %v461_v56 = vrot.slane %v7978_v19, 1 }
  0x34   :  { %6382 = vmatprep.mubr.msk.bf16.mxu0 %vm680_vm1, %v7962_v60  ;;  %v465_v47 = vsel %vm390_vm0, %v462_v18, %v464_v10  ;;  %v8081_v10 = vld [vmem:[%s11022_s0 + $0x1d0] sm:$0xff] }
  0x35   :  { %11205 = vst [vmem:[#allocation24_spill] sm:$0xff] %v8081_v10 }
  0x3a   :  { %6095 = vmatmul.mubr.msk.bf16.gmra.mrb[20].mxu1 %vm680_vm1, %v7962_v60  ;;  %v463_v60 = vsel %vm390_vm0, %v461_v56, %v462_v18  ;;  %v471_v56 = vrot.slane %v8049_v55, 1  ;;  %v8097_v55 = vld [vmem:[%s11022_s0 + $0x1e0] sm:$0xff] }
  0x3b   :  { %6383 = vmatmul.mubr.msk.bf16.gmra.mrb[20].mxu0 %vm680_vm1, %v8013_v13  ;;  %6098 = vmatprep.mubr.msk.bf16.mxu1 %vm680_vm1, %v8013_v13  ;;  %v468_v13 = vsel %vm390_vm0, %v466_v34, %v467_v20  ;;  %v8083_v18 = vpack.c.bf16 %v465_v47, %v463_v60  ;;  %v472_v34 = vrot.slane %v8059_v15, 1  ;;  %v474_v20 = vrot.slane %v202_v14, 1 }
  0x3c   :  { %6386 = vmatprep.mubr.msk.bf16.mxu0 %vm680_vm1, %v8027_v36  ;;  %v8086_v21 = vpack.c.bf16 %v470_v17, %v468_v13  ;;  %v2616_v47 = vsel %vm390_vm0, %v2614_v57, %v2615_v9  ;;  %v2618_v17 = vsel %vm390_vm0, %v2615_v9, %v2617_v12  ;;  %v476_v60 = vrot.slane %v8075_v61, 1  ;;  %v8107_v13 = vld [vmem:[%s11022_s0 + $0x1e8] sm:$0xff]  ;;  %v8120_v12 = vld [vmem:[%s11022_s0 + $0x1f0] sm:$0x3] }
  0x3d   :  { %11206 = vst [vmem:[#allocation25_spill] sm:$0xff] %v8083_v18  ;;  %11209 = vst [vmem:[#allocation28_spill] sm:$0xff] %v8107_v13  ;;  %v473_v16 = vsel %vm390_vm0, %v471_v56, %v472_v34  ;;  %v475_v14 = vsel %vm390_vm0, %v472_v34, %v474_v20  ;;  %v477_v57 = vrot.slane %v8081_v10, 1  ;;  %v479_v9 = vrot.slane %v8091_v7, 1  ;;  %v8133_v7 = vld [vmem:[%s11022_s0 + $0x1f8] sm:$0xff] }
  0x3e   :  { %11207 = vst [vmem:[#allocation26_spill] sm:$0xff] %v8086_v21  ;;  %11210 = vst [vmem:[#allocation29_spill] sm:$0xff] %v8120_v12  ;;  %v1487_v15 = vrot.slane %v7659_v26, 2  ;;  %v1489_v56 = vrot.slane %v7669_v30, 2  ;;  %v1483_v34 = vsel %vm1475_vm2, %v1481_v11, %v1482_v39  ;;  %v1485_v20 = vsel %vm1475_vm2, %v1482_v39, %v1484_v8  ;;  %v8142_v30 = vld [vmem:[%s11022_s0 + $0x200] sm:$0xff] }
  0x3f   :  { %v8135_v10 = vpack.c.bf16 %v2618_v17, %v2616_v47  ;;  %v482_v26 = vrot.slane %v8107_v13, 1  ;;  %v484_v61 = vrot.slane %v8120_v12, 1  ;;  %v8147_v8 = vld [vmem:[%s11022_s0 + $0x208] sm:$0x3]  ;;  %v478_v11 = vsel %vm390_vm0, %v476_v60, %v477_v57  ;;  %v8159_v12 = vld [vmem:[%s11022_s0 + $0x210] sm:$0xff]  ;;  %v8164_v13 = vld [vmem:[%s11022_s0 + $0x218] sm:$0xff] }
  0x40   :  { %11212 = vst [vmem:[#allocation31_spill] sm:$0xff] %v8147_v8  ;;  %v480_v39 = vsel %vm390_vm0, %v477_v57, %v479_v9  ;;  %v1491_v47 = vrot.slane %v7678_v35, 2  ;;  %v1492_v17 = vrot.slane %v7684_v37, 2  ;;  %11214 = vst [vmem:[#allocation33_spill] sm:$0xff] %v8159_v12  ;;  %v8170_v35 = vld [vmem:[%s11022_s0 + $0x220] sm:$0x3]  ;;  %v1490_v57 = vsel %vm1475_vm2, %v1487_v15, %v1489_v56 }
  0x41   :  { %11211 = vst [vmem:[#allocation30_spill] sm:$0xff] %v8135_v10  ;;  %11215 = vst [vmem:[#allocation34_spill] sm:$0xff] %v8164_v13  ;;  %v8175_v37 = vld [vmem:[%s11022_s0 + $0x228] sm:$0xff] }
  0x42   :  { %6099 = vmatmul.mubr.msk.bf16.gmra.mrb[24].mxu1 %vm680_vm1, %v8027_v36  ;;  %v1486_v36 = vrot.slane %v7654_v25, 2  ;;  %v631_v25 = vpack.c.bf16 %v475_v14, %v473_v16  ;;  %v8153_v16 = vpack.c.bf16 %v1485_v20, %v1483_v34  ;;  %v1494_v14 = vrot.slane %v7689_v38, 2  ;;  %11216 = vst [vmem:[#allocation35_spill] sm:$0xff] %v8170_v35  ;;  %v8187_v34 = vld [vmem:[%s11022_s0 + $0x230] sm:$0xff] }
  0x43   :  { %6387 = vmatmul.mubr.msk.bf16.gmra.mrb[24].mxu0 %vm680_vm1, %v8083_v18  ;;  %6102 = vmatprep.mubr.msk.bf16.mxu1 %vm680_vm1, %v8083_v18  ;;  %v481_v18 = vrot.slane %v8097_v55, 1  ;;  %v8179_v38 = vpack.c.bf16 %v480_v39, %v478_v11  ;;  %v485_v20 = vsel %vm390_vm0, %v482_v26, %v484_v61  ;;  %v1493_v11 = vsel %vm1475_vm2, %v1491_v47, %v1492_v17 }
  0x44   :  { %6390 = vmatprep.mubr.msk.bf16.mxu0 %vm680_vm1, %v8086_v21  ;;  %11213 = vst [vmem:[#allocation32_spill] sm:$0xff] %v8153_v16  ;;  %v1488_v60 = vsel %vm1475_vm2, %v1486_v36, %v1487_v15  ;;  %v486_v36 = vrot.slane %v8133_v7, 1  ;;  %v487_v15 = vrot.slane %v8142_v30, 1  ;;  %v1495_v56 = vsel %vm1475_vm2, %v1492_v17, %v1494_v14 }
  0x45   :  { %11217 = vst [vmem:[#allocation36_spill] sm:$0xff] %v8179_v38  ;;  %v483_v9 = vsel %vm390_vm0, %v481_v18, %v482_v26  ;;  %v489_v18 = vrot.slane %v8147_v8, 1  ;;  %v1496_v39 = vrot.slane %v7695_v40, 2  ;;  %v492_v61 = vrot.slane %v8164_v13, 1 }
  0x46   :  { %v494_v26 = vrot.slane %v8170_v35, 1  ;;  %v1501_v47 = vrot.slane %v7719_v50, 2  ;;  %v1502_v17 = vrot.slane %v7724_v51, 2  ;;  %v1504_v40 = vrot.slane %v7729_v52, 2  ;;  %v8227_v51 = vld [vmem:[%s11022_s0 + $0x240] sm:$0xff]  ;;  %v8232_v52 = vld [vmem:[%s11022_s0 + $0x248] sm:$0xff] }
  0x47   :  { %v8215_v14 = vpack.c.bf16 %v1490_v57, %v1488_v60  ;;  %v8217_v13 = vpack.c.bf16 %v485_v20, %v483_v9  ;;  %v8219_v35 = vpack.c.bf16 %v1495_v56, %v1493_v11  ;;  %v488_v50 = vsel %vm390_vm0, %v486_v36, %v487_v15  ;;  %v8241_v20 = vld [vmem:[%s11022_s0 + $0x250] sm:$0x3]  ;;  %v7251_v11 = vld [vmem:[%s11021_s1 + $0xc8] sm:$0xff]  }
  0x48   :  { %v495_v36 = vsel %vm390_vm0, %v492_v61, %v494_v26  ;;  %v1507_v56 = vrot.slane %v7760_v1, 2  ;;  %v504_v26 = vrot.slane %v8241_v20, 1  ;;  %v1514_v1 = vrot.slane %v7780_v5, 2 }
  0x49   :  { %11218 = vst [vmem:[#allocation37_spill] sm:$0xff] %v8215_v14  ;;  %11219 = vst [vmem:[#allocation38_spill] sm:$0xff] %v8217_v13 }
  0x4a   :  { %6103 = vmatmul.mubr.msk.bf16.gmra.mrb[28].mxu1 %vm680_vm1, %v8086_v21  ;;  %v1497_v21 = vrot.slane %v7704_v44, 2  ;;  %v496_v44 = vrot.slane %v8175_v37, 1  ;;  %11220 = vst [vmem:[#allocation39_spill] sm:$0xff] %v8219_v35 }
  0x4b   :  { %6391 = vmatmul.mubr.msk.bf16.gmra.mrb[28].mxu0 %vm680_vm1, %v8135_v10  ;;  %6106 = vmatprep.mubr.msk.bf16.mxu1 %vm680_vm1, %v631_v25  ;;  %v1499_v10 = vrot.slane %v7709_v45, 2  ;;  %v491_v25 = vrot.slane %v8159_v12, 1  ;;  %v497_v45 = vrot.slane %v8187_v34, 1  ;;  %v490_v12 = vsel %vm390_vm0, %v487_v15, %v489_v18 }
  0x4c   :  { %6434 = vmatprep.mubr.msk.bf16.mxu0 %vm680_vm1, %v8153_v16  ;;  %v8209_v16 = vld [vmem:[%s11022_s0 + $0x238] sm:$0x3]  ;;  %v1498_v60 = vsel %vm1475_vm2, %v1496_v39, %v1497_v21  ;;  %v1503_v15 = vsel %vm1475_vm2, %v1501_v47, %v1502_v17  ;;  %v1506_v18 = vrot.slane %v7751_v62, 2  ;;  %v1509_v39 = vrot.slane %v7765_v2, 2 }
  0x4d   :  { %v499_v8 = vrot.slane %v8209_v16, 1  ;;  %v1500_v57 = vsel %vm1475_vm2, %v1497_v21, %v1499_v10  ;;  %v493_v9 = vsel %vm390_vm0, %v491_v25, %v492_v61  ;;  %v1505_v10 = vsel %vm1475_vm2, %v1502_v17, %v1504_v40  ;;  %v8271_v2 = vld [vmem:[%s11022_s0 + $0x258] sm:$0xff] }
  0x4e   :  { %v498_v21 = vsel %vm390_vm0, %v496_v44, %v497_v45  ;;  %v501_v25 = vrot.slane %v8227_v51, 1  ;;  %v502_v61 = vrot.slane %v8232_v52, 1  ;;  %v1511_v47 = vrot.slane %v7770_v3, 2  ;;  %v8292_v44 = vld [vmem:[%s11022_s0 + $0x268] sm:$0x3] }
  0x4f   :  { %v500_v62 = vsel %vm390_vm0, %v497_v45, %v499_v8  ;;  %v1512_v17 = vrot.slane %v7775_v4, 2  ;;  %v7253_v8 = vld [vmem:[%s11021_s1 + $0xd0] sm:$0xff]   ;;  %v8281_v3 = vpack.c.bf16 %v490_v12, %v488_v50  ;;  %v8283_v4 = vpack.c.bf16 %v1500_v57, %v1498_v60  ;;  %v8307_v60 = vld [vmem:[%s11022_s0 + $0x278] sm:$0xff] }
  0x50   :  { %v8285_v5 = vpack.c.bf16 %v495_v36, %v493_v9  ;;  %v8287_v40 = vpack.c.bf16 %v1505_v10, %v1503_v15  ;;  %v8294_v45 = vpack.c.bf16 %v500_v62, %v498_v21  ;;  %v503_v12 = vsel %vm390_vm0, %v501_v25, %v502_v61  ;;  %v8302_v50 = vld [vmem:[%s11022_s0 + $0x270] sm:$0xff]  ;;  %v226_v10 = vld [vmem:[%s11022_s0 + $0x280] sm:$0x3]  ;;  %v7255_v25 = vld [vmem:[%s11021_s1 + $0xd8] sm:$0xff]  }
  0x51   :  { %11221 = vst [vmem:[#allocation40_spill] sm:$0xff] %v8281_v3  ;;  %11222 = vst [vmem:[#allocation41_spill] sm:$0xff] %v8283_v4  ;;  %v505_v57 = vsel %vm390_vm0, %v502_v61, %v504_v26  ;;  %v1513_v9 = vsel %vm1475_vm2, %v1511_v47, %v1512_v17  ;;  %v506_v36 = vrot.slane %v8271_v2, 1  ;;  %v1515_v21 = vsel %vm1475_vm2, %v1512_v17, %v1514_v1 }
  0x52   :  { %6107 = vmatmul.mubr.msk.bf16.gmra.mrb[32].mxu1 %vm680_vm1, %v8179_v38  ;;  %11223 = vst [vmem:[#allocation42_spill] sm:$0xff] %v8285_v5  ;;  %11224 = vst [vmem:[#allocation43_spill] sm:$0xff] %v8287_v40  ;;  %v1508_v38 = vsel %vm1475_vm2, %v1506_v18, %v1507_v56  ;;  %v509_v18 = vrot.slane %v8292_v44, 1  ;;  %v511_v62 = vrot.slane %v8302_v50, 1  ;;  %v512_v26 = vrot.slane %v8307_v60, 1 }
  0x53   :  { %6435 = vmatmul.mubr.msk.bf16.vlgmr.msra.gmra.mrb[0].mxu0 %vm680_vm1, %v8215_v14  ;;  %6110 = vmatprep.mubr.msk.bf16.mxu1 %vm680_vm1, %v8217_v13  ;;  %11225 = vst [vmem:[#allocation44_spill] sm:$0xff] %v8294_v45  ;;  %v1510_v13 = vsel %vm1475_vm2, %v1507_v56, %v1509_v39  ;;  %v1516_v56 = vrot.slane %v7811_v22, 2  ;;  %v1517_v39 = vrot.slane %v7818_v27, 2  ;;  %v514_v22 = vrot.slane %v226_v10, 1 }
  0x54   :  { %6499 = vmatpush3.bf16.msra.mxu0 %v7901_v6  ;;  %6438 = vmatprep.mubr.msk.bf16.mxu0 %vm680_vm1, %v8219_v35  ;;  %v8276_v6 = vld [vmem:[%s11022_s0 + $0x260] sm:$0xff]  ;;  %v8325_v61 = vpack.c.bf16 %v1510_v13, %v1508_v38  ;;  %v1586_v27 = vrot.slane %v8227_v51, 2  ;;  %v1587_v47 = vrot.slane %v8232_v52, 2  ;;  %v1589_v13 = vrot.slane %v8241_v20, 2  ;;  %v8354_v20 = vld [vmem:[%s11022_s0 + $0x290] sm:$0xff] }
  0x55   :  { %6500 = vmatprep.subr.bf16.mxu0 %v7251_v11  ;;  %v507_v15 = vrot.slane %v8276_v6, 1  ;;  %v8341_v38 = vpack.c.bf16 %v1515_v21, %v1513_v9 }
  0x56   :  { %11226 = vst [vmem:[#allocation45_spill] sm:$0xff] %v8325_v61 }
  0x57   :  { %11228 = vst [vmem:[#allocation47_spill] sm:$0xff] %v8341_v38  ;;  %v508_v17 = vsel %vm390_vm0, %v506_v36, %v507_v15  ;;  %v510_v1 = vsel %vm390_vm0, %v507_v15, %v509_v18  ;;  %v513_v36 = vsel %vm390_vm0, %v511_v62, %v512_v26  ;;  %v1521_v15 = vrot.slane %v7828_v29, 2 }
  0x58   :  { %6501 = vmatpush3.bf16.msra.mxu0 %v7251_v11  ;;  %v1519_v11 = vrot.slane %v7823_v28, 2  ;;  %v8339_v28 = vpack.c.bf16 %v505_v57, %v503_v12  ;;  %v1588_v12 = vsel %vm1475_vm2, %v1586_v27, %v1587_v47  ;;  %v1590_v57 = vsel %vm1475_vm2, %v1587_v47, %v1589_v13 }
  0x59   :  { %6502 = vmatprep.subr.bf16.mxu0 %v7253_v8  ;;  %v8366_v21 = vpack.c.bf16 %v1590_v57, %v1588_v12  ;;  %v515_v18 = vsel %vm390_vm0, %v512_v26, %v514_v22  ;;  %v1596_v27 = vrot.slane %v8302_v50, 2  ;;  %v1597_v47 = vrot.slane %v8307_v60, 2  ;;  %v8387_v12 = vld [vmem:[%s11022_s0 + $0x2a0] sm:$0xff] }
  0x5a   :  { %6111 = vmatmul.mubr.msk.bf16.gmra.mrb[36].mxu1 %vm680_vm1, %v8281_v3  ;;  %11227 = vst [vmem:[#allocation46_spill] sm:$0xff] %v8339_v28  ;;  %v8349_v3 = vld [vmem:[%s11022_s0 + $0x288] sm:$0xff]  ;;  %v1520_v9 = vsel %vm1475_vm2, %v1517_v39, %v1519_v11  ;;  %v1599_v13 = vrot.slane %v226_v10, 2  ;;  %v1524_v11 = vrot.slane %v7838_v32, 2  ;;  %v517_v62 = vrot.slane %v8354_v20, 1 }
  0x5b   :  { %6439 = vmatmul.mubr.msk.bf16.gmra.mrb[4].mxu0 %vm680_vm1, %v8283_v4  ;;  %6114 = vmatprep.mubr.msk.bf16.mxu1 %vm680_vm1, %v8285_v5  ;;  %v1518_v5 = vsel %vm1475_vm2, %v1516_v56, %v1517_v39  ;;  %v8372_v56 = vld [vmem:[%s11022_s0 + $0x298] sm:$0x3]  ;;  %v1522_v39 = vrot.slane %v7833_v31, 2  ;;  %v516_v29 = vrot.slane %v8349_v3, 1  ;;  %v8380_v26 = vpack.c.bf16 %v510_v1, %v508_v17  ;;  %v232_v17 = vld [vmem:[%s11022_s0 + $0x2b0] sm:$0x3] }
  0x5c   :  { %6442 = vmatprep.mubr.msk.bf16.mxu0 %vm680_vm1, %v8287_v40  ;;  %6503 = vmatpush3.bf16.msra.mxu0 %v7253_v8  ;;  %v8361_v8 = vld [vmem:[%s11021_s1 + $0xe0] sm:$0xff]   ;;  %v8382_v22 = vpack.c.bf16 %v1520_v9, %v1518_v5  ;;  %v1598_v10 = vsel %vm1475_vm2, %v1596_v27, %v1597_v47  ;;  %v1600_v31 = vsel %vm1475_vm2, %v1597_v47, %v1599_v13  ;;  %v8400_v5 = vld [vmem:[%s11022_s0 + $0x2a8] sm:$0xff]  ;;  %v1606_v57 = vrot.slane %v8387_v12, 2 }
  0x5d   :  { %6504 = vmatprep.subr.bf16.mxu0 %v7255_v25  ;;  %11229 = vst [vmem:[#allocation48_spill] sm:$0xff] %v8380_v26  ;;  %v8394_v32 = vpack.c.bf16 %v515_v18, %v513_v36  ;;  %v8405_v1 = vpack.c.bf16 %v1600_v31, %v1598_v10  ;;  %v1526_v9 = vrot.slane %v7862_v49, 2  ;;  %v1527_v36 = vrot.slane %v7867_v53, 2  ;;  %v8424_v49 = vld [vmem:[%s11022_s0 + $0x2d0] sm:$0xff] }
  0x5e   :  { %11230 = vst [vmem:[#allocation49_spill] sm:$0xff] %v8382_v22  ;;  %v1607_v18 = vrot.slane %v8400_v5, 2  ;;  %v1609_v27 = vrot.slane %v232_v17, 2  ;;  %v1523_v47 = vsel %vm1475_vm2, %v1521_v15, %v1522_v39  ;;  %v1525_v13 = vsel %vm1475_vm2, %v1522_v39, %v1524_v11 }
  0x5f   :  { %11231 = vst [vmem:[#allocation50_spill] sm:$0xff] %v8394_v32  ;;  %v518_v10 = vsel %vm390_vm0, %v516_v29, %v517_v62  ;;  %v1529_v31 = vrot.slane %v7872_v54, 2  ;;  %v521_v53 = vrot.slane %v8387_v12, 1  ;;  %v1616_v11 = vrot.slane %v8424_v49, 2 }
  0x60   :  { %6505 = vmatpush3.bf16.msra.mxu0 %v7255_v25  ;;  %v519_v25 = vrot.slane %v8372_v56, 1  ;;  %v1608_v15 = vsel %vm1475_vm2, %v1606_v57, %v1607_v18  ;;  %v1610_v39 = vsel %vm1475_vm2, %v1607_v18, %v1609_v27  ;;  %v522_v54 = vrot.slane %v8400_v5, 1  ;;  %v8451_v27 = vld [vmem:[%s11022_s0 + $0x300] sm:$0xff] }
  0x61   :  { %6570 = vmatprep.subr.bf16.mxu0 %v8361_v8  ;;  %v524_v29 = vrot.slane %v232_v17, 1  ;;  %v8444_v40 = vpack.c.bf16 %v1525_v13, %v1523_v47  ;;  %v1528_v18 = vsel %vm1475_vm2, %v1526_v9, %v1527_v36  ;;  %v1531_v4 = vrot.slane %v7881_v58, 2  ;;  %v8460_v47 = vld [vmem:[%s11022_s0 + $0x308] sm:$0xff] }
  0x62   :  { %6115 = vmatmul.mubr.msk.bf16.gmra.mrb[40].mxu1 %vm680_vm1, %v8294_v45  ;;  %v8439_v45 = vld [vmem:[%s11022_s0 + $0x2e0] sm:$0x3]  ;;  %v520_v57 = vsel %vm390_vm0, %v517_v62, %v519_v25  ;;  %v8465_v62 = vld [vmem:[%s11022_s0 + $0x310] sm:$0x3]  ;;  %v1626_v58 = vrot.slane %v8451_v27, 2  ;;  %v1530_v13 = vsel %vm1475_vm2, %v1527_v36, %v1529_v31  ;;  %v523_v35 = vsel %vm390_vm0, %v521_v53, %v522_v54 }
  0x63   :  { %6443 = vmatmul.mubr.msk.bf16.gmra.mrb[8].mxu0 %vm680_vm1, %v8325_v61  ;;  %6118 = vmatprep.mubr.msk.bf16.mxu1 %vm680_vm1, %v8339_v28  ;;  %v8430_v28 = vld [vmem:[%s11022_s0 + $0x2d8] sm:$0xff]  ;;  %11232 = vst [vmem:[#allocation51_spill] sm:$0xff] %v8444_v40  ;;  %v1619_v17 = vrot.slane %v8439_v45, 2  ;;  %v525_v14 = vsel %vm390_vm0, %v522_v54, %v524_v29  ;;  %v8496_v36 = vld [vmem:[%s11022_s0 + $0x2c8] sm:$0x3]  ;;  %v8502_v54 = vpack.c.bf16 %v520_v57, %v518_v10  ;;  %v1537_v10 = vrot.slane %v7934_v41, 2 }
  0x64   :  { %6446 = vmatprep.mubr.msk.bf16.mxu0 %vm680_vm1, %v8341_v38  ;;  %v8441_v38 = vpack.c.bf16 %v1610_v39, %v1608_v15  ;;  %v1617_v61 = vrot.slane %v8430_v28, 2  ;;  %v1532_v15 = vrot.slane %v7891_v63, 2  ;;  %v1534_v39 = vrot.slane %v7896_v0, 2 }
  0x65   :  { %v1627_v63 = vrot.slane %v8460_v47, 2  ;;  %v1629_v0 = vrot.slane %v8465_v62, 2  ;;  %11234 = vst [vmem:[#allocation53_spill] sm:$0xff] %v8502_v54  ;;  %v1544_v41 = vrot.slane %v7954_v48, 2 }
  0x66   :  { %v1618_v25 = vsel %vm1475_vm2, %v1616_v11, %v1617_v61  ;;  %v1620_v9 = vsel %vm1475_vm2, %v1617_v61, %v1619_v17  ;;  %v8480_v11 = vld [vmem:[%s11022_s0 + $0x2b8] sm:$0xff]  ;;  %v8485_v61 = vld [vmem:[%s11022_s0 + $0x2c0] sm:$0xff]  ;;  %v1533_v29 = vsel %vm1475_vm2, %v1531_v4, %v1532_v15  ;;  %v1539_v4 = vrot.slane %v7939_v42, 2 }
  0x67   :  { %v8487_v17 = vpack.c.bf16 %v1620_v9, %v1618_v25  ;;  %v1628_v31 = vsel %vm1475_vm2, %v1626_v58, %v1627_v63  ;;  %v1630_v53 = vsel %vm1475_vm2, %v1627_v63, %v1629_v0  ;;  %v1535_v25 = vsel %vm1475_vm2, %v1532_v15, %v1534_v39 }
  0x68   :  { %v8506_v9 = vpack.c.bf16 %v1630_v53, %v1628_v31  ;;  %v527_v58 = vrot.slane %v8485_v61, 1  ;;  %v529_v63 = vrot.slane %v8496_v36, 1  ;;  %v1536_v0 = vrot.slane %v7927_v24, 2 }
  0x69   :  { %11233 = vst [vmem:[#allocation52_spill] sm:$0xff] %v8487_v17  ;;  %v8518_v57 = vpack.c.bf16 %v1535_v25, %v1533_v29  ;;  %v531_v15 = vrot.slane %v8424_v49, 1  ;;  %v1542_v39 = vrot.slane %v7949_v46, 2  ;;  %v8531_v24 = vpack.c.bf16 %v8232_v52, %v8227_v51 }
  0x6a   :  { %6119 = vmatmul.mubr.msk.bf16.gmra.mrb[44].mxu1 %vm680_vm1, %v8380_v26  ;;  %11235 = vst [vmem:[#allocation54_spill] sm:$0xff] %v8506_v9  ;;  %v8510_v26 = vpack.c.bf16 %v525_v14, %v523_v35  ;;  %v534_v35 = vrot.slane %v8439_v45, 1  ;;  %v1541_v14 = vrot.slane %v7944_v43, 2  ;;  %v8536_v42 = vpack.c.bf16 %v8276_v6, %v8271_v2 }
  0x6b   :  { %6447 = vmatmul.mubr.msk.bf16.gmra.mrb[12].mxu0 %vm680_vm1, %v8382_v22  ;;  %6122 = vmatprep.mubr.msk.bf16.mxu1 %vm680_vm1, %v8394_v32  ;;  %v8508_v32 = vpack.c.bf16 %v1530_v13, %v1528_v18  ;;  %v526_v22 = vrot.slane %v8480_v11, 1  ;;  %11238 = vst [vmem:[#allocation57_spill] sm:$0xff] %v8518_v57  ;;  %v532_v18 = vrot.slane %v8430_v28, 1  ;;  %v8527_v13 = vpack.c.bf16 %v8187_v34, %v8175_v37 }
  0x6c   :  { %6450 = vmatprep.mubr.msk.bf16.mxu0 %vm680_vm1, %v8444_v40  ;;  %11237 = vst [vmem:[#allocation56_spill] sm:$0xff] %v8510_v26  ;;  %v8540_v45 = vpack.c.bf16 %v8307_v60, %v8302_v50  ;;  %v8544_v43 = vpack.c.bf16 %v8354_v20, %v8349_v3  ;;  %v530_v51 = vsel %vm390_vm0, %v527_v58, %v529_v63  ;;  %v8559_v50 = vld [vmem:[%s11022_s0 + $0x2e8] sm:$0xff]  ;;  %v8564_v60 = vld [vmem:[%s11022_s0 + $0x2f0] sm:$0xff] }
  0x6d   :  { %11236 = vst [vmem:[#allocation55_spill] sm:$0xff] %v8508_v32  ;;  %v528_v46 = vsel %vm390_vm0, %v526_v22, %v527_v58  ;;  %v1538_v48 = vsel %vm1475_vm2, %v1536_v0, %v1537_v10  ;;  %v1540_v52 = vsel %vm1475_vm2, %v1537_v10, %v1539_v4  ;;  %v8569_v22 = vld [vmem:[%s11022_s0 + $0x2f8] sm:$0x3]  ;;  %v8573_v31 = vpack.c.bf16 %v8400_v5, %v8387_v12 }
  0x6e   :  { %11239 = vst [vmem:[#allocation58_spill] sm:$0xff] %v8544_v43  ;;  %v533_v53 = vsel %vm390_vm0, %v531_v15, %v532_v18  ;;  %v535_v29 = vsel %vm390_vm0, %v532_v18, %v534_v35  ;;  %v8581_v25 = vpack.c.bf16 %v8485_v61, %v8480_v11  ;;  %v8583_v58 = vpack.c.bf16 %v530_v51, %v528_v46 }
  0x6f   :  { %11240 = vst [vmem:[#allocation59_spill] sm:$0xff] %v8573_v31  ;;  %v1543_v63 = vsel %vm1475_vm2, %v1541_v14, %v1542_v39  ;;  %v1545_v0 = vsel %vm1475_vm2, %v1542_v39, %v1544_v41  ;;  %v8587_v10 = vpack.c.bf16 %v1540_v52, %v1538_v48  ;;  %v536_v12 = vrot.slane %v8559_v50, 1  ;;  %v11246_v52 = vld [vmem:[#allocation13_spill] sm:$0xff] }
  0x70   :  { %11241 = vst [vmem:[#allocation60_spill] sm:$0xff] %v8581_v25  ;;  %11242 = vst [vmem:[#allocation61_spill] sm:$0xff] %v8583_v58  ;;  %v537_v5 = vrot.slane %v8564_v60, 1  ;;  %v539_v4 = vrot.slane %v8569_v22, 1  ;;  %v8592_v15 = vpack.c.bf16 %v535_v29, %v533_v53  ;;  %v1546_v18 = vrot.slane %v7978_v19, 2  ;;  %v11247_v53 = vld [vmem:[#allocation14_spill] sm:$0xff] }
  0x71   :  { %11243 = vst [vmem:[#allocation62_spill] sm:$0xff] %v8587_v10  ;;  %v1547_v35 = vrot.slane %v7987_v23, 2  ;;  %v1549_v46 = vrot.slane %v7992_v33, 2  ;;  %v8597_v51 = vpack.c.bf16 %v1545_v0, %v1543_v63  ;;  %v541_v14 = vrot.slane %v8451_v27, 1 }
  0x72   :  { %6123 = vmatmul.mubr.msk.bf16.gmra.mrb[48].mxu1 %vm680_vm1, %v8502_v54  ;;  %11244 = vst [vmem:[#allocation63_spill] sm:$0xff] %v8592_v15  ;;  %v542_v39 = vrot.slane %v8460_v47, 1  ;;  %v544_v41 = vrot.slane %v8465_v62, 1  ;;  %v1551_v48 = vrot.slane %v7999_v59, 2  ;;  %v1554_v29 = vrot.slane %v11247_v53, 2  ;;  %v11255_v54 = vld [vmem:[#allocation19_spill] sm:$0xff] }
  0x73   :  { %6451 = vmatmul.mubr.msk.bf16.gmra.mrb[16].mxu0 %vm680_vm1, %v8508_v32  ;;  %6126 = vmatprep.mubr.msk.bf16.mxu1 %vm680_vm1, %v8510_v26  ;;  %11245 = vst [vmem:[#allocation64_spill] sm:$0xff] %v8597_v51  ;;  %v1552_v26 = vrot.slane %v11246_v52, 2  ;;  %v538_v19 = vsel %vm390_vm0, %v536_v12, %v537_v5  ;;  %v540_v23 = vsel %vm390_vm0, %v537_v5, %v539_v4  ;;  %v8626_v12 = vld [vmem:[%s11022_s0 + $0x318] sm:$0xff]  ;;  %v8631_v5 = vld [vmem:[%s11022_s0 + $0x320] sm:$0xff] }
  0x74   :  { %6454 = vmatprep.mubr.msk.bf16.mxu0 %vm680_vm1, %v8518_v57  ;;  %v1548_v33 = vsel %vm1475_vm2, %v1546_v18, %v1547_v35  ;;  %v1550_v59 = vsel %vm1475_vm2, %v1547_v35, %v1549_v46  ;;  %v8617_v62 = vpack.c.bf16 %v8430_v28, %v8424_v49  ;;  %v543_v63 = vsel %vm390_vm0, %v541_v14, %v542_v39  ;;  %v8636_v28 = vld [vmem:[%s11022_s0 + $0x328] sm:$0x3] }
  0x75   :  { %v545_v0 = vsel %vm390_vm0, %v542_v39, %v544_v41  ;;  %v8640_v49 = vpack.c.bf16 %v8564_v60, %v8559_v50  ;;  %v1553_v4 = vsel %vm1475_vm2, %v1551_v48, %v1552_v26  ;;  %v1555_v18 = vsel %vm1475_vm2, %v1552_v26, %v1554_v29  ;;  %v11257_v29 = vld [vmem:[#allocation23_spill] sm:$0xff] }
  0x76   :  { %11248 = vst [vmem:[#allocation13_spill] sm:$0xff] %v8617_v62  ;;  %v8644_v35 = vpack.c.bf16 %v540_v23, %v538_v19  ;;  %v8646_v46 = vpack.c.bf16 %v1550_v59, %v1548_v33  ;;  %v8648_v14 = vpack.c.bf16 %v545_v0, %v543_v63  ;;  %v546_v39 = vrot.slane %v8626_v12, 1  ;;  %v11258_v23 = vld [vmem:[#allocation24_spill] sm:$0xff]  ;;  %v11259_v59 = vld [vmem:[#allocation27_spill] sm:$0xff] }
  0x77   :  { %11249 = vst [vmem:[#allocation14_spill] sm:$0xff] %v8640_v49  ;;  %v547_v41 = vrot.slane %v8631_v5, 1  ;;  %v549_v52 = vrot.slane %v8636_v28, 1  ;;  %v8653_v53 = vpack.c.bf16 %v1555_v18, %v1553_v4  ;;  %v3023_v48 = vrot.slane %v11255_v54, 2 }
  0x78   :  { %11250 = vst [vmem:[#allocation65_spill] sm:$0xff] %v8644_v35  ;;  %11251 = vst [vmem:[#allocation66_spill] sm:$0xff] %v8646_v46  ;;  %v1561_v19 = vrot.slane %v11257_v29, 2  ;;  %v1562_v33 = vrot.slane %v11258_v23, 2  ;;  %v1564_v63 = vrot.slane %v11259_v59, 2  ;;  %v8679_v18 = vpack.c.bf16 %v8631_v5, %v8626_v12 }
  0x79   :  { %11252 = vst [vmem:[#allocation67_spill] sm:$0xff] %v8648_v14  ;;  %11253 = vst [vmem:[#allocation68_spill] sm:$0xff] %v8653_v53  ;;  %v550_v54 = vsel %vm390_vm0, %v547_v41, %v549_v52 }
  0x7a   :  { %6127 = vmatmul.mubr.msk.bf16.gmra.mrb[52].mxu1 %vm680_vm1, %v8583_v58  ;;  %11261 = vst [vmem:[#allocation19_spill] sm:$0xff] %v8679_v18  ;;  %v1563_v59 = vsel %vm1475_vm2, %v1561_v19, %v1562_v33  ;;  %v11265_v19 = vld [vmem:[#allocation28_spill] sm:$0xff] }
  0x7b   :  { %6455 = vmatmul.mubr.msk.bf16.gmra.mrb[20].mxu0 %vm680_vm1, %v8587_v10  ;;  %6130 = vmatprep.mubr.msk.bf16.mxu1 %vm680_vm1, %v8592_v15  ;;  %v11254_v15 = vld [vmem:[#allocation16_spill] sm:$0xff] }
  0x7c   :  { %6458 = vmatprep.mubr.msk.bf16.mxu0 %vm680_vm1, %v8597_v51  ;;  %v3022_v58 = vrot.slane %v11254_v15, 2  ;;  %v11256_v51 = vld [vmem:[#allocation20_spill] sm:$0xff]  ;;  %v548_v15 = vsel %vm390_vm0, %v546_v39, %v547_v41  ;;  %v1565_v39 = vsel %vm1475_vm2, %v1562_v33, %v1564_v63  ;;  %v1567_v33 = vrot.slane %v11265_v19, 2  ;;  %v11266_v63 = vld [vmem:[#allocation29_spill] sm:$0xff] }
  0x7d   :  { %v3025_v26 = vrot.slane %v11256_v51, 2  ;;  %v8671_v51 = vpack.c.bf16 %v8460_v47, %v8451_v27  ;;  %v8683_v41 = vpack.c.bf16 %v550_v54, %v548_v15  ;;  %v8690_v27 = vld [vmem:[%s11022_s0] sm:$0xff]  ;;  %v8695_v47 = vld [vmem:[%s11022_s0 + $0x8] sm:$0xff]  ;;  %v1569_v15 = vrot.slane %v11266_v63, 2 }
  0x7e   :  { %v3024_v0 = vsel %vm1475_vm2, %v3022_v58, %v3023_v48  ;;  %v254_v58 = vpack.c.bf16 %v8695_v47, %v8690_v27  ;;  %v1571_v54 = vrot.slane %v8133_v7, 2 }
  0x7f   :  { %11260 = vst [vmem:[#allocation16_spill] sm:$0xff] %v8671_v51  ;;  %v3026_v4 = vsel %vm1475_vm2, %v3023_v48, %v3025_v26  ;;  %11262 = vst [vmem:[#allocation20_spill] sm:$0xff] %v8683_v41  ;;  %v8699_v48 = vpack.c.bf16 %v1565_v39, %v1563_v59  ;;  %v1566_v26 = vrot.slane %v8097_v55, 2  ;;  %v1570_v39 = vsel %vm1475_vm2, %v1567_v33, %v1569_v15  ;;  %v11269_v15 = vld [vmem:[#allocation34_spill] sm:$0xff] }
  0x80   :  { %v8685_v52 = vpack.c.bf16 %v3026_v4, %v3024_v0  ;;  %v1572_v0 = vrot.slane %v8142_v30, 2  ;;  %v11267_v4 = vld [vmem:[#allocation31_spill] sm:$0xff] }
  0x81   :  { %11264 = vst [vmem:[#allocation24_spill] sm:$0xff] %v8699_v48  ;;  %v1568_v59 = vsel %vm1475_vm2, %v1566_v26, %v1567_v33  ;;  %v11268_v26 = vld [vmem:[#allocation33_spill] sm:$0xff] }
  0x82   :  { %6131 = vmatmul.mubr.msk.bf16.gmra.mrb[56].mxu1 %vm680_vm1, %v8644_v35  ;;  %11263 = vst [vmem:[#allocation23_spill] sm:$0xff] %v8685_v52  ;;  %v1573_v63 = vsel %vm1475_vm2, %v1571_v54, %v1572_v0  ;;  %v1576_v33 = vrot.slane %v11268_v26, 2  ;;  %v1577_v54 = vrot.slane %v11269_v15, 2 }
  0x83   :  { %6459 = vmatmul.mubr.msk.bf16.gmra.mrb[24].mxu0 %vm680_vm1, %v8646_v46  ;;  %6134 = vmatprep.mubr.msk.bf16.mxu1 %vm680_vm1, %v8648_v14  ;;  %v1574_v14 = vrot.slane %v11267_v4, 2  ;;  %v8718_v4 = vpack.c.bf16 %v1570_v39, %v1568_v59  ;;  %v1582_v59 = vrot.slane %v8187_v34, 2  ;;  %v1584_v39 = vrot.slane %v8209_v16, 2  ;;  %v7254_v46 = vld [vmem:[%s11021_s1 + $0x48] sm:$0xff]   ;;  %v7256_v34 = vld [vmem:[%s11021_s1 + $0x50] sm:$0xff]  }
  0x84   :  { %6462 = vmatprep.mubr.msk.bf16.mxu0 %vm680_vm1, %v8653_v53  ;;  %v11270_v53 = vld [vmem:[#allocation35_spill] sm:$0xff]  ;;  %v1578_v16 = vsel %vm1475_vm2, %v1576_v33, %v1577_v54 }
  0x85   :  { %v1575_v35 = vsel %vm1475_vm2, %v1572_v0, %v1574_v14  ;;  %v1579_v14 = vrot.slane %v11270_v53, 2  ;;  %v1581_v0 = vrot.slane %v8175_v37, 2 }
  0x87   :  { %v1580_v37 = vsel %vm1475_vm2, %v1577_v54, %v1579_v14  ;;  %v1583_v53 = vsel %vm1475_vm2, %v1581_v0, %v1582_v59  ;;  %v7532_v14 = vld [vmem:[%s11022_s0 + $0x60] sm:$0xff]  ;;  %v7533_v0 = vld [vmem:[%s11022_s0 + $0x68] sm:$0xff] }
  0x88   :  { %v8763_v54 = vpack.c.bf16 %v1580_v37, %v1578_v16  ;;  %v1594_v16 = vrot.slane %v8292_v44, 2  ;;  %v7258_v37 = vld [vmem:[%s11021_s1 + $0x58] sm:$0xff]   ;;  %v8794_v44 = vld [vmem:[%s11021_s1 + $0x60] sm:$0xff]  }
  0x8a   :  { %6135 = vmatmul.mubr.msk.bf16.gmra.mrb[60].mxu1 %vm680_vm1, %v8683_v41  ;;  %v7528_v41 = vld [vmem:[%s11022_s0 + $0x30] sm:$0xff] }
  0x8b   :  { %6463 = vmatmul.mubr.msk.bf16.gmra.mrb[28].mxu0 %vm680_vm1, %v8685_v52  ;;  %6146 = vmatprep.mubr.msk.bf16.mxu1 %vm680_vm1, %v254_v58  ;;  %v7529_v58 = vld [vmem:[%s11022_s0 + $0x38] sm:$0xff] }
  0x8c   :  { %6466 = vmatprep.mubr.msk.bf16.mxu0 %vm680_vm1, %v8699_v48  ;;  %v8726_v52 = vpack.c.bf16 %v7529_v58, %v7528_v41  ;;  %v8728_v48 = vpack.c.bf16 %v1575_v35, %v1573_v63  ;;  %v11271_v41 = vld [vmem:[#allocation2_spill] sm:$0xff]  ;;  %v11272_v35 = vld [vmem:[#allocation17_spill] sm:$0xff]  ;;  %v1585_v63 = vsel %vm1475_vm2, %v1582_v59, %v1584_v39  ;;  %v7530_v58 = vld [vmem:[%s11022_s0 + $0x48] sm:$0xff]  ;;  %v8771_v59 = vpack.c.bf16 %v7533_v0, %v7532_v14 }
  0x8d   :  { %v8773_v39 = vpack.c.bf16 %v1585_v63, %v1583_v53  ;;  %v7535_v53 = vld [vmem:[%s11022_s0 + $0x80] sm:$0xff]  ;;  %v1601_v0 = vrot.slane %v8349_v3, 2 }
  0x92   :  { %6147 = vmatmul.mubr.msk.bf16.vlgmr.msra.gmra.mrb[0].mxu1 %vm680_vm1, %v11271_v41  ;;  %v1591_v41 = vrot.slane %v8271_v2, 2 }
  0x93   :  { %6467 = vmatmul.mubr.msk.bf16.gmra.mrb[32].mxu0 %vm680_vm1, %v8718_v4  ;;  %6211 = vmatpush3.bf16.msra.mxu1 %v11272_v35  ;;  %v7531_v35 = vld [vmem:[%s11022_s0 + $0x50] sm:$0xff] }
  0x94   :  { %6150 = vmatprep.mubr.msk.bf16.mxu1 %vm680_vm1, %v8726_v52  ;;  %6470 = vmatprep.mubr.msk.bf16.mxu0 %vm680_vm1, %v8728_v48  ;;  %v8761_v33 = vpack.c.bf16 %v7531_v35, %v7530_v58  ;;  %v1592_v58 = vrot.slane %v8276_v6, 2 }
  0x95   :  { %6212 = vmatprep.subr.bf16.mxu1 %v7254_v46 }
  0x96   :  { %v1593_v2 = vsel %vm1475_vm2, %v1591_v41, %v1592_v58  ;;  %v1595_v6 = vsel %vm1475_vm2, %v1592_v58, %v1594_v16  ;;  %v7536_v41 = vld [vmem:[%s11022_s0 + $0x90] sm:$0xff]  ;;  %v1602_v58 = vrot.slane %v8354_v20, 2  ;;  %v1604_v16 = vrot.slane %v8372_v56, 2  ;;  %v7538_v56 = vld [vmem:[%s11022_s0 + $0xa8] sm:$0xff] }
  0x97   :  { %6213 = vmatpush3.bf16.msra.mxu1 %v7254_v46  ;;  %v7534_v46 = vld [vmem:[%s11022_s0 + $0x78] sm:$0xff]  ;;  %v8812_v14 = vpack.c.bf16 %v1595_v6, %v1593_v2  ;;  %v7540_v6 = vld [vmem:[%s11022_s0 + $0xc0] sm:$0xff] }
  0x98   :  { %6214 = vmatprep.subr.bf16.mxu1 %v7256_v34  ;;  %v8802_v63 = vpack.c.bf16 %v7535_v53, %v7534_v46  ;;  %v1603_v3 = vsel %vm1475_vm2, %v1601_v0, %v1602_v58  ;;  %v1605_v20 = vsel %vm1475_vm2, %v1602_v58, %v1604_v16  ;;  %v7541_v46 = vld [vmem:[%s11022_s0 + $0xc8] sm:$0xff]  ;;  %v1612_v0 = vrot.slane %v8485_v61, 2  ;;  %v7542_v61 = vld [vmem:[%s11022_s0 + $0xd8] sm:$0xff] }
  0x99   :  { %v8842_v53 = vpack.c.bf16 %v7541_v46, %v7540_v6  ;;  %v1614_v58 = vrot.slane %v8496_v36, 2  ;;  %v7543_v36 = vld [vmem:[%s11022_s0 + $0xe0] sm:$0xff]  ;;  %v1621_v46 = vrot.slane %v8559_v50, 2 }
  0x9a   :  { %6151 = vmatmul.mubr.msk.bf16.gmra.mrb[4].mxu1 %vm680_vm1, %v8761_v33 }
  0x9b   :  { %6471 = vmatmul.mubr.msk.bf16.gmra.mrb[36].mxu0 %vm680_vm1, %v8763_v54  ;;  %6154 = vmatprep.mubr.msk.bf16.mxu1 %vm680_vm1, %v8771_v59 }
  0x9c   :  { %6474 = vmatprep.mubr.msk.bf16.mxu0 %vm680_vm1, %v8773_v39  ;;  %6215 = vmatpush3.bf16.msra.mxu1 %v7256_v34  ;;  %v7537_v34 = vld [vmem:[%s11022_s0 + $0x98] sm:$0xff] }
  0x9d   :  { %6216 = vmatprep.subr.bf16.mxu1 %v7258_v37  ;;  %v8810_v35 = vpack.c.bf16 %v7537_v34, %v7536_v41  ;;  %v8844_v41 = vpack.c.bf16 %v1605_v20, %v1603_v3  ;;  %v1611_v34 = vrot.slane %v8480_v11, 2  ;;  %v1615_v11 = vsel %vm1475_vm2, %v1612_v0, %v1614_v58  ;;  %v7544_v20 = vld [vmem:[%s11022_s0 + $0xf0] sm:$0xff] }
  0x9e   :  { %v8865_v3 = vpack.c.bf16 %v7543_v36, %v7542_v61  ;;  %v7549_v61 = vld [vmem:[%s11022_s0 + $0x128] sm:$0xff] }
  0x9f   :  { %v1613_v16 = vsel %vm1475_vm2, %v1611_v34, %v1612_v0  ;;  %v1622_v34 = vrot.slane %v8564_v60, 2  ;;  %v1624_v0 = vrot.slane %v8569_v22, 2  ;;  %v7546_v60 = vld [vmem:[%s11022_s0 + $0x108] sm:$0xff]  ;;  %v7547_v22 = vld [vmem:[%s11022_s0 + $0x110] sm:$0xff] }
  0xa0   :  { %6217 = vmatpush3.bf16.msra.mxu1 %v7258_v37  ;;  %v7539_v37 = vld [vmem:[%s11022_s0 + $0xb0] sm:$0xff]  ;;  %v8875_v6 = vpack.c.bf16 %v1615_v11, %v1613_v16  ;;  %v8896_v16 = vpack.c.bf16 %v7547_v22, %v7546_v60  ;;  %v7548_v11 = vld [vmem:[%s11022_s0 + $0x120] sm:$0xff] }
  0xa1   :  { %6282 = vmatprep.subr.bf16.mxu1 %v8794_v44  ;;  %v8834_v2 = vpack.c.bf16 %v7539_v37, %v7538_v56  ;;  %v7545_v56 = vld [vmem:[%s11022_s0 + $0xf8] sm:$0xff]  ;;  %v1623_v58 = vsel %vm1475_vm2, %v1621_v46, %v1622_v34  ;;  %v1625_v50 = vsel %vm1475_vm2, %v1622_v34, %v1624_v0  ;;  %v8904_v36 = vpack.c.bf16 %v7549_v61, %v7548_v11  ;;  %v7551_v60 = vld [vmem:[%s11022_s0 + $0x140] sm:$0xff]  ;;  %v7552_v11 = vld [vmem:[%s11022_s0 + $0x150] sm:$0xff] }
  0xa2   :  { %6155 = vmatmul.mubr.msk.bf16.gmra.mrb[8].mxu1 %vm680_vm1, %v8802_v63  ;;  %v8873_v37 = vpack.c.bf16 %v7545_v56, %v7544_v20  ;;  %11273 = vst [vmem:[#allocation27_spill] sm:$0xff] %v8875_v6  ;;  %v8906_v20 = vpack.c.bf16 %v1625_v50, %v1623_v58  ;;  %v1631_v56 = vrot.slane %v8626_v12, 2  ;;  %v1632_v46 = vrot.slane %v8631_v5, 2  ;;  %v8924_v5 = vld [vmem:[%s11022_s0 + $0x330] sm:$0xff]  ;;  %v8934_v58 = vld [vmem:[%s11022_s0 + $0x340] sm:$0x3] }
  0xa3   :  { %6475 = vmatmul.mubr.msk.bf16.gmra.mrb[40].mxu0 %vm680_vm1, %v8366_v21  ;;  %6158 = vmatprep.mubr.msk.bf16.mxu1 %vm680_vm1, %v8810_v35  ;;  %v1634_v34 = vrot.slane %v8636_v28, 2  ;;  %v8929_v28 = vld [vmem:[%s11022_s0 + $0x338] sm:$0xff]  ;;  %11275 = vst [vmem:[#allocation29_spill] sm:$0xff] %v8934_v58 }
  0xa4   :  { %6478 = vmatprep.mubr.msk.bf16.mxu0 %vm680_vm1, %v8812_v14  ;;  %11274 = vst [vmem:[#allocation28_spill] sm:$0xff] %v8906_v20  ;;  %v1633_v0 = vsel %vm1475_vm2, %v1631_v56, %v1632_v46  ;;  %v7550_v50 = vld [vmem:[%s11022_s0 + $0x138] sm:$0xff] }
  0xa5   :  { %v1635_v12 = vsel %vm1475_vm2, %v1632_v46, %v1634_v34  ;;  %v8942_v22 = vpack.c.bf16 %v7551_v60, %v7550_v50  ;;  %v7553_v61 = vld [vmem:[%s11022_s0 + $0x158] sm:$0xff]  ;;  %v3027_v34 = vrot.slane %v8924_v5, 2  ;;  %v7554_v50 = vld [vmem:[%s11022_s0 + $0x168] sm:$0xff]  ;;  %v7555_v60 = vld [vmem:[%s11022_s0 + $0x170] sm:$0xff] }
  0xa6   :  { %v8950_v56 = vpack.c.bf16 %v7553_v61, %v7552_v11  ;;  %v8952_v46 = vpack.c.bf16 %v1635_v12, %v1633_v0  ;;  %v8973_v11 = vpack.c.bf16 %v7555_v60, %v7554_v50 }
  0xaa   :  { %6159 = vmatmul.mubr.msk.bf16.gmra.mrb[12].mxu1 %vm680_vm1, %v8834_v2 }
  0xab   :  { %6479 = vmatmul.mubr.msk.bf16.gmra.mrb[44].mxu0 %vm680_vm1, %v8405_v1  ;;  %6162 = vmatprep.mubr.msk.bf16.mxu1 %vm680_vm1, %v8842_v53 }
  0xac   :  { %6482 = vmatprep.mubr.msk.bf16.mxu0 %vm680_vm1, %v8844_v41 }
  0xb2   :  { %6163 = vmatmul.mubr.msk.bf16.gmra.mrb[16].mxu1 %vm680_vm1, %v8865_v3 }
  0xb3   :  { %6483 = vmatmul.mubr.msk.bf16.gmra.mrb[48].mxu0 %vm680_vm1, %v8441_v38  ;;  %6166 = vmatprep.mubr.msk.bf16.mxu1 %vm680_vm1, %v8873_v37 }
  0xb4   :  { %6486 = vmatprep.mubr.msk.bf16.mxu0 %vm680_vm1, %v8875_v6 }
  0xba   :  { %6167 = vmatmul.mubr.msk.bf16.gmra.mrb[20].mxu1 %vm680_vm1, %v8896_v16 }
  0xbb   :  { %6487 = vmatmul.mubr.msk.bf16.gmra.mrb[52].mxu0 %vm680_vm1, %v8487_v17  ;;  %6170 = vmatprep.mubr.msk.bf16.mxu1 %vm680_vm1, %v8904_v36  ;;  %v3030_v17 = vrot.slane %v8934_v58, 2  ;;  %v11277_v58 = vld [vmem:[#allocation21_spill] sm:$0xff] }
  0xbc   :  { %6490 = vmatprep.mubr.msk.bf16.mxu0 %vm680_vm1, %v8906_v20  ;;  %v3028_v20 = vrot.slane %v8929_v28, 2 }
  0xbe   :  { %v3029_v0 = vsel %vm1475_vm2, %v3027_v34, %v3028_v20  ;;  %v3031_v12 = vsel %vm1475_vm2, %v3028_v20, %v3030_v17  ;;  %v8988_v17 = vpack.c.bf16 %v11258_v23, %v11257_v29  ;;  %v8992_v20 = vpack.c.bf16 %v11265_v19, %v8097_v55  ;;  %v7261_v55 = vld [vmem:[%s11021_s1 + $0xf0] sm:$0xff]  }
  0xbf   :  { %v8975_v61 = vpack.c.bf16 %v3031_v12, %v3029_v0  ;;  %v9011_v29 = vpack.c.bf16 %v8142_v30, %v8133_v7  ;;  %v9015_v23 = vpack.c.bf16 %v11269_v15, %v11268_v26  ;;  %v9031_v7 = vld [vmem:[%s11021_s1 + $0x100] sm:$0xff]   ;;  %v1476_v30 = vrot.slane %v8690_v27, 2  ;;  %v7556_v26 = vld [vmem:[%s11022_s0 + $0x10] sm:$0x3]  ;;  %v9088_v27 = vld [vmem:[%s11022_s0 + $0x198] sm:$0xff] }
  0xc0   :  { %v1477_v19 = vrot.slane %v8695_v47, 2  ;;  %v1479_v15 = vrot.slane %v7556_v26, 2  ;;  %v9093_v47 = vld [vmem:[%s11022_s0 + $0x1a0] sm:$0xff]  ;;  %v3830_v0 = vrot.slane %v9088_v27, 1 }
  0xc1   :  { %11276 = vst [vmem:[#allocation31_spill] sm:$0xff] %v8975_v61  ;;  %v3831_v12 = vrot.slane %v9093_v47, 1 }
  0xc2   :  { %6171 = vmatmul.mubr.msk.bf16.gmra.mrb[24].mxu1 %vm680_vm1, %v8942_v22  ;;  %v1478_v50 = vsel %vm1475_vm2, %v1476_v30, %v1477_v19  ;;  %v1480_v60 = vsel %vm1475_vm2, %v1477_v19, %v1479_v15  ;;  %v7262_v19 = vld [vmem:[%s11021_s1 + $0x68] sm:$0xff]   ;;  %v11279_v15 = vld [vmem:[#allocation32_spill] sm:$0xff] }
  0xc3   :  { %6491 = vmatmul.mubr.msk.bf16.gmra.mrb[56].mxu0 %vm680_vm1, %v8506_v9  ;;  %6174 = vmatprep.mubr.msk.bf16.mxu1 %vm680_vm1, %v8950_v56  ;;  %v11278_v9 = vld [vmem:[#allocation22_spill] sm:$0xff]  ;;  %v1700_v26 = vpack.c.bf16 %v1480_v60, %v1478_v50  ;;  %v7266_v50 = vld [vmem:[%s11021_s1 + $0x78] sm:$0xff]   ;;  %v11281_v60 = vld [vmem:[#allocation39_spill] sm:$0xff] }
  0xc4   :  { %6494 = vmatprep.mubr.msk.bf16.mxu0 %vm680_vm1, %v8952_v46  ;;  %v270_v6 = vpack.c.bf16 %v11278_v9, %v11277_v58  ;;  %v7259_v9 = vld [vmem:[%s11021_s1 + $0xe8] sm:$0xff]  }
  0xc5   :  { %v7558_v58 = vld [vmem:[%s11022_s0 + $0x188] sm:$0xff] }
  0xca   :  { %6175 = vmatmul.mubr.msk.bf16.gmra.mrb[28].mxu1 %vm680_vm1, %v8973_v11 }
  0xcb   :  { %6495 = vmatmul.mubr.msk.bf16.gmra.mrb[60].mxu0 %vm680_vm1, %v8975_v61  ;;  %6178 = vmatprep.mubr.msk.bf16.mxu1 %vm680_vm1, %v270_v6  ;;  %v7557_v6 = vld [vmem:[%s11022_s0 + $0x180] sm:$0xff]  ;;  %v7561_v61 = vld [vmem:[%s11022_s0 + $0x1b8] sm:$0xff] }
  0xcc   :  { %6506 = vmatprep.mubr.msk.bf16.mxu0 %vm680_vm1, %v8726_v52  ;;  %v9077_v34 = vpack.c.bf16 %v7558_v58, %v7557_v6  ;;  %v9110_v6 = vsel %vm390_vm0, %v3830_v0, %v3831_v12  ;;  %v11280_v0 = vld [vmem:[#allocation37_spill] sm:$0xff] }
  0xd2   :  { %6179 = vmatmul.mubr.msk.bf16.gmra.mrb[32].mxu1 %vm680_vm1, %v8988_v17 }
  0xd3   :  { %6507 = vmatmul.mubr.msk.bf16.vlgmr.msra.gmra.mrb[0].mxu0 %vm680_vm1, %v8761_v33  ;;  %6182 = vmatprep.mubr.msk.bf16.mxu1 %vm680_vm1, %v8992_v20 }
  0xd4   :  { %6571 = vmatpush3.bf16.msra.mxu0 %v8361_v8  ;;  %6510 = vmatprep.mubr.msk.bf16.mxu0 %vm680_vm1, %v8771_v59  ;;  %v7263_v8 = vld [vmem:[%s11021_s1 + $0xf8] sm:$0xff]  }
  0xd5   :  { %6572 = vmatprep.subr.bf16.mxu0 %v7259_v9 }
  0xd8   :  { %6573 = vmatpush3.bf16.msra.mxu0 %v7259_v9  ;;  %v9104_v9 = vld [vmem:[%s11022_s0 + $0x1a8] sm:$0x3] }
  0xd9   :  { %6574 = vmatprep.subr.bf16.mxu0 %v7261_v55 }
  0xda   :  { %6183 = vmatmul.mubr.msk.bf16.gmra.mrb[36].mxu1 %vm680_vm1, %v9011_v29 }
  0xdb   :  { %6511 = vmatmul.mubr.msk.bf16.gmra.mrb[4].mxu0 %vm680_vm1, %v8802_v63  ;;  %6186 = vmatprep.mubr.msk.bf16.mxu1 %vm680_vm1, %v9015_v23 }
  0xdc   :  { %6514 = vmatprep.mubr.msk.bf16.mxu0 %vm680_vm1, %v8810_v35  ;;  %6575 = vmatpush3.bf16.msra.mxu0 %v7261_v55  ;;  %v3833_v55 = vrot.slane %v9104_v9, 1 }
  0xdd   :  { %6576 = vmatprep.subr.bf16.mxu0 %v7263_v8 }
  0xde   :  { %v9113_v58 = vsel %vm390_vm0, %v3831_v12, %v3833_v55  ;;  %v7264_v12 = vld [vmem:[%s11021_s1 + $0x70] sm:$0xff]   ;;  %v9152_v55 = vld [vmem:[%s11021_s1 + $0x80] sm:$0xff]  }
  0xe0   :  { %6577 = vmatpush3.bf16.msra.mxu0 %v7263_v8  ;;  %v3430_v8 = vpack.c.bf16 %v9093_v47, %v9088_v27 }
  0xe1   :  { %6642 = vmatprep.subr.bf16.mxu0 %v9031_v7 }
  0xe2   :  { %6187 = vmatmul.mubr.msk.bf16.gmra.mrb[40].mxu1 %vm680_vm1, %v8527_v13 }
  0xe3   :  { %6515 = vmatmul.mubr.msk.bf16.gmra.mrb[8].mxu0 %vm680_vm1, %v8834_v2  ;;  %6190 = vmatprep.mubr.msk.bf16.mxu1 %vm680_vm1, %v8531_v24 }
  0xe4   :  { %6518 = vmatprep.mubr.msk.bf16.mxu0 %vm680_vm1, %v8842_v53 }
  0xea   :  { %6191 = vmatmul.mubr.msk.bf16.gmra.mrb[44].mxu1 %vm680_vm1, %v8536_v42 }
  0xeb   :  { %6519 = vmatmul.mubr.msk.bf16.gmra.mrb[12].mxu0 %vm680_vm1, %v8865_v3  ;;  %6194 = vmatprep.mubr.msk.bf16.mxu1 %vm680_vm1, %v8540_v45 }
  0xec   :  { %6522 = vmatprep.mubr.msk.bf16.mxu0 %vm680_vm1, %v8873_v37 }
  0xf2   :  { %6195 = vmatmul.mubr.msk.bf16.gmra.mrb[48].mxu1 %vm680_vm1, %v8544_v43 }
  0xf3   :  { %6523 = vmatmul.mubr.msk.bf16.gmra.mrb[16].mxu0 %vm680_vm1, %v8896_v16  ;;  %6198 = vmatprep.mubr.msk.bf16.mxu1 %vm680_vm1, %v8573_v31 }
  0xf4   :  { %6526 = vmatprep.mubr.msk.bf16.mxu0 %vm680_vm1, %v8904_v36 }
  0xfa   :  { %6199 = vmatmul.mubr.msk.bf16.gmra.mrb[52].mxu1 %vm680_vm1, %v8581_v25 }
  0xfb   :  { %6527 = vmatmul.mubr.msk.bf16.gmra.mrb[20].mxu0 %vm680_vm1, %v8942_v22  ;;  %6202 = vmatprep.mubr.msk.bf16.mxu1 %vm680_vm1, %v8617_v62 }
  0xfc   :  { %6530 = vmatprep.mubr.msk.bf16.mxu0 %vm680_vm1, %v8950_v56 }
 0x102   :  { %6203 = vmatmul.mubr.msk.bf16.gmra.mrb[56].mxu1 %vm680_vm1, %v8640_v49 }
 0x103   :  { %6531 = vmatmul.mubr.msk.bf16.gmra.mrb[24].mxu0 %vm680_vm1, %v8973_v11  ;;  %6206 = vmatprep.mubr.msk.bf16.mxu1 %vm680_vm1, %v8671_v51 }
 0x104   :  { %6534 = vmatprep.mubr.msk.bf16.mxu0 %vm680_vm1, %v9077_v34 }
 0x10a   :  { %6207 = vmatmul.mubr.msk.bf16.gmra.mrb[60].mxu1 %vm680_vm1, %v8679_v18 }
 0x10b   :  { %6535 = vmatmul.mubr.msk.bf16.gmra.mrb[28].mxu0 %vm680_vm1, %v3430_v8  ;;  %6218 = vmatprep.mubr.msk.bf16.mxu1 %vm680_vm1, %v1700_v26  ;;  %v11283_v8 = vld [vmem:[#allocation43_spill] sm:$0xff]  ;;  %v11284_v26 = vld [vmem:[#allocation45_spill] sm:$0xff] }
 0x10c   :  { %6538 = vmatprep.mubr.msk.bf16.mxu0 %vm680_vm1, %v8992_v20 }
 0x112   :  { %6219 = vmatmul.mubr.msk.bf16.vlgmr.msra.gmra.mrb[0].mxu1 %vm680_vm1, %v11279_v15  ;;  %v11286_v15 = vld [vmem:[#allocation49_spill] sm:$0xff] }
 0x113   :  { %6539 = vmatmul.mubr.msk.bf16.gmra.mrb[32].mxu0 %vm680_vm1, %v9011_v29  ;;  %6283 = vmatpush3.bf16.msra.mxu1 %v8794_v44  ;;  %v11282_v44 = vld [vmem:[#allocation41_spill] sm:$0xff] }
 0x114   :  { %6222 = vmatprep.mubr.msk.bf16.mxu1 %vm680_vm1, %v11280_v0  ;;  %6542 = vmatprep.mubr.msk.bf16.mxu0 %vm680_vm1, %v9015_v23 }
 0x115   :  { %6284 = vmatprep.subr.bf16.mxu1 %v7262_v19 }
 0x117   :  { %6285 = vmatpush3.bf16.msra.mxu1 %v7262_v19  ;;  %v11285_v19 = vld [vmem:[#allocation47_spill] sm:$0xff] }
 0x118   :  { %6286 = vmatprep.subr.bf16.mxu1 %v7264_v12 }
 0x11a   :  { %6223 = vmatmul.mubr.msk.bf16.gmra.mrb[4].mxu1 %vm680_vm1, %v11281_v60 }
 0x11b   :  { %6543 = vmatmul.mubr.msk.bf16.gmra.mrb[36].mxu0 %vm680_vm1, %v8527_v13  ;;  %6226 = vmatprep.mubr.msk.bf16.mxu1 %vm680_vm1, %v11282_v44 }
 0x11c   :  { %6546 = vmatprep.mubr.msk.bf16.mxu0 %vm680_vm1, %v8531_v24  ;;  %6287 = vmatpush3.bf16.msra.mxu1 %v7264_v12  ;;  %v9189_v12 = vpack.c.bf16 %v8929_v28, %v8924_v5 }
 0x11d   :  { %6288 = vmatprep.subr.bf16.mxu1 %v7266_v50 }
 0x11e   :  { %11287 = vst [vmem:[#allocation33_spill] sm:$0xff] %v9189_v12 }
 0x120   :  { %6289 = vmatpush3.bf16.msra.mxu1 %v7266_v50  ;;  %v7560_v50 = vld [vmem:[%s11022_s0 + $0x1b0] sm:$0xff] }
 0x121   :  { %6714 = vmatprep.subr.bf16.mxu1 %v9152_v55  ;;  %v1556_v30 = vrot.slane %v7560_v50, 2  ;;  %v9209_v50 = vld [vmem:[%s11022_s0 + $0x348] sm:$0xff] }
 0x122   :  { %6227 = vmatmul.mubr.msk.bf16.gmra.mrb[8].mxu1 %vm680_vm1, %v11283_v8 }
 0x123   :  { %6547 = vmatmul.mubr.msk.bf16.gmra.mrb[40].mxu0 %vm680_vm1, %v8536_v42  ;;  %6230 = vmatprep.mubr.msk.bf16.mxu1 %vm680_vm1, %v11284_v26 }
 0x124   :  { %6550 = vmatprep.mubr.msk.bf16.mxu0 %vm680_vm1, %v8540_v45 }
 0x12a   :  { %6231 = vmatmul.mubr.msk.bf16.gmra.mrb[12].mxu1 %vm680_vm1, %v11285_v19 }
 0x12b   :  { %6551 = vmatmul.mubr.msk.bf16.gmra.mrb[44].mxu0 %vm680_vm1, %v8544_v43  ;;  %6234 = vmatprep.mubr.msk.bf16.mxu1 %vm680_vm1, %v11286_v15 }
 0x12c   :  { %6554 = vmatprep.mubr.msk.bf16.mxu0 %vm680_vm1, %v8573_v31 }
 0x132   :  { %6235 = vmatmul.mubr.msk.bf16.gmra.mrb[16].mxu1 %vm680_vm1, %v8444_v40 }
 0x133   :  { %6555 = vmatmul.mubr.msk.bf16.gmra.mrb[48].mxu0 %vm680_vm1, %v8581_v25  ;;  %6238 = vmatprep.mubr.msk.bf16.mxu1 %vm680_vm1, %v8508_v32  ;;  %v11289_v25 = vld [vmem:[#allocation66_spill] sm:$0xff] }
 0x134   :  { %6558 = vmatprep.mubr.msk.bf16.mxu0 %vm680_vm1, %v8617_v62  ;;  %v7562_v62 = vld [vmem:[%s11022_s0 + $0x1c0] sm:$0x3] }
 0x13a   :  { %6239 = vmatmul.mubr.msk.bf16.gmra.mrb[20].mxu1 %vm680_vm1, %v8518_v57  ;;  %v9225_v57 = vld [vmem:[%s11022_s0 + $0x358] sm:$0x3] }
 0x13b   :  { %6559 = vmatmul.mubr.msk.bf16.gmra.mrb[52].mxu0 %vm680_vm1, %v8640_v49  ;;  %6242 = vmatprep.mubr.msk.bf16.mxu1 %vm680_vm1, %v8587_v10  ;;  %v1557_v49 = vrot.slane %v7561_v61, 2  ;;  %v1559_v10 = vrot.slane %v7562_v62, 2  ;;  %v9214_v61 = vld [vmem:[%s11022_s0 + $0x350] sm:$0xff]  ;;  %v3835_v62 = vrot.slane %v9209_v50, 1  ;;  %v3838_v31 = vrot.slane %v9225_v57, 1 }
 0x13c   :  { %6562 = vmatprep.mubr.msk.bf16.mxu0 %vm680_vm1, %v8671_v51  ;;  %v11288_v51 = vld [vmem:[#allocation64_spill] sm:$0xff]  ;;  %v3431_v32 = vpack.c.bf16 %v9214_v61, %v9209_v50 }
 0x142   :  { %6243 = vmatmul.mubr.msk.bf16.gmra.mrb[24].mxu1 %vm680_vm1, %v11288_v51  ;;  %v1558_v51 = vsel %vm1475_vm2, %v1556_v30, %v1557_v49  ;;  %v11291_v30 = vld [vmem:[#allocation3_spill] sm:$0xff] }
 0x143   :  { %6563 = vmatmul.mubr.msk.bf16.gmra.mrb[56].mxu0 %vm680_vm1, %v8679_v18  ;;  %6246 = vmatprep.mubr.msk.bf16.mxu1 %vm680_vm1, %v11289_v25  ;;  %v3836_v18 = vrot.slane %v9214_v61, 1  ;;  %v1560_v25 = vsel %vm1475_vm2, %v1557_v49, %v1559_v10  ;;  %v11290_v49 = vld [vmem:[#allocation68_spill] sm:$0xff]  ;;  %v4241_v10 = vrot.slane %v9104_v9, 2  ;;  %v11313_v9 = vld [vmem:[#allocation38_spill] sm:$0xff] }
 0x144   :  { %6566 = vmatprep.mubr.msk.bf16.mxu0 %vm680_vm1, %v9189_v12  ;;  %v1716_v43 = vpack.c.bf16 %v1560_v25, %v1558_v51  ;;  %v7267_v25 = vld [vmem:[%s11021_s1 + $0x108] sm:$0xff]   ;;  %v11292_v51 = vld [vmem:[#allocation24_spill] sm:$0xff] }
 0x145   :  { %v9231_v12 = vsel %vm390_vm0, %v3835_v62, %v3836_v18  ;;  %v9234_v40 = vsel %vm390_vm0, %v3836_v18, %v3838_v31  ;;  %v11293_v31 = vld [vmem:[#allocation4_spill] sm:$0xff]  ;;  %v7269_v18 = vld [vmem:[%s11021_s1 + $0x118] sm:$0xff]   ;;  %v11295_v62 = vld [vmem:[#allocation6_spill] sm:$0xff] }
 0x14a   :  { %6247 = vmatmul.mubr.msk.bf16.gmra.mrb[28].mxu1 %vm680_vm1, %v11290_v49 }
 0x14b   :  { %6567 = vmatmul.mubr.msk.bf16.gmra.mrb[60].mxu0 %vm680_vm1, %v3431_v32  ;;  %6250 = vmatprep.mubr.msk.bf16.mxu1 %vm680_vm1, %v1716_v43  ;;  %v11294_v32 = vld [vmem:[#allocation5_spill] sm:$0xff]  ;;  %v7268_v43 = vld [vmem:[%s11021_s1 + $0x110] sm:$0xff]  }
 0x14c   :  { %6578 = vmatprep.mubr.msk.bf16.mxu0 %vm680_vm1, %v11291_v30  ;;  %v11297_v30 = vld [vmem:[#allocation8_spill] sm:$0xff] }
 0x152   :  { %6251 = vmatmul.mubr.msk.bf16.gmra.mrb[32].mxu1 %vm680_vm1, %v11292_v51  ;;  %v11299_v51 = vld [vmem:[#allocation10_spill] sm:$0xff] }
 0x153   :  { %6579 = vmatmul.mubr.msk.bf16.vlgmr.msra.gmra.mrb[0].mxu0 %vm680_vm1, %v11293_v31  ;;  %6254 = vmatprep.mubr.msk.bf16.mxu1 %vm680_vm1, %v8718_v4  ;;  %v11300_v31 = vld [vmem:[#allocation11_spill] sm:$0xff] }
 0x154   :  { %6643 = vmatpush3.bf16.msra.mxu0 %v9031_v7  ;;  %6582 = vmatprep.mubr.msk.bf16.mxu0 %vm680_vm1, %v11294_v32  ;;  %v11296_v7 = vld [vmem:[#allocation7_spill] sm:$0xff]  ;;  %v11301_v32 = vld [vmem:[#allocation12_spill] sm:$0xff] }
 0x155   :  { %6644 = vmatprep.subr.bf16.mxu0 %v7267_v25 }
 0x158   :  { %6645 = vmatpush3.bf16.msra.mxu0 %v7267_v25  ;;  %v11298_v25 = vld [vmem:[#allocation9_spill] sm:$0xff] }
 0x159   :  { %6646 = vmatprep.subr.bf16.mxu0 %v7268_v43 }
 0x15a   :  { %6255 = vmatmul.mubr.msk.bf16.gmra.mrb[36].mxu1 %vm680_vm1, %v8728_v48 }
 0x15b   :  { %6583 = vmatmul.mubr.msk.bf16.gmra.mrb[4].mxu0 %vm680_vm1, %v11295_v62  ;;  %6258 = vmatprep.mubr.msk.bf16.mxu1 %vm680_vm1, %v8763_v54  ;;  %v11304_v62 = vld [vmem:[#allocation18_spill] sm:$0xff] }
 0x15c   :  { %6586 = vmatprep.mubr.msk.bf16.mxu0 %vm680_vm1, %v11296_v7  ;;  %6647 = vmatpush3.bf16.msra.mxu0 %v7268_v43  ;;  %v11302_v43 = vld [vmem:[#allocation15_spill] sm:$0xff]  ;;  %v11305_v7 = vld [vmem:[#allocation52_spill] sm:$0xff] }
 0x15d   :  { %6648 = vmatprep.subr.bf16.mxu0 %v7269_v18 }
 0x160   :  { %6649 = vmatpush3.bf16.msra.mxu0 %v7269_v18  ;;  %v11303_v18 = vld [vmem:[#allocation27_spill] sm:$0xff] }
 0x162   :  { %6259 = vmatmul.mubr.msk.bf16.gmra.mrb[40].mxu1 %vm680_vm1, %v8773_v39 }
 0x163   :  { %6587 = vmatmul.mubr.msk.bf16.gmra.mrb[8].mxu0 %vm680_vm1, %v11297_v30  ;;  %6262 = vmatprep.mubr.msk.bf16.mxu1 %vm680_vm1, %v8366_v21  ;;  %v11306_v30 = vld [vmem:[#allocation25_spill] sm:$0xff] }
 0x164   :  { %6590 = vmatprep.mubr.msk.bf16.mxu0 %vm680_vm1, %v11298_v25  ;;  %v11307_v25 = vld [vmem:[#allocation28_spill] sm:$0xff] }
 0x16a   :  { %6263 = vmatmul.mubr.msk.bf16.gmra.mrb[44].mxu1 %vm680_vm1, %v8812_v14 }
 0x16b   :  { %6591 = vmatmul.mubr.msk.bf16.gmra.mrb[12].mxu0 %vm680_vm1, %v11299_v51  ;;  %6266 = vmatprep.mubr.msk.bf16.mxu1 %vm680_vm1, %v8405_v1  ;;  %v11308_v51 = vld [vmem:[#allocation26_spill] sm:$0xff] }
 0x16c   :  { %6594 = vmatprep.mubr.msk.bf16.mxu0 %vm680_vm1, %v11300_v31  ;;  %v11309_v31 = vld [vmem:[#allocation54_spill] sm:$0xff] }
 0x172   :  { %6267 = vmatmul.mubr.msk.bf16.gmra.mrb[48].mxu1 %vm680_vm1, %v8844_v41 }
 0x173   :  { %6595 = vmatmul.mubr.msk.bf16.gmra.mrb[16].mxu0 %vm680_vm1, %v11301_v32  ;;  %6270 = vmatprep.mubr.msk.bf16.mxu1 %vm680_vm1, %v8441_v38  ;;  %v4238_v32 = vrot.slane %v9088_v27, 2  ;;  %v11311_v27 = vpack.c.bf16 %v9113_v58, %v9110_v6  ;;  %v11315_v6 = vld [vmem:[#allocation42_spill] sm:$0xff]  ;;  %v7563_v58 = vld [vmem:[%s11021_s1 + $0x88] sm:$0xff]  }
 0x174   :  { %6598 = vmatprep.mubr.msk.bf16.mxu0 %vm680_vm1, %v11302_v43  ;;  %v4239_v43 = vrot.slane %v9093_v47, 2  ;;  %v11312_v47 = vld [vmem:[#allocation2_spill] sm:$0xff] }
 0x17a   :  { %6271 = vmatmul.mubr.msk.bf16.gmra.mrb[52].mxu1 %vm680_vm1, %v11303_v18 }
 0x17b   :  { %6599 = vmatmul.mubr.msk.bf16.gmra.mrb[20].mxu0 %vm680_vm1, %v11304_v62  ;;  %6274 = vmatprep.mubr.msk.bf16.mxu1 %vm680_vm1, %v11305_v7  ;;  %v11310_v62 = vld [vmem:[#allocation30_spill] sm:$0xff] }
 0x17c   :  { %6602 = vmatprep.mubr.msk.bf16.mxu0 %vm680_vm1, %v11306_v30  ;;  %v9314_v30 = vsel %vm1475_vm2, %v4238_v32, %v4239_v43  ;;  %v7565_v32 = vld [vmem:[%s11021_s1 + $0x98] sm:$0xff]  }
 0x182   :  { %6275 = vmatmul.mubr.msk.bf16.gmra.mrb[56].mxu1 %vm680_vm1, %v11307_v25  ;;  %v9317_v25 = vsel %vm1475_vm2, %v4239_v43, %v4241_v10  ;;  %v11314_v10 = vld [vmem:[#allocation40_spill] sm:$0xff]  ;;  %v11320_v43 = vld [vmem:[#allocation53_spill] sm:$0xff] }
 0x183   :  { %6603 = vmatmul.mubr.msk.bf16.gmra.mrb[24].mxu0 %vm680_vm1, %v11308_v51  ;;  %6278 = vmatprep.mubr.msk.bf16.mxu1 %vm680_vm1, %v11309_v31  ;;  %v4252_v51 = vpack.c.bf16 %v9317_v25, %v9314_v30 }
 0x184   :  { %6606 = vmatprep.mubr.msk.bf16.mxu0 %vm680_vm1, %v11310_v62  ;;  %v11321_v62 = vld [vmem:[#allocation56_spill] sm:$0xff] }
 0x18a   :  { %6279 = vmatmul.mubr.msk.bf16.gmra.mrb[60].mxu1 %vm680_vm1, %v8952_v46 }
 0x18b   :  { %6607 = vmatmul.mubr.msk.bf16.gmra.mrb[28].mxu0 %vm680_vm1, %v11311_v27  ;;  %6290 = vmatprep.mubr.msk.bf16.mxu1 %vm680_vm1, %v11312_v47  ;;  %v2620_v27 = vrot.slane %v8929_v28, 1  ;;  %v11327_v28 = vld [vmem:[#allocation20_spill] sm:$0xff] }
 0x18c   :  { %6610 = vmatprep.mubr.msk.bf16.mxu0 %vm680_vm1, %v11313_v9 }
 0x192   :  { %6291 = vmatmul.mubr.msk.bf16.vlgmr.msra.gmra.mrb[0].mxu1 %vm680_vm1, %v8726_v52  ;;  %v7564_v52 = vld [vmem:[%s11021_s1 + $0x90] sm:$0xff]  }
 0x193   :  { %6611 = vmatmul.mubr.msk.bf16.gmra.mrb[32].mxu0 %vm680_vm1, %v11314_v10  ;;  %6718 = vmatpush3.bf16.msra.mxu1 %v9152_v55  ;;  %v11316_v55 = vld [vmem:[#allocation44_spill] sm:$0xff] }
 0x194   :  { %6294 = vmatprep.mubr.msk.bf16.mxu1 %vm680_vm1, %v8761_v33  ;;  %6614 = vmatprep.mubr.msk.bf16.mxu0 %vm680_vm1, %v11315_v6  ;;  %v11317_v33 = vld [vmem:[#allocation46_spill] sm:$0xff] }
 0x195   :  { %6715 = vmatprep.subr.bf16.mxu1 %v7563_v58 }
 0x197   :  { %6719 = vmatpush3.bf16.msra.mxu1 %v7563_v58  ;;  %v11325_v58 = vld [vmem:[#allocation65_spill] sm:$0xff] }
 0x198   :  { %6716 = vmatprep.subr.bf16.mxu1 %v7564_v52 }
 0x19a   :  { %6295 = vmatmul.mubr.msk.bf16.gmra.mrb[4].mxu1 %vm680_vm1, %v8771_v59  ;;  %v11318_v59 = vld [vmem:[#allocation48_spill] sm:$0xff] }
 0x19b   :  { %6615 = vmatmul.mubr.msk.bf16.gmra.mrb[36].mxu0 %vm680_vm1, %v11316_v55  ;;  %6298 = vmatprep.mubr.msk.bf16.mxu1 %vm680_vm1, %v8802_v63  ;;  %v11319_v63 = vld [vmem:[#allocation50_spill] sm:$0xff] }
 0x19c   :  { %6618 = vmatprep.mubr.msk.bf16.mxu0 %vm680_vm1, %v11317_v33  ;;  %6720 = vmatpush3.bf16.msra.mxu1 %v7564_v52 }
 0x19d   :  { %6717 = vmatprep.subr.bf16.mxu1 %v7565_v32 }
 0x1a0   :  { %6721 = vmatpush3.bf16.msra.mxu1 %v7565_v32  ;;  %v4246_v32 = vrot.slane %v9225_v57, 2  ;;  %v11330_v57 = vld [vmem:[#allocation58_spill] sm:$0xff] }
 0x1a2   :  { %6299 = vmatmul.mubr.msk.bf16.gmra.mrb[8].mxu1 %vm680_vm1, %v8810_v35  ;;  %v11322_v35 = vld [vmem:[#allocation61_spill] sm:$0xff] }
 0x1a3   :  { %6619 = vmatmul.mubr.msk.bf16.gmra.mrb[40].mxu0 %vm680_vm1, %v11318_v59  ;;  %6302 = vmatprep.mubr.msk.bf16.mxu1 %vm680_vm1, %v8834_v2  ;;  %v11323_v2 = vld [vmem:[#allocation63_spill] sm:$0xff] }
 0x1a4   :  { %6622 = vmatprep.mubr.msk.bf16.mxu0 %vm680_vm1, %v11319_v63 }
 0x1aa   :  { %6303 = vmatmul.mubr.msk.bf16.gmra.mrb[12].mxu1 %vm680_vm1, %v8842_v53  ;;  %v2619_v53 = vrot.slane %v8924_v5, 1 }
 0x1ab   :  { %6623 = vmatmul.mubr.msk.bf16.gmra.mrb[44].mxu0 %vm680_vm1, %v11320_v43  ;;  %6306 = vmatprep.mubr.msk.bf16.mxu1 %vm680_vm1, %v8865_v3  ;;  %v11324_v3 = vld [vmem:[#allocation29_spill] sm:$0xff] }
 0x1ac   :  { %6626 = vmatprep.mubr.msk.bf16.mxu0 %vm680_vm1, %v11321_v62  ;;  %v2622_v47 = vrot.slane %v11324_v3, 1 }
 0x1ae   :  { %v2623_v5 = vsel %vm390_vm0, %v2620_v27, %v2622_v47 }
 0x1b2   :  { %6307 = vmatmul.mubr.msk.bf16.gmra.mrb[16].mxu1 %vm680_vm1, %v8873_v37  ;;  %v11326_v37 = vld [vmem:[#allocation67_spill] sm:$0xff] }
 0x1b3   :  { %6627 = vmatmul.mubr.msk.bf16.gmra.mrb[48].mxu0 %vm680_vm1, %v11322_v35  ;;  %6310 = vmatprep.mubr.msk.bf16.mxu1 %vm680_vm1, %v8896_v16  ;;  %v2621_v16 = vsel %vm390_vm0, %v2619_v53, %v2620_v27 }
 0x1b4   :  { %6630 = vmatprep.mubr.msk.bf16.mxu0 %vm680_vm1, %v11323_v2  ;;  %v9394_v52 = vpack.c.bf16 %v2623_v5, %v2621_v16 }
 0x1ba   :  { %6311 = vmatmul.mubr.msk.bf16.gmra.mrb[20].mxu1 %vm680_vm1, %v8904_v36  ;;  %v4243_v36 = vrot.slane %v9209_v50, 2 }
 0x1bb   :  { %6631 = vmatmul.mubr.msk.bf16.gmra.mrb[52].mxu0 %vm680_vm1, %v11325_v58  ;;  %6314 = vmatprep.mubr.msk.bf16.mxu1 %vm680_vm1, %v8942_v22  ;;  %v4244_v22 = vrot.slane %v9214_v61, 2 }
 0x1bc   :  { %6634 = vmatprep.mubr.msk.bf16.mxu0 %vm680_vm1, %v11326_v37 }
 0x1bd   :  { %v9408_v53 = vsel %vm1475_vm2, %v4243_v36, %v4244_v22 }
 0x1c2   :  { %6315 = vmatmul.mubr.msk.bf16.gmra.mrb[24].mxu1 %vm680_vm1, %v8950_v56  ;;  %v9411_v56 = vsel %vm1475_vm2, %v4244_v22, %v4246_v32 }
 0x1c3   :  { %6635 = vmatmul.mubr.msk.bf16.gmra.mrb[56].mxu0 %vm680_vm1, %v11327_v28  ;;  %6318 = vmatprep.mubr.msk.bf16.mxu1 %vm680_vm1, %v8973_v11  ;;  %v4253_v27 = vpack.c.bf16 %v9411_v56, %v9408_v53  ;;  %v11328_v11 = vpack.c.bf16 %v9234_v40, %v9231_v12  ;;  %v11329_v40 = vld [vmem:[#allocation51_spill] sm:$0xff] }
 0x1c4   :  { %6638 = vmatprep.mubr.msk.bf16.mxu0 %vm680_vm1, %v9394_v52 }
 0x1ca   :  { %6319 = vmatmul.mubr.msk.bf16.gmra.mrb[28].mxu1 %vm680_vm1, %v9077_v34  ;;  %v11339_v34 = vld [vmem:[#allocation66_spill] sm:$0xff] }
 0x1cb   :  { %6639 = vmatmul.mubr.msk.bf16.gmra.mrb[60].mxu0 %vm680_vm1, %v11328_v11  ;;  %6322 = vmatprep.mubr.msk.bf16.mxu1 %vm680_vm1, %v8988_v17  ;;  %v11333_v17 = vld [vmem:[#allocation57_spill] sm:$0xff] }
 0x1cc   :  { %6650 = vmatprep.mubr.msk.bf16.mxu0 %vm680_vm1, %v11280_v0  ;;  %v11340_v0 = vld [vmem:[#allocation16_spill] sm:$0xff] }
 0x1d2   :  { %6323 = vmatmul.mubr.msk.bf16.gmra.mrb[32].mxu1 %vm680_vm1, %v8992_v20  ;;  %v11335_v20 = vld [vmem:[#allocation62_spill] sm:$0xff] }
 0x1d3   :  { %6651 = vmatmul.mubr.msk.bf16.vlgmr.msra.gmra.mrb[0].mxu0 %vm680_vm1, %v11281_v60  ;;  %6326 = vmatprep.mubr.msk.bf16.mxu1 %vm680_vm1, %v9011_v29  ;;  %v11337_v29 = vld [vmem:[#allocation64_spill] sm:$0xff]  ;;  %v11341_v60 = vld [vmem:[#allocation19_spill] sm:$0xff] }
 0x1d4   :  { %6654 = vmatprep.mubr.msk.bf16.mxu0 %vm680_vm1, %v11282_v44  ;;  %v11342_v44 = vld [vmem:[#allocation23_spill] sm:$0xff] }
 0x1da   :  { %6327 = vmatmul.mubr.msk.bf16.gmra.mrb[36].mxu1 %vm680_vm1, %v9015_v23  ;;  %v11338_v23 = vld [vmem:[#allocation14_spill] sm:$0xff] }
 0x1db   :  { %6655 = vmatmul.mubr.msk.bf16.gmra.mrb[4].mxu0 %vm680_vm1, %v11283_v8  ;;  %6330 = vmatprep.mubr.msk.bf16.mxu1 %vm680_vm1, %v8527_v13  ;;  %v11331_v13 = vld [vmem:[#allocation55_spill] sm:$0xff]  ;;  %v11343_v8 = vld [vmem:[#allocation33_spill] sm:$0xff] }
 0x1dc   :  { %6658 = vmatprep.mubr.msk.bf16.mxu0 %vm680_vm1, %v11284_v26  ;;  %v11344_v26 = vld [vmem:[#allocation36_spill] sm:$0xff] }
 0x1e2   :  { %6331 = vmatmul.mubr.msk.bf16.gmra.mrb[40].mxu1 %vm680_vm1, %v8531_v24  ;;  %v11332_v24 = vld [vmem:[#allocation59_spill] sm:$0xff] }
 0x1e3   :  { %6659 = vmatmul.mubr.msk.bf16.gmra.mrb[8].mxu0 %vm680_vm1, %v11285_v19  ;;  %6334 = vmatprep.mubr.msk.bf16.mxu1 %vm680_vm1, %v8536_v42  ;;  %v11334_v42 = vld [vmem:[#allocation60_spill] sm:$0xff] }
 0x1e4   :  { %6662 = vmatprep.mubr.msk.bf16.mxu0 %vm680_vm1, %v11286_v15 }
 0x1ea   :  { %6335 = vmatmul.mubr.msk.bf16.gmra.mrb[44].mxu1 %vm680_vm1, %v8540_v45  ;;  %v11336_v45 = vld [vmem:[#allocation13_spill] sm:$0xff] }
 0x1eb   :  { %6663 = vmatmul.mubr.msk.bf16.gmra.mrb[12].mxu0 %vm680_vm1, %v11329_v40  ;;  %6338 = vmatprep.mubr.msk.bf16.mxu1 %vm680_vm1, %v11330_v57 }
 0x1ec   :  { %6666 = vmatprep.mubr.msk.bf16.mxu0 %vm680_vm1, %v11331_v13 }
 0x1f2   :  { %6339 = vmatmul.mubr.msk.bf16.gmra.mrb[48].mxu1 %vm680_vm1, %v11332_v24 }
 0x1f3   :  { %6667 = vmatmul.mubr.msk.bf16.gmra.mrb[16].mxu0 %vm680_vm1, %v11333_v17  ;;  %6342 = vmatprep.mubr.msk.bf16.mxu1 %vm680_vm1, %v11334_v42 }
 0x1f4   :  { %6670 = vmatprep.mubr.msk.bf16.mxu0 %vm680_vm1, %v11335_v20 }
 0x1fa   :  { %6343 = vmatmul.mubr.msk.bf16.gmra.mrb[52].mxu1 %vm680_vm1, %v11336_v45 }
 0x1fb   :  { %6671 = vmatmul.mubr.msk.bf16.gmra.mrb[20].mxu0 %vm680_vm1, %v11337_v29  ;;  %6346 = vmatprep.mubr.msk.bf16.mxu1 %vm680_vm1, %v11338_v23 }
 0x1fc   :  { %6674 = vmatprep.mubr.msk.bf16.mxu0 %vm680_vm1, %v11339_v34 }
 0x202   :  { %6347 = vmatmul.mubr.msk.bf16.gmra.mrb[56].mxu1 %vm680_vm1, %v11340_v0 }
 0x203   :  { %6675 = vmatmul.mubr.msk.bf16.gmra.mrb[24].mxu0 %vm680_vm1, %v11290_v49  ;;  %6350 = vmatprep.mubr.msk.bf16.mxu1 %vm680_vm1, %v11341_v60 }
 0x204   :  { %6678 = vmatprep.mubr.msk.bf16.mxu0 %vm680_vm1, %v11342_v44 }
 0x20a   :  { %6351 = vmatmul.mubr.msk.bf16.gmra.mrb[60].mxu1 %vm680_vm1, %v11343_v8 }
 0x20b   :  { %6679 = vmatmul.mubr.msk.bf16.gmra.mrb[28].mxu0 %vm680_vm1, %v4252_v51  ;;  %6394 = vmatprep.mubr.msk.bf16.mxu1 %vm680_vm1, %v11344_v26 }
 0x20c   :  { %6682 = vmatprep.mubr.msk.bf16.mxu0 %vm680_vm1, %v8718_v4 }
 0x212   :  { %6395 = vmatmul.mubr.msk.bf16.vlgmr.msra.gmra.mrb[32].mxu1 %vm680_vm1, %v11313_v9 }
 0x213   :  { %6683 = vmatmul.mubr.msk.bf16.gmra.mrb[32].mxu0 %vm680_vm1, %v8728_v48  ;;  %6398 = vmatprep.mubr.msk.bf16.mxu1 %vm680_vm1, %v11314_v10 }
 0x214   :  { %6686 = vmatprep.mubr.msk.bf16.mxu0 %vm680_vm1, %v8763_v54 }
 0x21a   :  { %6399 = vmatmul.mubr.msk.bf16.gmra.mrb[36].mxu1 %vm680_vm1, %v11315_v6 }
 0x21b   :  { %6687 = vmatmul.mubr.msk.bf16.gmra.mrb[36].mxu0 %vm680_vm1, %v8773_v39  ;;  %6402 = vmatprep.mubr.msk.bf16.mxu1 %vm680_vm1, %v11316_v55 }
 0x21c   :  { %6690 = vmatprep.mubr.msk.bf16.mxu0 %vm680_vm1, %v8366_v21  ;;  %v11345_v21 = vld [vmem:[#allocation28_spill] sm:$0xff] }
 0x222   :  { %6403 = vmatmul.mubr.msk.bf16.gmra.mrb[40].mxu1 %vm680_vm1, %v11317_v33 }
 0x223   :  { %6691 = vmatmul.mubr.msk.bf16.gmra.mrb[40].mxu0 %vm680_vm1, %v8812_v14  ;;  %6406 = vmatprep.mubr.msk.bf16.mxu1 %vm680_vm1, %v11318_v59 }
 0x224   :  { %6694 = vmatprep.mubr.msk.bf16.mxu0 %vm680_vm1, %v8405_v1 }
 0x22a   :  { %6407 = vmatmul.mubr.msk.bf16.gmra.mrb[44].mxu1 %vm680_vm1, %v11319_v63 }
 0x22b   :  { %6695 = vmatmul.mubr.msk.bf16.gmra.mrb[44].mxu0 %vm680_vm1, %v8844_v41  ;;  %6410 = vmatprep.mubr.msk.bf16.mxu1 %vm680_vm1, %v11320_v43 }
 0x22c   :  { %6698 = vmatprep.mubr.msk.bf16.mxu0 %vm680_vm1, %v8441_v38  ;;  %v11346_v38 = vld [vmem:[#allocation31_spill] sm:$0xff] }
 0x232   :  { %6411 = vmatmul.mubr.msk.bf16.gmra.mrb[48].mxu1 %vm680_vm1, %v11321_v62 }
 0x233   :  { %6699 = vmatmul.mubr.msk.bf16.gmra.mrb[48].mxu0 %vm680_vm1, %v11303_v18  ;;  %6414 = vmatprep.mubr.msk.bf16.mxu1 %vm680_vm1, %v11322_v35 }
 0x234   :  { %6702 = vmatprep.mubr.msk.bf16.mxu0 %vm680_vm1, %v11305_v7 }
 0x23a   :  { %6415 = vmatmul.mubr.msk.bf16.gmra.mrb[52].mxu1 %vm680_vm1, %v11323_v2 }
 0x23b   :  { %6703 = vmatmul.mubr.msk.bf16.gmra.mrb[52].mxu0 %vm680_vm1, %v11345_v21  ;;  %6418 = vmatprep.mubr.msk.bf16.mxu1 %vm680_vm1, %v11325_v58 }
 0x23c   :  { %6706 = vmatprep.mubr.msk.bf16.mxu0 %vm680_vm1, %v11309_v31 }
 0x242   :  { %6419 = vmatmul.mubr.msk.bf16.gmra.mrb[56].mxu1 %vm680_vm1, %v11326_v37 }
 0x243   :  { %6707 = vmatmul.mubr.msk.bf16.gmra.mrb[56].mxu0 %vm680_vm1, %v8952_v46  ;;  %6422 = vmatprep.mubr.msk.bf16.mxu1 %vm680_vm1, %v11327_v28 }
 0x244   :  { %6710 = vmatprep.mubr.msk.bf16.mxu0 %vm680_vm1, %v11346_v38 }
 0x24a   :  { %6423 = vmatmul.mubr.msk.bf16.gmra.mrb[60].mxu1 %vm680_vm1, %v9394_v52 }
 0x24b   :  { %6711 = vmatmul.mubr.msk.bf16.gmra.mrb[60].mxu0 %vm680_vm1, %v4253_v27 }
 0x265   :  { %v6292_v1 = vpop.f32.mrb[0].mxu1 }
 0x266   :  { %v2289_v48 = vpop.f32.mrb[1].mxu1 }
 0x267   :  { %v6293_v4 = vpop.f32.mrb[2].mxu1 }
 0x268   :  { %v2292_v54 = vpop.f32.mrb[3].mxu1 }
 0x26d   :  { %v6296_v39 = vpop.f32.mrb[4].mxu1 }
 0x26e   :  { %v2305_v14 = vpop.f32.mrb[5].mxu1 }
 0x26f   :  { %v6297_v41 = vpop.f32.mrb[6].mxu1 }
 0x270   :  { %v2308_v46 = vpop.f32.mrb[7].mxu1 }
 0x275   :  { %v6300_v19 = vpop.f32.mrb[8].mxu1 }
 0x276   :  { %v2321_v15 = vpop.f32.mrb[9].mxu1 }
 0x277   :  { %v6301_v12 = vpop.f32.mrb[10].mxu1 }
 0x278   :  { %v2324_v50 = vpop.f32.mrb[11].mxu1 }
 0x27d   :  { %v9553_v61 = vpop.f32.mrb[12].mxu1 }
 0x27e   :  { %v9555_v49 = vpop.f32.mrb[13].mxu1 }
 0x27f   :  { %v9557_v18 = vpop.f32.mrb[14].mxu1 }
 0x280   :  { %v9559_v7 = vpop.f32.mrb[15].mxu1 }
 0x285   :  { %v9561_v25 = vpop.f32.mrb[16].mxu1 }
 0x286   :  { %v9563_v31 = vpop.f32.mrb[17].mxu1 }
 0x287   :  { %v9565_v30 = vpop.f32.mrb[18].mxu1 }
 0x288   :  { %v9567_v51 = vpop.f32.mrb[19].mxu1 }
 0x28d   :  { %v9569_v9 = vpop.f32.mrb[20].mxu1 }
 0x28e   :  { %v9571_v10 = vpop.f32.mrb[21].mxu1 }
 0x28f   :  { %v9573_v6 = vpop.f32.mrb[22].mxu1 }
 0x290   :  { %v9575_v55 = vpop.f32.mrb[23].mxu1 }
 0x295   :  { %v9577_v33 = vpop.f32.mrb[24].mxu1 }
 0x296   :  { %v9579_v59 = vpop.f32.mrb[25].mxu1 }
 0x297   :  { %v9581_v63 = vpop.f32.mrb[26].mxu1 }
 0x298   :  { %v9583_v43 = vpop.f32.mrb[27].mxu1 }
 0x29d   :  { %v9585_v62 = vpop.f32.mrb[28].mxu1 }
 0x29e   :  { %v9587_v35 = vpop.f32.mrb[29].mxu1 }
 0x29f   :  { %v9589_v2 = vpop.f32.mrb[30].mxu1 }
 0x2a0   :  { %v9591_v3 = vpop.f32.mrb[31].mxu1 }
 0x2a6   :  { %v6652_v47 = vpop.f32.mrb[0].mxu0 }
 0x2a7   :  { %v9593_v58 = vadd.f32 %v6652_v47, %v6292_v1  ;;  %v4327_v37 = vpop.f32.mrb[1].mxu0 }
 0x2a8   :  { %v9595_v16 = vadd.f32 %v4327_v37, %v2289_v48  ;;  %v6653_v5 = vpop.f32.mrb[2].mxu0 }
 0x2a9   :  { %v9597_v52 = vadd.f32 %v6653_v5, %v6293_v4  ;;  %v4330_v28 = vpop.f32.mrb[3].mxu0  ;;  %v4652_v36 = vsel %vm680_vm1, %v9593_v58, -inf }
 0x2aa   :  { %v9601_v22 = vadd.f32 %v4330_v28, %v2292_v54  ;;  %4653 = vmax.xlane.f32.xlu1 %v4652_v36  ;;  %v4646_v32 = vsel %vm680_vm1, %v9595_v16, -inf }
 0x2ab   :  { %4647 = vmax.xlane.f32.xlu0 %v4646_v32  ;;  %v4655_v53 = vsel %vm680_vm1, %v9597_v52, -inf }
 0x2ac   :  { %v4649_v27 = vsel %vm680_vm1, %v9601_v22, -inf }
 0x2ae   :  { %v6656_v56 = vpop.f32.mrb[4].mxu0  ;;  %4656 = vmax.xlane.f32.xlu1 %v4655_v53 }
 0x2af   :  { %v9609_v11 = vadd.f32 %v6656_v56, %v6296_v39  ;;  %v4343_v40 = vpop.f32.mrb[5].mxu0  ;;  %4650 = vmax.xlane.f32.xlu0 %v4649_v27 }
 0x2b0   :  { %v9611_v57 = vadd.f32 %v4343_v40, %v2305_v14  ;;  %v6657_v13 = vpop.f32.mrb[6].mxu0 }
 0x2b1   :  { %v9613_v24 = vadd.f32 %v6657_v13, %v6297_v41  ;;  %v4346_v17 = vpop.f32.mrb[7].mxu0  ;;  %v4664_v42 = vsel %vm680_vm1, %v9609_v11, -inf }
 0x2b2   :  { %v9617_v20 = vadd.f32 %v4346_v17, %v2308_v46  ;;  %v4658_v23 = vsel %vm680_vm1, %v9611_v57, -inf }
 0x2b3   :  { %4665 = vmax.xlane.f32.xlu0 %v4664_v42  ;;  %v4667_v45 = vsel %vm680_vm1, %v9613_v24, -inf }
 0x2b4   :  { %4668 = vmax.xlane.f32.xlu1 %v4667_v45  ;;  %v4661_v60 = vsel %vm680_vm1, %v9617_v20, -inf }
 0x2b6   :  { %v6660_v29 = vpop.f32.mrb[8].mxu0 }
 0x2b7   :  { %v9623_v34 = vadd.f32 %v6660_v29, %v6300_v19  ;;  %v4359_v0 = vpop.f32.mrb[9].mxu0  ;;  %4659 = vmax.xlane.f32.xlu0 %v4658_v23 }
 0x2b8   :  { %v9627_v44 = vadd.f32 %v4359_v0, %v2321_v15  ;;  %v6661_v8 = vpop.f32.mrb[10].mxu0  ;;  %4662 = vmax.xlane.f32.xlu1 %v4661_v60 }
 0x2b9   :  { %v9629_v26 = vadd.f32 %v6661_v8, %v6301_v12  ;;  %v4362_v21 = vpop.f32.mrb[11].mxu0  ;;  %v4676_v38 = vsel %vm680_vm1, %v9623_v34, -inf }
 0x2ba   :  { %v9633_v1 = vadd.f32 %v4362_v21, %v2324_v50  ;;  %v4670_v54 = vsel %vm680_vm1, %v9627_v44, -inf }
 0x2bb   :  { %4677 = vmax.xlane.f32.xlu0 %v4676_v38  ;;  %v4679_v48 = vsel %vm680_vm1, %v9629_v26, -inf }
 0x2bc   :  { %4680 = vmax.xlane.f32.xlu1 %v4679_v48  ;;  %v4673_v41 = vsel %vm680_vm1, %v9633_v1, -inf }
 0x2be   :  { %v6664_v4 = vpop.f32.mrb[12].mxu0 }
 0x2bf   :  { %v9640_v39 = vadd.f32 %v6664_v4, %v9553_v61  ;;  %v4375_v14 = vpop.f32.mrb[13].mxu0  ;;  %4671 = vmax.xlane.f32.xlu0 %v4670_v54 }
 0x2c0   :  { %v9645_v46 = vadd.f32 %v4375_v14, %v9555_v49  ;;  %v6665_v19 = vpop.f32.mrb[14].mxu0  ;;  %4674 = vmax.xlane.f32.xlu1 %v4673_v41 }
 0x2c1   :  { %v9648_v15 = vadd.f32 %v6665_v19, %v9557_v18  ;;  %v4378_v12 = vpop.f32.mrb[15].mxu0  ;;  %v4688_v50 = vsel %vm680_vm1, %v9640_v39, -inf }
 0x2c2   :  { %v9653_v61 = vadd.f32 %v4378_v12, %v9559_v7  ;;  %v4682_v49 = vsel %vm680_vm1, %v9645_v46, -inf }
 0x2c3   :  { %4689 = vmax.xlane.f32.xlu0 %v4688_v50  ;;  %v4691_v47 = vsel %vm680_vm1, %v9648_v15, -inf }
 0x2c4   :  { %4692 = vmax.xlane.f32.xlu1 %v4691_v47  ;;  %v4685_v28 = vsel %vm680_vm1, %v9653_v61, -inf }
 0x2c6   :  { %v6668_v37 = vpop.f32.mrb[16].mxu0 }
 0x2c7   :  { %v9660_v5 = vadd.f32 %v6668_v37, %v9561_v25  ;;  %v4391_v18 = vpop.f32.mrb[17].mxu0  ;;  %4683 = vmax.xlane.f32.xlu0 %v4682_v49 }
 0x2c8   :  { %v9665_v7 = vadd.f32 %v4391_v18, %v9563_v31  ;;  %v6669_v36 = vpop.f32.mrb[18].mxu0  ;;  %4686 = vmax.xlane.f32.xlu1 %v4685_v28 }
 0x2c9   :  { %v9668_v32 = vadd.f32 %v6669_v36, %v9565_v30  ;;  %v4394_v53 = vpop.f32.mrb[19].mxu0  ;;  %v4700_v56 = vsel %vm680_vm1, %v9660_v5, -inf }
 0x2ca   :  { %v9673_v25 = vadd.f32 %v4394_v53, %v9567_v51  ;;  %v4694_v31 = vsel %vm680_vm1, %v9665_v7, -inf }
 0x2cb   :  { %4701 = vmax.xlane.f32.xlu0 %v4700_v56  ;;  %v4703_v27 = vsel %vm680_vm1, %v9668_v32, -inf }
 0x2cc   :  { %4704 = vmax.xlane.f32.xlu1 %v4703_v27  ;;  %v4697_v17 = vsel %vm680_vm1, %v9673_v25, -inf }
 0x2ce   :  { %v6672_v40 = vpop.f32.mrb[20].mxu0 }
 0x2cf   :  { %v9680_v13 = vadd.f32 %v6672_v40, %v9569_v9  ;;  %v4407_v30 = vpop.f32.mrb[21].mxu0  ;;  %4695 = vmax.xlane.f32.xlu0 %v4694_v31 }
 0x2d0   :  { %v9685_v51 = vadd.f32 %v4407_v30, %v9571_v10  ;;  %v6673_v42 = vpop.f32.mrb[22].mxu0  ;;  %4698 = vmax.xlane.f32.xlu1 %v4697_v17 }
 0x2d1   :  { %v9688_v45 = vadd.f32 %v6673_v42, %v9573_v6  ;;  %v4410_v29 = vpop.f32.mrb[23].mxu0  ;;  %v4712_v23 = vsel %vm680_vm1, %v9680_v13, -inf }
 0x2d2   :  { %v9693_v9 = vadd.f32 %v4410_v29, %v9575_v55  ;;  %v4706_v10 = vsel %vm680_vm1, %v9685_v51, -inf }
 0x2d3   :  { %4713 = vmax.xlane.f32.xlu0 %v4712_v23  ;;  %v4715_v0 = vsel %vm680_vm1, %v9688_v45, -inf }
 0x2d4   :  { %4716 = vmax.xlane.f32.xlu1 %v4715_v0  ;;  %v4709_v21 = vsel %vm680_vm1, %v9693_v9, -inf }
 0x2d6   :  { %v6676_v60 = vpop.f32.mrb[24].mxu0 }
 0x2d7   :  { %v9700_v8 = vadd.f32 %v6676_v60, %v9577_v33  ;;  %v4423_v6 = vpop.f32.mrb[25].mxu0  ;;  %4707 = vmax.xlane.f32.xlu0 %v4706_v10 }
 0x2d8   :  { %v9705_v55 = vadd.f32 %v4423_v6, %v9579_v59  ;;  %v6677_v38 = vpop.f32.mrb[26].mxu0  ;;  %4710 = vmax.xlane.f32.xlu1 %v4709_v21 }
 0x2d9   :  { %v9708_v48 = vadd.f32 %v6677_v38, %v9581_v63  ;;  %v4426_v4 = vpop.f32.mrb[27].mxu0  ;;  %v4724_v54 = vsel %vm680_vm1, %v9700_v8, -inf }
 0x2da   :  { %v9713_v33 = vadd.f32 %v4426_v4, %v9583_v43  ;;  %v4718_v59 = vsel %vm680_vm1, %v9705_v55, -inf }
 0x2db   :  { %4725 = vmax.xlane.f32.xlu0 %v4724_v54  ;;  %v4727_v14 = vsel %vm680_vm1, %v9708_v48, -inf }
 0x2dc   :  { %4728 = vmax.xlane.f32.xlu1 %v4727_v14  ;;  %v4721_v12 = vsel %vm680_vm1, %v9713_v33, -inf }
 0x2de   :  { %v6680_v41 = vpop.f32.mrb[28].mxu0 }
 0x2df   :  { %v9720_v19 = vadd.f32 %v6680_v41, %v9585_v62  ;;  %v4439_v63 = vpop.f32.mrb[29].mxu0  ;;  %4719 = vmax.xlane.f32.xlu0 %v4718_v59 }
 0x2e0   :  { %v9725_v43 = vadd.f32 %v4439_v63, %v9587_v35  ;;  %v6681_v50 = vpop.f32.mrb[30].mxu0  ;;  %4722 = vmax.xlane.f32.xlu1 %v4721_v12 }
 0x2e1   :  { %v9728_v47 = vadd.f32 %v6681_v50, %v9589_v2  ;;  %v4442_v37 = vpop.f32.mrb[31].mxu0  ;;  %v4736_v49 = vsel %vm680_vm1, %v9720_v19, -inf }
 0x2e2   :  { %v9733_v62 = vadd.f32 %v4442_v37, %v9591_v3  ;;  %v4730_v36 = vsel %vm680_vm1, %v9725_v43, -inf }
 0x2e3   :  { %4737 = vmax.xlane.f32.xlu0 %v4736_v49  ;;  %v4739_v18 = vsel %vm680_vm1, %v9728_v47, -inf }
 0x2e4   :  { %4740 = vmax.xlane.f32.xlu1 %v4739_v18  ;;  %v4733_v27 = vsel %vm680_vm1, %v9733_v62, -inf }
 0x2e5   :  { %v6396_v28 = vpop.f32.mrb[32].mxu1 }
 0x2e6   :  { %v6684_v35 = vpop.f32.mrb[32].mxu0  ;;  %v2831_v53 = vpop.f32.mrb[33].mxu1 }
 0x2e7   :  { %v9739_v2 = vadd.f32 %v6684_v35, %v6396_v28  ;;  %v4455_v56 = vpop.f32.mrb[33].mxu0  ;;  %4731 = vmax.xlane.f32.xlu0 %v4730_v36  ;;  %v6397_v3 = vpop.f32.mrb[34].mxu1 }
 0x2e8   :  { %v9743_v40 = vadd.f32 %v4455_v56, %v2831_v53  ;;  %v6685_v31 = vpop.f32.mrb[34].mxu0  ;;  %4734 = vmax.xlane.f32.xlu1 %v4733_v27  ;;  %v2834_v30 = vpop.f32.mrb[35].mxu1 }
 0x2e9   :  { %v9745_v17 = vadd.f32 %v6685_v31, %v6397_v3  ;;  %v4458_v42 = vpop.f32.mrb[35].mxu0  ;;  %v4748_v29 = vsel %vm680_vm1, %v9739_v2, -inf }
 0x2ea   :  { %11347 = vst [vmem:[#allocation34_spill] sm:$0xff] %v9743_v40  ;;  %v9749_v23 = vadd.f32 %v4458_v42, %v2834_v30  ;;  %v4742_v6 = vsel %vm680_vm1, %v9743_v40, -inf }
 0x2eb   :  { %11348 = vst [vmem:[#allocation35_spill] sm:$0xff] %v9745_v17  ;;  %4749 = vmax.xlane.f32.xlu0 %v4748_v29  ;;  %v4751_v0 = vsel %vm680_vm1, %v9745_v17, -inf }
 0x2ec   :  { %11349 = vst [vmem:[#allocation17_spill] sm:$0xff] %v9749_v23  ;;  %4752 = vmax.xlane.f32.xlu1 %v4751_v0  ;;  %v4745_v54 = vsel %vm680_vm1, %v9749_v23, -inf }
 0x2ed   :  { %v6400_v60 = vpop.f32.mrb[36].mxu1 }
 0x2ee   :  { %v6688_v10 = vpop.f32.mrb[36].mxu0  ;;  %v2847_v21 = vpop.f32.mrb[37].mxu1 }
 0x2ef   :  { %v9755_v38 = vadd.f32 %v6688_v10, %v6400_v60  ;;  %v4471_v4 = vpop.f32.mrb[37].mxu0  ;;  %4743 = vmax.xlane.f32.xlu0 %v4742_v6  ;;  %v6401_v14 = vpop.f32.mrb[38].mxu1 }
 0x2f0   :  { %v9759_v41 = vadd.f32 %v4471_v4, %v2847_v21  ;;  %v6689_v59 = vpop.f32.mrb[38].mxu0  ;;  %4746 = vmax.xlane.f32.xlu1 %v4745_v54  ;;  %v2850_v63 = vpop.f32.mrb[39].mxu1 }
 0x2f1   :  { %11350 = vst [vmem:[#allocation21_spill] sm:$0xff] %v9755_v38  ;;  %v9761_v12 = vadd.f32 %v6689_v59, %v6401_v14  ;;  %v4474_v50 = vpop.f32.mrb[39].mxu0  ;;  %v4760_v37 = vsel %vm680_vm1, %v9755_v38, -inf }
 0x2f2   :  { %11351 = vst [vmem:[#allocation22_spill] sm:$0xff] %v9759_v41  ;;  %v9765_v49 = vadd.f32 %v4474_v50, %v2850_v63  ;;  %v4754_v36 = vsel %vm680_vm1, %v9759_v41, -inf }
 0x2f3   :  { %11352 = vst [vmem:[#allocation32_spill] sm:$0xff] %v9761_v12  ;;  %4761 = vmax.xlane.f32.xlu0 %v4760_v37  ;;  %v4763_v18 = vsel %vm680_vm1, %v9761_v12, -inf }
 0x2f4   :  { %11353 = vst [vmem:[#allocation37_spill] sm:$0xff] %v9765_v49  ;;  %4764 = vmax.xlane.f32.xlu1 %v4763_v18  ;;  %v4757_v3 = vsel %vm680_vm1, %v9765_v49, -inf }
 0x2f5   :  { %v6404_v28 = vpop.f32.mrb[40].mxu1 }
 0x2f6   :  { %v6692_v35 = vpop.f32.mrb[40].mxu0  ;;  %v2863_v53 = vpop.f32.mrb[41].mxu1 }
 0x2f7   :  { %v9771_v56 = vadd.f32 %v6692_v35, %v6404_v28  ;;  %v4487_v27 = vpop.f32.mrb[41].mxu0  ;;  %4755 = vmax.xlane.f32.xlu0 %v4754_v36  ;;  %v6405_v31 = vpop.f32.mrb[42].mxu1 }
 0x2f8   :  { %v9775_v30 = vadd.f32 %v4487_v27, %v2863_v53  ;;  %v6693_v42 = vpop.f32.mrb[42].mxu0  ;;  %4758 = vmax.xlane.f32.xlu1 %v4757_v3  ;;  %v2866_v29 = vpop.f32.mrb[43].mxu1 }
 0x2f9   :  { %11354 = vst [vmem:[#allocation39_spill] sm:$0xff] %v9771_v56  ;;  %v9777_v0 = vadd.f32 %v6693_v42, %v6405_v31  ;;  %v4490_v60 = vpop.f32.mrb[43].mxu0  ;;  %v4772_v10 = vsel %vm680_vm1, %v9771_v56, -inf }
 0x2fa   :  { %11355 = vst [vmem:[#allocation41_spill] sm:$0xff] %v9775_v30  ;;  %v9781_v6 = vadd.f32 %v4490_v60, %v2866_v29  ;;  %v4766_v14 = vsel %vm680_vm1, %v9775_v30, -inf }
 0x2fb   :  { %11356 = vst [vmem:[#allocation43_spill] sm:$0xff] %v9777_v0  ;;  %4773 = vmax.xlane.f32.xlu0 %v4772_v10  ;;  %v4775_v21 = vsel %vm680_vm1, %v9777_v0, -inf }
 0x2fc   :  { %11357 = vst [vmem:[#allocation45_spill] sm:$0xff] %v9781_v6  ;;  %4776 = vmax.xlane.f32.xlu1 %v4775_v21  ;;  %v4769_v37 = vsel %vm680_vm1, %v9781_v6, -inf }
 0x2fd   :  { %v6408_v4 = vpop.f32.mrb[44].mxu1 }
 0x2fe   :  { %v6696_v54 = vpop.f32.mrb[44].mxu0  ;;  %v2879_v59 = vpop.f32.mrb[45].mxu1 }
 0x2ff   :  { %v9787_v63 = vadd.f32 %v6696_v54, %v6408_v4  ;;  %v4503_v50 = vpop.f32.mrb[45].mxu0  ;;  %4767 = vmax.xlane.f32.xlu0 %v4766_v14  ;;  %v6409_v18 = vpop.f32.mrb[46].mxu1 }
 0x300   :  { %v9791_v28 = vadd.f32 %v4503_v50, %v2879_v59  ;;  %v6697_v35 = vpop.f32.mrb[46].mxu0  ;;  %4770 = vmax.xlane.f32.xlu1 %v4769_v37  ;;  %v2882_v36 = vpop.f32.mrb[47].mxu1 }
 0x301   :  { %11358 = vst [vmem:[#allocation47_spill] sm:$0xff] %v9787_v63  ;;  %v9793_v53 = vadd.f32 %v6697_v35, %v6409_v18  ;;  %v4506_v27 = vpop.f32.mrb[47].mxu0  ;;  %v4784_v3 = vsel %vm680_vm1, %v9787_v63, -inf }
 0x302   :  { %11359 = vst [vmem:[#allocation49_spill] sm:$0xff] %v9791_v28  ;;  %v9797_v31 = vadd.f32 %v4506_v27, %v2882_v36  ;;  %v4778_v10 = vsel %vm680_vm1, %v9791_v28, -inf  ;;  %v85_v28 = vld [vmem:[%s11023_s2 + $0x18] sm:$0xff] }
 0x303   :  { %11360 = vst [vmem:[#allocation68_spill] sm:$0xff] %v9793_v53  ;;  %4785 = vmax.xlane.f32.xlu0 %v4784_v3  ;;  %v4787_v42 = vsel %vm680_vm1, %v9793_v53, -inf }
 0x304   :  { %11361 = vst [vmem:[#allocation3_spill] sm:$0xff] %v9797_v31  ;;  %4788 = vmax.xlane.f32.xlu1 %v4787_v42  ;;  %v4781_v14 = vsel %vm680_vm1, %v9797_v31, -inf }
 0x305   :  { %v6412_v29 = vpop.f32.mrb[48].mxu1 }
 0x306   :  { %v6700_v60 = vpop.f32.mrb[48].mxu0  ;;  %v2895_v21 = vpop.f32.mrb[49].mxu1 }
 0x307   :  { %v9803_v4 = vadd.f32 %v6700_v60, %v6412_v29  ;;  %v4519_v54 = vpop.f32.mrb[49].mxu0  ;;  %4779 = vmax.xlane.f32.xlu0 %v4778_v10  ;;  %v6413_v59 = vpop.f32.mrb[50].mxu1 }
 0x308   :  { %v9807_v50 = vadd.f32 %v4519_v54, %v2895_v21  ;;  %v6701_v37 = vpop.f32.mrb[50].mxu0  ;;  %4782 = vmax.xlane.f32.xlu1 %v4781_v14  ;;  %v2898_v18 = vpop.f32.mrb[51].mxu1 }
 0x309   :  { %11362 = vst [vmem:[#allocation24_spill] sm:$0xff] %v9803_v4  ;;  %v9809_v35 = vadd.f32 %v6701_v37, %v6413_v59  ;;  %v4522_v36 = vpop.f32.mrb[51].mxu0  ;;  %v4796_v27 = vsel %vm680_vm1, %v9803_v4, -inf }
 0x30a   :  { %11363 = vst [vmem:[#allocation4_spill] sm:$0xff] %v9807_v50  ;;  %v9813_v3 = vadd.f32 %v4522_v36, %v2898_v18  ;;  %v4790_v10 = vsel %vm680_vm1, %v9807_v50, -inf }
 0x30b   :  { %11364 = vst [vmem:[#allocation5_spill] sm:$0xff] %v9809_v35  ;;  %4797 = vmax.xlane.f32.xlu0 %v4796_v27  ;;  %v4799_v42 = vsel %vm680_vm1, %v9809_v35, -inf }
 0x30c   :  { %11365 = vst [vmem:[#allocation6_spill] sm:$0xff] %v9813_v3  ;;  %4800 = vmax.xlane.f32.xlu1 %v4799_v42  ;;  %v4793_v59 = vsel %vm680_vm1, %v9813_v3, -inf }
 0x30d   :  { %v6416_v29 = vpop.f32.mrb[52].mxu1 }
 0x30e   :  { %v6704_v60 = vpop.f32.mrb[52].mxu0  ;;  %v2911_v21 = vpop.f32.mrb[53].mxu1 }
 0x30f   :  { %v9819_v54 = vadd.f32 %v6704_v60, %v6416_v29  ;;  %v4535_v14 = vpop.f32.mrb[53].mxu0  ;;  %4791 = vmax.xlane.f32.xlu0 %v4790_v10  ;;  %v6417_v37 = vpop.f32.mrb[54].mxu1 }
 0x310   :  { %v9823_v18 = vadd.f32 %v4535_v14, %v2911_v21  ;;  %v6705_v36 = vpop.f32.mrb[54].mxu0  ;;  %4794 = vmax.xlane.f32.xlu1 %v4793_v59  ;;  %v2914_v27 = vpop.f32.mrb[55].mxu1 }
 0x311   :  { %11366 = vst [vmem:[#allocation7_spill] sm:$0xff] %v9819_v54  ;;  %v9825_v42 = vadd.f32 %v6705_v36, %v6417_v37  ;;  %v4538_v35 = vpop.f32.mrb[55].mxu0  ;;  %v4808_v50 = vsel %vm680_vm1, %v9819_v54, -inf }
 0x312   :  { %11367 = vst [vmem:[#allocation8_spill] sm:$0xff] %v9823_v18  ;;  %v9829_v4 = vadd.f32 %v4538_v35, %v2914_v27  ;;  %v4802_v21 = vsel %vm680_vm1, %v9823_v18, -inf }
 0x313   :  { %11368 = vst [vmem:[#allocation9_spill] sm:$0xff] %v9825_v42  ;;  %4809 = vmax.xlane.f32.xlu0 %v4808_v50  ;;  %v4811_v29 = vsel %vm680_vm1, %v9825_v42, -inf }
 0x314   :  { %11369 = vst [vmem:[#allocation10_spill] sm:$0xff] %v9829_v4  ;;  %4812 = vmax.xlane.f32.xlu1 %v4811_v29  ;;  %v4805_v36 = vsel %vm680_vm1, %v9829_v4, -inf }
 0x315   :  { %v6420_v60 = vpop.f32.mrb[56].mxu1 }
 0x316   :  { %v6708_v10 = vpop.f32.mrb[56].mxu0  ;;  %v2927_v14 = vpop.f32.mrb[57].mxu1 }
 0x317   :  { %v9835_v59 = vadd.f32 %v6708_v10, %v6420_v60  ;;  %v4551_v37 = vpop.f32.mrb[57].mxu0  ;;  %4803 = vmax.xlane.f32.xlu0 %v4802_v21  ;;  %v6421_v35 = vpop.f32.mrb[58].mxu1 }
 0x318   :  { %v9839_v27 = vadd.f32 %v4551_v37, %v2927_v14  ;;  %v6709_v50 = vpop.f32.mrb[58].mxu0  ;;  %4806 = vmax.xlane.f32.xlu1 %v4805_v36  ;;  %v2930_v42 = vpop.f32.mrb[59].mxu1 }
 0x319   :  { %11370 = vst [vmem:[#allocation11_spill] sm:$0xff] %v9835_v59  ;;  %v9841_v29 = vadd.f32 %v6709_v50, %v6421_v35  ;;  %v4554_v54 = vpop.f32.mrb[59].mxu0  ;;  %v4820_v18 = vsel %vm680_vm1, %v9835_v59, -inf }
 0x31a   :  { %11371 = vst [vmem:[#allocation12_spill] sm:$0xff] %v9839_v27  ;;  %v9845_v3 = vadd.f32 %v4554_v54, %v2930_v42  ;;  %v4814_v14 = vsel %vm680_vm1, %v9839_v27, -inf }
 0x31b   :  { %11372 = vst [vmem:[#allocation15_spill] sm:$0xff] %v9841_v29  ;;  %4821 = vmax.xlane.f32.xlu0 %v4820_v18  ;;  %v4823_v60 = vsel %vm680_vm1, %v9841_v29, -inf }
 0x31c   :  { %11373 = vst [vmem:[#allocation27_spill] sm:$0xff] %v9845_v3  ;;  %4824 = vmax.xlane.f32.xlu1 %v4823_v60  ;;  %v4817_v50 = vsel %vm680_vm1, %v9845_v3, -inf }
 0x31d   :  { %v6424_v10 = vpop.f32.mrb[60].mxu1 }
 0x31e   :  { %v6712_v21 = vpop.f32.mrb[60].mxu0  ;;  %v2943_v37 = vpop.f32.mrb[61].mxu1 }
 0x31f   :  { %v9851_v36 = vadd.f32 %v6712_v21, %v6424_v10  ;;  %v4567_v35 = vpop.f32.mrb[61].mxu0  ;;  %4815 = vmax.xlane.f32.xlu0 %v4814_v14  ;;  %v6425_v54 = vpop.f32.mrb[62].mxu1 }
 0x320   :  { %v9855_v42 = vadd.f32 %v4567_v35, %v2943_v37  ;;  %v6713_v18 = vpop.f32.mrb[62].mxu0  ;;  %4818 = vmax.xlane.f32.xlu1 %v4817_v50  ;;  %v2946_v29 = vpop.f32.mrb[63].mxu1 }
 0x321   :  { %11374 = vst [vmem:[#allocation18_spill] sm:$0xff] %v9851_v36  ;;  %v9857_v60 = vadd.f32 %v6713_v18, %v6425_v54  ;;  %v4570_v59 = vpop.f32.mrb[63].mxu0  ;;  %v4832_v14 = vsel %vm680_vm1, %v9851_v36, -inf  ;;  %v82_v36 = vld [vmem:[%s11023_s2] sm:$0xff] }
 0x322   :  { %11375 = vst [vmem:[#allocation52_spill] sm:$0xff] %v9855_v42  ;;  %v9859_v4 = vadd.f32 %v4570_v59, %v2946_v29  ;;  %v4826_v10 = vsel %vm680_vm1, %v9855_v42, -inf }
 0x323   :  { %11376 = vst [vmem:[#allocation25_spill] sm:$0xff] %v9857_v60  ;;  %4827 = vmax.xlane.f32.xlu0 %v4826_v10  ;;  %v4835_v37 = vsel %vm680_vm1, %v9857_v60, -inf }
 0x324   :  { %11377 = vst [vmem:[#allocation26_spill] sm:$0xff] %v9859_v4  ;;  %v4829_v21 = vsel %vm680_vm1, %v9859_v4, -inf }
 0x325   :  { %4830 = vmax.xlane.f32.xlu1 %v4829_v21 }
 0x327   :  { %4833 = vmax.xlane.f32.xlu0 %v4832_v14 }
 0x329   :  { %4836 = vmax.xlane.f32.xlu1 %v4835_v37 }
 0x337   :  { %v9869_v35 = vpop.xlane.xlu1 %4653 }
 0x338   :  { %v11148_v59 = vmax.f32 %v9869_v35, 1.0  ;;  %v9872_v29 = vpop.xlane.xlu0 %4647 }
 0x339   :  { %v11149_v50 = vmax.f32 %v9872_v29, 1.0  ;;  %v11380_v49 = vmax.f32 %v9872_v29, 1.0 }
 0x33a   :  { %7270 = vrcp.f32 %v11148_v59 }
 0x33b   :  { %7272 = vrcp.f32 %v11149_v50  ;;  %v9879_v54 = vpop.xlane.xlu1 %4656  ;;  %v84_v50 = vld [vmem:[%s11023_s2 + $0x10] sm:$0xff] }
 0x33c   :  { %v11153_v18 = vmax.f32 %v9879_v54, 1.0  ;;  %v9882_v10 = vpop.xlane.xlu0 %4650 }
 0x33d   :  { %v11152_v21 = vmax.f32 %v9882_v10, 1.0 }
 0x33e   :  { %7274 = vrcp.f32 %v11153_v18 }
 0x33f   :  { %7276 = vrcp.f32 %v11152_v21 }
 0x340   :  { %v9889_v14 = vpop.xlane.xlu0 %4665 }
 0x341   :  { %v11162_v37 = vmax.f32 %v9889_v14, 1.0  ;;  %v9892_v59 = vpop.xlane.xlu1 %4668 }
 0x342   :  { %v11161_v60 = vmax.f32 %v9892_v59, 1.0 }
 0x343   :  { %7278 = vrcp.f32 %v11162_v37 }
 0x344   :  { %v7271_v21 = vpop.eup %7270  ;;  %7280 = vrcp.f32 %v11161_v60  ;;  %v9905_v18 = vpop.xlane.xlu0 %4659  ;;  %v83_v60 = vld [vmem:[%s11023_s2 + $0x8] sm:$0xff] }
 0x345   :  { %v7273_v4 = vpop.eup %7272  ;;  %v4968_v42 = vmul.f32 %v7271_v21, %v84_v50  ;;  %v11165_v3 = vmax.f32 %v9905_v18, 1.0  ;;  %v9908_v27 = vpop.xlane.xlu1 %4662 }
 0x346   :  { %v4966_v31 = vmul.f32 %v7273_v4, %v82_v36  ;;  %v11166_v53 = vmax.f32 %v9908_v27, 1.0 }
 0x347   :  { %7282 = vtanh.f32 %v4968_v42 }
 0x348   :  { %v7275_v37 = vpop.eup %7274  ;;  %7284 = vtanh.f32 %v4966_v31  ;;  %v9917_v63 = vpop.xlane.xlu0 %4677  ;;  %v88_v31 = vld [vmem:[%s11023_s2 + $0x30] sm:$0xff] }
 0x349   :  { %v7277_v50 = vpop.eup %7276  ;;  %v4969_v21 = vmul.f32 %v7275_v37, %v85_v28  ;;  %7286 = vrcp.f32 %v11165_v3  ;;  %v11170_v4 = vmax.f32 %v9917_v63, 1.0  ;;  %v9922_v36 = vpop.xlane.xlu1 %4680  ;;  %v89_v28 = vld [vmem:[%s11023_s2 + $0x38] sm:$0xff] }
 0x34a   :  { %v4967_v6 = vmul.f32 %v7277_v50, %v83_v60  ;;  %7288 = vrcp.f32 %v11166_v53  ;;  %v11171_v42 = vmax.f32 %v9922_v36, 1.0 }
 0x34b   :  { %7290 = vtanh.f32 %v4969_v21 }
 0x34c   :  { %7292 = vtanh.f32 %v4967_v6  ;;  %v9933_v37 = vpop.xlane.xlu0 %4671  ;;  %v11378_v6 = vmax.f32 %v9869_v35, 1.0 }
 0x34d   :  { %v7279_v3 = vpop.eup %7278  ;;  %7294 = vrcp.f32 %v11170_v4  ;;  %v11172_v60 = vmax.f32 %v9933_v37, 1.0  ;;  %v9938_v50 = vpop.xlane.xlu1 %4674  ;;  %v86_v4 = vld [vmem:[%s11023_s2 + $0x20] sm:$0xff] }
 0x34e   :  { %v7281_v21 = vpop.eup %7280  ;;  %v4972_v53 = vmul.f32 %v7279_v3, %v88_v31  ;;  %7296 = vrcp.f32 %v11171_v42  ;;  %v20_v3 = vld [vmem:[%s11024_s3 + $0x10] sm:$0xff] }
 0x34f   :  { %v4973_v30 = vmul.f32 %v7281_v21, %v89_v28  ;;  %7298 = vrcp.f32 %v11172_v60  ;;  %v11379_v21 = vmax.f32 %v9938_v50, 1.0 }
 0x350   :  { %7300 = vtanh.f32 %v4972_v53  ;;  %v9945_v0 = vpop.xlane.xlu0 %4689  ;;  %v87_v53 = vld [vmem:[%s11023_s2 + $0x28] sm:$0xff] }
 0x351   :  { %v7283_v56 = vpop.eup %7282  ;;  %7302 = vtanh.f32 %v4973_v30  ;;  %v9951_v31 = vpop.xlane.xlu1 %4692  ;;  %v11381_v35 = vmax.f32 %v9945_v0, 1.0 }
 0x352   :  { %v7285_v42 = vpop.eup %7284  ;;  %v5096_v28 = vmul.f32 %v7283_v56, %v11378_v6  ;;  %7304 = vrcp.f32 %v11379_v21  ;;  %v11179_v30 = vmax.f32 %v9951_v31, 1.0  ;;  %v18_v21 = vld [vmem:[%s11024_s3] sm:$0xff] }
 0x353   :  { %v7287_v60 = vpop.eup %7286  ;;  %v5094_v41 = vmul.f32 %v7285_v42, %v11380_v49  ;;  %7306 = vrcp.f32 %v11381_v35  ;;  %v92_v42 = vld [vmem:[%s11023_s2 + $0x50] sm:$0xff] }
 0x354   :  { %v7289_v56 = vpop.eup %7288  ;;  %v5160_v6 = vadd.f32 %v9593_v58, %v5096_v28  ;;  %v4970_v12 = vmul.f32 %v7287_v60, %v86_v4  ;;  %7308 = vrcp.f32 %v11179_v30  ;;  %v9974_v38 = vpop.xlane.xlu0 %4683  ;;  %v11382_v4 = vmax.f32 %v9879_v54, 1.0  ;;  %v93_v30 = vld [vmem:[%s11023_s2 + $0x58] sm:$0xff] }
 0x355   :  { %v7291_v23 = vpop.eup %7290  ;;  %v5158_v29 = vadd.f32 %v9595_v16, %v5094_v41  ;;  %v4971_v49 = vmul.f32 %v7289_v56, %v87_v53  ;;  %v9981_v28 = vpop.xlane.xlu1 %4686  ;;  %v21_v56 = vld [vmem:[%s11024_s3 + $0x18] sm:$0xff]  ;;  %v11383_v58 = vmax.f32 %v9882_v10, 1.0  ;;  %v11384_v10 = vmax.f32 %v9974_v38, 1.0 }
 0x356   :  { %v7293_v35 = vpop.eup %7292  ;;  %v5224_v40 = vadd.f32 %v5160_v6, %v20_v3  ;;  %v5097_v60 = vmul.f32 %v7291_v23, %v11382_v4  ;;  %7310 = vtanh.f32 %v4970_v12  ;;  %v4851_v16 = vmax.f32 %v9981_v28, 1.0  ;;  %v90_v23 = vld [vmem:[%s11023_s2 + $0x40] sm:$0xff] }
 0x357   :  { %v7295_v41 = vpop.eup %7294  ;;  %v5222_v53 = vadd.f32 %v5158_v29, %v18_v21  ;;  %v5095_v17 = vmul.f32 %v7293_v35, %v11383_v58  ;;  %7312 = vtanh.f32 %v4971_v49 }
 0x358   :  { %v7297_v12 = vpop.eup %7296  ;;  %5288 = vst.msk [vmem:[%s11025_s4 + $0x10] sm:$0xff] %vm680_vm1, %v5224_v40  ;;  %v5161_v54 = vadd.f32 %v9597_v52, %v5097_v60  ;;  %v4976_v6 = vmul.f32 %v7295_v41, %v92_v42  ;;  %7314 = vrcp.f32 %v11384_v10  ;;  %v10007_v21 = vpop.xlane.xlu0 %4701  ;;  %v91_v60 = vld [vmem:[%s11023_s2 + $0x48] sm:$0xff] }
 0x359   :  { %v7299_v29 = vpop.eup %7298  ;;  %v5159_v40 = vadd.f32 %v9601_v22, %v5095_v17  ;;  %v4977_v49 = vmul.f32 %v7297_v12, %v93_v30  ;;  %7316 = vrcp.f32 %v4851_v16  ;;  %v4856_v52 = vmax.f32 %v10007_v21, 1.0  ;;  %v10017_v42 = vpop.xlane.xlu1 %4704  ;;  %v96_v12 = vld [vmem:[%s11023_s2 + $0x70] sm:$0xff] }
 0x35a   :  { %v7301_v58 = vpop.eup %7300  ;;  %v5225_v35 = vadd.f32 %v5161_v54, %v21_v56  ;;  %7318 = vtanh.f32 %v4976_v6  ;;  %v4974_v4 = vmul.f32 %v7299_v29, %v90_v23  ;;  %v4857_v41 = vmax.f32 %v10017_v42, 1.0 }
 0x35b   :  { %v11385_v17 = vmax.f32 %v9889_v14, 1.0  ;;  %7320 = vtanh.f32 %v4977_v49  ;;  %v11386_v23 = vmax.f32 %v9892_v59, 1.0  ;;  %v97_v14 = vld [vmem:[%s11023_s2 + $0x78] sm:$0xff] }
 0x35c   :  { %7322 = vtanh.f32 %v4974_v4 }
 0x35d   :  { %v5100_v30 = vmul.f32 %v7301_v58, %v11385_v17  ;;  %7324 = vrcp.f32 %v4856_v52  ;;  %v10052_v49 = vpop.xlane.xlu1 %4698 }
 0x35e   :  { %7326 = vrcp.f32 %v4857_v41  ;;  %v11181_v17 = vmax.f32 %v10052_v49, 1.0 }
 0x35f   :  { %v19_v3 = vld [vmem:[%s11024_s3 + $0x8] sm:$0xff]  ;;  %v5164_v29 = vadd.f32 %v9609_v11, %v5100_v30 }
 0x360   :  { %5286 = vst.msk [vmem:[%s11025_s4] sm:$0xff] %vm680_vm1, %v5222_v53  ;;  %v7303_v53 = vpop.eup %7302  ;;  %v5223_v22 = vadd.f32 %v5159_v40, %v19_v3  ;;  %5289 = vst.msk [vmem:[%s11025_s4 + $0x18] sm:$0xff] %vm680_vm1, %v5225_v35  ;;  %v10040_v3 = vpop.xlane.xlu0 %4695 }
 0x361   :  { %v7305_v10 = vpop.eup %7304  ;;  %v5101_v54 = vmul.f32 %v7303_v53, %v11386_v23  ;;  %v4854_v53 = vmax.f32 %v10040_v3, 1.0  ;;  %v11396_v3 = vmax.f32 %v10052_v49, 1.0 }
 0x362   :  { %v7307_v6 = vpop.eup %7306  ;;  %v4975_v40 = vmul.f32 %v7305_v10, %v91_v60  ;;  %v94_v10 = vld [vmem:[%s11023_s2 + $0x60] sm:$0xff] }
 0x363   :  { %v7309_v58 = vpop.eup %7308  ;;  %v5165_v35 = vadd.f32 %v9613_v24, %v5101_v54  ;;  %v4980_v4 = vmul.f32 %v7307_v6, %v96_v12  ;;  %v11387_v12 = vmax.f32 %v9905_v18, 1.0  ;;  %v95_v54 = vld [vmem:[%s11023_s2 + $0x68] sm:$0xff]  ;;  %v10074_v6 = vpop.xlane.xlu1 %4716 }
 0x364   :  { %7328 = vtanh.f32 %v4975_v40  ;;  %v7311_v60 = vpop.eup %7310  ;;  %v10062_v23 = vpop.xlane.xlu0 %4713 }
 0x365   :  { %7330 = vtanh.f32 %v4980_v4  ;;  %v7313_v24 = vpop.eup %7312 }
 0x367   :  { %v24_v56 = vld [vmem:[%s11024_s3 + $0x30] sm:$0xff] }
 0x368   :  { %5287 = vst.msk [vmem:[%s11025_s4 + $0x8] sm:$0xff] %vm680_vm1, %v5223_v22  ;;  %v5228_v11 = vadd.f32 %v5164_v29, %v24_v56  ;;  %v4981_v22 = vmul.f32 %v7309_v58, %v97_v14  ;;  %v5098_v56 = vmul.f32 %v7311_v60, %v11387_v12  ;;  %v4860_v14 = vmax.f32 %v10062_v23, 1.0  ;;  %v7315_v29 = vpop.eup %7314 }
 0x369   :  { %v7317_v58 = vpop.eup %7316 }
 0x36a   :  { %7332 = vtanh.f32 %v4981_v22  ;;  %v4861_v22 = vmax.f32 %v10074_v6, 1.0  ;;  %v7319_v60 = vpop.eup %7318 }
 0x36b   :  { %7334 = vrcp.f32 %v4854_v53 }
 0x36c   :  { %7336 = vrcp.f32 %v11181_v17  ;;  %v10105_v17 = vpop.xlane.xlu1 %4710 }
 0x36d   :  { %7338 = vrcp.f32 %v4860_v14 }
 0x36f   :  { %v25_v59 = vld [vmem:[%s11024_s3 + $0x38] sm:$0xff] }
 0x370   :  { %v5229_v30 = vadd.f32 %v5165_v35, %v25_v59  ;;  %5292 = vst.msk [vmem:[%s11025_s4 + $0x30] sm:$0xff] %vm680_vm1, %v5228_v11  ;;  %v11388_v59 = vmax.f32 %v9908_v27, 1.0  ;;  %v5162_v35 = vadd.f32 %v9611_v57, %v5098_v56  ;;  %v4978_v11 = vmul.f32 %v7315_v29, %v94_v10  ;;  %v7321_v57 = vpop.eup %7320  ;;  %v100_v10 = vld [vmem:[%s11023_s2 + $0x90] sm:$0xff] }
 0x371   :  { %v11389_v56 = vmax.f32 %v9917_v63, 1.0  ;;  %v101_v63 = vld [vmem:[%s11023_s2 + $0x98] sm:$0xff] }
 0x372   :  { %5293 = vst.msk [vmem:[%s11025_s4 + $0x38] sm:$0xff] %vm680_vm1, %v5229_v30  ;;  %v5099_v40 = vmul.f32 %v7313_v24, %v11388_v59  ;;  %v4979_v30 = vmul.f32 %v7317_v58, %v95_v54  ;;  %v10097_v24 = vpop.xlane.xlu0 %4707  ;;  %7340 = vtanh.f32 %v4978_v11 }
 0x373   :  { %v5104_v59 = vmul.f32 %v7319_v60, %v11389_v56  ;;  %v4858_v29 = vmax.f32 %v10097_v24, 1.0  ;;  %v11391_v60 = vmax.f32 %v9933_v37, 1.0 }
 0x374   :  { %v5163_v27 = vadd.f32 %v9617_v20, %v5099_v40  ;;  %v7323_v20 = vpop.eup %7322  ;;  %7342 = vtanh.f32 %v4979_v30 }
 0x375   :  { %v7325_v11 = vpop.eup %7324  ;;  %7344 = vrcp.f32 %v4861_v22 }
 0x376   :  { %v7327_v30 = vpop.eup %7326  ;;  %7346 = vrcp.f32 %v4858_v29  ;;  %v10138_v37 = vpop.xlane.xlu0 %4725 }
 0x377   :  { %v7329_v56 = vpop.eup %7328 }
 0x379   :  { %v22_v18 = vld [vmem:[%s11024_s3 + $0x20] sm:$0xff]  ;;  %v23_v4 = vld [vmem:[%s11024_s3 + $0x28] sm:$0xff]  ;;  %v28_v40 = vld [vmem:[%s11024_s3 + $0x50] sm:$0xff] }
 0x37a   :  { %v5226_v12 = vadd.f32 %v5162_v35, %v22_v18  ;;  %v5227_v54 = vadd.f32 %v5163_v27, %v23_v4  ;;  %v11390_v18 = vmax.f32 %v9922_v36, 1.0  ;;  %v4859_v35 = vmax.f32 %v10105_v17, 1.0 }
 0x37b   :  { %v5168_v4 = vadd.f32 %v9623_v34, %v5104_v59  ;;  %v5102_v27 = vmul.f32 %v7323_v20, %v11391_v60  ;;  %v11392_v60 = vmax.f32 %v9938_v50, 1.0  ;;  %v11393_v50 = vmax.f32 %v9945_v0, 1.0 }
 0x37c   :  { %v5105_v58 = vmul.f32 %v7321_v57, %v11390_v18  ;;  %5290 = vst.msk [vmem:[%s11025_s4 + $0x20] sm:$0xff] %vm680_vm1, %v5226_v12  ;;  %v4984_v12 = vmul.f32 %v7325_v11, %v100_v10  ;;  %v4985_v18 = vmul.f32 %v7327_v30, %v101_v63  ;;  %7348 = vrcp.f32 %v4859_v35  ;;  %v98_v11 = vld [vmem:[%s11023_s2 + $0x80] sm:$0xff] }
 0x37d   :  { %v5232_v59 = vadd.f32 %v5168_v4, %v28_v40  ;;  %v5166_v20 = vadd.f32 %v9627_v44, %v5102_v27  ;;  %v5103_v10 = vmul.f32 %v7329_v56, %v11392_v60  ;;  %v11182_v40 = vmax.f32 %v10138_v37, 1.0  ;;  %v99_v27 = vld [vmem:[%s11023_s2 + $0x88] sm:$0xff] }
 0x37e   :  { %v5169_v57 = vadd.f32 %v9629_v26, %v5105_v58  ;;  %v7331_v26 = vpop.eup %7330  ;;  %7350 = vtanh.f32 %v4984_v12  ;;  %v11394_v12 = vmax.f32 %v9951_v31, 1.0 }
 0x37f   :  { %v7333_v4 = vpop.eup %7332  ;;  %7352 = vtanh.f32 %v4985_v18 }
 0x380   :  { %v5109_v56 = vmul.f32 %v7333_v4, %v11394_v12  ;;  %7354 = vrcp.f32 %v11182_v40 }
 0x382   :  { %v5173_v4 = vadd.f32 %v9648_v15, %v5109_v56 }
 0x383   :  { %v29_v36 = vld [vmem:[%s11024_s3 + $0x58] sm:$0xff] }
 0x384   :  { %5291 = vst.msk [vmem:[%s11025_s4 + $0x28] sm:$0xff] %vm680_vm1, %v5227_v54  ;;  %v10143_v54 = vpop.xlane.xlu1 %4728  ;;  %v5233_v58 = vadd.f32 %v5169_v57, %v29_v36  ;;  %v5108_v36 = vmul.f32 %v7331_v26, %v11393_v50  ;;  %v7335_v57 = vpop.eup %7334 }
 0x385   :  { %v4865_v30 = vmax.f32 %v10143_v54, 1.0  ;;  %v7337_v18 = vpop.eup %7336  ;;  %v4982_v26 = vmul.f32 %v7335_v57, %v98_v11  ;;  %v105_v11 = vld [vmem:[%s11023_s2 + $0xb8] sm:$0xff] }
 0x386   :  { %v7339_v60 = vpop.eup %7338  ;;  %v4983_v50 = vmul.f32 %v7337_v18, %v99_v27  ;;  %v103_v18 = vld [vmem:[%s11023_s2 + $0xa8] sm:$0xff] }
 0x387   :  { %7356 = vrcp.f32 %v4865_v30 }
 0x388   :  { %7358 = vtanh.f32 %v4982_v26 }
 0x389   :  { %7360 = vtanh.f32 %v4983_v50 }
 0x38b   :  { %v26_v34 = vld [vmem:[%s11024_s3 + $0x40] sm:$0xff] }
 0x38c   :  { %5296 = vst.msk [vmem:[%s11025_s4 + $0x50] sm:$0xff] %vm680_vm1, %v5232_v59  ;;  %v5230_v44 = vadd.f32 %v5166_v20, %v26_v34  ;;  %v5167_v34 = vadd.f32 %v9633_v1, %v5103_v10  ;;  %v104_v59 = vld [vmem:[%s11023_s2 + $0xb0] sm:$0xff]  ;;  %v10179_v20 = vpop.xlane.xlu0 %4719  ;;  %v5172_v1 = vadd.f32 %v9640_v39, %v5108_v36 }
 0x38d   :  { %v4862_v12 = vmax.f32 %v10179_v20, 1.0  ;;  %v4988_v39 = vmul.f32 %v7339_v60, %v104_v59  ;;  %v120_v20 = vld [vmem:[%s11023_s2 + $0x130] sm:$0xff] }
 0x38f   :  { %7362 = vtanh.f32 %v4988_v39  ;;  %v108_v39 = vld [vmem:[%s11023_s2 + $0xd0] sm:$0xff] }
 0x390   :  { %7364 = vrcp.f32 %v4862_v12 }
 0x393   :  { %v27_v63 = vld [vmem:[%s11024_s3 + $0x48] sm:$0xff] }
 0x394   :  { %5297 = vst.msk [vmem:[%s11025_s4 + $0x58] sm:$0xff] %vm680_vm1, %v5233_v58  ;;  %v10191_v58 = vpop.xlane.xlu1 %4722  ;;  %v5231_v10 = vadd.f32 %v5167_v34, %v27_v63  ;;  %v11395_v63 = vmax.f32 %v9974_v38, 1.0  ;;  %v102_v34 = vld [vmem:[%s11023_s2 + $0xa0] sm:$0xff] }
 0x395   :  { %v4863_v36 = vmax.f32 %v10191_v58, 1.0 }
 0x397   :  { %7366 = vrcp.f32 %v4863_v36 }
 0x39b   :  { %v32_v0 = vld [vmem:[%s11024_s3 + $0x70] sm:$0xff] }
 0x39c   :  { %5294 = vst.msk [vmem:[%s11025_s4 + $0x40] sm:$0xff] %vm680_vm1, %v5230_v44  ;;  %v7341_v44 = vpop.eup %7340  ;;  %v5236_v40 = vadd.f32 %v5172_v1, %v32_v0  ;;  %v10208_v0 = vpop.xlane.xlu0 %4737 }
 0x39d   :  { %v7343_v57 = vpop.eup %7342  ;;  %v5106_v27 = vmul.f32 %v7341_v44, %v11395_v63  ;;  %v10222_v1 = vpop.xlane.xlu1 %4740 }
 0x39e   :  { %v7345_v56 = vpop.eup %7344  ;;  %v5107_v38 = vmul.f32 %v7343_v57, %v4851_v16 }
 0x39f   :  { %v4989_v16 = vmul.f32 %v7345_v56, %v105_v11  ;;  %v4869_v11 = vmax.f32 %v10222_v1, 1.0 }
 0x3a0   :  { %v5171_v60 = vadd.f32 %v9653_v61, %v5107_v38  ;;  %v10242_v57 = vpop.xlane.xlu0 %4731 }
 0x3a1   :  { %7368 = vtanh.f32 %v4989_v16  ;;  %v4866_v42 = vmax.f32 %v10242_v57, 1.0 }
 0x3a3   :  { %v33_v31 = vld [vmem:[%s11024_s3 + $0x78] sm:$0xff] }
 0x3a4   :  { %5295 = vst.msk [vmem:[%s11025_s4 + $0x48] sm:$0xff] %vm680_vm1, %v5231_v10  ;;  %v5237_v15 = vadd.f32 %v5173_v4, %v33_v31  ;;  %5300 = vst.msk [vmem:[%s11025_s4 + $0x70] sm:$0xff] %vm680_vm1, %v5236_v40  ;;  %v7347_v31 = vpop.eup %7346  ;;  %v5170_v40 = vadd.f32 %v9645_v46, %v5106_v27  ;;  %v4868_v4 = vmax.f32 %v10208_v0, 1.0  ;;  %v109_v27 = vld [vmem:[%s11023_s2 + $0xd8] sm:$0xff]  ;;  %v10275_v16 = vpop.xlane.xlu0 %4749 }
 0x3a5   :  { %v7349_v26 = vpop.eup %7348  ;;  %v4986_v10 = vmul.f32 %v7347_v31, %v102_v34  ;;  %v10249_v34 = vpop.xlane.xlu1 %4734 }
 0x3a6   :  { %v7351_v50 = vpop.eup %7350  ;;  %v4987_v46 = vmul.f32 %v7349_v26, %v103_v18 }
 0x3a7   :  { %v5112_v63 = vmul.f32 %v7351_v50, %v4856_v52  ;;  %7370 = vtanh.f32 %v4986_v10 }
 0x3a8   :  { %7372 = vtanh.f32 %v4987_v46  ;;  %v106_v46 = vld [vmem:[%s11023_s2 + $0xc0] sm:$0xff] }
 0x3a9   :  { %v5176_v38 = vadd.f32 %v9660_v5, %v5112_v63  ;;  %7374 = vrcp.f32 %v4868_v4  ;;  %v10278_v10 = vpop.xlane.xlu1 %4752  ;;  %v107_v63 = vld [vmem:[%s11023_s2 + $0xc8] sm:$0xff] }
 0x3aa   :  { %7376 = vrcp.f32 %v4869_v11 }
 0x3ab   :  { %v30_v59 = vld [vmem:[%s11024_s3 + $0x60] sm:$0xff] }
 0x3ac   :  { %5301 = vst.msk [vmem:[%s11025_s4 + $0x78] sm:$0xff] %vm680_vm1, %v5237_v15  ;;  %v5234_v44 = vadd.f32 %v5170_v40, %v30_v59  ;;  %v7353_v15 = vpop.eup %7352 }
 0x3ad   :  { %v7355_v56 = vpop.eup %7354  ;;  %v5113_v21 = vmul.f32 %v7353_v15, %v4857_v41  ;;  %v10321_v23 = vpop.xlane.xlu1 %4746 }
 0x3ae   :  { %v7357_v52 = vpop.eup %7356  ;;  %v4992_v31 = vmul.f32 %v7355_v56, %v108_v39  ;;  %v4873_v39 = vmax.f32 %v10278_v10, 1.0 }
 0x3af   :  { %v5177_v41 = vadd.f32 %v9668_v32, %v5113_v21  ;;  %v4993_v40 = vmul.f32 %v7357_v52, %v109_v27  ;;  %v7359_v5 = vpop.eup %7358  ;;  %v10312_v21 = vpop.xlane.xlu0 %4743 }
 0x3b0   :  { %7378 = vtanh.f32 %v4992_v31  ;;  %v7361_v50 = vpop.eup %7360  ;;  %v5110_v32 = vmul.f32 %v7359_v5, %v4854_v53  ;;  %v4870_v31 = vmax.f32 %v10312_v21, 1.0 }
 0x3b1   :  { %7380 = vtanh.f32 %v4993_v40  ;;  %v7363_v15 = vpop.eup %7362  ;;  %v5111_v53 = vmul.f32 %v7361_v50, %v11396_v3 }
 0x3b2   :  { %7382 = vrcp.f32 %v4866_v42  ;;  %v7365_v27 = vpop.eup %7364  ;;  %v5174_v56 = vadd.f32 %v9665_v7, %v5110_v32  ;;  %v4871_v32 = vmax.f32 %v10321_v23, 1.0 }
 0x3b3   :  { %v31_v28 = vld [vmem:[%s11024_s3 + $0x68] sm:$0xff]  ;;  %v7367_v52 = vpop.eup %7366  ;;  %v4990_v7 = vmul.f32 %v7365_v27, %v106_v46  ;;  %v10359_v27 = vpop.xlane.xlu1 %4764 }
 0x3b4   :  { %v5235_v61 = vadd.f32 %v5171_v60, %v31_v28  ;;  %5298 = vst.msk [vmem:[%s11025_s4 + $0x60] sm:$0xff] %vm680_vm1, %v5234_v44  ;;  %v4867_v28 = vmax.f32 %v10249_v34, 1.0  ;;  %v4872_v60 = vmax.f32 %v10275_v16, 1.0  ;;  %v4991_v5 = vmul.f32 %v7367_v52, %v107_v63 }
 0x3b6   :  { %7384 = vrcp.f32 %v4867_v28 }
 0x3b7   :  { %7386 = vrcp.f32 %v4872_v60 }
 0x3b8   :  { %7388 = vrcp.f32 %v4873_v39 }
 0x3b9   :  { %7390 = vtanh.f32 %v4990_v7  ;;  %v110_v7 = vld [vmem:[%s11023_s2 + $0xe0] sm:$0xff] }
 0x3ba   :  { %7392 = vtanh.f32 %v4991_v5  ;;  %v111_v5 = vld [vmem:[%s11023_s2 + $0xe8] sm:$0xff] }
 0x3bb   :  { %v36_v59 = vld [vmem:[%s11024_s3 + $0x90] sm:$0xff]  ;;  %7394 = vrcp.f32 %v4870_v31 }
 0x3bc   :  { %5299 = vst.msk [vmem:[%s11025_s4 + $0x68] sm:$0xff] %vm680_vm1, %v5235_v61  ;;  %v5240_v26 = vadd.f32 %v5176_v38, %v36_v59  ;;  %v5116_v59 = vmul.f32 %v7363_v15, %v4860_v14  ;;  %v5175_v38 = vadd.f32 %v9673_v25, %v5111_v53  ;;  %v7369_v14 = vpop.eup %7368  ;;  %7396 = vrcp.f32 %v4871_v32 }
 0x3bd   :  { %v7371_v25 = vpop.eup %7370  ;;  %v5117_v50 = vmul.f32 %v7369_v14, %v4861_v22  ;;  %v113_v22 = vld [vmem:[%s11023_s2 + $0xf8] sm:$0xff] }
 0x3be   :  { %v5180_v40 = vadd.f32 %v9680_v13, %v5116_v59  ;;  %v7373_v46 = vpop.eup %7372  ;;  %v5114_v6 = vmul.f32 %v7371_v25, %v4858_v29 }
 0x3bf   :  { %v7375_v3 = vpop.eup %7374  ;;  %v5181_v53 = vadd.f32 %v9688_v45, %v5117_v50  ;;  %v5115_v29 = vmul.f32 %v7373_v46, %v4859_v35 }
 0x3c0   :  { %v5178_v45 = vadd.f32 %v9685_v51, %v5114_v6 }
 0x3c3   :  { %v37_v18 = vld [vmem:[%s11024_s3 + $0x98] sm:$0xff] }
 0x3c4   :  { %v5241_v44 = vadd.f32 %v5177_v41, %v37_v18  ;;  %5304 = vst.msk [vmem:[%s11025_s4 + $0x90] sm:$0xff] %vm680_vm1, %v5240_v26 }
 0x3cb   :  { %v34_v61 = vld [vmem:[%s11024_s3 + $0x80] sm:$0xff] }
 0x3cc   :  { %5305 = vst.msk [vmem:[%s11025_s4 + $0x98] sm:$0xff] %vm680_vm1, %v5241_v44  ;;  %v5238_v41 = vadd.f32 %v5174_v56, %v34_v61  ;;  %v112_v44 = vld [vmem:[%s11023_s2 + $0xf0] sm:$0xff]  ;;  %v10344_v61 = vpop.xlane.xlu0 %4761  ;;  %v7377_v56 = vpop.eup %7376 }
 0x3cd   :  { %v4876_v63 = vmax.f32 %v10344_v61, 1.0  ;;  %v4996_v35 = vmul.f32 %v7375_v3, %v112_v44  ;;  %v7379_v59 = vpop.eup %7378  ;;  %v116_v44 = vld [vmem:[%s11023_s2 + $0x110] sm:$0xff] }
 0x3ce   :  { %v7381_v51 = vpop.eup %7380 }
 0x3cf   :  { %7398 = vrcp.f32 %v4876_v63 }
 0x3d0   :  { %7400 = vtanh.f32 %v4996_v35  ;;  %v10383_v25 = vpop.xlane.xlu0 %4755 }
 0x3d1   :  { %v4874_v46 = vmax.f32 %v10383_v25, 1.0 }
 0x3d3   :  { %v35_v49 = vld [vmem:[%s11024_s3 + $0x88] sm:$0xff]  ;;  %v40_v18 = vld [vmem:[%s11024_s3 + $0xb0] sm:$0xff] }
 0x3d4   :  { %v5239_v26 = vadd.f32 %v5175_v38, %v35_v49  ;;  %5302 = vst.msk [vmem:[%s11025_s4 + $0x80] sm:$0xff] %vm680_vm1, %v5238_v41  ;;  %v5244_v13 = vadd.f32 %v5180_v40, %v40_v18  ;;  %v4877_v49 = vmax.f32 %v10359_v27, 1.0  ;;  %v5179_v38 = vadd.f32 %v9693_v9, %v5115_v29  ;;  %v7383_v9 = vpop.eup %7382 }
 0x3d5   :  { %v4997_v18 = vmul.f32 %v7377_v56, %v113_v22  ;;  %v11397_v41 = vmax.f32 %v10138_v37, 1.0  ;;  %v5121_v37 = vmul.f32 %v7381_v51, %v4865_v30  ;;  %v4994_v30 = vmul.f32 %v7383_v9, %v110_v7  ;;  %v117_v22 = vld [vmem:[%s11023_s2 + $0x118] sm:$0xff] }
 0x3d7   :  { %v5120_v40 = vmul.f32 %v7379_v59, %v11397_v41  ;;  %7402 = vtanh.f32 %v4997_v18 }
 0x3d8   :  { %7404 = vrcp.f32 %v4877_v49 }
 0x3d9   :  { %v5184_v6 = vadd.f32 %v9700_v8, %v5120_v40  ;;  %v5185_v8 = vadd.f32 %v9708_v48, %v5121_v37  ;;  %7406 = vrcp.f32 %v4874_v46  ;;  %v114_v48 = vld [vmem:[%s11023_s2 + $0x100] sm:$0xff] }
 0x3da   :  { %7408 = vtanh.f32 %v4994_v30 }
 0x3db   :  { %v41_v15 = vld [vmem:[%s11024_s3 + $0xb8] sm:$0xff] }
 0x3dc   :  { %5303 = vst.msk [vmem:[%s11025_s4 + $0x88] sm:$0xff] %vm680_vm1, %v5239_v26  ;;  %v5245_v52 = vadd.f32 %v5181_v53, %v41_v15  ;;  %v7385_v15 = vpop.eup %7384 }
 0x3dd   :  { %v7387_v3 = vpop.eup %7386  ;;  %v4995_v53 = vmul.f32 %v7385_v15, %v111_v5 }
 0x3de   :  { %v5000_v56 = vmul.f32 %v7387_v3, %v116_v44 }
 0x3df   :  { %7410 = vtanh.f32 %v4995_v53 }
 0x3e0   :  { %7412 = vtanh.f32 %v5000_v56 }
 0x3e3   :  { %v38_v24 = vld [vmem:[%s11024_s3 + $0xa0] sm:$0xff] }
 0x3e4   :  { %5308 = vst.msk [vmem:[%s11025_s4 + $0xb0] sm:$0xff] %vm680_vm1, %v5244_v13  ;;  %v5242_v14 = vadd.f32 %v5178_v45, %v38_v24  ;;  %v10398_v13 = vpop.xlane.xlu1 %4758  ;;  %v7389_v24 = vpop.eup %7388 }
 0x3e5   :  { %v4875_v45 = vmax.f32 %v10398_v13, 1.0  ;;  %v7391_v35 = vpop.eup %7390 }
 0x3e6   :  { %v7393_v7 = vpop.eup %7392  ;;  %v5118_v51 = vmul.f32 %v7391_v35, %v4862_v12 }
 0x3e7   :  { %v7395_v41 = vpop.eup %7394  ;;  %v5119_v5 = vmul.f32 %v7393_v7, %v4863_v36 }
 0x3e8   :  { %v10427_v18 = vpop.xlane.xlu1 %4776  ;;  %v7397_v12 = vpop.eup %7396  ;;  %v5182_v9 = vadd.f32 %v9705_v55, %v5118_v51 }
 0x3e9   :  { %v7399_v58 = vpop.eup %7398  ;;  %v5183_v36 = vadd.f32 %v9713_v33, %v5119_v5  ;;  %v4881_v15 = vmax.f32 %v10427_v18, 1.0 }
 0x3ea   :  { %v5004_v30 = vmul.f32 %v7399_v58, %v120_v20 }
 0x3eb   :  { %v39_v17 = vld [vmem:[%s11024_s3 + $0xa8] sm:$0xff] }
 0x3ec   :  { %5309 = vst.msk [vmem:[%s11025_s4 + $0xb8] sm:$0xff] %vm680_vm1, %v5245_v52  ;;  %v5243_v26 = vadd.f32 %v5179_v38, %v39_v17  ;;  %v10421_v17 = vpop.xlane.xlu0 %4773  ;;  %v5001_v52 = vmul.f32 %v7389_v24, %v117_v22  ;;  %v10462_v55 = vpop.xlane.xlu1 %4770  ;;  %v121_v22 = vld [vmem:[%s11023_s2 + $0x138] sm:$0xff]  ;;  %v118_v24 = vld [vmem:[%s11023_s2 + $0x120] sm:$0xff] }
 0x3ed   :  { %v4880_v38 = vmax.f32 %v10421_v17, 1.0  ;;  %v4879_v1 = vmax.f32 %v10462_v55, 1.0  ;;  %v136_v55 = vld [vmem:[%s11023_s2 + $0x1b0] sm:$0xff] }
 0x3ee   :  { %7414 = vtanh.f32 %v5001_v52 }
 0x3ef   :  { %7416 = vrcp.f32 %v4875_v45 }
 0x3f0   :  { %v10456_v37 = vpop.xlane.xlu0 %4767  ;;  %7418 = vrcp.f32 %v4880_v38 }
 0x3f1   :  { %v4878_v3 = vmax.f32 %v10456_v37, 1.0 }
 0x3f3   :  { %v44_v50 = vld [vmem:[%s11024_s3 + $0xd0] sm:$0xff] }
 0x3f4   :  { %5306 = vst.msk [vmem:[%s11025_s4 + $0xa0] sm:$0xff] %vm680_vm1, %v5242_v14  ;;  %v5248_v29 = vadd.f32 %v5184_v6, %v44_v50  ;;  %v115_v14 = vld [vmem:[%s11023_s2 + $0x108] sm:$0xff]  ;;  %v4998_v50 = vmul.f32 %v7395_v41, %v114_v48  ;;  %v7401_v6 = vpop.eup %7400  ;;  %v10482_v0 = vpop.xlane.xlu0 %4785 }
 0x3f5   :  { %v4999_v44 = vmul.f32 %v7397_v12, %v115_v14  ;;  %v5124_v53 = vmul.f32 %v7401_v6, %v4868_v4 }
 0x3f6   :  { %7420 = vtanh.f32 %v4998_v50  ;;  %v119_v50 = vld [vmem:[%s11023_s2 + $0x128] sm:$0xff] }
 0x3f7   :  { %7422 = vtanh.f32 %v4999_v44 }
 0x3f8   :  { %7424 = vtanh.f32 %v5004_v30  ;;  %v10512_v58 = vpop.xlane.xlu0 %4779 }
 0x3f9   :  { %7426 = vrcp.f32 %v4881_v15  ;;  %v4882_v44 = vmax.f32 %v10512_v58, 1.0 }
 0x3fa   :  { %7428 = vrcp.f32 %v4878_v3 }
 0x3fb   :  { %v45_v54 = vld [vmem:[%s11024_s3 + $0xd8] sm:$0xff] }
 0x3fc   :  { %5307 = vst.msk [vmem:[%s11025_s4 + $0xa8] sm:$0xff] %vm680_vm1, %v5243_v26  ;;  %v5249_v59 = vadd.f32 %v5185_v8, %v45_v54  ;;  %5312 = vst.msk [vmem:[%s11025_s4 + $0xd0] sm:$0xff] %vm680_vm1, %v5248_v29  ;;  %v7403_v8 = vpop.eup %7402 }
 0x3fd   :  { %v7405_v29 = vpop.eup %7404  ;;  %v5125_v35 = vmul.f32 %v7403_v8, %v4869_v11  ;;  %v10495_v11 = vpop.xlane.xlu1 %4788 }
 0x3fe   :  { %5313 = vst.msk [vmem:[%s11025_s4 + $0xd8] sm:$0xff] %vm680_vm1, %v5249_v59  ;;  %v7407_v4 = vpop.eup %7406  ;;  %v5188_v59 = vadd.f32 %v9720_v19, %v5124_v53  ;;  %v5005_v48 = vmul.f32 %v7405_v29, %v121_v22  ;;  %v4884_v19 = vmax.f32 %v10482_v0, 1.0  ;;  %v4885_v20 = vmax.f32 %v10495_v11, 1.0 }
 0x3ff   :  { %v7409_v7 = vpop.eup %7408  ;;  %v5189_v51 = vadd.f32 %v9728_v47, %v5125_v35  ;;  %v5002_v14 = vmul.f32 %v7407_v4, %v118_v24  ;;  %v10554_v35 = vpop.xlane.xlu0 %4797 }
 0x400   :  { %v7411_v41 = vpop.eup %7410  ;;  %v5122_v5 = vmul.f32 %v7409_v7, %v4866_v42  ;;  %7430 = vtanh.f32 %v5005_v48  ;;  %v4888_v48 = vmax.f32 %v10554_v35, 1.0 }
 0x401   :  { %v7413_v12 = vpop.eup %7412  ;;  %7432 = vtanh.f32 %v5002_v14  ;;  %v10530_v6 = vpop.xlane.xlu1 %4782 }
 0x402   :  { %v7415_v57 = vpop.eup %7414  ;;  %v5186_v42 = vadd.f32 %v9725_v43, %v5122_v5  ;;  %7434 = vrcp.f32 %v4879_v1  ;;  %v4883_v30 = vmax.f32 %v10530_v6, 1.0 }
 0x403   :  { %7436 = vrcp.f32 %v4884_v19  ;;  %v10603_v61 = vpop.xlane.xlu0 %4791 }
 0x404   :  { %7438 = vrcp.f32 %v4885_v20 }
 0x405   :  { %v42_v40 = vld [vmem:[%s11024_s3 + $0xc0] sm:$0xff]  ;;  %v43_v26 = vld [vmem:[%s11024_s3 + $0xc8] sm:$0xff]  ;;  %7440 = vrcp.f32 %v4882_v44  ;;  %v10566_v7 = vpop.xlane.xlu1 %4800 }
 0x406   :  { %v5246_v54 = vadd.f32 %v5182_v9, %v42_v40  ;;  %v5247_v33 = vadd.f32 %v5183_v36, %v43_v26  ;;  %v5123_v26 = vmul.f32 %v7411_v41, %v4867_v28  ;;  %v5128_v28 = vmul.f32 %v7413_v12, %v4872_v60  ;;  %v124_v36 = vld [vmem:[%s11023_s2 + $0x150] sm:$0xff]  ;;  %v122_v41 = vld [vmem:[%s11023_s2 + $0x140] sm:$0xff] }
 0x407   :  { %v5129_v60 = vmul.f32 %v7415_v57, %v4873_v39  ;;  %v11398_v39 = vld [vmem:[#allocation35_spill] sm:$0xff]  ;;  %v11399_v12 = vld [vmem:[#allocation34_spill] sm:$0xff] }
 0x408   :  { %5310 = vst.msk [vmem:[%s11025_s4 + $0xc0] sm:$0xff] %vm680_vm1, %v5246_v54  ;;  %v7417_v54 = vpop.eup %7416  ;;  %v5187_v43 = vadd.f32 %v9733_v62, %v5123_v26  ;;  %v11400_v26 = vld [vmem:[#allocation17_spill] sm:$0xff] }
 0x409   :  { %v7419_v22 = vpop.eup %7418  ;;  %v5003_v53 = vmul.f32 %v7417_v54, %v119_v50  ;;  %v5193_v29 = vadd.f32 %v11398_v39, %v5129_v60 }
 0x40a   :  { %v7421_v24 = vpop.eup %7420 }
 0x40b   :  { %v7423_v4 = vpop.eup %7422  ;;  %7442 = vtanh.f32 %v5003_v53 }
 0x40f   :  { %v48_v56 = vld [vmem:[%s11024_s3 + $0xf0] sm:$0xff] }
 0x410   :  { %5311 = vst.msk [vmem:[%s11025_s4 + $0xc8] sm:$0xff] %vm680_vm1, %v5247_v33  ;;  %v5252_v40 = vadd.f32 %v5188_v59, %v48_v56  ;;  %v5192_v33 = vadd.f32 %v9739_v2, %v5128_v28  ;;  %v5008_v56 = vmul.f32 %v7419_v22, %v124_v36  ;;  %v5126_v59 = vmul.f32 %v7421_v24, %v4870_v31  ;;  %v11401_v28 = vld [vmem:[#allocation21_spill] sm:$0xff] }
 0x411   :  { %v5127_v31 = vmul.f32 %v7423_v4, %v4871_v32 }
 0x412   :  { %7444 = vtanh.f32 %v5008_v56  ;;  %v11402_v56 = vld [vmem:[#allocation32_spill] sm:$0xff] }
 0x413   :  { %7446 = vrcp.f32 %v4883_v30  ;;  %v5191_v50 = vadd.f32 %v11400_v26, %v5127_v31  ;;  %v127_v26 = vld [vmem:[%s11023_s2 + $0x168] sm:$0xff] }
 0x414   :  { %7448 = vrcp.f32 %v4888_v48 }
 0x417   :  { %v49_v52 = vld [vmem:[%s11024_s3 + $0xf8] sm:$0xff]  ;;  %v46_v47 = vld [vmem:[%s11024_s3 + $0xe0] sm:$0xff] }
 0x418   :  { %v5253_v9 = vadd.f32 %v5189_v51, %v49_v52  ;;  %5316 = vst.msk [vmem:[%s11025_s4 + $0xf0] sm:$0xff] %vm680_vm1, %v5252_v40  ;;  %v5250_v8 = vadd.f32 %v5186_v42, %v46_v47  ;;  %v125_v52 = vld [vmem:[%s11023_s2 + $0x158] sm:$0xff]  ;;  %v7425_v51 = vpop.eup %7424  ;;  %v4889_v40 = vmax.f32 %v10566_v7, 1.0 }
 0x419   :  { %v7427_v5 = vpop.eup %7426  ;;  %v5132_v32 = vmul.f32 %v7425_v51, %v4876_v63  ;;  %v11403_v51 = vld [vmem:[#allocation22_spill] sm:$0xff] }
 0x41a   :  { %v7429_v47 = vpop.eup %7428  ;;  %v5009_v42 = vmul.f32 %v7427_v5, %v125_v52  ;;  %7450 = vrcp.f32 %v4889_v40 }
 0x41b   :  { %v7431_v63 = vpop.eup %7430  ;;  %v5196_v36 = vadd.f32 %v11401_v28, %v5132_v32  ;;  %v5006_v54 = vmul.f32 %v7429_v47, %v122_v41 }
 0x41c   :  { %v7433_v60 = vpop.eup %7432  ;;  %7452 = vtanh.f32 %v5009_v42 }
 0x41d   :  { %v7435_v53 = vpop.eup %7434  ;;  %v5130_v27 = vmul.f32 %v7433_v60, %v4874_v46  ;;  %7454 = vtanh.f32 %v5006_v54  ;;  %v11404_v60 = vld [vmem:[#allocation37_spill] sm:$0xff] }
 0x41f   :  { %v47_v34 = vld [vmem:[%s11024_s3 + $0xe8] sm:$0xff] }
 0x420   :  { %5317 = vst.msk [vmem:[%s11025_s4 + $0xf8] sm:$0xff] %vm680_vm1, %v5253_v9  ;;  %v5251_v10 = vadd.f32 %v5187_v43, %v47_v34  ;;  %v5190_v9 = vadd.f32 %v11399_v12, %v5126_v59  ;;  %v123_v43 = vld [vmem:[%s11023_s2 + $0x148] sm:$0xff]  ;;  %v10645_v59 = vpop.xlane.xlu0 %4809 }
 0x421   :  { %v5007_v46 = vmul.f32 %v7435_v53, %v123_v43 }
 0x427   :  { %v52_v16 = vld [vmem:[%s11024_s3 + $0x110] sm:$0xff]  ;;  %v53_v62 = vld [vmem:[%s11024_s3 + $0x118] sm:$0xff] }
 0x428   :  { %5314 = vst.msk [vmem:[%s11025_s4 + $0xe0] sm:$0xff] %vm680_vm1, %v5250_v8  ;;  %v5256_v2 = vadd.f32 %v5192_v33, %v52_v16  ;;  %5315 = vst.msk [vmem:[%s11025_s4 + $0xe8] sm:$0xff] %vm680_vm1, %v5251_v10  ;;  %v5257_v14 = vadd.f32 %v5193_v29, %v53_v62  ;;  %v10611_v16 = vpop.xlane.xlu1 %4794  ;;  %v5133_v8 = vmul.f32 %v7431_v63, %v4877_v49  ;;  %v128_v33 = vld [vmem:[%s11023_s2 + $0x170] sm:$0xff]  ;;  %v4886_v62 = vmax.f32 %v10603_v61, 1.0  ;;  %v129_v49 = vld [vmem:[%s11023_s2 + $0x178] sm:$0xff]  ;;  %v7437_v29 = vpop.eup %7436 }
 0x429   :  { %v4887_v39 = vmax.f32 %v10611_v16, 1.0  ;;  %v7439_v52 = vpop.eup %7438  ;;  %v132_v63 = vld [vmem:[%s11023_s2 + $0x190] sm:$0xff]  ;;  %v139_v16 = vld [vmem:[%s11023_s2 + $0x1c8] sm:$0xff] }
 0x42a   :  { %v5197_v4 = vadd.f32 %v11402_v56, %v5133_v8  ;;  %7456 = vrcp.f32 %v4886_v62  ;;  %v7441_v41 = vpop.eup %7440  ;;  %v5013_v12 = vmul.f32 %v7439_v52, %v129_v49  ;;  %v130_v56 = vld [vmem:[%s11023_s2 + $0x180] sm:$0xff] }
 0x42b   :  { %7458 = vrcp.f32 %v4887_v39 }
 0x42c   :  { %v10654_v31 = vpop.xlane.xlu1 %4812  ;;  %7460 = vtanh.f32 %v5007_v46 }
 0x42f   :  { %v50_v21 = vld [vmem:[%s11024_s3 + $0x100] sm:$0xff] }
 0x430   :  { %5320 = vst.msk [vmem:[%s11025_s4 + $0x110] sm:$0xff] %vm680_vm1, %v5256_v2  ;;  %v5254_v34 = vadd.f32 %v5190_v9, %v50_v21  ;;  %v126_v2 = vld [vmem:[%s11023_s2 + $0x160] sm:$0xff]  ;;  %v5012_v21 = vmul.f32 %v7437_v29, %v128_v33  ;;  %v4892_v9 = vmax.f32 %v10645_v59, 1.0  ;;  %v10684_v54 = vpop.xlane.xlu1 %4806  ;;  %v144_v59 = vld [vmem:[%s11023_s2 + $0x1f0] sm:$0xff] }
 0x431   :  { %v5010_v47 = vmul.f32 %v7441_v41, %v126_v2 }
 0x432   :  { %7462 = vtanh.f32 %v5012_v21 }
 0x433   :  { %7464 = vtanh.f32 %v5013_v12 }
 0x434   :  { %7466 = vtanh.f32 %v5010_v47  ;;  %v11407_v47 = vld [vmem:[#allocation41_spill] sm:$0xff] }
 0x435   :  { %7468 = vrcp.f32 %v4892_v9 }
 0x437   :  { %v51_v23 = vld [vmem:[%s11024_s3 + $0x108] sm:$0xff] }
 0x438   :  { %5321 = vst.msk [vmem:[%s11025_s4 + $0x118] sm:$0xff] %vm680_vm1, %v5257_v14  ;;  %v5255_v22 = vadd.f32 %v5191_v50, %v51_v23  ;;  %v5194_v14 = vadd.f32 %v11403_v51, %v5130_v27  ;;  %v7443_v23 = vpop.eup %7442  ;;  %v4893_v50 = vmax.f32 %v10654_v31, 1.0  ;;  %v131_v51 = vld [vmem:[%s11023_s2 + $0x188] sm:$0xff] }
 0x439   :  { %v5131_v42 = vmul.f32 %v7443_v23, %v4875_v45  ;;  %v133_v45 = vld [vmem:[%s11023_s2 + $0x198] sm:$0xff] }
 0x43a   :  { %7470 = vrcp.f32 %v4893_v50 }
 0x43f   :  { %v56_v57 = vld [vmem:[%s11024_s3 + $0x130] sm:$0xff] }
 0x440   :  { %5318 = vst.msk [vmem:[%s11025_s4 + $0x100] sm:$0xff] %vm680_vm1, %v5254_v34  ;;  %v5260_v24 = vadd.f32 %v5196_v36, %v56_v57  ;;  %v7445_v57 = vpop.eup %7444  ;;  %v10670_v34 = vpop.xlane.xlu0 %4803 }
 0x441   :  { %v7447_v28 = vpop.eup %7446  ;;  %v5136_v13 = vmul.f32 %v7445_v57, %v4880_v38  ;;  %v11405_v38 = vld [vmem:[#allocation39_spill] sm:$0xff] }
 0x442   :  { %v7449_v43 = vpop.eup %7448  ;;  %v5011_v33 = vmul.f32 %v7447_v28, %v127_v26 }
 0x443   :  { %v7451_v17 = vpop.eup %7450  ;;  %v5200_v53 = vadd.f32 %v11405_v38, %v5136_v13  ;;  %v11408_v38 = vld [vmem:[#allocation45_spill] sm:$0xff] }
 0x444   :  { %v7453_v27 = vpop.eup %7452  ;;  %7472 = vtanh.f32 %v5011_v33  ;;  %v5017_v29 = vmul.f32 %v7451_v17, %v133_v45 }
 0x445   :  { %v7455_v46 = vpop.eup %7454  ;;  %v5137_v52 = vmul.f32 %v7453_v27, %v4881_v15 }
 0x446   :  { %v7457_v21 = vpop.eup %7456  ;;  %v5134_v18 = vmul.f32 %v7455_v46, %v4878_v3 }
 0x447   :  { %v57_v10 = vld [vmem:[%s11024_s3 + $0x138] sm:$0xff]  ;;  %v7459_v15 = vpop.eup %7458 }
 0x448   :  { %5319 = vst.msk [vmem:[%s11025_s4 + $0x108] sm:$0xff] %vm680_vm1, %v5255_v22  ;;  %v5261_v5 = vadd.f32 %v5197_v4, %v57_v10  ;;  %v5195_v22 = vadd.f32 %v11404_v60, %v5131_v42  ;;  %v4890_v10 = vmax.f32 %v10670_v34, 1.0  ;;  %v4891_v4 = vmax.f32 %v10684_v54, 1.0  ;;  %v7461_v3 = vpop.eup %7460  ;;  %v11419_v34 = vld [vmem:[#allocation8_spill] sm:$0xff] }
 0x449   :  { %v5198_v26 = vadd.f32 %v11407_v47, %v5134_v18  ;;  %v5015_v57 = vmul.f32 %v7459_v15, %v131_v51  ;;  %v7463_v28 = vpop.eup %7462  ;;  %v5135_v13 = vmul.f32 %v7461_v3, %v4879_v1  ;;  %v134_v47 = vld [vmem:[%s11023_s2 + $0x1a0] sm:$0xff] }
 0x44a   :  { %v7465_v60 = vpop.eup %7464  ;;  %v5140_v33 = vmul.f32 %v7463_v28, %v4884_v19 }
 0x44b   :  { %v7467_v17 = vpop.eup %7466  ;;  %v5141_v19 = vmul.f32 %v7465_v60, %v4885_v20 }
 0x44c   :  { %v7469_v27 = vpop.eup %7468  ;;  %v5138_v20 = vmul.f32 %v7467_v17, %v4882_v44  ;;  %v11411_v44 = vld [vmem:[#allocation49_spill] sm:$0xff] }
 0x44d   :  { %v7471_v46 = vpop.eup %7470 }
 0x44e   :  { %v7473_v18 = vpop.eup %7472  ;;  %v5202_v15 = vadd.f32 %v11411_v44, %v5138_v20  ;;  %v11415_v44 = vld [vmem:[#allocation4_spill] sm:$0xff] }
 0x44f   :  { %v54_v25 = vld [vmem:[%s11024_s3 + $0x120] sm:$0xff]  ;;  %v5139_v3 = vmul.f32 %v7473_v18, %v4883_v30  ;;  %v135_v30 = vld [vmem:[%s11023_s2 + $0x1a8] sm:$0xff] }
 0x450   :  { %5324 = vst.msk [vmem:[%s11025_s4 + $0x130] sm:$0xff] %vm680_vm1, %v5260_v24  ;;  %v5258_v32 = vadd.f32 %v5194_v14, %v54_v25  ;;  %5325 = vst.msk [vmem:[%s11025_s4 + $0x138] sm:$0xff] %vm680_vm1, %v5261_v5  ;;  %v5016_v24 = vmul.f32 %v7449_v43, %v132_v63  ;;  %v10700_v25 = vpop.xlane.xlu0 %4821  ;;  %v10707_v14 = vpop.xlane.xlu1 %4824  ;;  %v11406_v5 = vld [vmem:[#allocation43_spill] sm:$0xff] }
 0x451   :  { %v5201_v12 = vadd.f32 %v11406_v5, %v5137_v52  ;;  %v4896_v37 = vmax.f32 %v10700_v25, 1.0  ;;  %v4897_v42 = vmax.f32 %v10707_v14, 1.0  ;;  %v11410_v52 = vld [vmem:[#allocation68_spill] sm:$0xff]  ;;  %v11422_v14 = vld [vmem:[#allocation15_spill] sm:$0xff] }
 0x452   :  { %5322 = vst.msk [vmem:[%s11025_s4 + $0x120] sm:$0xff] %vm680_vm1, %v5258_v32  ;;  %7474 = vtanh.f32 %v5016_v24  ;;  %v5014_v32 = vmul.f32 %v7457_v21, %v130_v56  ;;  %v137_v24 = vld [vmem:[%s11023_s2 + $0x1b8] sm:$0xff]  ;;  %v5205_v51 = vadd.f32 %v11410_v52, %v5141_v19 }
 0x453   :  { %7476 = vtanh.f32 %v5017_v29  ;;  %v5021_v5 = vmul.f32 %v7471_v46, %v137_v24  ;;  %v141_v52 = vld [vmem:[%s11023_s2 + $0x1d8] sm:$0xff] }
 0x454   :  { %7478 = vrcp.f32 %v4890_v10  ;;  %v10733_v63 = vpop.xlane.xlu0 %4815  ;;  %v10738_v43 = vpop.xlane.xlu1 %4818 }
 0x455   :  { %7480 = vrcp.f32 %v4891_v4  ;;  %v4894_v45 = vmax.f32 %v10733_v63, 1.0  ;;  %v4895_v1 = vmax.f32 %v10738_v43, 1.0 }
 0x456   :  { %7482 = vtanh.f32 %v5014_v32 }
 0x457   :  { %7484 = vtanh.f32 %v5015_v57 }
 0x458   :  { %7486 = vrcp.f32 %v4896_v37  ;;  %v10776_v56 = vpop.xlane.xlu0 %4827 }
 0x459   :  { %v55_v36 = vld [vmem:[%s11024_s3 + $0x128] sm:$0xff]  ;;  %v60_v8 = vld [vmem:[%s11024_s3 + $0x150] sm:$0xff]  ;;  %7488 = vrcp.f32 %v4897_v42 }
 0x45a   :  { %v5259_v49 = vadd.f32 %v5195_v22, %v55_v36  ;;  %v5264_v2 = vadd.f32 %v5200_v53, %v60_v8  ;;  %v5199_v53 = vadd.f32 %v11408_v38, %v5135_v13  ;;  %7490 = vrcp.f32 %v4894_v45  ;;  %v11413_v38 = vld [vmem:[#allocation24_spill] sm:$0xff] }
 0x45b   :  { %7492 = vrcp.f32 %v4895_v1 }
 0x45c   :  { %5323 = vst.msk [vmem:[%s11025_s4 + $0x128] sm:$0xff] %vm680_vm1, %v5259_v49  ;;  %v11409_v49 = vld [vmem:[#allocation47_spill] sm:$0xff]  ;;  %v10812_v60 = vpop.xlane.xlu0 %4833 }
 0x45d   :  { %v5204_v29 = vadd.f32 %v11409_v49, %v5140_v33 }
 0x463   :  { %v61_v41 = vld [vmem:[%s11024_s3 + $0x158] sm:$0xff] }
 0x464   :  { %5328 = vst.msk [vmem:[%s11025_s4 + $0x150] sm:$0xff] %vm680_vm1, %v5264_v2  ;;  %v5265_v36 = vadd.f32 %v5201_v12, %v61_v41  ;;  %v5020_v41 = vmul.f32 %v7469_v27, %v136_v55  ;;  %v10787_v12 = vpop.xlane.xlu1 %4830  ;;  %v4900_v55 = vmax.f32 %v10812_v60, 1.0  ;;  %v11414_v27 = vld [vmem:[#allocation5_spill] sm:$0xff] }
 0x465   :  { %v4899_v13 = vmax.f32 %v10787_v12, 1.0  ;;  %v11426_v12 = vld [vmem:[#allocation26_spill] sm:$0xff] }
 0x466   :  { %7494 = vtanh.f32 %v5020_v41 }
 0x467   :  { %7496 = vtanh.f32 %v5021_v5 }
 0x468   :  { %v10837_v7 = vpop.xlane.xlu1 %4836 }
 0x46b   :  { %v58_v23 = vld [vmem:[%s11024_s3 + $0x140] sm:$0xff]  ;;  %v59_v8 = vld [vmem:[%s11024_s3 + $0x148] sm:$0xff] }
 0x46c   :  { %v5262_v22 = vadd.f32 %v5198_v26, %v58_v23  ;;  %5329 = vst.msk [vmem:[%s11025_s4 + $0x158] sm:$0xff] %vm680_vm1, %v5265_v36  ;;  %v5263_v2 = vadd.f32 %v5199_v53, %v59_v8  ;;  %v7475_v23 = vpop.eup %7474  ;;  %v4898_v26 = vmax.f32 %v10776_v56, 1.0  ;;  %v11412_v8 = vld [vmem:[#allocation3_spill] sm:$0xff]  ;;  %v11425_v56 = vld [vmem:[#allocation52_spill] sm:$0xff] }
 0x46d   :  { %v7477_v57 = vpop.eup %7476  ;;  %v5144_v6 = vmul.f32 %v7475_v23, %v4888_v48  ;;  %v5203_v33 = vadd.f32 %v11412_v8, %v5139_v3  ;;  %v142_v8 = vld [vmem:[%s11023_s2 + $0x1e0] sm:$0xff] }
 0x46e   :  { %v5145_v48 = vmul.f32 %v7477_v57, %v4889_v40  ;;  %7498 = vrcp.f32 %v4898_v26 }
 0x46f   :  { %v5208_v53 = vadd.f32 %v11413_v38, %v5144_v6  ;;  %7500 = vrcp.f32 %v4899_v13 }
 0x470   :  { %v5209_v49 = vadd.f32 %v11414_v27, %v5145_v48  ;;  %7502 = vrcp.f32 %v4900_v55  ;;  %v143_v48 = vld [vmem:[%s11023_s2 + $0x1e8] sm:$0xff] }
 0x473   :  { %v64_v0 = vld [vmem:[%s11024_s3 + $0x170] sm:$0xff] }
 0x474   :  { %5326 = vst.msk [vmem:[%s11025_s4 + $0x140] sm:$0xff] %vm680_vm1, %v5262_v22  ;;  %v5268_v58 = vadd.f32 %v5204_v29, %v64_v0  ;;  %v7479_v22 = vpop.eup %7478 }
 0x475   :  { %v7481_v17 = vpop.eup %7480  ;;  %v5018_v19 = vmul.f32 %v7479_v22, %v134_v47 }
 0x476   :  { %v7483_v40 = vpop.eup %7482  ;;  %v5019_v29 = vmul.f32 %v7481_v17, %v135_v30 }
 0x477   :  { %v7485_v20 = vpop.eup %7484  ;;  %7504 = vtanh.f32 %v5018_v19 }
 0x478   :  { %v5143_v61 = vmul.f32 %v7485_v20, %v4887_v39  ;;  %7506 = vtanh.f32 %v5019_v29 }
 0x47b   :  { %v65_v11 = vld [vmem:[%s11024_s3 + $0x178] sm:$0xff]  ;;  %v62_v21 = vld [vmem:[%s11024_s3 + $0x160] sm:$0xff] }
 0x47c   :  { %5327 = vst.msk [vmem:[%s11025_s4 + $0x148] sm:$0xff] %vm680_vm1, %v5263_v2  ;;  %v5269_v32 = vadd.f32 %v5205_v51, %v65_v11  ;;  %5332 = vst.msk [vmem:[%s11025_s4 + $0x170] sm:$0xff] %vm680_vm1, %v5268_v58  ;;  %v5266_v28 = vadd.f32 %v5202_v15, %v62_v21  ;;  %v140_v11 = vld [vmem:[%s11023_s2 + $0x1d0] sm:$0xff]  ;;  %v5142_v2 = vmul.f32 %v7483_v40, %v4886_v62  ;;  %v4901_v51 = vmax.f32 %v10837_v7, 1.0  ;;  %v7487_v21 = vpop.eup %7486  ;;  %v138_v62 = vld [vmem:[%s11023_s2 + $0x1c0] sm:$0xff] }
 0x47d   :  { %v7489_v58 = vpop.eup %7488  ;;  %v5024_v23 = vmul.f32 %v7487_v21, %v140_v11 }
 0x47e   :  { %v5206_v15 = vadd.f32 %v11415_v44, %v5142_v2  ;;  %7508 = vrcp.f32 %v4901_v51  ;;  %v7491_v39 = vpop.eup %7490  ;;  %v5025_v47 = vmul.f32 %v7489_v58, %v141_v52 }
 0x47f   :  { %v7493_v57 = vpop.eup %7492  ;;  %7510 = vtanh.f32 %v5024_v23 }
 0x480   :  { %v7495_v6 = vpop.eup %7494  ;;  %7512 = vtanh.f32 %v5025_v47  ;;  %v5023_v22 = vmul.f32 %v7493_v57, %v139_v16  ;;  %v11421_v57 = vld [vmem:[#allocation11_spill] sm:$0xff] }
 0x483   :  { %v63_v36 = vld [vmem:[%s11024_s3 + $0x168] sm:$0xff] }
 0x484   :  { %5333 = vst.msk [vmem:[%s11025_s4 + $0x178] sm:$0xff] %vm680_vm1, %v5269_v32  ;;  %v5267_v24 = vadd.f32 %v5203_v33, %v63_v36  ;;  %v11416_v32 = vld [vmem:[#allocation6_spill] sm:$0xff]  ;;  %v5022_v36 = vmul.f32 %v7491_v39, %v138_v62  ;;  %v7497_v33 = vpop.eup %7496 }
 0x485   :  { %v5207_v3 = vadd.f32 %v11416_v32, %v5143_v61  ;;  %v7499_v17 = vpop.eup %7498 }
 0x486   :  { %7514 = vtanh.f32 %v5022_v36 }
 0x487   :  { %7516 = vtanh.f32 %v5023_v22  ;;  %v11423_v22 = vld [vmem:[#allocation12_spill] sm:$0xff] }
 0x48b   :  { %v68_v35 = vld [vmem:[%s11024_s3 + $0x190] sm:$0xff] }
 0x48c   :  { %5330 = vst.msk [vmem:[%s11025_s4 + $0x160] sm:$0xff] %vm680_vm1, %v5266_v28  ;;  %v5272_v46 = vadd.f32 %v5208_v53, %v68_v35  ;;  %v5148_v35 = vmul.f32 %v7495_v6, %v4892_v9  ;;  %v5149_v53 = vmul.f32 %v7497_v33, %v4893_v50  ;;  %v7501_v9 = vpop.eup %7500 }
 0x48d   :  { %v7503_v27 = vpop.eup %7502  ;;  %v5027_v11 = vmul.f32 %v7501_v9, %v143_v48 }
 0x48e   :  { %v7505_v20 = vpop.eup %7504  ;;  %v5028_v50 = vmul.f32 %v7503_v27, %v144_v59 }
 0x48f   :  { %v7507_v2 = vpop.eup %7506  ;;  %v5146_v21 = vmul.f32 %v7505_v20, %v4890_v10 }
 0x490   :  { %v5147_v61 = vmul.f32 %v7507_v2, %v4891_v4 }
 0x491   :  { %v5210_v10 = vadd.f32 %v11419_v34, %v5146_v21 }
 0x493   :  { %v69_v0 = vld [vmem:[%s11024_s3 + $0x198] sm:$0xff] }
 0x494   :  { %5331 = vst.msk [vmem:[%s11025_s4 + $0x168] sm:$0xff] %vm680_vm1, %v5267_v24  ;;  %v5273_v41 = vadd.f32 %v5209_v49, %v69_v0  ;;  %v11417_v0 = vld [vmem:[#allocation7_spill] sm:$0xff]  ;;  %v5026_v24 = vmul.f32 %v7499_v17, %v142_v8  ;;  %v11418_v49 = vld [vmem:[#allocation9_spill] sm:$0xff] }
 0x495   :  { %v5212_v19 = vadd.f32 %v11417_v0, %v5148_v35  ;;  %v5213_v29 = vadd.f32 %v11418_v49, %v5149_v53  ;;  %v11424_v35 = vld [vmem:[#allocation27_spill] sm:$0xff]  ;;  %v11427_v49 = vld [vmem:[#allocation18_spill] sm:$0xff] }
 0x496   :  { %7518 = vtanh.f32 %v5026_v24 }
 0x497   :  { %7520 = vtanh.f32 %v5027_v11 }
 0x498   :  { %7522 = vtanh.f32 %v5028_v50 }
 0x49b   :  { %v66_v18 = vld [vmem:[%s11024_s3 + $0x180] sm:$0xff] }
 0x49c   :  { %5336 = vst.msk [vmem:[%s11025_s4 + $0x190] sm:$0xff] %vm680_vm1, %v5272_v46  ;;  %v5270_v28 = vadd.f32 %v5206_v15, %v66_v18  ;;  %v145_v46 = vld [vmem:[%s11023_s2 + $0x1f8] sm:$0xff]  ;;  %v11420_v15 = vld [vmem:[#allocation10_spill] sm:$0xff] }
 0x4a3   :  { %v67_v5 = vld [vmem:[%s11024_s3 + $0x188] sm:$0xff] }
 0x4a4   :  { %5337 = vst.msk [vmem:[%s11025_s4 + $0x198] sm:$0xff] %vm680_vm1, %v5273_v41  ;;  %v5271_v30 = vadd.f32 %v5207_v3, %v67_v5  ;;  %5334 = vst.msk [vmem:[%s11025_s4 + $0x180] sm:$0xff] %vm680_vm1, %v5270_v28  ;;  %v7509_v41 = vpop.eup %7508  ;;  %v5211_v5 = vadd.f32 %v11420_v15, %v5147_v61 }
 0x4a5   :  { %v5029_v58 = vmul.f32 %v7509_v41, %v145_v46  ;;  %v7511_v44 = vpop.eup %7510 }
 0x4a6   :  { %5335 = vst.msk [vmem:[%s11025_s4 + $0x188] sm:$0xff] %vm680_vm1, %v5271_v30  ;;  %v7513_v23 = vpop.eup %7512  ;;  %v5152_v54 = vmul.f32 %v7511_v44, %v4896_v37 }
 0x4a7   :  { %7524 = vtanh.f32 %v5029_v58  ;;  %v7515_v4 = vpop.eup %7514  ;;  %v5153_v3 = vmul.f32 %v7513_v23, %v4897_v42 }
 0x4a8   :  { %v7517_v47 = vpop.eup %7516  ;;  %v5216_v28 = vadd.f32 %v11421_v57, %v5152_v54  ;;  %v5150_v37 = vmul.f32 %v7515_v4, %v4894_v45 }
 0x4a9   :  { %v5217_v42 = vadd.f32 %v11422_v14, %v5153_v3  ;;  %v5151_v6 = vmul.f32 %v7517_v47, %v4895_v1  ;;  %v7519_v45 = vpop.eup %7518 }
 0x4aa   :  { %v5214_v8 = vadd.f32 %v11423_v22, %v5150_v37  ;;  %v7521_v17 = vpop.eup %7520  ;;  %v5154_v43 = vmul.f32 %v7519_v45, %v4898_v26 }
 0x4ab   :  { %v5215_v48 = vadd.f32 %v11424_v35, %v5151_v6  ;;  %v7523_v1 = vpop.eup %7522  ;;  %v5155_v9 = vmul.f32 %v7521_v17, %v4899_v13 }
 0x4ac   :  { %v5218_v26 = vadd.f32 %v11425_v56, %v5154_v43 }
 0x4ad   :  { %v72_v38 = vld [vmem:[%s11024_s3 + $0x1b0] sm:$0xff]  ;;  %v73_v40 = vld [vmem:[%s11024_s3 + $0x1b8] sm:$0xff]  ;;  %v5219_v13 = vadd.f32 %v11426_v12, %v5155_v9 }
 0x4ae   :  { %v5276_v31 = vadd.f32 %v5212_v19, %v72_v38  ;;  %v5277_v52 = vadd.f32 %v5213_v29, %v73_v40  ;;  %v5156_v19 = vmul.f32 %v7523_v1, %v4900_v55 }
 0x4b0   :  { %5340 = vst.msk [vmem:[%s11025_s4 + $0x1b0] sm:$0xff] %vm680_vm1, %v5276_v31  ;;  %v5220_v29 = vadd.f32 %v11427_v49, %v5156_v19  ;;  %v11428_v31 = vld [vmem:[#allocation25_spill] sm:$0xff] }
 0x4b1   :  { %v7525_v24 = vpop.eup %7524 }
 0x4b2   :  { %v5157_v60 = vmul.f32 %v7525_v24, %v4901_v51 }
 0x4b4   :  { %v5221_v50 = vadd.f32 %v11428_v31, %v5157_v60 }
 0x4b7   :  { %v70_v18 = vld [vmem:[%s11024_s3 + $0x1a0] sm:$0xff] }
 0x4b8   :  { %5341 = vst.msk [vmem:[%s11025_s4 + $0x1b8] sm:$0xff] %vm680_vm1, %v5277_v52  ;;  %v5274_v16 = vadd.f32 %v5210_v10, %v70_v18 }
 0x4bf   :  { %v71_v62 = vld [vmem:[%s11024_s3 + $0x1a8] sm:$0xff]  ;;  %v76_v32 = vld [vmem:[%s11024_s3 + $0x1d0] sm:$0xff] }
 0x4c0   :  { %v5275_v39 = vadd.f32 %v5211_v5, %v71_v62  ;;  %5338 = vst.msk [vmem:[%s11025_s4 + $0x1a0] sm:$0xff] %vm680_vm1, %v5274_v16  ;;  %v5280_v30 = vadd.f32 %v5216_v28, %v76_v32 }
 0x4c7   :  { %v77_v25 = vld [vmem:[%s11024_s3 + $0x1d8] sm:$0xff] }
 0x4c8   :  { %5339 = vst.msk [vmem:[%s11025_s4 + $0x1a8] sm:$0xff] %vm680_vm1, %v5275_v39  ;;  %v5281_v33 = vadd.f32 %v5217_v42, %v77_v25 }
 0x4cf   :  { %v74_v36 = vld [vmem:[%s11024_s3 + $0x1c0] sm:$0xff]  ;;  %v75_v63 = vld [vmem:[%s11024_s3 + $0x1c8] sm:$0xff] }
 0x4d0   :  { %5344 = vst.msk [vmem:[%s11025_s4 + $0x1d0] sm:$0xff] %vm680_vm1, %v5280_v30  ;;  %v5278_v38 = vadd.f32 %v5214_v8, %v74_v36  ;;  %5345 = vst.msk [vmem:[%s11025_s4 + $0x1d8] sm:$0xff] %vm680_vm1, %v5281_v33  ;;  %v5279_v53 = vadd.f32 %v5215_v48, %v75_v63 }
 0x4d7   :  { %v78_v59 = vld [vmem:[%s11024_s3 + $0x1e0] sm:$0xff] }
 0x4d8   :  { %5342 = vst.msk [vmem:[%s11025_s4 + $0x1c0] sm:$0xff] %vm680_vm1, %v5278_v38  ;;  %v5282_v27 = vadd.f32 %v5218_v26, %v78_v59 }
 0x4df   :  { %v79_v0 = vld [vmem:[%s11024_s3 + $0x1e8] sm:$0xff] }
 0x4e0   :  { %5343 = vst.msk [vmem:[%s11025_s4 + $0x1c8] sm:$0xff] %vm680_vm1, %v5279_v53  ;;  %v5283_v11 = vadd.f32 %v5219_v13, %v79_v0 }
 0x4e7   :  { %v80_v40 = vld [vmem:[%s11024_s3 + $0x1f0] sm:$0xff] }
 0x4e8   :  { %5346 = vst.msk [vmem:[%s11025_s4 + $0x1e0] sm:$0xff] %vm680_vm1, %v5282_v27  ;;  %v5284_v55 = vadd.f32 %v5220_v29, %v80_v40 }
 0x4ef   :  { %v81_v20 = vld [vmem:[%s11024_s3 + $0x1f8] sm:$0xff] }
 0x4f0   :  { %5347 = vst.msk [vmem:[%s11025_s4 + $0x1e8] sm:$0xff] %vm680_vm1, %v5283_v11  ;;  %5348 = vst.msk [vmem:[%s11025_s4 + $0x1f0] sm:$0xff] %vm680_vm1, %v5284_v55  ;;  %v5285_v7 = vadd.f32 %v5221_v50, %v81_v20 }
 0x4f2   :  { %5349 = vst.msk [vmem:[%s11025_s4 + $0x1f8] sm:$0xff] %vm680_vm1, %v5285_v7 }

</bundles_post_ra>
